<compile_context>
chip_gen: v5e
topology: v5e:2x2
jax: 0.10.0
libtpu: 0.0.40
codegen_flags: <defaults>
</compile_context>

<pallas_src>
import math
import jax
import jax.numpy as jnp
import numpy as np
from jax.experimental import pallas as pl
from jax.experimental.pallas import tpu as pltpu

EMBD_DIM = 100
FFN_DIM = 300
HEADS = 5
LAYERS = 5
MAX_LEN = 60
HEAD_DIM = EMBD_DIM // HEADS          # 20
LN_EPS = 1e-5
NEG_INF = -1e30                        # numerically -inf for f32 softmax

# hardware-padded shapes (lane = 128, sublane = 8)
D_PAD = 128                            # model dim 100 -> 128
S_PAD = 64                             # seq len  60 -> 64
FFN_PAD = 384                          # ffn dim 300 -> 384
HD_PAD = 128                           # head dim 20 -> 128 (lane dense)
HW = HEADS * HD_PAD                    # 640


def _round_up(x, m):
    return (x + m - 1) // m * m


# ----------------------------------------------------------------------------
# in-kernel math helpers (operate on padded, zero-extended tensors)
# ----------------------------------------------------------------------------
def _layer_norm_masked(x, w, b, dmask):
    """LayerNorm over the true EMBD_DIM columns; padded cols of x are zero and
    stay zero in the output (w, b are zero-padded)."""
    inv_d = 1.0 / EMBD_DIM
    mu = jnp.sum(x, axis=-1, keepdims=True) * inv_d
    diff = jnp.where(dmask, x - mu, 0.0)
    var = jnp.sum(diff * diff, axis=-1, keepdims=True) * inv_d
    return diff * jax.lax.rsqrt(var + LN_EPS) * w + b


def _attend(q2d, k2d, v2d, wo, bo, mask):
    """Multi-head attention on padded head layout.
    q2d/k2d/v2d: (S_PAD, HEADS*HD_PAD) with head h in lane-aligned 128-slice h.
    wo: (HEADS*HD_PAD, D_PAD) per-head output projection (pre-transposed).
    mask: (S_PAD, S_PAD) additive mask. Returns (S_PAD, D_PAD)."""
    scale = 1.0 / math.sqrt(HEAD_DIM)
    acc = jnp.zeros((S_PAD, D_PAD), jnp.float32)
    for h in range(HEADS):
        c0 = h * HD_PAD
        qh = q2d[:, c0:c0 + HD_PAD]
        kh = k2d[:, c0:c0 + HD_PAD]
        vh = v2d[:, c0:c0 + HD_PAD]
        # q @ k^T : contract last dims (no materialized transpose)
        s = jax.lax.dot_general(qh, kh, (((1,), (1,)), ((), ())),
                                preferred_element_type=jnp.float32) * scale
        s = s + mask
        s = s - jnp.max(s, axis=-1, keepdims=True)
        p = jnp.exp(s)
        p = p * pl.reciprocal(jnp.sum(p, axis=-1, keepdims=True), approx=True)
        ctx = jnp.dot(p, vh, preferred_element_type=jnp.float32)
        # fold output projection per head (no concat)
        acc = acc + jnp.dot(ctx, wo[c0:c0 + HD_PAD, :],
                            preferred_element_type=jnp.float32)
    return acc + bo


# ----------------------------------------------------------------------------
# fused Pallas kernel: all decoder layers + final linear
# ----------------------------------------------------------------------------
def fused_decoder_kernel(tgt_ref, mem_ref,
                         sa_wqkv, sa_bqkv, sa_wo, sa_bo,
                         ca_wq, ca_bq, ca_wkv, ca_bkv, ca_wo, ca_bo,
                         l1w, l1b, l2w, l2b,
                         n1w, n1b, n2w, n2b, n3w, n3b,
                         fw, fb,
                         out_ref,
                         x_scr):
    l = pl.program_id(1)

    @pl.when(l == 0)
    def _():
        x_scr[...] = tgt_ref[0]

    x = x_scr[...]            # (S_PAD, D_PAD), running activation
    mem = mem_ref[0]          # (S_PAD, D_PAD)

    # masks generated in-kernel
    row = jax.lax.broadcasted_iota(jnp.int32, (S_PAD, S_PAD), 0)
    col = jax.lax.broadcasted_iota(jnp.int32, (S_PAD, S_PAD), 1)
    causal = jnp.where(col > row, NEG_INF, 0.0).astype(jnp.float32)
    kpad = jnp.where(col >= MAX_LEN, NEG_INF, 0.0).astype(jnp.float32)
    dcol = jax.lax.broadcasted_iota(jnp.int32, (S_PAD, D_PAD), 1)
    dmask = dcol < EMBD_DIM

    # --- self attention (causal) + residual + post-norm ---
    qkv = jnp.dot(x, sa_wqkv[0], preferred_element_type=jnp.float32) + sa_bqkv[0]
    sa = _attend(qkv[:, 0:HW], qkv[:, HW:2 * HW], qkv[:, 2 * HW:3 * HW],
                 sa_wo[0], sa_bo[0], causal)
    x = _layer_norm_masked(x + sa, n1w[0], n1b[0], dmask)

    # --- cross attention to memory + residual + post-norm ---
    q = jnp.dot(x, ca_wq[0], preferred_element_type=jnp.float32) + ca_bq[0]
    kv = jnp.dot(mem, ca_wkv[0], preferred_element_type=jnp.float32) + ca_bkv[0]
    ca = _attend(q, kv[:, 0:HW], kv[:, HW:2 * HW],
                 ca_wo[0], ca_bo[0], kpad)
    x = _layer_norm_masked(x + ca, n2w[0], n2b[0], dmask)

    # --- feed-forward (ReLU) + residual + post-norm ---
    h1 = jnp.maximum(
        jnp.dot(x, l1w[0], preferred_element_type=jnp.float32) + l1b[0], 0.0)
    ff = jnp.dot(h1, l2w[0], preferred_element_type=jnp.float32) + l2b[0]
    x = _layer_norm_masked(x + ff, n3w[0], n3b[0], dmask)

    x_scr[...] = x

    # --- final linear epilogue on the last layer iteration ---
    @pl.when(l == LAYERS - 1)
    def _():
        out_ref[0] = (jnp.dot(x, fw[...], preferred_element_type=jnp.float32)
                      + fb[...])


_WEIGHT_NAMES = ['sa_wqkv', 'sa_bqkv', 'sa_wo', 'sa_bo',
                 'ca_wq', 'ca_bq', 'ca_wkv', 'ca_bkv', 'ca_wo', 'ca_bo',
                 'l1w', 'l1b', 'l2w', 'l2b',
                 'n1w', 'n1b', 'n2w', 'n2b', 'n3w', 'n3b']


def run_fused(tgt, mem, pk):
    """tgt/mem: (B, S_PAD, D_PAD) f32 padded activations; pk: packed weights."""
    B = tgt.shape[0]
    Vp = pk['fw'].shape[1]

    act_spec = pl.BlockSpec((1, S_PAD, D_PAD), lambda b, l: (b, 0, 0))

    def layer_spec(name):
        a = pk[name]
        return pl.BlockSpec((1,) + a.shape[1:], lambda b, l: (l, 0, 0))

    def const_spec(name):
        a = pk[name]
        return pl.BlockSpec(a.shape, lambda b, l: (0, 0))

    in_specs = ([act_spec, act_spec]
                + [layer_spec(n) for n in _WEIGHT_NAMES]
                + [const_spec('fw'), const_spec('fb')])
    args = ([tgt, mem] + [pk[n] for n in _WEIGHT_NAMES] + [pk['fw'], pk['fb']])

    return pl.pallas_call(
        fused_decoder_kernel,
        out_shape=jax.ShapeDtypeStruct((B, S_PAD, Vp), jnp.float32),
        grid=(B, LAYERS),
        in_specs=in_specs,
        out_specs=pl.BlockSpec((1, S_PAD, Vp), lambda b, l: (b, 0, 0)),
        scratch_shapes=[pltpu.VMEM((S_PAD, D_PAD), jnp.float32)],
        compiler_params=pltpu.CompilerParams(
            dimension_semantics=("parallel", "arbitrary"),
            vmem_limit_bytes=32 * 1024 * 1024),
    )(*args)


def forward(params, packed, input_seq, output_seq):
    """Pallas-backed forward. Embedding gather + PE add + padding are JAX glue."""
    scale = math.sqrt(EMBD_DIM)
    pe = params['pe']
    emb = params['embedding']
    enc_in = emb[input_seq] * scale + pe[None, :, :]    # (B, 60, 100)
    enc_out = emb[output_seq] * scale + pe[None, :, :]  # (B, 60, 100)

    pad = ((0, 0), (0, S_PAD - MAX_LEN), (0, D_PAD - EMBD_DIM))
    mem = jnp.pad(enc_in, pad)
    tgt = jnp.pad(enc_out, pad)

    out = run_fused(tgt, mem, packed)                   # (B, S_PAD, V_PAD)
    vocab = params['fw'].shape[0]
    return out[:, :MAX_LEN, :vocab]


# ----------------------------------------------------------------------------
# host-side weight packing: pad + pre-transpose + stack over layers
# ----------------------------------------------------------------------------
def pack_params(params, vocab_size):
    L, D, HD, H = LAYERS, EMBD_DIM, HEAD_DIM, HEADS
    Vp = _round_up(vocab_size, 128)

    def np32(x):
        return np.asarray(x, dtype=np.float32)

    pk = {
        'sa_wqkv': np.zeros((L, D_PAD, 3 * HW), np.float32),
        'sa_bqkv': np.zeros((L, 1, 3 * HW), np.float32),
        'sa_wo':   np.zeros((L, HW, D_PAD), np.float32),
        'sa_bo':   np.zeros((L, 1, D_PAD), np.float32),
        'ca_wq':   np.zeros((L, D_PAD, HW), np.float32),
        'ca_bq':   np.zeros((L, 1, HW), np.float32),
        'ca_wkv':  np.zeros((L, D_PAD, 2 * HW), np.float32),
        'ca_bkv':  np.zeros((L, 1, 2 * HW), np.float32),
        'ca_wo':   np.zeros((L, HW, D_PAD), np.float32),
        'ca_bo':   np.zeros((L, 1, D_PAD), np.float32),
        'l1w':     np.zeros((L, D_PAD, FFN_PAD), np.float32),
        'l1b':     np.zeros((L, 1, FFN_PAD), np.float32),
        'l2w':     np.zeros((L, FFN_PAD, D_PAD), np.float32),
        'l2b':     np.zeros((L, 1, D_PAD), np.float32),
    }
    for name in ['n1w', 'n1b', 'n2w', 'n2b', 'n3w', 'n3b']:
        pk[name] = np.zeros((L, 1, D_PAD), np.float32)

    for l, lp in enumerate(params['layers']):
        # self attention: fused QKV, packed per head into 128-wide lanes
        w_in, b_in = np32(lp['sa_w']), np32(lp['sa_b'])[0]
        for t in range(3):                       # 0:q 1:k 2:v
            for h in range(H):
                r0 = t * D + h * HD
                c0 = (t * H + h) * HD_PAD
                pk['sa_wqkv'][l, :D, c0:c0 + HD] = w_in[r0:r0 + HD, :].T
                pk['sa_bqkv'][l, 0, c0:c0 + HD] = b_in[r0:r0 + HD]
        w_o, b_o = np32(lp['sa_ow']), np32(lp['sa_ob'])[0]
        for h in range(H):
            pk['sa_wo'][l, h * HD_PAD:h * HD_PAD + HD, :D] = \
                w_o[:, h * HD:(h + 1) * HD].T
        pk['sa_bo'][l, 0, :D] = b_o

        # cross attention: q from tgt, k/v from memory
        w_in, b_in = np32(lp['ca_w']), np32(lp['ca_b'])[0]
        for h in range(H):
            c0 = h * HD_PAD
            pk['ca_wq'][l, :D, c0:c0 + HD] = w_in[h * HD:(h + 1) * HD, :].T
            pk['ca_bq'][l, 0, c0:c0 + HD] = b_in[h * HD:(h + 1) * HD]
        for t in range(2):                       # 0:k 1:v
            for h in range(H):
                r0 = (1 + t) * D + h * HD
                c0 = (t * H + h) * HD_PAD
                pk['ca_wkv'][l, :D, c0:c0 + HD] = w_in[r0:r0 + HD, :].T
                pk['ca_bkv'][l, 0, c0:c0 + HD] = b_in[r0:r0 + HD]
        w_o, b_o = np32(lp['ca_ow']), np32(lp['ca_ob'])[0]
        for h in range(H):
            pk['ca_wo'][l, h * HD_PAD:h * HD_PAD + HD, :D] = \
                w_o[:, h * HD:(h + 1) * HD].T
        pk['ca_bo'][l, 0, :D] = b_o

        # feed-forward
        pk['l1w'][l, :D, :FFN_DIM] = np32(lp['l1w']).T
        pk['l1b'][l, 0, :FFN_DIM] = np32(lp['l1b'])[0]
        pk['l2w'][l, :FFN_DIM, :D] = np32(lp['l2w']).T
        pk['l2b'][l, 0, :D] = np32(lp['l2b'])[0]

        # layer norms (padded cols stay zero so padded activations stay zero)
        for name in ['n1w', 'n1b', 'n2w', 'n2b', 'n3w', 'n3b']:
            pk[name][l, 0, :D] = np32(lp[name])[0]

    fw = np.zeros((D_PAD, Vp), np.float32)
    fw[:D, :vocab_size] = np32(params['fw']).T
    fb = np.zeros((1, Vp), np.float32)
    fb[0, :vocab_size] = np32(params['fb'])[0]
    pk['fw'], pk['fb'] = fw, fb

    return {k: jnp.asarray(v) for k, v in pk.items()}


# ----------------------------------------------------------------------------
# pure-JAX reference (unpadded, PyTorch-layout math) for correctness check
# ----------------------------------------------------------------------------
def _ref_layer_norm(x, w, b):
    mu = jnp.mean(x, axis=-1, keepdims=True)
    var = jnp.mean(jnp.square(x - mu), axis=-1, keepdims=True)
    return (x - mu) * jax.lax.rsqrt(var + LN_EPS) * w + b


def _ref_mha(q_in, kv_in, w_in, b_in, w_out, b_out, mask):
    d = EMBD_DIM
    wq, wk, wv = w_in[0:d], w_in[d:2 * d], w_in[2 * d:3 * d]
    bq, bk, bv = b_in[:, 0:d], b_in[:, d:2 * d], b_in[:, 2 * d:3 * d]
    q = jnp.dot(q_in, wq.T) + bq
    k = jnp.dot(kv_in, wk.T) + bk
    v = jnp.dot(kv_in, wv.T) + bv
    scale = 1.0 / math.sqrt(HEAD_DIM)
    head_outs = []
    for h in range(HEADS):
        sl = slice(h * HEAD_DIM, (h + 1) * HEAD_DIM)
        qh, kh, vh = q[:, sl], k[:, sl], v[:, sl]
        s = jnp.dot(qh, kh.T) * scale
        if mask is not None:
            s = s + mask
        s = s - jnp.max(s, axis=-1, keepdims=True)
        p = jnp.exp(s)
        p = p / jnp.sum(p, axis=-1, keepdims=True)
        head_outs.append(jnp.dot(p, vh))
    attn = jnp.concatenate(head_outs, axis=-1)
    return jnp.dot(attn, w_out.T) + b_out


def ref_forward(params, input_seq, output_seq):
    scale = math.sqrt(EMBD_DIM)
    pe = params['pe']
    emb = params['embedding']
    enc_in = emb[input_seq] * scale + pe[None]
    enc_out = emb[output_seq] * scale + pe[None]
    mask = params['mask']
    B = input_seq.shape[0]
    outs = []
    for b in range(B):
        x = enc_out[b]
        mem = enc_in[b]
        for lp in params['layers']:
            sa = _ref_mha(x, x, lp['sa_w'], lp['sa_b'], lp['sa_ow'], lp['sa_ob'], mask)
            x = _ref_layer_norm(x + sa, lp['n1w'], lp['n1b'])
            ca = _ref_mha(x, mem, lp['ca_w'], lp['ca_b'], lp['ca_ow'], lp['ca_ob'], None)
            x = _ref_layer_norm(x + ca, lp['n2w'], lp['n2b'])
            h = jnp.maximum(jnp.dot(x, lp['l1w'].T) + lp['l1b'], 0.0)
            ff = jnp.dot(h, lp['l2w'].T) + lp['l2b']
            x = _ref_layer_norm(x + ff, lp['n3w'], lp['n3b'])
        outs.append(jnp.dot(x, params['fw'].T) + params['fb'])
    return jnp.stack(outs, axis=0)


# ----------------------------------------------------------------------------
# parameter / input construction (PyTorch layout; packed for the kernel)
# ----------------------------------------------------------------------------
def positional_encoding():
    position = jnp.arange(MAX_LEN, dtype=jnp.float32)[:, None]
    div_term = jnp.exp(jnp.arange(0, EMBD_DIM, 2, dtype=jnp.float32)
                       * (-math.log(10000.0) / EMBD_DIM))
    pe = jnp.zeros((MAX_LEN, EMBD_DIM), dtype=jnp.float32)
    pe = pe.at[:, 0::2].set(jnp.sin(position * div_term))
    pe = pe.at[:, 1::2].set(jnp.cos(position * div_term))
    return pe


def init_params(key, vocab_size):
    keys = jax.random.split(key, 4 + LAYERS)
    params = {}
    params['embedding'] = (jax.random.normal(keys[0], (vocab_size, EMBD_DIM),
                                             jnp.float32) * 0.1)
    params['pe'] = positional_encoding()
    idx = jnp.arange(MAX_LEN)
    params['mask'] = jnp.where(idx[None, :] > idx[:, None],
                               NEG_INF, 0.0).astype(jnp.float32)

    def nrm(k, shape, s=0.02):
        return jax.random.normal(k, shape, jnp.float32) * s

    layers = []
    for l in range(LAYERS):
        lk = jax.random.split(keys[1 + l], 6)
        lp = dict(
            sa_w=nrm(lk[0], (3 * EMBD_DIM, EMBD_DIM)),
            sa_b=jnp.zeros((1, 3 * EMBD_DIM), jnp.float32),
            sa_ow=nrm(lk[1], (EMBD_DIM, EMBD_DIM)),
            sa_ob=jnp.zeros((1, EMBD_DIM), jnp.float32),
            ca_w=nrm(lk[2], (3 * EMBD_DIM, EMBD_DIM)),
            ca_b=jnp.zeros((1, 3 * EMBD_DIM), jnp.float32),
            ca_ow=nrm(lk[3], (EMBD_DIM, EMBD_DIM)),
            ca_ob=jnp.zeros((1, EMBD_DIM), jnp.float32),
            l1w=nrm(lk[4], (FFN_DIM, EMBD_DIM)),
            l1b=jnp.zeros((1, FFN_DIM), jnp.float32),
            l2w=nrm(lk[5], (EMBD_DIM, FFN_DIM)),
            l2b=jnp.zeros((1, EMBD_DIM), jnp.float32),
            n1w=jnp.ones((1, EMBD_DIM), jnp.float32),
            n1b=jnp.zeros((1, EMBD_DIM), jnp.float32),
            n2w=jnp.ones((1, EMBD_DIM), jnp.float32),
            n2b=jnp.zeros((1, EMBD_DIM), jnp.float32),
            n3w=jnp.ones((1, EMBD_DIM), jnp.float32),
            n3b=jnp.zeros((1, EMBD_DIM), jnp.float32),
        )
        layers.append(lp)
    params['layers'] = layers
    fk = jax.random.split(keys[1 + LAYERS], 2)
    params['fw'] = nrm(fk[0], (vocab_size, EMBD_DIM))
    params['fb'] = jnp.zeros((1, vocab_size), jnp.float32)
    return params


if __name__ == "__main__":
    vocab_size = 128
    batch = 2
    key = jax.random.PRNGKey(0)
    kp, ki, ko = jax.random.split(key, 3)
    params = init_params(kp, vocab_size)
    packed = pack_params(params, vocab_size)
    input_seq = jax.random.randint(ki, (batch, MAX_LEN), 0, vocab_size,
                                   dtype=jnp.int32)
    output_seq = jax.random.randint(ko, (batch, MAX_LEN), 0, vocab_size,
                                    dtype=jnp.int32)

    out = forward(params, packed, input_seq, output_seq)
    out = jax.block_until_ready(out)

    assert out.shape == (batch, MAX_LEN, vocab_size), out.shape
    out_np = np.asarray(out)
    assert np.all(np.isfinite(out_np))

    ref = np.asarray(jax.block_until_ready(
        ref_forward(params, input_seq, output_seq)))
    np.testing.assert_allclose(out_np, ref, atol=5e-2, rtol=5e-2)

    print("KERNEL_OK")
</pallas_src>

<mosaic_0001>
module attributes {stable_mosaic.version = 11 : i64} {
  func.func @fused_decoder_kernel(%arg0: i32, %arg1: i32, %arg2: memref<1x64x128xf32, #tpu.memory_space<vmem>>, %arg3: memref<1x64x128xf32, #tpu.memory_space<vmem>>, %arg4: memref<1x128x1920xf32, #tpu.memory_space<vmem>>, %arg5: memref<1x1x1920xf32, #tpu.memory_space<vmem>>, %arg6: memref<1x640x128xf32, #tpu.memory_space<vmem>>, %arg7: memref<1x1x128xf32, #tpu.memory_space<vmem>>, %arg8: memref<1x128x640xf32, #tpu.memory_space<vmem>>, %arg9: memref<1x1x640xf32, #tpu.memory_space<vmem>>, %arg10: memref<1x128x1280xf32, #tpu.memory_space<vmem>>, %arg11: memref<1x1x1280xf32, #tpu.memory_space<vmem>>, %arg12: memref<1x640x128xf32, #tpu.memory_space<vmem>>, %arg13: memref<1x1x128xf32, #tpu.memory_space<vmem>>, %arg14: memref<1x128x384xf32, #tpu.memory_space<vmem>>, %arg15: memref<1x1x384xf32, #tpu.memory_space<vmem>>, %arg16: memref<1x384x128xf32, #tpu.memory_space<vmem>>, %arg17: memref<1x1x128xf32, #tpu.memory_space<vmem>>, %arg18: memref<1x1x128xf32, #tpu.memory_space<vmem>>, %arg19: memref<1x1x128xf32, #tpu.memory_space<vmem>>, %arg20: memref<1x1x128xf32, #tpu.memory_space<vmem>>, %arg21: memref<1x1x128xf32, #tpu.memory_space<vmem>>, %arg22: memref<1x1x128xf32, #tpu.memory_space<vmem>>, %arg23: memref<1x1x128xf32, #tpu.memory_space<vmem>>, %arg24: memref<128x128xf32, #tpu.memory_space<vmem>>, %arg25: memref<1x128xf32, #tpu.memory_space<vmem>>, %arg26: memref<1x64x128xf32, #tpu.memory_space<vmem>>, %arg27: memref<64x128xf32, #tpu.memory_space<vmem>>) attributes {dimension_semantics = [#tpu.dimension_semantics<parallel>, #tpu.dimension_semantics<arbitrary>], iteration_bounds = array<i64: 2, 5>, scalar_prefetch = 0 : i64, scratch_operands = 1 : i64, tpu.core_type = #tpu.core_type<tc>, window_params = [{transform_indices = @transform_0, window_bounds = array<i64: 1, 64, 128>}, {transform_indices = @transform_1, window_bounds = array<i64: 1, 64, 128>}, {transform_indices = @transform_2, window_bounds = array<i64: 1, 128, 1920>}, {transform_indices = @transform_3, window_bounds = array<i64: 1, 1, 1920>}, {transform_indices = @transform_4, window_bounds = array<i64: 1, 640, 128>}, {transform_indices = @transform_5, window_bounds = array<i64: 1, 1, 128>}, {transform_indices = @transform_6, window_bounds = array<i64: 1, 128, 640>}, {transform_indices = @transform_7, window_bounds = array<i64: 1, 1, 640>}, {transform_indices = @transform_8, window_bounds = array<i64: 1, 128, 1280>}, {transform_indices = @transform_9, window_bounds = array<i64: 1, 1, 1280>}, {transform_indices = @transform_10, window_bounds = array<i64: 1, 640, 128>}, {transform_indices = @transform_11, window_bounds = array<i64: 1, 1, 128>}, {transform_indices = @transform_12, window_bounds = array<i64: 1, 128, 384>}, {transform_indices = @transform_13, window_bounds = array<i64: 1, 1, 384>}, {transform_indices = @transform_14, window_bounds = array<i64: 1, 384, 128>}, {transform_indices = @transform_15, window_bounds = array<i64: 1, 1, 128>}, {transform_indices = @transform_16, window_bounds = array<i64: 1, 1, 128>}, {transform_indices = @transform_17, window_bounds = array<i64: 1, 1, 128>}, {transform_indices = @transform_18, window_bounds = array<i64: 1, 1, 128>}, {transform_indices = @transform_19, window_bounds = array<i64: 1, 1, 128>}, {transform_indices = @transform_20, window_bounds = array<i64: 1, 1, 128>}, {transform_indices = @transform_21, window_bounds = array<i64: 1, 1, 128>}, {pipeline_mode = #tpu.pipeline_mode<synchronous>, transform_indices = @transform_22, window_bounds = array<i64: 128, 128>}, {pipeline_mode = #tpu.pipeline_mode<synchronous>, transform_indices = @transform_23, window_bounds = array<i64: 1, 128>}, {transform_indices = @transform_24, window_bounds = array<i64: 1, 64, 128>}]} {
    %c0_i32 = arith.constant 0 : i32
    %0 = arith.cmpi eq, %arg1, %c0_i32 : i32
    %1 = arith.extui %0 : i1 to i32
    %c0_i32_0 = arith.constant 0 : i32
    %2 = arith.cmpi ne, %1, %c0_i32_0 : i32
    scf.if %2 {
      %c0_157 = arith.constant 0 : index
      %c0_158 = arith.constant 0 : index
      %c0_159 = arith.constant 0 : index
      %371 = vector.load %arg2[%c0_157, %c0_158, %c0_159] : memref<1x64x128xf32, #tpu.memory_space<vmem>>, vector<1x64x128xf32>
      %372 = vector.shape_cast %371 : vector<1x64x128xf32> to vector<64x128xf32>
      %c0_160 = arith.constant 0 : index
      %c0_161 = arith.constant 0 : index
      %373 = vector.load %arg27[%c0_160, %c0_161] : memref<64x128xf32, #tpu.memory_space<vmem>>, vector<64x128xf32>
      tpu.vector_store %arg27[%c0_160, %c0_161], %372 {strides = array<i32>} : memref<64x128xf32, #tpu.memory_space<vmem>>, vector<64x128xf32>,
    } else {
    }
    %c0 = arith.constant 0 : index
    %c0_1 = arith.constant 0 : index
    %3 = vector.load %arg27[%c0, %c0_1] : memref<64x128xf32, #tpu.memory_space<vmem>>, vector<64x128xf32>
    %c0_2 = arith.constant 0 : index
    %c0_3 = arith.constant 0 : index
    %c0_4 = arith.constant 0 : index
    %4 = vector.load %arg3[%c0_2, %c0_3, %c0_4] : memref<1x64x128xf32, #tpu.memory_space<vmem>>, vector<1x64x128xf32>
    %5 = vector.shape_cast %4 : vector<1x64x128xf32> to vector<64x128xf32>
    %6 = tpu.iota {dimensions = array<i32: 0>} : vector<64x64xi32>
    %7 = tpu.iota {dimensions = array<i32: 1>} : vector<64x64xi32>
    %8 = arith.cmpi sgt, %7, %6 : vector<64x64xi32>
    %cst = arith.constant -1.000000e+30 : f32
    %cst_5 = arith.constant 0.000000e+00 : f32
    %9 = vector.broadcast %cst : f32 to vector<64x64xf32>
    %10 = vector.broadcast %cst_5 : f32 to vector<64x64xf32>
    %11 = arith.select %8, %9, %10 : vector<64x64xi1>, vector<64x64xf32>
    %c60_i32 = arith.constant 60 : i32
    %12 = vector.broadcast %c60_i32 : i32 to vector<64x64xi32>
    %13 = arith.cmpi sge, %7, %12 : vector<64x64xi32>
    %cst_6 = arith.constant -1.000000e+30 : f32
    %cst_7 = arith.constant 0.000000e+00 : f32
    %14 = vector.broadcast %cst_6 : f32 to vector<64x64xf32>
    %15 = vector.broadcast %cst_7 : f32 to vector<64x64xf32>
    %16 = arith.select %13, %14, %15 : vector<64x64xi1>, vector<64x64xf32>
    %17 = tpu.iota {dimensions = array<i32: 1>} : vector<64x128xi32>
    %c100_i32 = arith.constant 100 : i32
    %18 = vector.broadcast %c100_i32 : i32 to vector<64x128xi32>
    %19 = arith.cmpi slt, %17, %18 : vector<64x128xi32>
    %c0_8 = arith.constant 0 : index
    %c0_9 = arith.constant 0 : index
    %c0_10 = arith.constant 0 : index
    %20 = vector.load %arg4[%c0_8, %c0_9, %c0_10] : memref<1x128x1920xf32, #tpu.memory_space<vmem>>, vector<1x128x1920xf32>
    %21 = vector.shape_cast %20 : vector<1x128x1920xf32> to vector<128x1920xf32>
    %cst_11 = arith.constant dense<0.000000e+00> : vector<64x1920xf32>
    %22 = tpu.matmul %3, %21, %cst_11 {dimension_numbers = #tpu.dot_dimension_numbers<[1], [0], [0], [1], [0, 0, 1, 1], [], []>} : vector<64x128xf32>, vector<128x1920xf32>, vector<64x1920xf32> -> vector<64x1920xf32>
    %c0_12 = arith.constant 0 : index
    %c0_13 = arith.constant 0 : index
    %c0_14 = arith.constant 0 : index
    %23 = vector.load %arg5[%c0_12, %c0_13, %c0_14] : memref<1x1x1920xf32, #tpu.memory_space<vmem>>, vector<1x1x1920xf32>
    %24 = vector.shape_cast %23 : vector<1x1x1920xf32> to vector<1x1920xf32>
    %25 = vector.broadcast %24 : vector<1x1920xf32> to vector<64x1920xf32>
    %26 = arith.addf %22, %25 : vector<64x1920xf32>
    %27 = vector.extract_strided_slice %26 {offsets = [0, 0], sizes = [64, 640], strides = [1, 1]} : vector<64x1920xf32> to vector<64x640xf32>
    %28 = vector.extract_strided_slice %26 {offsets = [0, 640], sizes = [64, 640], strides = [1, 1]} : vector<64x1920xf32> to vector<64x640xf32>
    %29 = vector.extract_strided_slice %26 {offsets = [0, 1280], sizes = [64, 640], strides = [1, 1]} : vector<64x1920xf32> to vector<64x640xf32>
    %c0_15 = arith.constant 0 : index
    %c0_16 = arith.constant 0 : index
    %c0_17 = arith.constant 0 : index
    %30 = vector.load %arg6[%c0_15, %c0_16, %c0_17] : memref<1x640x128xf32, #tpu.memory_space<vmem>>, vector<1x640x128xf32>
    %31 = vector.shape_cast %30 : vector<1x640x128xf32> to vector<640x128xf32>
    %c0_18 = arith.constant 0 : index
    %c0_19 = arith.constant 0 : index
    %c0_20 = arith.constant 0 : index
    %32 = vector.load %arg7[%c0_18, %c0_19, %c0_20] : memref<1x1x128xf32, #tpu.memory_space<vmem>>, vector<1x1x128xf32>
    %33 = vector.shape_cast %32 : vector<1x1x128xf32> to vector<1x128xf32>
    %cst_21 = arith.constant 0.000000e+00 : f32
    %34 = vector.broadcast %cst_21 : f32 to vector<64x128xf32>
    %35 = vector.extract_strided_slice %27 {offsets = [0, 0], sizes = [64, 128], strides = [1, 1]} : vector<64x640xf32> to vector<64x128xf32>
    %36 = vector.extract_strided_slice %28 {offsets = [0, 0], sizes = [64, 128], strides = [1, 1]} : vector<64x640xf32> to vector<64x128xf32>
    %37 = vector.extract_strided_slice %29 {offsets = [0, 0], sizes = [64, 128], strides = [1, 1]} : vector<64x640xf32> to vector<64x128xf32>
    %cst_22 = arith.constant dense<0.000000e+00> : vector<64x64xf32>
    %38 = tpu.matmul %35, %36, %cst_22 {dimension_numbers = #tpu.dot_dimension_numbers<[1], [1], [0], [0], [0, 0, 1, 0], [], []>} : vector<64x128xf32>, vector<64x128xf32>, vector<64x64xf32> -> vector<64x64xf32>
    %cst_23 = arith.constant 0.223606795 : f32
    %39 = vector.broadcast %cst_23 : f32 to vector<64x64xf32>
    %40 = arith.mulf %38, %39 : vector<64x64xf32>
    %41 = arith.addf %40, %11 : vector<64x64xf32>
    %cst_24 = arith.constant dense<0xFF800000> : vector<64xf32>
    %42 = vector.multi_reduction <maximumf>, %41, %cst_24 [1] : vector<64x64xf32> to vector<64xf32>
    %43 = vector.shape_cast %42 : vector<64xf32> to vector<64x1xf32>
    %44 = vector.broadcast %43 : vector<64x1xf32> to vector<64x64xf32>
    %45 = arith.subf %41, %44 : vector<64x64xf32>
    %46 = math.exp %45 : vector<64x64xf32>
    %cst_25 = arith.constant dense<0.000000e+00> : vector<64xf32>
    %47 = vector.multi_reduction <add>, %46, %cst_25 [1] : vector<64x64xf32> to vector<64xf32>
    %48 = vector.shape_cast %47 : vector<64xf32> to vector<64x1xf32>
    %49 = tpu.reciprocal %48 {approx = true} : vector<64x1xf32> -> vector<64x1xf32>
    %50 = vector.broadcast %49 : vector<64x1xf32> to vector<64x64xf32>
    %51 = arith.mulf %46, %50 : vector<64x64xf32>
    %cst_26 = arith.constant dense<0.000000e+00> : vector<64x128xf32>
    %52 = tpu.matmul %51, %37, %cst_26 {dimension_numbers = #tpu.dot_dimension_numbers<[1], [0], [0], [1], [0, 0, 1, 1], [], []>} : vector<64x64xf32>, vector<64x128xf32>, vector<64x128xf32> -> vector<64x128xf32>
    %53 = vector.extract_strided_slice %31 {offsets = [0, 0], sizes = [128, 128], strides = [1, 1]} : vector<640x128xf32> to vector<128x128xf32>
    %cst_27 = arith.constant dense<0.000000e+00> : vector<64x128xf32>
    %54 = tpu.matmul %52, %53, %cst_27 {dimension_numbers = #tpu.dot_dimension_numbers<[1], [0], [0], [1], [0, 0, 1, 1], [], []>} : vector<64x128xf32>, vector<128x128xf32>, vector<64x128xf32> -> vector<64x128xf32>
    %55 = arith.addf %34, %54 : vector<64x128xf32>
    %56 = vector.extract_strided_slice %27 {offsets = [0, 128], sizes = [64, 128], strides = [1, 1]} : vector<64x640xf32> to vector<64x128xf32>
    %57 = vector.extract_strided_slice %28 {offsets = [0, 128], sizes = [64, 128], strides = [1, 1]} : vector<64x640xf32> to vector<64x128xf32>
    %58 = vector.extract_strided_slice %29 {offsets = [0, 128], sizes = [64, 128], strides = [1, 1]} : vector<64x640xf32> to vector<64x128xf32>
    %cst_28 = arith.constant dense<0.000000e+00> : vector<64x64xf32>
    %59 = tpu.matmul %56, %57, %cst_28 {dimension_numbers = #tpu.dot_dimension_numbers<[1], [1], [0], [0], [0, 0, 1, 0], [], []>} : vector<64x128xf32>, vector<64x128xf32>, vector<64x64xf32> -> vector<64x64xf32>
    %cst_29 = arith.constant 0.223606795 : f32
    %60 = vector.broadcast %cst_29 : f32 to vector<64x64xf32>
    %61 = arith.mulf %59, %60 : vector<64x64xf32>
    %62 = arith.addf %61, %11 : vector<64x64xf32>
    %cst_30 = arith.constant dense<0xFF800000> : vector<64xf32>
    %63 = vector.multi_reduction <maximumf>, %62, %cst_30 [1] : vector<64x64xf32> to vector<64xf32>
    %64 = vector.shape_cast %63 : vector<64xf32> to vector<64x1xf32>
    %65 = vector.broadcast %64 : vector<64x1xf32> to vector<64x64xf32>
    %66 = arith.subf %62, %65 : vector<64x64xf32>
    %67 = math.exp %66 : vector<64x64xf32>
    %cst_31 = arith.constant dense<0.000000e+00> : vector<64xf32>
    %68 = vector.multi_reduction <add>, %67, %cst_31 [1] : vector<64x64xf32> to vector<64xf32>
    %69 = vector.shape_cast %68 : vector<64xf32> to vector<64x1xf32>
    %70 = tpu.reciprocal %69 {approx = true} : vector<64x1xf32> -> vector<64x1xf32>
    %71 = vector.broadcast %70 : vector<64x1xf32> to vector<64x64xf32>
    %72 = arith.mulf %67, %71 : vector<64x64xf32>
    %cst_32 = arith.constant dense<0.000000e+00> : vector<64x128xf32>
    %73 = tpu.matmul %72, %58, %cst_32 {dimension_numbers = #tpu.dot_dimension_numbers<[1], [0], [0], [1], [0, 0, 1, 1], [], []>} : vector<64x64xf32>, vector<64x128xf32>, vector<64x128xf32> -> vector<64x128xf32>
    %74 = vector.extract_strided_slice %31 {offsets = [128, 0], sizes = [128, 128], strides = [1, 1]} : vector<640x128xf32> to vector<128x128xf32>
    %cst_33 = arith.constant dense<0.000000e+00> : vector<64x128xf32>
    %75 = tpu.matmul %73, %74, %cst_33 {dimension_numbers = #tpu.dot_dimension_numbers<[1], [0], [0], [1], [0, 0, 1, 1], [], []>} : vector<64x128xf32>, vector<128x128xf32>, vector<64x128xf32> -> vector<64x128xf32>
    %76 = arith.addf %55, %75 : vector<64x128xf32>
    %77 = vector.extract_strided_slice %27 {offsets = [0, 256], sizes = [64, 128], strides = [1, 1]} : vector<64x640xf32> to vector<64x128xf32>
    %78 = vector.extract_strided_slice %28 {offsets = [0, 256], sizes = [64, 128], strides = [1, 1]} : vector<64x640xf32> to vector<64x128xf32>
    %79 = vector.extract_strided_slice %29 {offsets = [0, 256], sizes = [64, 128], strides = [1, 1]} : vector<64x640xf32> to vector<64x128xf32>
    %cst_34 = arith.constant dense<0.000000e+00> : vector<64x64xf32>
    %80 = tpu.matmul %77, %78, %cst_34 {dimension_numbers = #tpu.dot_dimension_numbers<[1], [1], [0], [0], [0, 0, 1, 0], [], []>} : vector<64x128xf32>, vector<64x128xf32>, vector<64x64xf32> -> vector<64x64xf32>
    %cst_35 = arith.constant 0.223606795 : f32
    %81 = vector.broadcast %cst_35 : f32 to vector<64x64xf32>
    %82 = arith.mulf %80, %81 : vector<64x64xf32>
    %83 = arith.addf %82, %11 : vector<64x64xf32>
    %cst_36 = arith.constant dense<0xFF800000> : vector<64xf32>
    %84 = vector.multi_reduction <maximumf>, %83, %cst_36 [1] : vector<64x64xf32> to vector<64xf32>
    %85 = vector.shape_cast %84 : vector<64xf32> to vector<64x1xf32>
    %86 = vector.broadcast %85 : vector<64x1xf32> to vector<64x64xf32>
    %87 = arith.subf %83, %86 : vector<64x64xf32>
    %88 = math.exp %87 : vector<64x64xf32>
    %cst_37 = arith.constant dense<0.000000e+00> : vector<64xf32>
    %89 = vector.multi_reduction <add>, %88, %cst_37 [1] : vector<64x64xf32> to vector<64xf32>
    %90 = vector.shape_cast %89 : vector<64xf32> to vector<64x1xf32>
    %91 = tpu.reciprocal %90 {approx = true} : vector<64x1xf32> -> vector<64x1xf32>
    %92 = vector.broadcast %91 : vector<64x1xf32> to vector<64x64xf32>
    %93 = arith.mulf %88, %92 : vector<64x64xf32>
    %cst_38 = arith.constant dense<0.000000e+00> : vector<64x128xf32>
    %94 = tpu.matmul %93, %79, %cst_38 {dimension_numbers = #tpu.dot_dimension_numbers<[1], [0], [0], [1], [0, 0, 1, 1], [], []>} : vector<64x64xf32>, vector<64x128xf32>, vector<64x128xf32> -> vector<64x128xf32>
    %95 = vector.extract_strided_slice %31 {offsets = [256, 0], sizes = [128, 128], strides = [1, 1]} : vector<640x128xf32> to vector<128x128xf32>
    %cst_39 = arith.constant dense<0.000000e+00> : vector<64x128xf32>
    %96 = tpu.matmul %94, %95, %cst_39 {dimension_numbers = #tpu.dot_dimension_numbers<[1], [0], [0], [1], [0, 0, 1, 1], [], []>} : vector<64x128xf32>, vector<128x128xf32>, vector<64x128xf32> -> vector<64x128xf32>
    %97 = arith.addf %76, %96 : vector<64x128xf32>
    %98 = vector.extract_strided_slice %27 {offsets = [0, 384], sizes = [64, 128], strides = [1, 1]} : vector<64x640xf32> to vector<64x128xf32>
    %99 = vector.extract_strided_slice %28 {offsets = [0, 384], sizes = [64, 128], strides = [1, 1]} : vector<64x640xf32> to vector<64x128xf32>
    %100 = vector.extract_strided_slice %29 {offsets = [0, 384], sizes = [64, 128], strides = [1, 1]} : vector<64x640xf32> to vector<64x128xf32>
    %cst_40 = arith.constant dense<0.000000e+00> : vector<64x64xf32>
    %101 = tpu.matmul %98, %99, %cst_40 {dimension_numbers = #tpu.dot_dimension_numbers<[1], [1], [0], [0], [0, 0, 1, 0], [], []>} : vector<64x128xf32>, vector<64x128xf32>, vector<64x64xf32> -> vector<64x64xf32>
    %cst_41 = arith.constant 0.223606795 : f32
    %102 = vector.broadcast %cst_41 : f32 to vector<64x64xf32>
    %103 = arith.mulf %101, %102 : vector<64x64xf32>
    %104 = arith.addf %103, %11 : vector<64x64xf32>
    %cst_42 = arith.constant dense<0xFF800000> : vector<64xf32>
    %105 = vector.multi_reduction <maximumf>, %104, %cst_42 [1] : vector<64x64xf32> to vector<64xf32>
    %106 = vector.shape_cast %105 : vector<64xf32> to vector<64x1xf32>
    %107 = vector.broadcast %106 : vector<64x1xf32> to vector<64x64xf32>
    %108 = arith.subf %104, %107 : vector<64x64xf32>
    %109 = math.exp %108 : vector<64x64xf32>
    %cst_43 = arith.constant dense<0.000000e+00> : vector<64xf32>
    %110 = vector.multi_reduction <add>, %109, %cst_43 [1] : vector<64x64xf32> to vector<64xf32>
    %111 = vector.shape_cast %110 : vector<64xf32> to vector<64x1xf32>
    %112 = tpu.reciprocal %111 {approx = true} : vector<64x1xf32> -> vector<64x1xf32>
    %113 = vector.broadcast %112 : vector<64x1xf32> to vector<64x64xf32>
    %114 = arith.mulf %109, %113 : vector<64x64xf32>
    %cst_44 = arith.constant dense<0.000000e+00> : vector<64x128xf32>
    %115 = tpu.matmul %114, %100, %cst_44 {dimension_numbers = #tpu.dot_dimension_numbers<[1], [0], [0], [1], [0, 0, 1, 1], [], []>} : vector<64x64xf32>, vector<64x128xf32>, vector<64x128xf32> -> vector<64x128xf32>
    %116 = vector.extract_strided_slice %31 {offsets = [384, 0], sizes = [128, 128], strides = [1, 1]} : vector<640x128xf32> to vector<128x128xf32>
    %cst_45 = arith.constant dense<0.000000e+00> : vector<64x128xf32>
    %117 = tpu.matmul %115, %116, %cst_45 {dimension_numbers = #tpu.dot_dimension_numbers<[1], [0], [0], [1], [0, 0, 1, 1], [], []>} : vector<64x128xf32>, vector<128x128xf32>, vector<64x128xf32> -> vector<64x128xf32>
    %118 = arith.addf %97, %117 : vector<64x128xf32>
    %119 = vector.extract_strided_slice %27 {offsets = [0, 512], sizes = [64, 128], strides = [1, 1]} : vector<64x640xf32> to vector<64x128xf32>
    %120 = vector.extract_strided_slice %28 {offsets = [0, 512], sizes = [64, 128], strides = [1, 1]} : vector<64x640xf32> to vector<64x128xf32>
    %121 = vector.extract_strided_slice %29 {offsets = [0, 512], sizes = [64, 128], strides = [1, 1]} : vector<64x640xf32> to vector<64x128xf32>
    %cst_46 = arith.constant dense<0.000000e+00> : vector<64x64xf32>
    %122 = tpu.matmul %119, %120, %cst_46 {dimension_numbers = #tpu.dot_dimension_numbers<[1], [1], [0], [0], [0, 0, 1, 0], [], []>} : vector<64x128xf32>, vector<64x128xf32>, vector<64x64xf32> -> vector<64x64xf32>
    %cst_47 = arith.constant 0.223606795 : f32
    %123 = vector.broadcast %cst_47 : f32 to vector<64x64xf32>
    %124 = arith.mulf %122, %123 : vector<64x64xf32>
    %125 = arith.addf %124, %11 : vector<64x64xf32>
    %cst_48 = arith.constant dense<0xFF800000> : vector<64xf32>
    %126 = vector.multi_reduction <maximumf>, %125, %cst_48 [1] : vector<64x64xf32> to vector<64xf32>
    %127 = vector.shape_cast %126 : vector<64xf32> to vector<64x1xf32>
    %128 = vector.broadcast %127 : vector<64x1xf32> to vector<64x64xf32>
    %129 = arith.subf %125, %128 : vector<64x64xf32>
    %130 = math.exp %129 : vector<64x64xf32>
    %cst_49 = arith.constant dense<0.000000e+00> : vector<64xf32>
    %131 = vector.multi_reduction <add>, %130, %cst_49 [1] : vector<64x64xf32> to vector<64xf32>
    %132 = vector.shape_cast %131 : vector<64xf32> to vector<64x1xf32>
    %133 = tpu.reciprocal %132 {approx = true} : vector<64x1xf32> -> vector<64x1xf32>
    %134 = vector.broadcast %133 : vector<64x1xf32> to vector<64x64xf32>
    %135 = arith.mulf %130, %134 : vector<64x64xf32>
    %cst_50 = arith.constant dense<0.000000e+00> : vector<64x128xf32>
    %136 = tpu.matmul %135, %121, %cst_50 {dimension_numbers = #tpu.dot_dimension_numbers<[1], [0], [0], [1], [0, 0, 1, 1], [], []>} : vector<64x64xf32>, vector<64x128xf32>, vector<64x128xf32> -> vector<64x128xf32>
    %137 = vector.extract_strided_slice %31 {offsets = [512, 0], sizes = [128, 128], strides = [1, 1]} : vector<640x128xf32> to vector<128x128xf32>
    %cst_51 = arith.constant dense<0.000000e+00> : vector<64x128xf32>
    %138 = tpu.matmul %136, %137, %cst_51 {dimension_numbers = #tpu.dot_dimension_numbers<[1], [0], [0], [1], [0, 0, 1, 1], [], []>} : vector<64x128xf32>, vector<128x128xf32>, vector<64x128xf32> -> vector<64x128xf32>
    %139 = arith.addf %118, %138 : vector<64x128xf32>
    %140 = vector.broadcast %33 : vector<1x128xf32> to vector<64x128xf32>
    %141 = arith.addf %139, %140 : vector<64x128xf32>
    %142 = arith.addf %3, %141 : vector<64x128xf32>
    %c0_52 = arith.constant 0 : index
    %c0_53 = arith.constant 0 : index
    %c0_54 = arith.constant 0 : index
    %143 = vector.load %arg18[%c0_52, %c0_53, %c0_54] : memref<1x1x128xf32, #tpu.memory_space<vmem>>, vector<1x1x128xf32>
    %144 = vector.shape_cast %143 : vector<1x1x128xf32> to vector<1x128xf32>
    %c0_55 = arith.constant 0 : index
    %c0_56 = arith.constant 0 : index
    %c0_57 = arith.constant 0 : index
    %145 = vector.load %arg19[%c0_55, %c0_56, %c0_57] : memref<1x1x128xf32, #tpu.memory_space<vmem>>, vector<1x1x128xf32>
    %146 = vector.shape_cast %145 : vector<1x1x128xf32> to vector<1x128xf32>
    %cst_58 = arith.constant dense<0.000000e+00> : vector<64xf32>
    %147 = vector.multi_reduction <add>, %142, %cst_58 [1] : vector<64x128xf32> to vector<64xf32>
    %148 = vector.shape_cast %147 : vector<64xf32> to vector<64x1xf32>
    %cst_59 = arith.constant 0.00999999977 : f32
    %149 = vector.broadcast %cst_59 : f32 to vector<64x1xf32>
    %150 = arith.mulf %148, %149 : vector<64x1xf32>
    %151 = vector.broadcast %150 : vector<64x1xf32> to vector<64x128xf32>
    %152 = arith.subf %142, %151 : vector<64x128xf32>
    %cst_60 = arith.constant 0.000000e+00 : f32
    %153 = vector.broadcast %cst_60 : f32 to vector<64x128xf32>
    %154 = arith.select %19, %152, %153 : vector<64x128xi1>, vector<64x128xf32>
    %155 = arith.mulf %154, %154 : vector<64x128xf32>
    %cst_61 = arith.constant dense<0.000000e+00> : vector<64xf32>
    %156 = vector.multi_reduction <add>, %155, %cst_61 [1] : vector<64x128xf32> to vector<64xf32>
    %157 = vector.shape_cast %156 : vector<64xf32> to vector<64x1xf32>
    %cst_62 = arith.constant 0.00999999977 : f32
    %158 = vector.broadcast %cst_62 : f32 to vector<64x1xf32>
    %159 = arith.mulf %157, %158 : vector<64x1xf32>
    %cst_63 = arith.constant 9.99999974E-6 : f32
    %160 = vector.broadcast %cst_63 : f32 to vector<64x1xf32>
    %161 = arith.addf %159, %160 : vector<64x1xf32>
    %162 = math.rsqrt %161 : vector<64x1xf32>
    %163 = vector.broadcast %162 : vector<64x1xf32> to vector<64x128xf32>
    %164 = arith.mulf %154, %163 : vector<64x128xf32>
    %165 = vector.broadcast %144 : vector<1x128xf32> to vector<64x128xf32>
    %166 = arith.mulf %164, %165 : vector<64x128xf32>
    %167 = vector.broadcast %146 : vector<1x128xf32> to vector<64x128xf32>
    %168 = arith.addf %166, %167 : vector<64x128xf32>
    %c0_64 = arith.constant 0 : index
    %c0_65 = arith.constant 0 : index
    %c0_66 = arith.constant 0 : index
    %169 = vector.load %arg8[%c0_64, %c0_65, %c0_66] : memref<1x128x640xf32, #tpu.memory_space<vmem>>, vector<1x128x640xf32>
    %170 = vector.shape_cast %169 : vector<1x128x640xf32> to vector<128x640xf32>
    %cst_67 = arith.constant dense<0.000000e+00> : vector<64x640xf32>
    %171 = tpu.matmul %168, %170, %cst_67 {dimension_numbers = #tpu.dot_dimension_numbers<[1], [0], [0], [1], [0, 0, 1, 1], [], []>} : vector<64x128xf32>, vector<128x640xf32>, vector<64x640xf32> -> vector<64x640xf32>
    %c0_68 = arith.constant 0 : index
    %c0_69 = arith.constant 0 : index
    %c0_70 = arith.constant 0 : index
    %172 = vector.load %arg9[%c0_68, %c0_69, %c0_70] : memref<1x1x640xf32, #tpu.memory_space<vmem>>, vector<1x1x640xf32>
    %173 = vector.shape_cast %172 : vector<1x1x640xf32> to vector<1x640xf32>
    %174 = vector.broadcast %173 : vector<1x640xf32> to vector<64x640xf32>
    %175 = arith.addf %171, %174 : vector<64x640xf32>
    %c0_71 = arith.constant 0 : index
    %c0_72 = arith.constant 0 : index
    %c0_73 = arith.constant 0 : index
    %176 = vector.load %arg10[%c0_71, %c0_72, %c0_73] : memref<1x128x1280xf32, #tpu.memory_space<vmem>>, vector<1x128x1280xf32>
    %177 = vector.shape_cast %176 : vector<1x128x1280xf32> to vector<128x1280xf32>
    %cst_74 = arith.constant dense<0.000000e+00> : vector<64x1280xf32>
    %178 = tpu.matmul %5, %177, %cst_74 {dimension_numbers = #tpu.dot_dimension_numbers<[1], [0], [0], [1], [0, 0, 1, 1], [], []>} : vector<64x128xf32>, vector<128x1280xf32>, vector<64x1280xf32> -> vector<64x1280xf32>
    %c0_75 = arith.constant 0 : index
    %c0_76 = arith.constant 0 : index
    %c0_77 = arith.constant 0 : index
    %179 = vector.load %arg11[%c0_75, %c0_76, %c0_77] : memref<1x1x1280xf32, #tpu.memory_space<vmem>>, vector<1x1x1280xf32>
    %180 = vector.shape_cast %179 : vector<1x1x1280xf32> to vector<1x1280xf32>
    %181 = vector.broadcast %180 : vector<1x1280xf32> to vector<64x1280xf32>
    %182 = arith.addf %178, %181 : vector<64x1280xf32>
    %183 = vector.extract_strided_slice %182 {offsets = [0, 0], sizes = [64, 640], strides = [1, 1]} : vector<64x1280xf32> to vector<64x640xf32>
    %184 = vector.extract_strided_slice %182 {offsets = [0, 640], sizes = [64, 640], strides = [1, 1]} : vector<64x1280xf32> to vector<64x640xf32>
    %c0_78 = arith.constant 0 : index
    %c0_79 = arith.constant 0 : index
    %c0_80 = arith.constant 0 : index
    %185 = vector.load %arg12[%c0_78, %c0_79, %c0_80] : memref<1x640x128xf32, #tpu.memory_space<vmem>>, vector<1x640x128xf32>
    %186 = vector.shape_cast %185 : vector<1x640x128xf32> to vector<640x128xf32>
    %c0_81 = arith.constant 0 : index
    %c0_82 = arith.constant 0 : index
    %c0_83 = arith.constant 0 : index
    %187 = vector.load %arg13[%c0_81, %c0_82, %c0_83] : memref<1x1x128xf32, #tpu.memory_space<vmem>>, vector<1x1x128xf32>
    %188 = vector.shape_cast %187 : vector<1x1x128xf32> to vector<1x128xf32>
    %cst_84 = arith.constant 0.000000e+00 : f32
    %189 = vector.broadcast %cst_84 : f32 to vector<64x128xf32>
    %190 = vector.extract_strided_slice %175 {offsets = [0, 0], sizes = [64, 128], strides = [1, 1]} : vector<64x640xf32> to vector<64x128xf32>
    %191 = vector.extract_strided_slice %183 {offsets = [0, 0], sizes = [64, 128], strides = [1, 1]} : vector<64x640xf32> to vector<64x128xf32>
    %192 = vector.extract_strided_slice %184 {offsets = [0, 0], sizes = [64, 128], strides = [1, 1]} : vector<64x640xf32> to vector<64x128xf32>
    %cst_85 = arith.constant dense<0.000000e+00> : vector<64x64xf32>
    %193 = tpu.matmul %190, %191, %cst_85 {dimension_numbers = #tpu.dot_dimension_numbers<[1], [1], [0], [0], [0, 0, 1, 0], [], []>} : vector<64x128xf32>, vector<64x128xf32>, vector<64x64xf32> -> vector<64x64xf32>
    %cst_86 = arith.constant 0.223606795 : f32
    %194 = vector.broadcast %cst_86 : f32 to vector<64x64xf32>
    %195 = arith.mulf %193, %194 : vector<64x64xf32>
    %196 = arith.addf %195, %16 : vector<64x64xf32>
    %cst_87 = arith.constant dense<0xFF800000> : vector<64xf32>
    %197 = vector.multi_reduction <maximumf>, %196, %cst_87 [1] : vector<64x64xf32> to vector<64xf32>
    %198 = vector.shape_cast %197 : vector<64xf32> to vector<64x1xf32>
    %199 = vector.broadcast %198 : vector<64x1xf32> to vector<64x64xf32>
    %200 = arith.subf %196, %199 : vector<64x64xf32>
    %201 = math.exp %200 : vector<64x64xf32>
    %cst_88 = arith.constant dense<0.000000e+00> : vector<64xf32>
    %202 = vector.multi_reduction <add>, %201, %cst_88 [1] : vector<64x64xf32> to vector<64xf32>
    %203 = vector.shape_cast %202 : vector<64xf32> to vector<64x1xf32>
    %204 = tpu.reciprocal %203 {approx = true} : vector<64x1xf32> -> vector<64x1xf32>
    %205 = vector.broadcast %204 : vector<64x1xf32> to vector<64x64xf32>
    %206 = arith.mulf %201, %205 : vector<64x64xf32>
    %cst_89 = arith.constant dense<0.000000e+00> : vector<64x128xf32>
    %207 = tpu.matmul %206, %192, %cst_89 {dimension_numbers = #tpu.dot_dimension_numbers<[1], [0], [0], [1], [0, 0, 1, 1], [], []>} : vector<64x64xf32>, vector<64x128xf32>, vector<64x128xf32> -> vector<64x128xf32>
    %208 = vector.extract_strided_slice %186 {offsets = [0, 0], sizes = [128, 128], strides = [1, 1]} : vector<640x128xf32> to vector<128x128xf32>
    %cst_90 = arith.constant dense<0.000000e+00> : vector<64x128xf32>
    %209 = tpu.matmul %207, %208, %cst_90 {dimension_numbers = #tpu.dot_dimension_numbers<[1], [0], [0], [1], [0, 0, 1, 1], [], []>} : vector<64x128xf32>, vector<128x128xf32>, vector<64x128xf32> -> vector<64x128xf32>
    %210 = arith.addf %189, %209 : vector<64x128xf32>
    %211 = vector.extract_strided_slice %175 {offsets = [0, 128], sizes = [64, 128], strides = [1, 1]} : vector<64x640xf32> to vector<64x128xf32>
    %212 = vector.extract_strided_slice %183 {offsets = [0, 128], sizes = [64, 128], strides = [1, 1]} : vector<64x640xf32> to vector<64x128xf32>
    %213 = vector.extract_strided_slice %184 {offsets = [0, 128], sizes = [64, 128], strides = [1, 1]} : vector<64x640xf32> to vector<64x128xf32>
    %cst_91 = arith.constant dense<0.000000e+00> : vector<64x64xf32>
    %214 = tpu.matmul %211, %212, %cst_91 {dimension_numbers = #tpu.dot_dimension_numbers<[1], [1], [0], [0], [0, 0, 1, 0], [], []>} : vector<64x128xf32>, vector<64x128xf32>, vector<64x64xf32> -> vector<64x64xf32>
    %cst_92 = arith.constant 0.223606795 : f32
    %215 = vector.broadcast %cst_92 : f32 to vector<64x64xf32>
    %216 = arith.mulf %214, %215 : vector<64x64xf32>
    %217 = arith.addf %216, %16 : vector<64x64xf32>
    %cst_93 = arith.constant dense<0xFF800000> : vector<64xf32>
    %218 = vector.multi_reduction <maximumf>, %217, %cst_93 [1] : vector<64x64xf32> to vector<64xf32>
    %219 = vector.shape_cast %218 : vector<64xf32> to vector<64x1xf32>
    %220 = vector.broadcast %219 : vector<64x1xf32> to vector<64x64xf32>
    %221 = arith.subf %217, %220 : vector<64x64xf32>
    %222 = math.exp %221 : vector<64x64xf32>
    %cst_94 = arith.constant dense<0.000000e+00> : vector<64xf32>
    %223 = vector.multi_reduction <add>, %222, %cst_94 [1] : vector<64x64xf32> to vector<64xf32>
    %224 = vector.shape_cast %223 : vector<64xf32> to vector<64x1xf32>
    %225 = tpu.reciprocal %224 {approx = true} : vector<64x1xf32> -> vector<64x1xf32>
    %226 = vector.broadcast %225 : vector<64x1xf32> to vector<64x64xf32>
    %227 = arith.mulf %222, %226 : vector<64x64xf32>
    %cst_95 = arith.constant dense<0.000000e+00> : vector<64x128xf32>
    %228 = tpu.matmul %227, %213, %cst_95 {dimension_numbers = #tpu.dot_dimension_numbers<[1], [0], [0], [1], [0, 0, 1, 1], [], []>} : vector<64x64xf32>, vector<64x128xf32>, vector<64x128xf32> -> vector<64x128xf32>
    %229 = vector.extract_strided_slice %186 {offsets = [128, 0], sizes = [128, 128], strides = [1, 1]} : vector<640x128xf32> to vector<128x128xf32>
    %cst_96 = arith.constant dense<0.000000e+00> : vector<64x128xf32>
    %230 = tpu.matmul %228, %229, %cst_96 {dimension_numbers = #tpu.dot_dimension_numbers<[1], [0], [0], [1], [0, 0, 1, 1], [], []>} : vector<64x128xf32>, vector<128x128xf32>, vector<64x128xf32> -> vector<64x128xf32>
    %231 = arith.addf %210, %230 : vector<64x128xf32>
    %232 = vector.extract_strided_slice %175 {offsets = [0, 256], sizes = [64, 128], strides = [1, 1]} : vector<64x640xf32> to vector<64x128xf32>
    %233 = vector.extract_strided_slice %183 {offsets = [0, 256], sizes = [64, 128], strides = [1, 1]} : vector<64x640xf32> to vector<64x128xf32>
    %234 = vector.extract_strided_slice %184 {offsets = [0, 256], sizes = [64, 128], strides = [1, 1]} : vector<64x640xf32> to vector<64x128xf32>
    %cst_97 = arith.constant dense<0.000000e+00> : vector<64x64xf32>
    %235 = tpu.matmul %232, %233, %cst_97 {dimension_numbers = #tpu.dot_dimension_numbers<[1], [1], [0], [0], [0, 0, 1, 0], [], []>} : vector<64x128xf32>, vector<64x128xf32>, vector<64x64xf32> -> vector<64x64xf32>
    %cst_98 = arith.constant 0.223606795 : f32
    %236 = vector.broadcast %cst_98 : f32 to vector<64x64xf32>
    %237 = arith.mulf %235, %236 : vector<64x64xf32>
    %238 = arith.addf %237, %16 : vector<64x64xf32>
    %cst_99 = arith.constant dense<0xFF800000> : vector<64xf32>
    %239 = vector.multi_reduction <maximumf>, %238, %cst_99 [1] : vector<64x64xf32> to vector<64xf32>
    %240 = vector.shape_cast %239 : vector<64xf32> to vector<64x1xf32>
    %241 = vector.broadcast %240 : vector<64x1xf32> to vector<64x64xf32>
    %242 = arith.subf %238, %241 : vector<64x64xf32>
    %243 = math.exp %242 : vector<64x64xf32>
    %cst_100 = arith.constant dense<0.000000e+00> : vector<64xf32>
    %244 = vector.multi_reduction <add>, %243, %cst_100 [1] : vector<64x64xf32> to vector<64xf32>
    %245 = vector.shape_cast %244 : vector<64xf32> to vector<64x1xf32>
    %246 = tpu.reciprocal %245 {approx = true} : vector<64x1xf32> -> vector<64x1xf32>
    %247 = vector.broadcast %246 : vector<64x1xf32> to vector<64x64xf32>
    %248 = arith.mulf %243, %247 : vector<64x64xf32>
    %cst_101 = arith.constant dense<0.000000e+00> : vector<64x128xf32>
    %249 = tpu.matmul %248, %234, %cst_101 {dimension_numbers = #tpu.dot_dimension_numbers<[1], [0], [0], [1], [0, 0, 1, 1], [], []>} : vector<64x64xf32>, vector<64x128xf32>, vector<64x128xf32> -> vector<64x128xf32>
    %250 = vector.extract_strided_slice %186 {offsets = [256, 0], sizes = [128, 128], strides = [1, 1]} : vector<640x128xf32> to vector<128x128xf32>
    %cst_102 = arith.constant dense<0.000000e+00> : vector<64x128xf32>
    %251 = tpu.matmul %249, %250, %cst_102 {dimension_numbers = #tpu.dot_dimension_numbers<[1], [0], [0], [1], [0, 0, 1, 1], [], []>} : vector<64x128xf32>, vector<128x128xf32>, vector<64x128xf32> -> vector<64x128xf32>
    %252 = arith.addf %231, %251 : vector<64x128xf32>
    %253 = vector.extract_strided_slice %175 {offsets = [0, 384], sizes = [64, 128], strides = [1, 1]} : vector<64x640xf32> to vector<64x128xf32>
    %254 = vector.extract_strided_slice %183 {offsets = [0, 384], sizes = [64, 128], strides = [1, 1]} : vector<64x640xf32> to vector<64x128xf32>
    %255 = vector.extract_strided_slice %184 {offsets = [0, 384], sizes = [64, 128], strides = [1, 1]} : vector<64x640xf32> to vector<64x128xf32>
    %cst_103 = arith.constant dense<0.000000e+00> : vector<64x64xf32>
    %256 = tpu.matmul %253, %254, %cst_103 {dimension_numbers = #tpu.dot_dimension_numbers<[1], [1], [0], [0], [0, 0, 1, 0], [], []>} : vector<64x128xf32>, vector<64x128xf32>, vector<64x64xf32> -> vector<64x64xf32>
    %cst_104 = arith.constant 0.223606795 : f32
    %257 = vector.broadcast %cst_104 : f32 to vector<64x64xf32>
    %258 = arith.mulf %256, %257 : vector<64x64xf32>
    %259 = arith.addf %258, %16 : vector<64x64xf32>
    %cst_105 = arith.constant dense<0xFF800000> : vector<64xf32>
    %260 = vector.multi_reduction <maximumf>, %259, %cst_105 [1] : vector<64x64xf32> to vector<64xf32>
    %261 = vector.shape_cast %260 : vector<64xf32> to vector<64x1xf32>
    %262 = vector.broadcast %261 : vector<64x1xf32> to vector<64x64xf32>
    %263 = arith.subf %259, %262 : vector<64x64xf32>
    %264 = math.exp %263 : vector<64x64xf32>
    %cst_106 = arith.constant dense<0.000000e+00> : vector<64xf32>
    %265 = vector.multi_reduction <add>, %264, %cst_106 [1] : vector<64x64xf32> to vector<64xf32>
    %266 = vector.shape_cast %265 : vector<64xf32> to vector<64x1xf32>
    %267 = tpu.reciprocal %266 {approx = true} : vector<64x1xf32> -> vector<64x1xf32>
    %268 = vector.broadcast %267 : vector<64x1xf32> to vector<64x64xf32>
    %269 = arith.mulf %264, %268 : vector<64x64xf32>
    %cst_107 = arith.constant dense<0.000000e+00> : vector<64x128xf32>
    %270 = tpu.matmul %269, %255, %cst_107 {dimension_numbers = #tpu.dot_dimension_numbers<[1], [0], [0], [1], [0, 0, 1, 1], [], []>} : vector<64x64xf32>, vector<64x128xf32>, vector<64x128xf32> -> vector<64x128xf32>
    %271 = vector.extract_strided_slice %186 {offsets = [384, 0], sizes = [128, 128], strides = [1, 1]} : vector<640x128xf32> to vector<128x128xf32>
    %cst_108 = arith.constant dense<0.000000e+00> : vector<64x128xf32>
    %272 = tpu.matmul %270, %271, %cst_108 {dimension_numbers = #tpu.dot_dimension_numbers<[1], [0], [0], [1], [0, 0, 1, 1], [], []>} : vector<64x128xf32>, vector<128x128xf32>, vector<64x128xf32> -> vector<64x128xf32>
    %273 = arith.addf %252, %272 : vector<64x128xf32>
    %274 = vector.extract_strided_slice %175 {offsets = [0, 512], sizes = [64, 128], strides = [1, 1]} : vector<64x640xf32> to vector<64x128xf32>
    %275 = vector.extract_strided_slice %183 {offsets = [0, 512], sizes = [64, 128], strides = [1, 1]} : vector<64x640xf32> to vector<64x128xf32>
    %276 = vector.extract_strided_slice %184 {offsets = [0, 512], sizes = [64, 128], strides = [1, 1]} : vector<64x640xf32> to vector<64x128xf32>
    %cst_109 = arith.constant dense<0.000000e+00> : vector<64x64xf32>
    %277 = tpu.matmul %274, %275, %cst_109 {dimension_numbers = #tpu.dot_dimension_numbers<[1], [1], [0], [0], [0, 0, 1, 0], [], []>} : vector<64x128xf32>, vector<64x128xf32>, vector<64x64xf32> -> vector<64x64xf32>
    %cst_110 = arith.constant 0.223606795 : f32
    %278 = vector.broadcast %cst_110 : f32 to vector<64x64xf32>
    %279 = arith.mulf %277, %278 : vector<64x64xf32>
    %280 = arith.addf %279, %16 : vector<64x64xf32>
    %cst_111 = arith.constant dense<0xFF800000> : vector<64xf32>
    %281 = vector.multi_reduction <maximumf>, %280, %cst_111 [1] : vector<64x64xf32> to vector<64xf32>
    %282 = vector.shape_cast %281 : vector<64xf32> to vector<64x1xf32>
    %283 = vector.broadcast %282 : vector<64x1xf32> to vector<64x64xf32>
    %284 = arith.subf %280, %283 : vector<64x64xf32>
    %285 = math.exp %284 : vector<64x64xf32>
    %cst_112 = arith.constant dense<0.000000e+00> : vector<64xf32>
    %286 = vector.multi_reduction <add>, %285, %cst_112 [1] : vector<64x64xf32> to vector<64xf32>
    %287 = vector.shape_cast %286 : vector<64xf32> to vector<64x1xf32>
    %288 = tpu.reciprocal %287 {approx = true} : vector<64x1xf32> -> vector<64x1xf32>
    %289 = vector.broadcast %288 : vector<64x1xf32> to vector<64x64xf32>
    %290 = arith.mulf %285, %289 : vector<64x64xf32>
    %cst_113 = arith.constant dense<0.000000e+00> : vector<64x128xf32>
    %291 = tpu.matmul %290, %276, %cst_113 {dimension_numbers = #tpu.dot_dimension_numbers<[1], [0], [0], [1], [0, 0, 1, 1], [], []>} : vector<64x64xf32>, vector<64x128xf32>, vector<64x128xf32> -> vector<64x128xf32>
    %292 = vector.extract_strided_slice %186 {offsets = [512, 0], sizes = [128, 128], strides = [1, 1]} : vector<640x128xf32> to vector<128x128xf32>
    %cst_114 = arith.constant dense<0.000000e+00> : vector<64x128xf32>
    %293 = tpu.matmul %291, %292, %cst_114 {dimension_numbers = #tpu.dot_dimension_numbers<[1], [0], [0], [1], [0, 0, 1, 1], [], []>} : vector<64x128xf32>, vector<128x128xf32>, vector<64x128xf32> -> vector<64x128xf32>
    %294 = arith.addf %273, %293 : vector<64x128xf32>
    %295 = vector.broadcast %188 : vector<1x128xf32> to vector<64x128xf32>
    %296 = arith.addf %294, %295 : vector<64x128xf32>
    %297 = arith.addf %168, %296 : vector<64x128xf32>
    %c0_115 = arith.constant 0 : index
    %c0_116 = arith.constant 0 : index
    %c0_117 = arith.constant 0 : index
    %298 = vector.load %arg20[%c0_115, %c0_116, %c0_117] : memref<1x1x128xf32, #tpu.memory_space<vmem>>, vector<1x1x128xf32>
    %299 = vector.shape_cast %298 : vector<1x1x128xf32> to vector<1x128xf32>
    %c0_118 = arith.constant 0 : index
    %c0_119 = arith.constant 0 : index
    %c0_120 = arith.constant 0 : index
    %300 = vector.load %arg21[%c0_118, %c0_119, %c0_120] : memref<1x1x128xf32, #tpu.memory_space<vmem>>, vector<1x1x128xf32>
    %301 = vector.shape_cast %300 : vector<1x1x128xf32> to vector<1x128xf32>
    %cst_121 = arith.constant dense<0.000000e+00> : vector<64xf32>
    %302 = vector.multi_reduction <add>, %297, %cst_121 [1] : vector<64x128xf32> to vector<64xf32>
    %303 = vector.shape_cast %302 : vector<64xf32> to vector<64x1xf32>
    %cst_122 = arith.constant 0.00999999977 : f32
    %304 = vector.broadcast %cst_122 : f32 to vector<64x1xf32>
    %305 = arith.mulf %303, %304 : vector<64x1xf32>
    %306 = vector.broadcast %305 : vector<64x1xf32> to vector<64x128xf32>
    %307 = arith.subf %297, %306 : vector<64x128xf32>
    %cst_123 = arith.constant 0.000000e+00 : f32
    %308 = vector.broadcast %cst_123 : f32 to vector<64x128xf32>
    %309 = arith.select %19, %307, %308 : vector<64x128xi1>, vector<64x128xf32>
    %310 = arith.mulf %309, %309 : vector<64x128xf32>
    %cst_124 = arith.constant dense<0.000000e+00> : vector<64xf32>
    %311 = vector.multi_reduction <add>, %310, %cst_124 [1] : vector<64x128xf32> to vector<64xf32>
    %312 = vector.shape_cast %311 : vector<64xf32> to vector<64x1xf32>
    %cst_125 = arith.constant 0.00999999977 : f32
    %313 = vector.broadcast %cst_125 : f32 to vector<64x1xf32>
    %314 = arith.mulf %312, %313 : vector<64x1xf32>
    %cst_126 = arith.constant 9.99999974E-6 : f32
    %315 = vector.broadcast %cst_126 : f32 to vector<64x1xf32>
    %316 = arith.addf %314, %315 : vector<64x1xf32>
    %317 = math.rsqrt %316 : vector<64x1xf32>
    %318 = vector.broadcast %317 : vector<64x1xf32> to vector<64x128xf32>
    %319 = arith.mulf %309, %318 : vector<64x128xf32>
    %320 = vector.broadcast %299 : vector<1x128xf32> to vector<64x128xf32>
    %321 = arith.mulf %319, %320 : vector<64x128xf32>
    %322 = vector.broadcast %301 : vector<1x128xf32> to vector<64x128xf32>
    %323 = arith.addf %321, %322 : vector<64x128xf32>
    %c0_127 = arith.constant 0 : index
    %c0_128 = arith.constant 0 : index
    %c0_129 = arith.constant 0 : index
    %324 = vector.load %arg14[%c0_127, %c0_128, %c0_129] : memref<1x128x384xf32, #tpu.memory_space<vmem>>, vector<1x128x384xf32>
    %325 = vector.shape_cast %324 : vector<1x128x384xf32> to vector<128x384xf32>
    %cst_130 = arith.constant dense<0.000000e+00> : vector<64x384xf32>
    %326 = tpu.matmul %323, %325, %cst_130 {dimension_numbers = #tpu.dot_dimension_numbers<[1], [0], [0], [1], [0, 0, 1, 1], [], []>} : vector<64x128xf32>, vector<128x384xf32>, vector<64x384xf32> -> vector<64x384xf32>
    %c0_131 = arith.constant 0 : index
    %c0_132 = arith.constant 0 : index
    %c0_133 = arith.constant 0 : index
    %327 = vector.load %arg15[%c0_131, %c0_132, %c0_133] : memref<1x1x384xf32, #tpu.memory_space<vmem>>, vector<1x1x384xf32>
    %328 = vector.shape_cast %327 : vector<1x1x384xf32> to vector<1x384xf32>
    %329 = vector.broadcast %328 : vector<1x384xf32> to vector<64x384xf32>
    %330 = arith.addf %326, %329 : vector<64x384xf32>
    %cst_134 = arith.constant 0.000000e+00 : f32
    %331 = vector.broadcast %cst_134 : f32 to vector<64x384xf32>
    %332 = arith.maximumf %330, %331 : vector<64x384xf32>
    %c0_135 = arith.constant 0 : index
    %c0_136 = arith.constant 0 : index
    %c0_137 = arith.constant 0 : index
    %333 = vector.load %arg16[%c0_135, %c0_136, %c0_137] : memref<1x384x128xf32, #tpu.memory_space<vmem>>, vector<1x384x128xf32>
    %334 = vector.shape_cast %333 : vector<1x384x128xf32> to vector<384x128xf32>
    %cst_138 = arith.constant dense<0.000000e+00> : vector<64x128xf32>
    %335 = tpu.matmul %332, %334, %cst_138 {dimension_numbers = #tpu.dot_dimension_numbers<[1], [0], [0], [1], [0, 0, 1, 1], [], []>} : vector<64x384xf32>, vector<384x128xf32>, vector<64x128xf32> -> vector<64x128xf32>
    %c0_139 = arith.constant 0 : index
    %c0_140 = arith.constant 0 : index
    %c0_141 = arith.constant 0 : index
    %336 = vector.load %arg17[%c0_139, %c0_140, %c0_141] : memref<1x1x128xf32, #tpu.memory_space<vmem>>, vector<1x1x128xf32>
    %337 = vector.shape_cast %336 : vector<1x1x128xf32> to vector<1x128xf32>
    %338 = vector.broadcast %337 : vector<1x128xf32> to vector<64x128xf32>
    %339 = arith.addf %335, %338 : vector<64x128xf32>
    %340 = arith.addf %323, %339 : vector<64x128xf32>
    %c0_142 = arith.constant 0 : index
    %c0_143 = arith.constant 0 : index
    %c0_144 = arith.constant 0 : index
    %341 = vector.load %arg22[%c0_142, %c0_143, %c0_144] : memref<1x1x128xf32, #tpu.memory_space<vmem>>, vector<1x1x128xf32>
    %342 = vector.shape_cast %341 : vector<1x1x128xf32> to vector<1x128xf32>
    %c0_145 = arith.constant 0 : index
    %c0_146 = arith.constant 0 : index
    %c0_147 = arith.constant 0 : index
    %343 = vector.load %arg23[%c0_145, %c0_146, %c0_147] : memref<1x1x128xf32, #tpu.memory_space<vmem>>, vector<1x1x128xf32>
    %344 = vector.shape_cast %343 : vector<1x1x128xf32> to vector<1x128xf32>
    %cst_148 = arith.constant dense<0.000000e+00> : vector<64xf32>
    %345 = vector.multi_reduction <add>, %340, %cst_148 [1] : vector<64x128xf32> to vector<64xf32>
    %346 = vector.shape_cast %345 : vector<64xf32> to vector<64x1xf32>
    %cst_149 = arith.constant 0.00999999977 : f32
    %347 = vector.broadcast %cst_149 : f32 to vector<64x1xf32>
    %348 = arith.mulf %346, %347 : vector<64x1xf32>
    %349 = vector.broadcast %348 : vector<64x1xf32> to vector<64x128xf32>
    %350 = arith.subf %340, %349 : vector<64x128xf32>
    %cst_150 = arith.constant 0.000000e+00 : f32
    %351 = vector.broadcast %cst_150 : f32 to vector<64x128xf32>
    %352 = arith.select %19, %350, %351 : vector<64x128xi1>, vector<64x128xf32>
    %353 = arith.mulf %352, %352 : vector<64x128xf32>
    %cst_151 = arith.constant dense<0.000000e+00> : vector<64xf32>
    %354 = vector.multi_reduction <add>, %353, %cst_151 [1] : vector<64x128xf32> to vector<64xf32>
    %355 = vector.shape_cast %354 : vector<64xf32> to vector<64x1xf32>
    %cst_152 = arith.constant 0.00999999977 : f32
    %356 = vector.broadcast %cst_152 : f32 to vector<64x1xf32>
    %357 = arith.mulf %355, %356 : vector<64x1xf32>
    %cst_153 = arith.constant 9.99999974E-6 : f32
    %358 = vector.broadcast %cst_153 : f32 to vector<64x1xf32>
    %359 = arith.addf %357, %358 : vector<64x1xf32>
    %360 = math.rsqrt %359 : vector<64x1xf32>
    %361 = vector.broadcast %360 : vector<64x1xf32> to vector<64x128xf32>
    %362 = arith.mulf %352, %361 : vector<64x128xf32>
    %363 = vector.broadcast %342 : vector<1x128xf32> to vector<64x128xf32>
    %364 = arith.mulf %362, %363 : vector<64x128xf32>
    %365 = vector.broadcast %344 : vector<1x128xf32> to vector<64x128xf32>
    %366 = arith.addf %364, %365 : vector<64x128xf32>
    %c0_154 = arith.constant 0 : index
    %c0_155 = arith.constant 0 : index
    %367 = vector.load %arg27[%c0_154, %c0_155] : memref<64x128xf32, #tpu.memory_space<vmem>>, vector<64x128xf32>
    tpu.vector_store %arg27[%c0_154, %c0_155], %366 {strides = array<i32>} : memref<64x128xf32, #tpu.memory_space<vmem>>, vector<64x128xf32>,
    %c4_i32 = arith.constant 4 : i32
    %368 = arith.cmpi eq, %arg1, %c4_i32 : i32
    %369 = arith.extui %368 : i1 to i32
    %c0_i32_156 = arith.constant 0 : i32
    %370 = arith.cmpi ne, %369, %c0_i32_156 : i32
    scf.if %370 {
      %c0_157 = arith.constant 0 : index
      %c0_158 = arith.constant 0 : index
      %371 = vector.load %arg24[%c0_157, %c0_158] : memref<128x128xf32, #tpu.memory_space<vmem>>, vector<128x128xf32>
      %cst_159 = arith.constant dense<0.000000e+00> : vector<64x128xf32>
      %372 = tpu.matmul %366, %371, %cst_159 {dimension_numbers = #tpu.dot_dimension_numbers<[1], [0], [0], [1], [0, 0, 1, 1], [], []>} : vector<64x128xf32>, vector<128x128xf32>, vector<64x128xf32> -> vector<64x128xf32>
      %c0_160 = arith.constant 0 : index
      %c0_161 = arith.constant 0 : index
      %373 = vector.load %arg25[%c0_160, %c0_161] : memref<1x128xf32, #tpu.memory_space<vmem>>, vector<1x128xf32>
      %374 = vector.broadcast %373 : vector<1x128xf32> to vector<64x128xf32>
      %375 = arith.addf %372, %374 : vector<64x128xf32>
      %c0_162 = arith.constant 0 : index
      %c0_163 = arith.constant 0 : index
      %c0_164 = arith.constant 0 : index
      %376 = vector.load %arg26[%c0_162, %c0_163, %c0_164] : memref<1x64x128xf32, #tpu.memory_space<vmem>>, vector<1x64x128xf32>
      %377 = vector.shape_cast %376 : vector<1x64x128xf32> to vector<64x128xf32>
      %378 = vector.shape_cast %375 : vector<64x128xf32> to vector<1x64x128xf32>
      tpu.vector_store %arg26[%c0_162, %c0_163, %c0_164], %378 {strides = array<i32>} : memref<1x64x128xf32, #tpu.memory_space<vmem>>, vector<1x64x128xf32>,
    } else {
    }
    return
  }
  func.func @transform_0(%arg0: i32, %arg1: i32) -> (i32, i32, i32) {
    %c0_i32 = arith.constant 0 : i32
    %c0_i32_0 = arith.constant 0 : i32
    %c0_i32_1 = arith.constant 0 : i32
    return %arg0, %c0_i32, %c0_i32_0 : i32, i32, i32
  }
  func.func @transform_1(%arg0: i32, %arg1: i32) -> (i32, i32, i32) {
    %c0_i32 = arith.constant 0 : i32
    %c0_i32_0 = arith.constant 0 : i32
    %c0_i32_1 = arith.constant 0 : i32
    return %arg0, %c0_i32, %c0_i32_0 : i32, i32, i32
  }
  func.func @transform_2(%arg0: i32, %arg1: i32) -> (i32, i32, i32) {
    %c0_i32 = arith.constant 0 : i32
    %c0_i32_0 = arith.constant 0 : i32
    %c0_i32_1 = arith.constant 0 : i32
    return %arg1, %c0_i32, %c0_i32_0 : i32, i32, i32
  }
  func.func @transform_3(%arg0: i32, %arg1: i32) -> (i32, i32, i32) {
    %c0_i32 = arith.constant 0 : i32
    %c0_i32_0 = arith.constant 0 : i32
    %c0_i32_1 = arith.constant 0 : i32
    return %arg1, %c0_i32, %c0_i32_0 : i32, i32, i32
  }
  func.func @transform_4(%arg0: i32, %arg1: i32) -> (i32, i32, i32) {
    %c0_i32 = arith.constant 0 : i32
    %c0_i32_0 = arith.constant 0 : i32
    %c0_i32_1 = arith.constant 0 : i32
    return %arg1, %c0_i32, %c0_i32_0 : i32, i32, i32
  }
  func.func @transform_5(%arg0: i32, %arg1: i32) -> (i32, i32, i32) {
    %c0_i32 = arith.constant 0 : i32
    %c0_i32_0 = arith.constant 0 : i32
    %c0_i32_1 = arith.constant 0 : i32
    return %arg1, %c0_i32, %c0_i32_0 : i32, i32, i32
  }
  func.func @transform_6(%arg0: i32, %arg1: i32) -> (i32, i32, i32) {
    %c0_i32 = arith.constant 0 : i32
    %c0_i32_0 = arith.constant 0 : i32
    %c0_i32_1 = arith.constant 0 : i32
    return %arg1, %c0_i32, %c0_i32_0 : i32, i32, i32
  }
  func.func @transform_7(%arg0: i32, %arg1: i32) -> (i32, i32, i32) {
    %c0_i32 = arith.constant 0 : i32
    %c0_i32_0 = arith.constant 0 : i32
    %c0_i32_1 = arith.constant 0 : i32
    return %arg1, %c0_i32, %c0_i32_0 : i32, i32, i32
  }
  func.func @transform_8(%arg0: i32, %arg1: i32) -> (i32, i32, i32) {
    %c0_i32 = arith.constant 0 : i32
    %c0_i32_0 = arith.constant 0 : i32
    %c0_i32_1 = arith.constant 0 : i32
    return %arg1, %c0_i32, %c0_i32_0 : i32, i32, i32
  }
  func.func @transform_9(%arg0: i32, %arg1: i32) -> (i32, i32, i32) {
    %c0_i32 = arith.constant 0 : i32
    %c0_i32_0 = arith.constant 0 : i32
    %c0_i32_1 = arith.constant 0 : i32
    return %arg1, %c0_i32, %c0_i32_0 : i32, i32, i32
  }
  func.func @transform_10(%arg0: i32, %arg1: i32) -> (i32, i32, i32) {
    %c0_i32 = arith.constant 0 : i32
    %c0_i32_0 = arith.constant 0 : i32
    %c0_i32_1 = arith.constant 0 : i32
    return %arg1, %c0_i32, %c0_i32_0 : i32, i32, i32
  }
  func.func @transform_11(%arg0: i32, %arg1: i32) -> (i32, i32, i32) {
    %c0_i32 = arith.constant 0 : i32
    %c0_i32_0 = arith.constant 0 : i32
    %c0_i32_1 = arith.constant 0 : i32
    return %arg1, %c0_i32, %c0_i32_0 : i32, i32, i32
  }
  func.func @transform_12(%arg0: i32, %arg1: i32) -> (i32, i32, i32) {
    %c0_i32 = arith.constant 0 : i32
    %c0_i32_0 = arith.constant 0 : i32
    %c0_i32_1 = arith.constant 0 : i32
    return %arg1, %c0_i32, %c0_i32_0 : i32, i32, i32
  }
  func.func @transform_13(%arg0: i32, %arg1: i32) -> (i32, i32, i32) {
    %c0_i32 = arith.constant 0 : i32
    %c0_i32_0 = arith.constant 0 : i32
    %c0_i32_1 = arith.constant 0 : i32
    return %arg1, %c0_i32, %c0_i32_0 : i32, i32, i32
  }
  func.func @transform_14(%arg0: i32, %arg1: i32) -> (i32, i32, i32) {
    %c0_i32 = arith.constant 0 : i32
    %c0_i32_0 = arith.constant 0 : i32
    %c0_i32_1 = arith.constant 0 : i32
    return %arg1, %c0_i32, %c0_i32_0 : i32, i32, i32
  }
  func.func @transform_15(%arg0: i32, %arg1: i32) -> (i32, i32, i32) {
    %c0_i32 = arith.constant 0 : i32
    %c0_i32_0 = arith.constant 0 : i32
    %c0_i32_1 = arith.constant 0 : i32
    return %arg1, %c0_i32, %c0_i32_0 : i32, i32, i32
  }
  func.func @transform_16(%arg0: i32, %arg1: i32) -> (i32, i32, i32) {
    %c0_i32 = arith.constant 0 : i32
    %c0_i32_0 = arith.constant 0 : i32
    %c0_i32_1 = arith.constant 0 : i32
    return %arg1, %c0_i32, %c0_i32_0 : i32, i32, i32
  }
  func.func @transform_17(%arg0: i32, %arg1: i32) -> (i32, i32, i32) {
    %c0_i32 = arith.constant 0 : i32
    %c0_i32_0 = arith.constant 0 : i32
    %c0_i32_1 = arith.constant 0 : i32
    return %arg1, %c0_i32, %c0_i32_0 : i32, i32, i32
  }
  func.func @transform_18(%arg0: i32, %arg1: i32) -> (i32, i32, i32) {
    %c0_i32 = arith.constant 0 : i32
    %c0_i32_0 = arith.constant 0 : i32
    %c0_i32_1 = arith.constant 0 : i32
    return %arg1, %c0_i32, %c0_i32_0 : i32, i32, i32
  }
  func.func @transform_19(%arg0: i32, %arg1: i32) -> (i32, i32, i32) {
    %c0_i32 = arith.constant 0 : i32
    %c0_i32_0 = arith.constant 0 : i32
    %c0_i32_1 = arith.constant 0 : i32
    return %arg1, %c0_i32, %c0_i32_0 : i32, i32, i32
  }
  func.func @transform_20(%arg0: i32, %arg1: i32) -> (i32, i32, i32) {
    %c0_i32 = arith.constant 0 : i32
    %c0_i32_0 = arith.constant 0 : i32
    %c0_i32_1 = arith.constant 0 : i32
    return %arg1, %c0_i32, %c0_i32_0 : i32, i32, i32
  }
  func.func @transform_21(%arg0: i32, %arg1: i32) -> (i32, i32, i32) {
    %c0_i32 = arith.constant 0 : i32
    %c0_i32_0 = arith.constant 0 : i32
    %c0_i32_1 = arith.constant 0 : i32
    return %arg1, %c0_i32, %c0_i32_0 : i32, i32, i32
  }
  func.func @transform_22(%arg0: i32, %arg1: i32) -> (i32, i32) {
    %c0_i32 = arith.constant 0 : i32
    %c0_i32_0 = arith.constant 0 : i32
    %c0_i32_1 = arith.constant 0 : i32
    return %c0_i32, %c0_i32_0 : i32, i32
  }
  func.func @transform_23(%arg0: i32, %arg1: i32) -> (i32, i32) {
    %c0_i32 = arith.constant 0 : i32
    %c0_i32_0 = arith.constant 0 : i32
    %c0_i32_1 = arith.constant 0 : i32
    return %c0_i32, %c0_i32_0 : i32, i32
  }
  func.func @transform_24(%arg0: i32, %arg1: i32) -> (i32, i32, i32) {
    %c0_i32 = arith.constant 0 : i32
    %c0_i32_0 = arith.constant 0 : i32
    %c0_i32_1 = arith.constant 0 : i32
    return %arg0, %c0_i32, %c0_i32_0 : i32, i32, i32
  }
}

</mosaic_0001>

<bundles_post_ra>
// kernel: tpu_custom_call.1
= control target key start
LH: loop header
LB: loop body
LE: loop exit
PB: predicated region body
PF: predicated region fallthrough
CT: control target
= control target key end

     0   :  { %s13422_s0 = inlined_call_operand.hbm [shape: f32[2,64,128], index: 0, kind: input, shape index: {}]   ;;  %s13423_s1 = inlined_call_operand.hbm [shape: f32[2,64,128], index: 1, kind: input, shape index: {}]   ;;  %s13424_s2 = inlined_call_operand.hbm [shape: f32[5,128,1920], index: 2, kind: input, shape index: {}]   ;;  %s13425_s3 = inlined_call_operand.hbm [shape: f32[5,1,1920], index: 3, kind: input, shape index: {}]   ;;  %s13426_s4 = inlined_call_operand.hbm [shape: f32[5,640,128], index: 4, kind: input, shape index: {}]   ;;  %s13427_s5 = inlined_call_operand.hbm [shape: f32[5,1,128], index: 5, kind: input, shape index: {}]   ;;  %s13428_s6 = inlined_call_operand.hbm [shape: f32[5,128,640], index: 6, kind: input, shape index: {}]   ;;  %s13429_s7 = inlined_call_operand.hbm [shape: f32[5,1,640], index: 7, kind: input, shape index: {}]   ;;  %s13430_s8 = inlined_call_operand.hbm [shape: f32[5,128,1280], index: 8, kind: input, shape index: {}]   ;;  %s13431_s9 = inlined_call_operand.hbm [shape: f32[5,1,1280], index: 9, kind: input, shape index: {}]   ;;  %s13432_s10 = inlined_call_operand.hbm [shape: f32[5,640,128], index: 10, kind: input, shape index: {}]   ;;  %s13433_s11 = inlined_call_operand.hbm [shape: f32[5,1,128], index: 11, kind: input, shape index: {}]   ;;  %s13434_s12 = inlined_call_operand.hbm [shape: f32[5,128,384], index: 12, kind: input, shape index: {}]   ;;  %s13435_s13 = inlined_call_operand.hbm [shape: f32[5,1,384], index: 13, kind: input, shape index: {}]   ;;  %s13436_s14 = inlined_call_operand.hbm [shape: f32[5,384,128], index: 14, kind: input, shape index: {}]   ;;  %s13437_s15 = inlined_call_operand.hbm [shape: f32[5,1,128], index: 15, kind: input, shape index: {}]   ;;  %s13438_s16 = inlined_call_operand.hbm [shape: f32[5,1,128], index: 16, kind: input, shape index: {}]   ;;  %s13439_s17 = inlined_call_operand.hbm [shape: f32[5,1,128], index: 17, kind: input, shape index: {}]   ;;  %s13440_s18 = inlined_call_operand.hbm [shape: f32[5,1,128], index: 18, kind: input, shape index: {}]   ;;  %s13441_s19 = inlined_call_operand.hbm [shape: f32[5,1,128], index: 19, kind: input, shape index: {}]   ;;  %s13442_s20 = inlined_call_operand.hbm [shape: f32[5,1,128], index: 20, kind: input, shape index: {}]   ;;  %s13443_s21 = inlined_call_operand.hbm [shape: f32[5,1,128], index: 21, kind: input, shape index: {}]   ;;  %s13444_s22 = inlined_call_operand.hbm [shape: f32[128,128], index: 22, kind: input, shape index: {}]   ;;  %s13445_s23 = inlined_call_operand.hbm [shape: f32[1,128], index: 23, kind: input, shape index: {}]   ;;  %s13446_s24 = inlined_call_operand.hbm [shape: f32[2,64,128], index: 24, kind: output, shape index: {}]  }
   0x1   :  { %13513 = sst [smem:[#allocation99_spill]] %s13422_s0 }
   0x2   :  { %13514 = sst [smem:[#allocation100_spill]] %s13423_s1 }
   0x3   :  { %13515 = sst [smem:[#allocation101_spill]] %s13424_s2 }
   0x4   :  { %13516 = sst [smem:[#allocation102_spill]] %s13425_s3 }
   0x5   :  { %13517 = sst [smem:[#allocation103_spill]] %s13426_s4 }
   0x6   :  { %13518 = sst [smem:[#allocation104_spill]] %s13427_s5 }
   0x7   :  { %13519 = sst [smem:[#allocation105_spill]] %s13428_s6 }
   0x8   :  { %13520 = sst [smem:[#allocation106_spill]] %s13429_s7 }
   0x9   :  { %13521 = sst [smem:[#allocation107_spill]] %s13430_s8 }
   0xa   :  { %13522 = sst [smem:[#allocation108_spill]] %s13431_s9 }
   0xb   :  { %13523 = sst [smem:[#allocation109_spill]] %s13432_s10 }
   0xc   :  { %13524 = sst [smem:[#allocation110_spill]] %s13433_s11 }
   0xd   :  { %13525 = sst [smem:[#allocation111_spill]] %s13434_s12 }
   0xe   :  { %13526 = sst [smem:[#allocation112_spill]] %s13435_s13 }
   0xf   :  { %13527 = sst [smem:[#allocation113_spill]] %s13436_s14 }
  0x10   :  { %13528 = sst [smem:[#allocation114_spill]] %s13437_s15 }
  0x11   :  { %13529 = sst [smem:[#allocation115_spill]] %s13438_s16 }
  0x12   :  { %13530 = sst [smem:[#allocation116_spill]] %s13440_s18 }
  0x13   :  { %13531 = sst [smem:[#allocation117_spill]] %s13442_s20 }
  0x14   :  { %13532 = sst [smem:[#allocation118_spill]] %s13443_s21 }
  0x15   :  { %13533 = sst [smem:[#allocation119_spill]] %s13444_s22 }
  0x16   :  { %13534 = sst [smem:[#allocation120_spill]] %s13445_s23 }
  0x17   :  { %13535 = sst [smem:[#allocation121_spill]] %s13446_s24 }
  0x18   :  { %29 = vsyncpa [#allocation4], 0 }
  0x19   :  { %31 = vsyncpa [#allocation4 + $0x1], 0 }
  0x1a   :  { %32 = vsyncpa [#allocation7], 0 }
  0x1b   :  { %34 = vsyncpa [#allocation7 + $0x1], 0 }
  0x1c   :  { %35 = vsyncpa [#allocation10], 0 }
  0x1d   :  { %37 = vsyncpa [#allocation10 + $0x1], 0 }
  0x1e   :  { %38 = vsyncpa [#allocation13], 0 }
  0x1f   :  { %40 = vsyncpa [#allocation13 + $0x1], 0 }
  0x20   :  { %41 = vsyncpa [#allocation16], 0 }
  0x21   :  { %43 = vsyncpa [#allocation16 + $0x1], 0 }
  0x22   :  { %44 = vsyncpa [#allocation19], 0 }
  0x23   :  { %46 = vsyncpa [#allocation19 + $0x1], 0 }
  0x24   :  { %47 = vsyncpa [#allocation22], 0 }
  0x25   :  { %49 = vsyncpa [#allocation22 + $0x1], 0 }
  0x26   :  { %50 = vsyncpa [#allocation25], 0 }
  0x27   :  { %52 = vsyncpa [#allocation25 + $0x1], 0 }
  0x28   :  { %53 = vsyncpa [#allocation28], 0 }
  0x29   :  { %55 = vsyncpa [#allocation28 + $0x1], 0 }
  0x2a   :  { %56 = vsyncpa [#allocation31], 0 }
  0x2b   :  { %58 = vsyncpa [#allocation31 + $0x1], 0 }
  0x2c   :  { %59 = vsyncpa [#allocation34], 0 }
  0x2d   :  { %61 = vsyncpa [#allocation34 + $0x1], 0 }
  0x2e   :  { %62 = vsyncpa [#allocation37], 0 }
  0x2f   :  { %64 = vsyncpa [#allocation37 + $0x1], 0 }
  0x30   :  { %65 = vsyncpa [#allocation40], 0 }
  0x31   :  { %66 = vsyncpa [#allocation5], 0 }
  0x32   :  { %68 = vsyncpa [#allocation5 + $0x1], 0  ;;  %s9567_s5 = smov 0   ;;  %s9569_s26 = smov 0  }
  0x33   :  { %s9571_s27 = smov 0   ;;  %s9573_s28 = smov 0  }
  0x34   :  { %s9575_s6 = smov 0   ;;  %s9577_s2 = smov 0  }
  0x35   :  { %s9579_s29 = smov 0   ;;  %s9581_s0 = smov 0  }
  0x36   :  { %s9583_s7 = smov 0   ;;  %s9585_s30 = smov 0  }
  0x37   :  { %s9587_s3 = smov 0  }
  0x38 LB: > { %13536 = sst [smem:[#allocation58_spill]] %s9387_s26  ;;  %s9623_s25 = sadd.s32 4294967295, %s9423_s3   ;;  %s9423_s3 = sphi %s9587_s3, %s74_s3   ;;  %s9419_s30 = sphi %s9585_s30, %s13712_s30   ;;  %s9415_s7 = sphi %s9583_s7, %s13711_s7   ;;  %s9411_s0 = sphi %s9581_s0, %s13710_s0   ;;  %s9407_s29 = sphi %s9579_s29, %s13709_s29   ;;  %s9403_s2 = sphi %s9577_s2, %s13708_s2   ;;  %s9399_s6 = sphi %s9575_s6, %s13707_s6   ;;  %s9395_s28 = sphi %s9573_s28, %s13703_s28   ;;  %s9391_s27 = sphi %s9571_s27, %s13702_s27   ;;  %s9387_s26 = sphi %s9569_s26, %s13701_s26   ;;  %s9383_s5 = sphi %s9567_s5, %s13700_s5  }
  0x39   : > { %13537 = sst [smem:[#allocation59_spill]] %s9391_s27  ;;  %s7763_s8 = sadd.s32 4294967294, %s9423_s3  }
  0x3a   : > { %13538 = sst [smem:[#allocation60_spill]] %s9395_s28  ;;  %s83_s4 = sadd.s32 1, %s9415_s7 }
  0x3b   : > { %13539 = sst [smem:[#allocation61_spill]] %s9399_s6  ;;  %s86_s1 = sadd.s32 1, %s9419_s30 }
  0x3c   : > { %13540 = sst [smem:[#allocation62_spill]] %s9407_s29  ;;  %p84_p0 = scmp.ge.s32.totalorder %s83_s4, 5 }
  0x3d   : > { %13541 = sst [smem:[#allocation63_spill]] %s9411_s0  ;;  %s93_s24 = sadd.s32 1, %s9403_s2 }
  0x3e   : > { %13542 = sst [smem:[#allocation64_spill]] %s9423_s3  ;;  %p13450_p1 = scmp.ne.s32.totalorder %s9403_s2, %s9399_s6 }
  0x3f   : > { %13543 = sst [smem:[#allocation65_spill]] %s9623_s25  ;;  %p101_p2 = scmp.eq.s32.totalorder %s9423_s3, 0 }
  0x40   : > { %s13714_s4 = smov (%p84_p0, %s83_s4), 0  ;;  %s13716_s1 = smov (!%p84_p0, %s86_s1), %s9419_s30 }
  0x41   : > { %13544 = sst [smem:[#allocation66_spill]] %s13714_s4  ;;  %p9640_p3 = por %p101_p2, %p13450_p1 }
  0x42   : > { %p13449_p4 = scmp.ne.s32.totalorder %s9399_s6, %s9395_s28  ;;  %p88_p5 = scmp.ge.s32.totalorder %s13716_s1, 2 }
  0x43   : > { %s13545_s0 = scalar_select %p9640_p3, 1, 0 }
  0x44   : > { %p107_p6 = scmp.eq.s32.totalorder %s9623_s25, 0  ;;  %s142_s29 = ssub.s32 %s9415_s7, %s13714_s4 }
  0x45   : > { %s145_s21 = sadd.s32 1, %s9391_s27  ;;  %s13718_s1 = smov (%p88_p5, %s13716_s1), 0 }
  0x46   : > { %13546 = sst [smem:[#allocation67_spill]] %s13718_s1  ;;  %p9657_p7 = por %p107_p6, %p13449_p4 }
  0x47   : > { %p143_p8 = scmp.eq.s32.totalorder %s142_s29, 0  ;;  %s90_s18 = ssub.s32 %s9419_s30, %s13718_s1 }
  0x48   : > { %s13547_s20 = scalar_select %p9657_p7, 1, 0 }
  0x49   : > { %p152_p9 = scmp.ne.s32.totalorder %s9391_s27, %s9387_s26  ;;  %p91_p10 = scmp.eq.s32.totalorder %s90_s18, 0 }
  0x4a   : > { %13548 = sst [smem:[#allocation68_spill]] %s13547_s20  ;;  %p158_p11 = scmp.ne.s32.totalorder %s9387_s26, %s9383_s5 }
  0x4b   : > { %s9668_s4 = scalar_select %p143_p8, %s9391_s27, %s145_s21  }
  0x4c   : > { %s9671_s16 = scalar_select %p91_p10, %s9403_s2, %s93_s24  }
  0x4d   : > { %13549 = sst [smem:[#allocation69_spill]] %s9668_s4  ;;  %p9675_p12 = por %p152_p9, %p101_p2 }
  0x4e   : > { %13550 = sst [smem:[#allocation70_spill]] %s9671_s16  ;;  %p9681_p13 = por %p158_p11, %p107_p6 }
  0x4f   : > { %p718_p0 = scmp.eq.s32.totalorder %s9623_s25, 9  ;;  %p724_p5 = scmp.eq.s32.totalorder %s7763_s8, 9 }
  0x50   : > { %s13552_s12 = scalar_select %p9681_p13, 1, 0 }
  0x51   : > { %p7764_p4 = scmp.ge.s32.totalorder %s9423_s3, 1  ;;  %p731_p1 = scmp.lt.s32.totalorder %s9423_s3, 11 }
  0x52   : > { %13553 = sst [smem:[#allocation71_spill]] %s13552_s12  ;;  %p13554_p7 = scmp.ne.s32.totalorder %s9403_s2, %s9399_s6 }
  0x53   : > { %p13557_p10 = scmp.ne.s32.totalorder %s9399_s6, %s9395_s28  ;;  %p9702_p2 = pnand %p7764_p4, %p731_p1 }
  0x54   : > { %p9691_p8 = por %p718_p0, %p13554_p7  ;;  %s13562_s22 = sld [smem:[#allocation119_spill]] }
  0x55   : > { %p9698_p3 = por %p724_p5, %p13557_p10  ;;  %p8041_p9 = pneg %p9702_p2 }
  0x56   : > { %s13555_s18 = scalar_select %p9691_p8, 1, 0 }
  0x57   : > { %s13558_s21 = scalar_select %p9698_p3, 1, 0 }
  0x58   : > { %13556 = sst [smem:[#allocation72_spill]] %s13555_s18  ;;  %s9425_s1 = smov [#allocation38]  }
  0x59   : > { %13559 = sst [smem:[#allocation73_spill]] %s13558_s21  ;;  %s744_s16 = sshll.u32 %s9425_s1, 4  ;;  %s745_s16 = int_to_ptr.vmem [resolvable:$true] %s744_s16 }
  0x5a   : > { %s13560_s24 = scalar_select %p9702_p2, 1, 0 }
  0x5b   : > { %s742_s8 = sshll.u32 %s13562_s22, 4  ;;  %p8042_p7 = pnand %p8041_p9, %p107_p6  ;;  %s743_s8 = int_to_ptr.hbm [resolvable:$true] %s742_s8 }
  0x5c   : > { %13561 = sst [smem:[#allocation74_spill]] %s13560_s24  ;;  %s9426_s18 = smov 128  }
  0x5d   : > { %s13563_s23 = sld [smem:[#allocation120_spill]]  ;;  %s9427_s12 = smov 8  }
  0x5e   : > { %8044 = dma.hbm_to_vmem [thread:$0]  (!%p8042_p7), %s743_s8, 2048, %s745_s16, [#allocation37], %s9426_s18, %s9426_s18, %s9427_s12  }
  0x5f   : > { %s9428_s26 = smov [#allocation39]   ;;  %p7767_p1 = scmp.ge.s32.totalorder %s9423_s3, 10 }
  0x60   : > { %s759_s5 = sshll.u32 %s9428_s26, 4  ;;  %s13461_s28 = sand.u32 (!%p7767_p1), 1, %s9403_s2   ;;  %s760_s5 = int_to_ptr.vmem [resolvable:$true] %s759_s5 }
  0x61   : > { %766 = sbr.rel (%p7767_p1) target bundleno = 211 (0xd3), region = 24  ;;  %s13464_s4 = sshll.u32 (!%p7767_p1), %s9419_s30, 6 }
  0x62   : > { %s9721_s12 = sshll.u32 (!%p7767_p1), %s13461_s28, 6  ;;  %s9724_s16 = sand.u32 (!%p7767_p1), 1, %s9423_s3  }
  0x63   : > { %s757_s21 = sshll.u32 %s13563_s23, 4  ;;  %s13564_s18 = sld [smem:[#allocation100_spill]] (!%p7767_p1)  ;;  %s758_s21 = int_to_ptr.hbm [resolvable:$true] %s757_s21 }
  0x64   : > { %8047 = dma.hbm_to_vmem [thread:$0]  (!%p8042_p7), %s758_s21, 16, %s760_s5, [#allocation40]  }
  0x65   : > { %s796_s29 = scalar_lea.vmem (!%p7767_p1), [#allocation6], %s9721_s12  ;;  %s9733_s28 = sand.u32 (!%p7767_p1), 1, %s9391_s27  }
  0x66   : > { %s804_s8 = sshll.u32 %s796_s29, 4  ;;  %s13472_s22 = scalar_lea.sflag [#allocation7], %s9724_s16  ;;  %s805_s8 = int_to_ptr.vmem [resolvable:$true] %s804_s8 }
  0x67   : > { %s13482_s23 = smov 128   ;;  %s13484_s3 = smov 8  }
  0x68   : > { %p13565_p4 = scmp.ne.s32.totalorder %s13545_s0, 0  ;;  %s7959_s26 = smul.u32 15, %s9733_s28 }
  0x69   : > { %s801_s21 = scalar_lea.hbm %s13564_s18, %s13464_s4  ;;  %s7960_s1 = smul.u32 15, %s9415_s7 }
  0x6a   : > { %s802_s5 = sshll.u32 %s801_s21, 4  ;;  %s13566_s29 = sld [smem:[#allocation102_spill]]  ;;  %s803_s5 = int_to_ptr.hbm [resolvable:$true] %s802_s5 }
  0x6b   : > { %7992 = dma.hbm_to_vmem [thread:$0]  (%p13565_p4), %s803_s5, 1024, %s805_s8, %s13472_s22, %s13482_s23, %s13482_s23, %s13484_s3  }
  0x6c   : > { %s840_s27 = scalar_lea.vmem [#allocation9], %s7959_s26  ;;  %s13567_s8 = sld [smem:[#allocation104_spill]] }
  0x6d   : > { %s848_s25 = sshll.u32 %s840_s27, 4  ;;  %s13473_s22 = scalar_lea.sflag [#allocation10], %s9724_s16  ;;  %s849_s25 = int_to_ptr.vmem [resolvable:$true] %s848_s25 }
  0x6e   : > { %s880_s21 = scalar_lea.vmem [#allocation12], %s9733_s28  ;;  %s13474_s27 = scalar_lea.sflag [#allocation13], %s9724_s16 }
  0x6f   : > { %s887_s26 = sshll.u32 %s880_s21, 4  ;;  %s7966_s6 = smul.u32 5, %s9415_s7  ;;  %s888_s26 = int_to_ptr.vmem [resolvable:$true] %s887_s26 }
  0x70   : > { %s844_s4 = scalar_lea.hbm %s13566_s29, %s7960_s1  ;;  %s7969_s24 = smul.u32 10, %s9733_s28 }
  0x71   : > { %s846_s20 = sshll.u32 %s844_s4, 4  ;;  %s7965_s4 = smul.u32 5, %s9733_s28  ;;  %s847_s20 = int_to_ptr.hbm [resolvable:$true] %s846_s20 }
  0x72   : > { %s883_s5 = scalar_lea.hbm %s13567_s8, %s9415_s7  ;;  %s13569_s9 = sld [smem:[#allocation108_spill]] }
  0x73   : > { %7994 = dma.hbm_to_vmem [thread:$0]  (%p9675_p12), %s847_s20, 240, %s849_s25, %s13473_s22  }
  0x74   : > { %s885_s18 = sshll.u32 %s883_s5, 4  ;;  %s13568_s20 = sld [smem:[#allocation106_spill]]  ;;  %s886_s18 = int_to_ptr.hbm [resolvable:$true] %s885_s18 }
  0x75   : > { %7996 = dma.hbm_to_vmem [thread:$0]  (%p9675_p12), %s886_s18, 16, %s888_s26, %s13474_s27  }
  0x76   : > { %s920_s8 = scalar_lea.vmem [#allocation15], %s7965_s4  ;;  %s13476_s22 = scalar_lea.sflag [#allocation16], %s9724_s16 }
  0x77   : > { %s928_s5 = sshll.u32 %s920_s8, 4  ;;  %s7970_s18 = smul.u32 10, %s9415_s7  ;;  %s929_s5 = int_to_ptr.vmem [resolvable:$true] %s928_s5 }
  0x78   : > { %s961_s26 = scalar_lea.vmem [#allocation18], %s7969_s24  ;;  %s13570_s11 = sld [smem:[#allocation110_spill]] }
  0x79   : > { %s965_s29 = scalar_lea.hbm %s13569_s9, %s7970_s18  ;;  %s1001_s24 = scalar_lea.vmem [#allocation21], %s9733_s28 }
  0x7a   : > { %s924_s25 = scalar_lea.hbm %s13568_s20, %s7966_s6  ;;  %s969_s6 = sshll.u32 %s961_s26, 4  ;;  %s970_s6 = int_to_ptr.vmem [resolvable:$true] %s969_s6 }
  0x7b   : > { %s926_s21 = sshll.u32 %s924_s25, 4  ;;  %s967_s20 = sshll.u32 %s965_s29, 4  ;;  %s927_s21 = int_to_ptr.hbm [resolvable:$true] %s926_s21  ;;  %s968_s20 = int_to_ptr.hbm [resolvable:$true] %s967_s20 }
  0x7c   : > { %7998 = dma.hbm_to_vmem [thread:$0]  (%p9675_p12), %s927_s21, 80, %s929_s5, %s13476_s22  }
  0x7d   : > { %s13475_s21 = scalar_lea.sflag [#allocation19], %s9724_s16  ;;  %s1008_s26 = sshll.u32 %s1001_s24, 4  ;;  %s1009_s26 = int_to_ptr.vmem [resolvable:$true] %s1008_s26 }
  0x7e   : > { %s1004_s27 = scalar_lea.hbm %s13570_s11, %s9415_s7  ;;  %s13481_s18 = scalar_lea.sflag [#allocation22], %s9724_s16 }
  0x7f   : > { %s1006_s5 = sshll.u32 %s1004_s27, 4  ;;  %s7975_s4 = smul.u32 3, %s9733_s28  ;;  %s1007_s5 = int_to_ptr.hbm [resolvable:$true] %s1006_s5 }
  0x80   : > { %8000 = dma.hbm_to_vmem [thread:$0]  (%p9675_p12), %s968_s20, 160, %s970_s6, %s13475_s21  }
  0x81   : > { %8002 = dma.hbm_to_vmem [thread:$0]  (%p9675_p12), %s1007_s5, 16, %s1009_s26, %s13481_s18  }
  0x82   : > { %s7976_s1 = smul.u32 3, %s9415_s7  ;;  %s13571_s15 = sld [smem:[#allocation114_spill]] }
  0x83   : > { %s13572_s13 = sld [smem:[#allocation112_spill]]  ;;  %s1041_s24 = scalar_lea.vmem [#allocation24], %s7975_s4 }
  0x84   : > { %s1049_s21 = sshll.u32 %s1041_s24, 4  ;;  %s13479_s26 = scalar_lea.sflag [#allocation25], %s9724_s16  ;;  %s1050_s21 = int_to_ptr.vmem [resolvable:$true] %s1049_s21 }
  0x85   : > { %s1081_s27 = scalar_lea.vmem [#allocation27], %s9733_s28  ;;  %s13477_s4 = scalar_lea.sflag [#allocation28], %s9724_s16 }
  0x86   : > { %s1088_s29 = sshll.u32 %s1081_s27, 4  ;;  %s1152_s27 = scalar_lea.hbm %s13441_s19, %s9415_s7  ;;  %s1089_s29 = int_to_ptr.vmem [resolvable:$true] %s1088_s29 }
  0x87   : > { %s1154_s20 = sshll.u32 %s1152_s27, 4  ;;  %s13575_s27 = sand.u32 1, %s9403_s2   ;;  %s1155_s20 = int_to_ptr.hbm [resolvable:$true] %s1154_s20 }
  0x88   : > { %s1084_s6 = scalar_lea.hbm %s13571_s15, %s9415_s7  ;;  %s9431_s0 = smov 1920  }
  0x89   : > { %s1045_s8 = scalar_lea.hbm %s13572_s13, %s7976_s1  ;;  %s1086_s5 = sshll.u32 %s1084_s6, 4  ;;  %s1087_s5 = int_to_ptr.hbm [resolvable:$true] %s1086_s5 }
  0x8a   : > { %s1047_s22 = sshll.u32 %s1045_s8, 4  ;;  %s1118_s6 = scalar_lea.hbm %s13439_s17, %s9415_s7  ;;  %s1048_s22 = int_to_ptr.hbm [resolvable:$true] %s1047_s22 }
  0x8b   : > { %8004 = dma.hbm_to_vmem [thread:$0]  (%p9675_p12), %s1048_s22, 48, %s1050_s21, %s13479_s26  }
  0x8c   : > { %8006 = dma.hbm_to_vmem [thread:$0]  (%p9675_p12), %s1087_s5, 16, %s1089_s29, %s13477_s4  }
  0x8d   : > { %s1120_s25 = sshll.u32 %s1118_s6, 4  ;;  %s1115_s8 = scalar_lea.vmem [#allocation30], %s9733_s28  ;;  %s1121_s25 = int_to_ptr.hbm [resolvable:$true] %s1120_s25 }
  0x8e   : > { %s1122_s22 = sshll.u32 %s1115_s8, 4  ;;  %s13478_s21 = scalar_lea.sflag [#allocation31], %s9724_s16  ;;  %s1123_s22 = int_to_ptr.vmem [resolvable:$true] %s1122_s22 }
  0x8f   : > { %8008 = dma.hbm_to_vmem [thread:$0]  (%p9675_p12), %s1121_s25, 16, %s1123_s22, %s13478_s21  }
  0x90   : > { %s1149_s29 = scalar_lea.vmem [#allocation33], %s9733_s28  ;;  %s13480_s6 = scalar_lea.sflag [#allocation34], %s9724_s16 }
  0x91   : > { %s1156_s1 = sshll.u32 %s1149_s29, 4  ;;  %s13573_s8 = sshll.u32 %s9419_s30, 6  ;;  %s1157_s1 = int_to_ptr.vmem [resolvable:$true] %s1156_s1 }
  0x92   : > { %8010 = dma.hbm_to_vmem [thread:$0]  (%p9675_p12), %s1155_s20, 16, %s1157_s1, %s13480_s6  }
  0x93   : > { %s13574_s22 = sld [smem:[#allocation99_spill]]  ;;  %s774_s5 = scalar_lea.vmem [#allocation3], %s9721_s12 }
  0x94   : > { %s782_s26 = sshll.u32 %s774_s5, 4  ;;  %s771_s29 = scalar_lea.sflag [#allocation4], %s13575_s27  ;;  %s783_s26 = int_to_ptr.vmem [resolvable:$true] %s782_s26 }
  0x95   : > { %s7957_s1 = smul.u32 1920, %s9733_s28  ;;  %s13576_s12 = sld [smem:[#allocation101_spill]] }
  0x96   : > { %s7958_s20 = smul.u32 1920, %s9415_s7  ;;  %s9432_s27 = smov 120  }
  0x97   : > { %s9849_s6 = smul.u32 640, %s9733_s28  ;;  %s818_s25 = scalar_lea.vmem [#allocation8], %s7957_s1 }
  0x98   : > { %s13579_s18 = sld [smem:[#allocation105_spill]]  ;;  %s9434_s4 = smov 40  }
  0x99   : > { %s779_s21 = scalar_lea.hbm %s13574_s22, %s13573_s8  ;;  %s826_s22 = sshll.u32 %s818_s25, 4  ;;  %s827_s22 = int_to_ptr.vmem [resolvable:$true] %s826_s22 }
  0x9a   : > { %s780_s24 = sshll.u32 %s779_s21, 4  ;;  %s13578_s21 = sld [smem:[#allocation103_spill]]  ;;  %s781_s24 = int_to_ptr.hbm [resolvable:$true] %s780_s24 }
  0x9b   : > { %7991 = dma.hbm_to_vmem [thread:$0]  (%p13565_p4), %s781_s24, 1024, %s783_s26, %s771_s29, %s13482_s23, %s13482_s23, %s13484_s3  }
  0x9c   : > { %s823_s8 = scalar_lea.hbm %s13576_s12, %s7958_s20  ;;  %s13577_s26 = scalar_lea.sflag [#allocation7], %s9724_s16 }
  0x9d   : > { %s824_s5 = sshll.u32 %s823_s8, 4  ;;  %s9859_s24 = smul.u32 640, %s9415_s7  ;;  %s825_s5 = int_to_ptr.hbm [resolvable:$true] %s824_s5 }
  0x9e   : > { %7993 = dma.hbm_to_vmem [thread:$0]  (%p9675_p12), %s825_s5, 30720, %s827_s22, %s13577_s26, %s9431_s0, %s9431_s0, %s9432_s27  }
  0x9f   : > { %s859_s29 = scalar_lea.vmem [#allocation11], %s9849_s6  ;;  %s903_s23 = scalar_lea.hbm %s13579_s18, %s9859_s24 }
  0xa0   : > { %s867_s1 = sshll.u32 %s859_s29, 4  ;;  %s864_s12 = scalar_lea.hbm %s13578_s21, %s9859_s24  ;;  %s868_s1 = int_to_ptr.vmem [resolvable:$true] %s867_s1 }
  0xa1   : > { %s865_s22 = sshll.u32 %s864_s12, 4  ;;  %s904_s5 = sshll.u32 %s903_s23, 4  ;;  %s866_s22 = int_to_ptr.hbm [resolvable:$true] %s865_s22  ;;  %s905_s5 = int_to_ptr.hbm [resolvable:$true] %s904_s5 }
  0xa2   : > { %s13580_s0 = smov 128   ;;  %s13581_s27 = scalar_lea.sflag [#allocation10], %s9724_s16 }
  0xa3   : > { %7995 = dma.hbm_to_vmem [thread:$0]  (%p9675_p12), %s866_s22, 10240, %s868_s1, %s13581_s27, %s13580_s0, %s13580_s0, %s13484_s3  }
  0xa4   : > { %s898_s26 = scalar_lea.vmem [#allocation14], %s9849_s6  ;;  %s9433_s20 = smov 640  }
  0xa5   : > { %s906_s29 = sshll.u32 %s898_s26, 4  ;;  %s13582_s18 = scalar_lea.sflag [#allocation13], %s9724_s16  ;;  %s907_s29 = int_to_ptr.vmem [resolvable:$true] %s906_s29 }
  0xa6   : > { %7997 = dma.hbm_to_vmem [thread:$0]  (%p9675_p12), %s905_s5, 10240, %s907_s29, %s13582_s18, %s9433_s20, %s9433_s20, %s9434_s4  }
  0xa7   : > { %s7967_s23 = smul.u32 1280, %s9733_s28  ;;  %s13583_s25 = sld [smem:[#allocation107_spill]] }
  0xa8   : > { %s7968_s21 = smul.u32 1280, %s9415_s7  ;;  %s13584_s10 = sld [smem:[#allocation109_spill]] }
  0xa9   : > { %s939_s1 = scalar_lea.vmem [#allocation17], %s7967_s23  ;;  %s9435_s5 = smov 1280  }
  0xaa   : > { %s947_s22 = sshll.u32 %s939_s1, 4  ;;  %s9436_s29 = smov 80   ;;  %s948_s22 = int_to_ptr.vmem [resolvable:$true] %s947_s22 }
  0xab   : > { %s13585_s20 = scalar_lea.sflag [#allocation16], %s9724_s16  ;;  %s980_s18 = scalar_lea.vmem [#allocation20], %s9849_s6 }
  0xac   : > { %s13587_s23 = scalar_lea.sflag [#allocation19], %s9724_s16  ;;  %s7973_s3 = smul.u32 384, %s9733_s28 }
  0xad   : > { %s944_s9 = scalar_lea.hbm %s13583_s25, %s7968_s21  ;;  %s988_s21 = sshll.u32 %s980_s18, 4  ;;  %s989_s21 = int_to_ptr.vmem [resolvable:$true] %s988_s21 }
  0xae   : > { %s945_s27 = sshll.u32 %s944_s9, 4  ;;  %s985_s11 = scalar_lea.hbm %s13584_s10, %s9859_s24  ;;  %s946_s27 = int_to_ptr.hbm [resolvable:$true] %s945_s27 }
  0xaf   : > { %7999 = dma.hbm_to_vmem [thread:$0]  (%p9675_p12), %s946_s27, 20480, %s948_s22, %s13585_s20, %s9435_s5, %s9435_s5, %s9436_s29  }
  0xb0   : > { %s986_s4 = sshll.u32 %s985_s11, 4  ;;  %s13586_s9 = smov 8   ;;  %s987_s4 = int_to_ptr.hbm [resolvable:$true] %s986_s4 }
  0xb1   : > { %8001 = dma.hbm_to_vmem [thread:$0]  (%p9675_p12), %s987_s4, 10240, %s989_s21, %s13587_s23, %s13580_s0, %s13580_s0, %s13586_s9  }
  0xb2   : > { %s7974_s24 = smul.u32 384, %s9415_s7  ;;  %s13588_s25 = sld [smem:[#allocation111_spill]] }
  0xb3   : > { %s1019_s6 = scalar_lea.vmem [#allocation23], %s7973_s3  ;;  %s13589_s5 = sld [smem:[#allocation113_spill]] }
  0xb4   : > { %s1027_s1 = sshll.u32 %s1019_s6, 4  ;;  %s9437_s20 = smov 384   ;;  %s1028_s1 = int_to_ptr.vmem [resolvable:$true] %s1027_s1 }
  0xb5   : > { %s9438_s4 = smov 24   ;;  %s13590_s18 = scalar_lea.sflag [#allocation22], %s9724_s16 }
  0xb6   : > { %s1060_s23 = scalar_lea.vmem [#allocation26], %s7973_s3  ;;  %s13593_s27 = scalar_lea.sflag [#allocation28], %s9724_s16 }
  0xb7   : > { %s1068_s12 = sshll.u32 %s1060_s23, 4  ;;  %s1183_s26 = scalar_lea.vmem [#allocation36], %s9733_s28  ;;  %s1069_s12 = int_to_ptr.vmem [resolvable:$true] %s1068_s12 }
  0xb8   : > { %s1024_s11 = scalar_lea.hbm %s13588_s25, %s7974_s24  ;;  %s1166_s25 = scalar_lea.vmem [#allocation35], %s9733_s28 }
  0xb9   : > { %s1025_s22 = sshll.u32 %s1024_s11, 4  ;;  %s1065_s29 = scalar_lea.hbm %s13589_s5, %s7974_s24  ;;  %s1026_s22 = int_to_ptr.hbm [resolvable:$true] %s1025_s22 }
  0xba   : > { %8003 = dma.hbm_to_vmem [thread:$0]  (%p9675_p12), %s1026_s22, 6144, %s1028_s1, %s13590_s18, %s9437_s20, %s9437_s20, %s9438_s4  }
  0xbb   : > { %s1066_s21 = sshll.u32 %s1065_s29, 4  ;;  %s13591_s24 = scalar_lea.sflag [#allocation25], %s9724_s16  ;;  %s1067_s21 = int_to_ptr.hbm [resolvable:$true] %s1066_s21 }
  0xbc   : > { %8005 = dma.hbm_to_vmem [thread:$0]  (%p9675_p12), %s1067_s21, 6144, %s1069_s12, %s13591_s24, %s13580_s0, %s13580_s0, %s13586_s9  }
  0xbd   : > { %s13592_s11 = sld [smem:[#allocation115_spill]]  ;;  %s1098_s22 = scalar_lea.vmem [#allocation29], %s9733_s28 }
  0xbe   : > { %s1105_s3 = sshll.u32 %s1098_s22, 4  ;;  %s13594_s29 = sld [smem:[#allocation116_spill]]  ;;  %s1106_s3 = int_to_ptr.vmem [resolvable:$true] %s1105_s3 }
  0xbf   : > { %s1132_s20 = scalar_lea.vmem [#allocation32], %s9733_s28  ;;  %s13595_s18 = scalar_lea.sflag [#allocation31], %s9724_s16 }
  0xc0   : > { %s1139_s4 = sshll.u32 %s1132_s20, 4  ;;  %s13596_s12 = sld [smem:[#allocation117_spill]]  ;;  %s1140_s4 = int_to_ptr.vmem [resolvable:$true] %s1139_s4 }
  0xc1   : > { %s1190_s5 = sshll.u32 %s1183_s26, 4  ;;  %s1191_s5 = int_to_ptr.vmem [resolvable:$true] %s1190_s5 }
  0xc3   : > { %s1101_s6 = scalar_lea.hbm %s13592_s11, %s9415_s7  ;;  %s1173_s11 = sshll.u32 %s1166_s25, 4  ;;  %s1174_s11 = int_to_ptr.vmem [resolvable:$true] %s1173_s11 }
  0xc4   : > { %s1103_s1 = sshll.u32 %s1101_s6, 4  ;;  %s1135_s0 = scalar_lea.hbm %s13594_s29, %s9415_s7  ;;  %s1104_s1 = int_to_ptr.hbm [resolvable:$true] %s1103_s1 }
  0xc5   : > { %8007 = dma.hbm_to_vmem [thread:$0]  (%p9675_p12), %s1104_s1, 16, %s1106_s3, %s13593_s27  }
  0xc6   : > { %s1137_s9 = sshll.u32 %s1135_s0, 4  ;;  %s1169_s24 = scalar_lea.hbm %s13596_s12, %s9415_s7  ;;  %s1138_s9 = int_to_ptr.hbm [resolvable:$true] %s1137_s9 }
  0xc7   : > { %8009 = dma.hbm_to_vmem [thread:$0]  (%p9675_p12), %s1138_s9, 16, %s1140_s4, %s13595_s18  }
  0xc8   : > { %s1171_s8 = sshll.u32 %s1169_s24, 4  ;;  %s13597_s6 = scalar_lea.sflag [#allocation34], %s9724_s16  ;;  %s1172_s8 = int_to_ptr.hbm [resolvable:$true] %s1171_s8 }
  0xc9   : > { %8011 = dma.hbm_to_vmem [thread:$0]  (%p9675_p12), %s1172_s8, 16, %s1174_s11, %s13597_s6  }
  0xca   : > { %s13598_s3 = sld [smem:[#allocation118_spill]]  ;;  %s1181_s0 = scalar_lea.sflag [#allocation37], %s9724_s16 }
  0xd0   : > { %s1186_s27 = scalar_lea.hbm %s13598_s3, %s9415_s7 }
  0xd1   : > { %s1188_s29 = sshll.u32 %s1186_s27, 4  ;;  %s1189_s29 = int_to_ptr.hbm [resolvable:$true] %s1188_s29 }
  0xd2   : > { %8012 = dma.hbm_to_vmem [thread:$0]  (%p9675_p12), %s1189_s29, 16, %s1191_s5, %s1181_s0  }
  0xd3 PF: > { %1199 = sbr.rel (%p9702_p2) target bundleno = 5243 (0x147b), region = 116 }
  0xd8   : > { %s13600_s20 = sld [smem:[#allocation61_spill]] }
  0xd9   : > { %s13601_s4 = sld [smem:[#allocation68_spill]] }
  0xde   : > { %s9960_s18 = sand.u32 1, %s13600_s20  }
  0xdf   : > { %s9963_s21 = sshll.u32 %s9960_s18, 6  ;;  %s1202_s28 = scalar_lea.sflag [#allocation4], %s9960_s18 }
  0xe0   : > { %s9967_s23 = scalar_lea.vmem [#allocation3], %s9963_s21  ;;  %p13602_p11 = scmp.ne.s32.totalorder %s13601_s4, 0 }
  0xe2   : > { %9318 = dma.done.wait (%p13602_p11), %s1202_s28, 1024  }
  0xe3   : > { %9320 = vsyncadd (%p13602_p11), %s1202_s28, 4294966272  ;;  %s13603_s14 = sld [smem:[#allocation65_spill]]  ;;  %s9978_s24 = scalar_lea.vmem [#allocation6], %s9963_s21 }
  0xe9   : > { %s9974_s16 = sand.u32 1, %s13603_s14  }
  0xea   : > { %s1212_s12 = scalar_lea.sflag [#allocation7], %s9974_s16 }
  0xeb   : > { %9322 = dma.done.wait (%p13602_p11), %s1212_s12, 1024  }
  0xec   : > { %9324 = vsyncadd (%p13602_p11), %s1212_s12, 4294966272  ;;  %s13604_s8 = sld [smem:[#allocation58_spill]] }
  0xf2   : > { %s9985_s11 = sand.u32 1, %s13604_s8  }
  0xf3   : > { %s7979_s6 = smul.u32 1920, %s9985_s11 }
  0xf5   : > { %s9988_s1 = scalar_lea.vmem [#allocation8], %s7979_s6 }
  0xf6   : > { %9326 = dma.done.wait (%p9681_p13), %s1212_s12, 30720  }
  0xf7   : > { %9328 = vsyncadd (%p9681_p13), %s1212_s12, 4294936576  ;;  %s7980_s22 = smul.u32 15, %s9985_s11  ;;  %s1232_s3 = scalar_lea.sflag [#allocation10], %s9974_s16 }
  0xf9   : > { %s9996_s27 = scalar_lea.vmem [#allocation9], %s7980_s22 }
  0xfa   : > { %9330 = dma.done.wait (%p9681_p13), %s1232_s3, 10480  }
  0xfb   : > { %9332 = vsyncadd (%p9681_p13), %s1232_s3, 4294956816  ;;  %s7981_s26 = smul.u32 640, %s9985_s11  ;;  %s1252_s29 = scalar_lea.sflag [#allocation13], %s9974_s16 }
  0xfd   : > { %s10003_s5 = scalar_lea.vmem [#allocation11], %s7981_s26 }
  0xfe   : > { %9334 = dma.done.wait (%p9681_p13), %s1252_s29, 10256  }
  0xff   : > { %9336 = vsyncadd (%p9681_p13), %s1252_s29, 4294957040  ;;  %s7982_s9 = smul.u32 5, %s9985_s11  ;;  %s10012_s20 = scalar_lea.vmem [#allocation14], %s7981_s26 }
 0x100   : > { %s1271_s4 = scalar_lea.sflag [#allocation16], %s9974_s16 }
 0x101   : > { %s10015_s28 = scalar_lea.vmem [#allocation15], %s7982_s9 }
 0x102   : > { %9338 = dma.done.wait (%p9681_p13), %s1271_s4, 20560  }
 0x103   : > { %9340 = vsyncadd (%p9681_p13), %s1271_s4, 4294946736  ;;  %s7983_s12 = smul.u32 1280, %s9985_s11  ;;  %s1291_s22 = scalar_lea.sflag [#allocation19], %s9974_s16 }
 0x104   : > { %s7984_s8 = smul.u32 10, %s9985_s11 }
 0x105   : > { %s10023_s6 = scalar_lea.vmem [#allocation17], %s7983_s12 }
 0x106   : > { %s10026_s3 = scalar_lea.vmem [#allocation18], %s7984_s8 }
 0x107   : > { %9342 = dma.done.wait (%p9681_p13), %s1291_s22, 10400  }
 0x108   : > { %9344 = vsyncadd (%p9681_p13), %s1291_s22, 4294956896  ;;  %s10032_s29 = scalar_lea.vmem [#allocation20], %s7981_s26  ;;  %s1311_s9 = scalar_lea.sflag [#allocation22], %s9974_s16 }
 0x109   : > { %9346 = dma.done.wait (%p9681_p13), %s1311_s9, 6160  }
 0x10a   : > { %9348 = vsyncadd (%p9681_p13), %s1311_s9, 4294961136  ;;  %s7985_s12 = smul.u32 384, %s9985_s11  ;;  %s1330_s22 = scalar_lea.sflag [#allocation25], %s9974_s16 }
 0x10b   : > { %s7986_s8 = smul.u32 3, %s9985_s11 }
 0x10c   : > { %s10042_s0 = scalar_lea.vmem [#allocation23], %s7985_s12 }
 0x10d   : > { %s10045_s10 = scalar_lea.vmem [#allocation24], %s7986_s8 }
 0x10e   : > { %9350 = dma.done.wait (%p9681_p13), %s1330_s22, 6192  }
 0x10f   : > { %9352 = vsyncadd (%p9681_p13), %s1330_s22, 4294961104  ;;  %s10051_s26 = scalar_lea.vmem [#allocation26], %s7985_s12  ;;  %s1350_s9 = scalar_lea.sflag [#allocation28], %s9974_s16 }
 0x110   : > { %9354 = dma.done.wait (%p9681_p13), %s1350_s9, 32  }
 0x111   : > { %9356 = vsyncadd (%p9681_p13), %s1350_s9, 4294967264  ;;  %s1368_s13 = scalar_lea.sflag [#allocation31], %s9974_s16 }
 0x112   : > { %9358 = dma.done.wait (%p9681_p13), %s1368_s13, 32  }
 0x113   : > { %9360 = vsyncadd (%p9681_p13), %s1368_s13, 4294967264  ;;  %s1379_s12 = scalar_lea.vmem [#allocation32], %s9985_s11  ;;  %s1386_s22 = scalar_lea.sflag [#allocation34], %s9974_s16 }
 0x114   : > { %s1388_s4 = scalar_lea.vmem [#allocation33], %s9985_s11 }
 0x115   : > { %9362 = dma.done.wait (%p9681_p13), %s1386_s22, 32  }
 0x116   : > { %9364 = vsyncadd (%p9681_p13), %s1386_s22, 4294967264  ;;  %s1397_s9 = scalar_lea.vmem [#allocation35], %s9985_s11  ;;  %s1404_s15 = scalar_lea.sflag [#allocation37], %s9974_s16 }
 0x117   : > { %s1406_s8 = scalar_lea.vmem [#allocation36], %s9985_s11 }
 0x118   : > { %9366 = dma.done.wait (%p9681_p13), %s1404_s15, 16  }
 0x119   : > { %9368 = vsyncadd (%p9681_p13), %s1404_s15, 4294967280 }
 0x11a   : > { %9370 = dma.done.wait (%p107_p6), [#allocation37], 2048  }
 0x11b   : > { %9372 = vsyncadd (%p107_p6), [#allocation37], 4294965248 }
 0x11c   : > { %9374 = dma.done.wait (%p107_p6), [#allocation40], 16  }
 0x11d   : > { %9376 = vsyncadd (%p107_p6), [#allocation40], 4294967280  ;;  %s10089_s13 = scalar_lea.vmem [#allocation41], %s9963_s21  ;;  %s13606_s16 = sld [smem:[#allocation62_spill]] }
 0x123   : > { %p7787_p12 = scmp.ne.s32.totalorder %s13606_s16, 0 }
 0x125   : > { %1581 = sbr.rel (%p7787_p12) target bundleno = 307 (0x133), region = 216 }
 0x12a   : > { %v1582_v0 = vld [vmem:[%s9967_s23] sm:$0xff]  ;;  %v1583_v1 = vld [vmem:[%s9967_s23 + $0x8] sm:$0xff]  ;;  %v1584_v2 = vld [vmem:[%s9967_s23 + $0x10] sm:$0xff] }
 0x12b   : > { %1590 = vst [vmem:[#allocation2 + $0x30] sm:$0xff] %v1582_v0  ;;  %v1585_v3 = vld [vmem:[%s9967_s23 + $0x18] sm:$0xff]  ;;  %v1586_v4 = vld [vmem:[%s9967_s23 + $0x20] sm:$0xff]  ;;  %v1587_v5 = vld [vmem:[%s9967_s23 + $0x28] sm:$0xff] }
 0x12c   : > { %1591 = vst [vmem:[#allocation2] sm:$0xff] %v1583_v1  ;;  %v1588_v6 = vld [vmem:[%s9967_s23 + $0x30] sm:$0xff]  ;;  %v1589_v7 = vld [vmem:[%s9967_s23 + $0x38] sm:$0xff] }
 0x12d   : > { %1592 = vst [vmem:[#allocation2 + $0x18] sm:$0xff] %v1584_v2 }
 0x12e   : > { %1593 = vst [vmem:[#allocation2 + $0x10] sm:$0xff] %v1585_v3 }
 0x12f   : > { %1594 = vst [vmem:[#allocation2 + $0x8] sm:$0xff] %v1586_v4 }
 0x130   : > { %1595 = vst [vmem:[#allocation2 + $0x20] sm:$0xff] %v1587_v5 }
 0x131   : > { %1596 = vst [vmem:[#allocation2 + $0x28] sm:$0xff] %v1588_v6 }
 0x132   : > { %1597 = vst [vmem:[#allocation2 + $0x38] sm:$0xff] %v1589_v7 }
 0x133 PF: > { %v1869_v8 = vld [vmem:[%s9988_s1 + $0x708] sm:$0xff]  ;;  %v1870_v9 = vld [vmem:[%s9988_s1 + $0x710] sm:$0xff]  ;;  %v1855_v11 = vld [vmem:[%s9988_s1 + $0x698] sm:$0xff]  ;;  %vm2671_vm2 = vcmask 523264   ;;  %s13639_s15 = scalar_lea.vmem [#allocation12], %s9985_s11  ;;  %s13641_s21 = scalar_lea.vmem [#allocation29], %s9985_s11 }
 0x134   : > { %v1854_v10 = vld [vmem:[%s9988_s1 + $0x690] sm:$0xff]  ;;  %7877 = vmatpush.msra.mxu2 %v1869_v8  ;;  %1959 = vmatpush.msra.mxu1 %v1870_v9  ;;  %v1839_v12 = vld [vmem:[%s9988_s1 + $0x618] sm:$0xff]  ;;  %v1840_v13 = vld [vmem:[%s9988_s1 + $0x620] sm:$0xff]  ;;  %s13642_s23 = scalar_lea.vmem [#allocation30], %s9985_s11  ;;  %s13681_s14 = scalar_lea.vmem [#allocation21], %s9985_s11 }
 0x135   : > { %7893 = vmatpush.msra.mxu3 %v1870_v9  ;;  %1918 = vmatpush.msra.mxu0 %v1869_v8  ;;  %v1824_v14 = vld [vmem:[%s9988_s1 + $0x5a0] sm:$0xff]  ;;  %v1825_v15 = vld [vmem:[%s9988_s1 + $0x5a8] sm:$0xff]  ;;  %v1810_v17 = vld [vmem:[%s9988_s1 + $0x530] sm:$0xff] }
 0x136   : > { %7878 = vmatpush.msra.mxu2 %v1854_v10  ;;  %1960 = vmatpush.msra.mxu1 %v1855_v11  ;;  %v1809_v16 = vld [vmem:[%s9988_s1 + $0x528] sm:$0xff]  ;;  %v1794_v18 = vld [vmem:[%s9988_s1 + $0x4b0] sm:$0xff]  ;;  %v1795_v19 = vld [vmem:[%s9988_s1 + $0x4b8] sm:$0xff] }
 0x137   : > { %7894 = vmatpush.msra.mxu3 %v1855_v11  ;;  %1919 = vmatpush.msra.mxu0 %v1854_v10  ;;  %v1779_v20 = vld [vmem:[%s9988_s1 + $0x438] sm:$0xff]  ;;  %v1780_v21 = vld [vmem:[%s9988_s1 + $0x440] sm:$0xff]  ;;  %v1765_v23 = vld [vmem:[%s9988_s1 + $0x3c8] sm:$0xff] }
 0x138   : > { %7879 = vmatpush.msra.mxu2 %v1839_v12  ;;  %1961 = vmatpush.msra.mxu1 %v1840_v13  ;;  %v1764_v22 = vld [vmem:[%s9988_s1 + $0x3c0] sm:$0xff]  ;;  %v1749_v24 = vld [vmem:[%s9988_s1 + $0x348] sm:$0xff]  ;;  %v1750_v25 = vld [vmem:[%s9988_s1 + $0x350] sm:$0xff] }
 0x139   : > { %7895 = vmatpush.msra.mxu3 %v1840_v13  ;;  %1920 = vmatpush.msra.mxu0 %v1839_v12  ;;  %v1734_v26 = vld [vmem:[%s9988_s1 + $0x2d0] sm:$0xff]  ;;  %v1735_v27 = vld [vmem:[%s9988_s1 + $0x2d8] sm:$0xff]  ;;  %v1720_v29 = vld [vmem:[%s9988_s1 + $0x260] sm:$0xff] }
 0x13a   : > { %7880 = vmatpush.msra.mxu2 %v1824_v14  ;;  %1962 = vmatpush.msra.mxu1 %v1825_v15  ;;  %v1719_v28 = vld [vmem:[%s9988_s1 + $0x258] sm:$0xff]  ;;  %v1704_v30 = vld [vmem:[%s9988_s1 + $0x1e0] sm:$0xff]  ;;  %v1705_v31 = vld [vmem:[%s9988_s1 + $0x1e8] sm:$0xff] }
 0x13b   : > { %7896 = vmatpush.msra.mxu3 %v1825_v15  ;;  %1921 = vmatpush.msra.mxu0 %v1824_v14  ;;  %v1689_v32 = vld [vmem:[%s9988_s1 + $0x168] sm:$0xff]  ;;  %v1690_v33 = vld [vmem:[%s9988_s1 + $0x170] sm:$0xff]  ;;  %v1675_v35 = vld [vmem:[%s9988_s1 + $0xf8] sm:$0xff] }
 0x13c   : > { %7881 = vmatpush.msra.mxu2 %v1809_v16  ;;  %1963 = vmatpush.msra.mxu1 %v1810_v17  ;;  %v1674_v34 = vld [vmem:[%s9988_s1 + $0xf0] sm:$0xff]  ;;  %v1659_v36 = vld [vmem:[%s9988_s1 + $0x78] sm:$0xff]  ;;  %v1660_v37 = vld [vmem:[%s9988_s1 + $0x80] sm:$0xff] }
 0x13d   : > { %7897 = vmatpush.msra.mxu3 %v1810_v17  ;;  %1922 = vmatpush.msra.mxu0 %v1809_v16  ;;  %v1644_v38 = vld [vmem:[%s9988_s1] sm:$0xff]  ;;  %v1645_v39 = vld [vmem:[%s9988_s1 + $0x8] sm:$0xff]  ;;  %v10134_v41 = vld [vmem:[#allocation2 + $0x30] sm:$0xff] }
 0x13e   : > { %7882 = vmatpush.msra.mxu2 %v1794_v18  ;;  %1964 = vmatpush.msra.mxu1 %v1795_v19  ;;  %v10132_v40 = vld [vmem:[#allocation2 + $0x8] sm:$0xff]  ;;  %v1871_v42 = vld [vmem:[%s9988_s1 + $0x718] sm:$0xff]  ;;  %v1874_v43 = vld [vmem:[%s9988_s1 + $0x730] sm:$0xff] }
 0x13f   : > { %7898 = vmatpush.msra.mxu3 %v1795_v19  ;;  %1923 = vmatpush.msra.mxu0 %v1794_v18  ;;  %v1856_v44 = vld [vmem:[%s9988_s1 + $0x6a0] sm:$0xff]  ;;  %v1859_v45 = vld [vmem:[%s9988_s1 + $0x6b8] sm:$0xff]  ;;  %v1841_v46 = vld [vmem:[%s9988_s1 + $0x628] sm:$0xff] }
 0x140   : > { %7883 = vmatpush.msra.mxu2 %v1779_v20  ;;  %1965 = vmatpush.msra.mxu1 %v1780_v21  ;;  %v1844_v47 = vld [vmem:[%s9988_s1 + $0x640] sm:$0xff]  ;;  %v1826_v49 = vld [vmem:[%s9988_s1 + $0x5b0] sm:$0xff]  ;;  %v1829_v50 = vld [vmem:[%s9988_s1 + $0x5c8] sm:$0xff] }
 0x141   : > { %7899 = vmatpush.msra.mxu3 %v1780_v21  ;;  %1924 = vmatpush.msra.mxu0 %v1779_v20  ;;  %v1872_v48 = vld [vmem:[%s9988_s1 + $0x720] sm:$0xff]  ;;  %v1811_v53 = vld [vmem:[%s9988_s1 + $0x538] sm:$0xff]  ;;  %v1814_v54 = vld [vmem:[%s9988_s1 + $0x550] sm:$0xff] }
 0x142   : > { %7884 = vmatpush.msra.mxu2 %v1764_v22  ;;  %1966 = vmatpush.msra.mxu1 %v1765_v23  ;;  %v10149_v51 = vld [vmem:[#allocation2 + $0x20] sm:$0xff]  ;;  %v1857_v55 = vld [vmem:[%s9988_s1 + $0x6a8] sm:$0xff]  ;;  %v1799_v57 = vld [vmem:[%s9988_s1 + $0x4d8] sm:$0xff] }
 0x143   : > { %7900 = vmatpush.msra.mxu3 %v1765_v23  ;;  %1925 = vmatpush.msra.mxu0 %v1764_v22  ;;  %v10151_v52 = vld [vmem:[#allocation2] sm:$0xff]  ;;  %v1842_v58 = vld [vmem:[%s9988_s1 + $0x630] sm:$0xff]  ;;  %v1781_v59 = vld [vmem:[%s9988_s1 + $0x448] sm:$0xff] }
 0x144   : > { %7885 = vmatpush.msra.mxu2 %v1749_v24  ;;  %1967 = vmatpush.msra.mxu1 %v1750_v25  ;;  %v1796_v56 = vld [vmem:[%s9988_s1 + $0x4c0] sm:$0xff]  ;;  %v1827_v61 = vld [vmem:[%s9988_s1 + $0x5b8] sm:$0xff]  ;;  %v1766_v62 = vld [vmem:[%s9988_s1 + $0x3d0] sm:$0xff] }
 0x145   : > { %7901 = vmatpush.msra.mxu3 %v1750_v25  ;;  %1926 = vmatpush.msra.mxu0 %v1749_v24  ;;  %v1784_v60 = vld [vmem:[%s9988_s1 + $0x460] sm:$0xff]  ;;  %v1769_v63 = vld [vmem:[%s9988_s1 + $0x3e8] sm:$0xff]  ;;  %v10169_v1 = vld [vmem:[#allocation2 + $0x18] sm:$0xff] }
 0x146   : > { %7886 = vmatpush.msra.mxu2 %v1734_v26  ;;  %1968 = vmatpush.msra.mxu1 %v1735_v27  ;;  %v10167_v0 = vld [vmem:[#allocation2 + $0x28] sm:$0xff]  ;;  %v1751_v2 = vld [vmem:[%s9988_s1 + $0x358] sm:$0xff]  ;;  %v1754_v3 = vld [vmem:[%s9988_s1 + $0x370] sm:$0xff] }
 0x147   : > { %7902 = vmatpush.msra.mxu3 %v1735_v27  ;;  %1927 = vmatpush.msra.mxu0 %v1734_v26  ;;  %v1736_v4 = vld [vmem:[%s9988_s1 + $0x2e0] sm:$0xff]  ;;  %v1739_v5 = vld [vmem:[%s9988_s1 + $0x2f8] sm:$0xff]  ;;  %v1721_v7 = vld [vmem:[%s9988_s1 + $0x268] sm:$0xff] }
 0x148   : > { %7887 = vmatpush.msra.mxu2 %v1719_v28  ;;  %1969 = vmatpush.msra.mxu1 %v1720_v29  ;;  %v1812_v6 = vld [vmem:[%s9988_s1 + $0x540] sm:$0xff]  ;;  %v1797_v9 = vld [vmem:[%s9988_s1 + $0x4c8] sm:$0xff]  ;;  %v1706_v10 = vld [vmem:[%s9988_s1 + $0x1f0] sm:$0xff] }
 0x149   : > { %7903 = vmatpush.msra.mxu3 %v1720_v29  ;;  %1928 = vmatpush.msra.mxu0 %v1719_v28  ;;  %v1724_v8 = vld [vmem:[%s9988_s1 + $0x280] sm:$0xff]  ;;  %v1709_v11 = vld [vmem:[%s9988_s1 + $0x208] sm:$0xff]  ;;  %v10185_v12 = vld [vmem:[#allocation2 + $0x38] sm:$0xff] }
 0x14a   : > { %7888 = vmatpush.msra.mxu2 %v1704_v30  ;;  %1970 = vmatpush.msra.mxu1 %v1705_v31  ;;  %v10187_v13 = vld [vmem:[#allocation2 + $0x10] sm:$0xff]  ;;  %v1691_v14 = vld [vmem:[%s9988_s1 + $0x178] sm:$0xff]  ;;  %v1676_v17 = vld [vmem:[%s9988_s1 + $0x100] sm:$0xff] }
 0x14b   : > { %7904 = vmatpush.msra.mxu3 %v1705_v31  ;;  %1929 = vmatpush.msra.mxu0 %v1704_v30  ;;  %v1694_v15 = vld [vmem:[%s9988_s1 + $0x190] sm:$0xff]  ;;  %v1679_v18 = vld [vmem:[%s9988_s1 + $0x118] sm:$0xff]  ;;  %v1661_v20 = vld [vmem:[%s9988_s1 + $0x88] sm:$0xff] }
 0x14c   : > { %7889 = vmatpush.msra.mxu2 %v1689_v32  ;;  %1971 = vmatpush.msra.mxu1 %v1690_v33  ;;  %v1782_v16 = vld [vmem:[%s9988_s1 + $0x450] sm:$0xff]  ;;  %v1767_v19 = vld [vmem:[%s9988_s1 + $0x3d8] sm:$0xff]  ;;  %v1664_v21 = vld [vmem:[%s9988_s1 + $0xa0] sm:$0xff] }
 0x14d   : > { %7905 = vmatpush.msra.mxu3 %v1690_v33  ;;  %1930 = vmatpush.msra.mxu0 %v1689_v32  ;;  %v1646_v22 = vld [vmem:[%s9988_s1 + $0x10] sm:$0xff]  ;;  %v1649_v23 = vld [vmem:[%s9988_s1 + $0x28] sm:$0xff]  ;;  %v1752_v24 = vld [vmem:[%s9988_s1 + $0x360] sm:$0xff] }
 0x14e   : > { %7890 = vmatpush.msra.mxu2 %v1674_v34  ;;  %1972 = vmatpush.msra.mxu1 %v1675_v35  ;;  %v1737_v25 = vld [vmem:[%s9988_s1 + $0x2e8] sm:$0xff]  ;;  %v1875_v26 = vld [vmem:[%s9988_s1 + $0x738] sm:$0xff]  ;;  %v1860_v27 = vld [vmem:[%s9988_s1 + $0x6c0] sm:$0xff] }
 0x14f   : > { %7906 = vmatpush.msra.mxu3 %v1675_v35  ;;  %1931 = vmatpush.msra.mxu0 %v1674_v34  ;;  %v1722_v28 = vld [vmem:[%s9988_s1 + $0x270] sm:$0xff]  ;;  %v1845_v29 = vld [vmem:[%s9988_s1 + $0x648] sm:$0xff]  ;;  %v1707_v30 = vld [vmem:[%s9988_s1 + $0x1f8] sm:$0xff] }
 0x150   : > { %7891 = vmatpush.msra.mxu2 %v1659_v36  ;;  %1973 = vmatpush.msra.mxu1 %v1660_v37  ;;  %v1830_v31 = vld [vmem:[%s9988_s1 + $0x5d0] sm:$0xff]  ;;  %v1692_v32 = vld [vmem:[%s9988_s1 + $0x180] sm:$0xff]  ;;  %v1677_v33 = vld [vmem:[%s9988_s1 + $0x108] sm:$0xff] }
 0x151   : > { %7907 = vmatpush.msra.mxu3 %v1660_v37  ;;  %1932 = vmatpush.msra.mxu0 %v1659_v36  ;;  %v1815_v34 = vld [vmem:[%s9988_s1 + $0x558] sm:$0xff]  ;;  %v1800_v35 = vld [vmem:[%s9988_s1 + $0x4e0] sm:$0xff]  ;;  %v1662_v36 = vld [vmem:[%s9988_s1 + $0x90] sm:$0xff] }
 0x152   : > { %7892 = vmatpush.msra.mxu2 %v1644_v38  ;;  %1974 = vmatpush.msra.mxu1 %v1645_v39  ;;  %v1785_v37 = vld [vmem:[%s9988_s1 + $0x468] sm:$0xff] }
 0x153   : > { %1946 = vmatmul.f32.vlgmr.msra.gmra.mxu2 %v10132_v40  ;;  %1975 = vmatmul.f32.vlgmr.msra.gmra.mxu1 %v10134_v41 }
 0x154   : > { %2000 = vmatpush.msrb.mxu2 %v1871_v42  ;;  %2123 = vmatpush.msrb.mxu1 %v1874_v43  ;;  %v1755_v42 = vld [vmem:[%s9988_s1 + $0x378] sm:$0xff]  ;;  %v1740_v43 = vld [vmem:[%s9988_s1 + $0x300] sm:$0xff] }
 0x155   : > { %7908 = vmatpush.msra.mxu3 %v1645_v39  ;;  %1933 = vmatpush.msra.mxu0 %v1644_v38  ;;  %v1647_v38 = vld [vmem:[%s9988_s1 + $0x18] sm:$0xff]  ;;  %v1770_v39 = vld [vmem:[%s9988_s1 + $0x3f0] sm:$0xff] }
 0x156   : > { %2001 = vmatpush.msrb.mxu2 %v1856_v44  ;;  %2124 = vmatpush.msrb.mxu1 %v1859_v45  ;;  %v1725_v44 = vld [vmem:[%s9988_s1 + $0x288] sm:$0xff]  ;;  %v1710_v45 = vld [vmem:[%s9988_s1 + $0x210] sm:$0xff] }
 0x157   : > { %1987 = vmatmul.f32.vlgmr.msra.gmra.mxu3 %v10132_v40  ;;  %1934 = vmatmul.f32.vlgmr.msra.gmra.mxu0 %v10134_v41 }
 0x158   : > { %2002 = vmatpush.msrb.mxu2 %v1841_v46  ;;  %2125 = vmatpush.msrb.mxu1 %v1844_v47  ;;  %v1876_v46 = vld [vmem:[%s9988_s1 + $0x740] sm:$0xff]  ;;  %v1878_v47 = vld [vmem:[%s9988_s1 + $0x750] sm:$0xff] }
 0x159   : > { %2041 = vmatpush.msrb.mxu3 %v1872_v48  ;;  %v1695_v48 = vld [vmem:[%s9988_s1 + $0x198] sm:$0xff] }
 0x15a   : > { %2003 = vmatpush.msrb.mxu2 %v1826_v49  ;;  %2126 = vmatpush.msrb.mxu1 %v1829_v50  ;;  %v1863_v49 = vld [vmem:[%s9988_s1 + $0x6d8] sm:$0xff]  ;;  %v1861_v50 = vld [vmem:[%s9988_s1 + $0x6c8] sm:$0xff] }
 0x15b   : > { %1949 = vmatmul.f32.gmra.mxu2 %v10149_v51  ;;  %1978 = vmatmul.f32.gmra.mxu1 %v10151_v52 }
 0x15c   : > { %2004 = vmatpush.msrb.mxu2 %v1811_v53  ;;  %2127 = vmatpush.msrb.mxu1 %v1814_v54  ;;  %v1680_v53 = vld [vmem:[%s9988_s1 + $0x120] sm:$0xff] }
 0x15d   : > { %2042 = vmatpush.msrb.mxu3 %v1857_v55  ;;  %v1848_v54 = vld [vmem:[%s9988_s1 + $0x660] sm:$0xff]  ;;  %v1846_v55 = vld [vmem:[%s9988_s1 + $0x650] sm:$0xff] }
 0x15e   : > { %2005 = vmatpush.msrb.mxu2 %v1796_v56  ;;  %2128 = vmatpush.msrb.mxu1 %v1799_v57  ;;  %v1665_v56 = vld [vmem:[%s9988_s1 + $0xa8] sm:$0xff] }
 0x15f   : > { %2043 = vmatpush.msrb.mxu3 %v1842_v58  ;;  %1937 = vmatmul.f32.gmra.mxu0 %v10151_v52  ;;  %v1833_v57 = vld [vmem:[%s9988_s1 + $0x5e8] sm:$0xff]  ;;  %v1650_v58 = vld [vmem:[%s9988_s1 + $0x30] sm:$0xff] }
 0x160   : > { %2006 = vmatpush.msrb.mxu2 %v1781_v59  ;;  %2129 = vmatpush.msrb.mxu1 %v1784_v60  ;;  %v1831_v59 = vld [vmem:[%s9988_s1 + $0x5d8] sm:$0xff]  ;;  %v1818_v60 = vld [vmem:[%s9988_s1 + $0x570] sm:$0xff] }
 0x161   : > { %2044 = vmatpush.msrb.mxu3 %v1827_v61  ;;  %v1816_v61 = vld [vmem:[%s9988_s1 + $0x560] sm:$0xff] }
 0x162   : > { %2007 = vmatpush.msrb.mxu2 %v1766_v62  ;;  %2130 = vmatpush.msrb.mxu1 %v1769_v63  ;;  %v1803_v62 = vld [vmem:[%s9988_s1 + $0x4f8] sm:$0xff]  ;;  %v1801_v63 = vld [vmem:[%s9988_s1 + $0x4e8] sm:$0xff] }
 0x163   : > { %1952 = vmatmul.f32.gmra.mxu2 %v10167_v0  ;;  %1981 = vmatmul.f32.gmra.mxu1 %v10169_v1 }
 0x164   : > { %2008 = vmatpush.msrb.mxu2 %v1751_v2  ;;  %2131 = vmatpush.msrb.mxu1 %v1754_v3  ;;  %v1788_v2 = vld [vmem:[%s9988_s1 + $0x480] sm:$0xff]  ;;  %v1773_v3 = vld [vmem:[%s9988_s1 + $0x408] sm:$0xff] }
 0x165   : > { %1990 = vmatmul.f32.gmra.mxu3 %v10149_v51 }
 0x166   : > { %2009 = vmatpush.msrb.mxu2 %v1736_v4  ;;  %2132 = vmatpush.msrb.mxu1 %v1739_v5  ;;  %v1786_v4 = vld [vmem:[%s9988_s1 + $0x470] sm:$0xff] }
 0x167   : > { %2045 = vmatpush.msrb.mxu3 %v1812_v6  ;;  %1940 = vmatmul.f32.gmra.mxu0 %v10169_v1  ;;  %v1758_v5 = vld [vmem:[%s9988_s1 + $0x390] sm:$0xff]  ;;  %v1771_v6 = vld [vmem:[%s9988_s1 + $0x3f8] sm:$0xff] }
 0x168   : > { %2010 = vmatpush.msrb.mxu2 %v1721_v7  ;;  %2133 = vmatpush.msrb.mxu1 %v1724_v8  ;;  %v1743_v7 = vld [vmem:[%s9988_s1 + $0x318] sm:$0xff]  ;;  %v1756_v8 = vld [vmem:[%s9988_s1 + $0x380] sm:$0xff] }
 0x169   : > { %2046 = vmatpush.msrb.mxu3 %v1797_v9  ;;  %v1728_v9 = vld [vmem:[%s9988_s1 + $0x2a0] sm:$0xff] }
 0x16a   : > { %2011 = vmatpush.msrb.mxu2 %v1706_v10  ;;  %2134 = vmatpush.msrb.mxu1 %v1709_v11  ;;  %v1713_v10 = vld [vmem:[%s9988_s1 + $0x228] sm:$0xff] }
 0x16b   : > { %1955 = vmatmul.f32.gmra.mxu2 %v10185_v12  ;;  %1984 = vmatmul.f32.gmra.mxu1 %v10187_v13  ;;  %v1741_v11 = vld [vmem:[%s9988_s1 + $0x308] sm:$0xff] }
 0x16c   : > { %2012 = vmatpush.msrb.mxu2 %v1691_v14  ;;  %2135 = vmatpush.msrb.mxu1 %v1694_v15  ;;  %v1698_v14 = vld [vmem:[%s9988_s1 + $0x1b0] sm:$0xff] }
 0x16d   : > { %2047 = vmatpush.msrb.mxu3 %v1782_v16  ;;  %v1726_v15 = vld [vmem:[%s9988_s1 + $0x290] sm:$0xff]  ;;  %v1683_v16 = vld [vmem:[%s9988_s1 + $0x138] sm:$0xff] }
 0x16e   : > { %2013 = vmatpush.msrb.mxu2 %v1676_v17  ;;  %2136 = vmatpush.msrb.mxu1 %v1679_v18  ;;  %v1711_v17 = vld [vmem:[%s9988_s1 + $0x218] sm:$0xff]  ;;  %v1668_v18 = vld [vmem:[%s9988_s1 + $0xc0] sm:$0xff] }
 0x16f   : > { %2048 = vmatpush.msrb.mxu3 %v1767_v19  ;;  %1943 = vmatmul.f32.gmra.mxu0 %v10187_v13  ;;  %v1653_v19 = vld [vmem:[%s9988_s1 + $0x48] sm:$0xff] }
 0x170   : > { %2014 = vmatpush.msrb.mxu2 %v1661_v20  ;;  %2137 = vmatpush.msrb.mxu1 %v1664_v21  ;;  %v1696_v20 = vld [vmem:[%s9988_s1 + $0x1a0] sm:$0xff]  ;;  %v1681_v21 = vld [vmem:[%s9988_s1 + $0x128] sm:$0xff] }
 0x171   : > { %1993 = vmatmul.f32.gmra.mxu3 %v10167_v0 }
 0x172   : > { %2015 = vmatpush.msrb.mxu2 %v1646_v22  ;;  %2138 = vmatpush.msrb.mxu1 %v1649_v23  ;;  %v1666_v22 = vld [vmem:[%s9988_s1 + $0xb0] sm:$0xff]  ;;  %v1651_v23 = vld [vmem:[%s9988_s1 + $0x38] sm:$0xff] }
 0x173   : > { %2016 = vmatmul.f32.vlgmr.msrb.gmra.mxu2 %v10134_v41  ;;  %2139 = vmatmul.f32.vlgmr.msrb.gmra.mxu1 %v10134_v41 }
 0x174   : > { %2049 = vmatpush.msrb.mxu3 %v1752_v24  ;;  %2164 = vmatpush.msra.mxu2 %v1875_v26  ;;  %v1880_v24 = vld [vmem:[%s9988_s1 + $0x760] sm:$0xff]  ;;  %v1865_v26 = vld [vmem:[%s9988_s1 + $0x6e8] sm:$0xff] }
 0x175   : > { %2287 = vmatpush.msra.mxu1 %v1878_v47  ;;  %v1745_v47 = vld [vmem:[%s9988_s1 + $0x328] sm:$0xff] }
 0x176   : > { %2050 = vmatpush.msrb.mxu3 %v1737_v25  ;;  %2165 = vmatpush.msra.mxu2 %v1860_v27  ;;  %v1882_v25 = vld [vmem:[%s9988_s1 + $0x770] sm:$0xff]  ;;  %v1867_v27 = vld [vmem:[%s9988_s1 + $0x6f8] sm:$0xff] }
 0x177   : > { %2288 = vmatpush.msra.mxu1 %v1863_v49  ;;  %v1747_v49 = vld [vmem:[%s9988_s1 + $0x338] sm:$0xff] }
 0x178   : > { %2051 = vmatpush.msrb.mxu3 %v1722_v28  ;;  %2166 = vmatpush.msra.mxu2 %v1845_v29  ;;  %v1850_v28 = vld [vmem:[%s9988_s1 + $0x670] sm:$0xff]  ;;  %v1852_v29 = vld [vmem:[%s9988_s1 + $0x680] sm:$0xff] }
 0x179   : > { %1996 = vmatmul.f32.gmra.mxu3 %v10185_v12  ;;  %2289 = vmatpush.msra.mxu1 %v1848_v54 }
 0x17a   : > { %2052 = vmatpush.msrb.mxu3 %v1707_v30  ;;  %2167 = vmatpush.msra.mxu2 %v1830_v31  ;;  %v1835_v31 = vld [vmem:[%s9988_s1 + $0x5f8] sm:$0xff] }
 0x17b   : > { %2019 = vmatmul.f32.gmra.mxu2 %v10151_v52  ;;  %2142 = vmatmul.f32.gmra.mxu1 %v10151_v52 }
 0x17c   : > { %2053 = vmatpush.msrb.mxu3 %v1692_v32  ;;  %2168 = vmatpush.msra.mxu2 %v1815_v34  ;;  %v1837_v32 = vld [vmem:[%s9988_s1 + $0x608] sm:$0xff]  ;;  %v1822_v34 = vld [vmem:[%s9988_s1 + $0x590] sm:$0xff] }
 0x17d   : > { %2290 = vmatpush.msra.mxu1 %v1833_v57  ;;  %v1717_v57 = vld [vmem:[%s9988_s1 + $0x248] sm:$0xff] }
 0x17e   : > { %2054 = vmatpush.msrb.mxu3 %v1677_v33  ;;  %2169 = vmatpush.msra.mxu2 %v1800_v35  ;;  %v1820_v33 = vld [vmem:[%s9988_s1 + $0x580] sm:$0xff]  ;;  %v1805_v35 = vld [vmem:[%s9988_s1 + $0x508] sm:$0xff] }
 0x17f   : > { %2291 = vmatpush.msra.mxu1 %v1818_v60 }
 0x180   : > { %2055 = vmatpush.msrb.mxu3 %v1662_v36  ;;  %2170 = vmatpush.msra.mxu2 %v1785_v37  ;;  %v1807_v36 = vld [vmem:[%s9988_s1 + $0x518] sm:$0xff] }
 0x181   : > { %2292 = vmatpush.msra.mxu1 %v1803_v62  ;;  %v1687_v62 = vld [vmem:[%s9988_s1 + $0x158] sm:$0xff] }
 0x182   : > { %2056 = vmatpush.msrb.mxu3 %v1647_v38  ;;  %2171 = vmatpush.msra.mxu2 %v1770_v39  ;;  %v1790_v38 = vld [vmem:[%s9988_s1 + $0x490] sm:$0xff]  ;;  %v1792_v39 = vld [vmem:[%s9988_s1 + $0x4a0] sm:$0xff] }
 0x183   : > { %2022 = vmatmul.f32.gmra.mxu2 %v10169_v1  ;;  %2145 = vmatmul.f32.gmra.mxu1 %v10169_v1 }
 0x184   : > { %2057 = vmatmul.f32.vlgmr.msrb.gmra.mxu3 %v10134_v41  ;;  %2172 = vmatpush.msra.mxu2 %v1755_v42 }
 0x185   : > { %2205 = vmatpush.msra.mxu3 %v1876_v46  ;;  %2293 = vmatpush.msra.mxu1 %v1788_v2  ;;  %v1762_v46 = vld [vmem:[%s9988_s1 + $0x3b0] sm:$0xff] }
 0x186   : > { %2173 = vmatpush.msra.mxu2 %v1740_v43  ;;  %v1775_v43 = vld [vmem:[%s9988_s1 + $0x418] sm:$0xff]  ;;  %v1670_v2 = vld [vmem:[%s9988_s1 + $0xd0] sm:$0xff] }
 0x187   : > { %2206 = vmatpush.msra.mxu3 %v1861_v50  ;;  %2294 = vmatpush.msra.mxu1 %v1773_v3  ;;  %v1730_v50 = vld [vmem:[%s9988_s1 + $0x2b0] sm:$0xff] }
 0x188   : > { %2174 = vmatpush.msra.mxu2 %v1725_v44  ;;  %v1777_v44 = vld [vmem:[%s9988_s1 + $0x428] sm:$0xff] }
 0x189   : > { %2207 = vmatpush.msra.mxu3 %v1846_v55  ;;  %2295 = vmatpush.msra.mxu1 %v1758_v5  ;;  %v1732_v55 = vld [vmem:[%s9988_s1 + $0x2c0] sm:$0xff]  ;;  %v1655_v5 = vld [vmem:[%s9988_s1 + $0x58] sm:$0xff] }
 0x18a   : > { %2175 = vmatpush.msra.mxu2 %v1710_v45  ;;  %v1760_v45 = vld [vmem:[%s9988_s1 + $0x3a0] sm:$0xff] }
 0x18b   : > { %2025 = vmatmul.f32.gmra.mxu2 %v10187_v13  ;;  %2148 = vmatmul.f32.gmra.mxu1 %v10187_v13 }
 0x18c   : > { %2060 = vmatmul.f32.gmra.mxu3 %v10151_v52  ;;  %2176 = vmatpush.msra.mxu2 %v1695_v48 }
 0x18d   : > { %2208 = vmatpush.msra.mxu3 %v1831_v59  ;;  %2296 = vmatpush.msra.mxu1 %v1743_v7  ;;  %v1702_v59 = vld [vmem:[%s9988_s1 + $0x1d0] sm:$0xff] }
 0x18e   : > { %2177 = vmatpush.msra.mxu2 %v1680_v53 }
 0x18f   : > { %2209 = vmatpush.msra.mxu3 %v1816_v61  ;;  %2297 = vmatpush.msra.mxu1 %v1728_v9  ;;  %v1685_v61 = vld [vmem:[%s9988_s1 + $0x148] sm:$0xff] }
 0x190   : > { %2178 = vmatpush.msra.mxu2 %v1665_v56  ;;  %v1715_v56 = vld [vmem:[%s9988_s1 + $0x238] sm:$0xff] }
 0x191   : > { %2210 = vmatpush.msra.mxu3 %v1801_v63  ;;  %2298 = vmatpush.msra.mxu1 %v1713_v10 }
 0x192   : > { %2179 = vmatpush.msra.mxu2 %v1650_v58  ;;  %v1700_v58 = vld [vmem:[%s9988_s1 + $0x1c0] sm:$0xff] }
 0x193   : > { %2028 = vmatmul.f32.gmra.mxu2 %v10132_v40  ;;  %2151 = vmatmul.f32.gmra.mxu1 %v10132_v40 }
 0x194   : > { %2063 = vmatmul.f32.gmra.mxu3 %v10169_v1  ;;  %2299 = vmatpush.msra.mxu1 %v1698_v14 }
 0x195   : > { %2211 = vmatpush.msra.mxu3 %v1786_v4  ;;  %v1672_v4 = vld [vmem:[%s9988_s1 + $0xe0] sm:$0xff] }
 0x196   : > { %2300 = vmatpush.msra.mxu1 %v1683_v16 }
 0x197   : > { %2212 = vmatpush.msra.mxu3 %v1771_v6  ;;  %v1657_v6 = vld [vmem:[%s9988_s1 + $0x68] sm:$0xff] }
 0x198   : > { %2301 = vmatpush.msra.mxu1 %v1668_v18 }
 0x199   : > { %2213 = vmatpush.msra.mxu3 %v1756_v8 }
 0x19a   : > { %2302 = vmatpush.msra.mxu1 %v1653_v19 }
 0x19b   : > { %2031 = vmatmul.f32.gmra.mxu2 %v10149_v51  ;;  %2154 = vmatmul.f32.gmra.mxu1 %v10149_v51 }
 0x19c   : > { %2066 = vmatmul.f32.gmra.mxu3 %v10187_v13  ;;  %2451 = vmatpush.msrb.mxu1 %v1882_v25 }
 0x19d   : > { %2214 = vmatpush.msra.mxu3 %v1741_v11 }
 0x19e   : > { %2452 = vmatpush.msrb.mxu1 %v1867_v27  ;;  %v10397_v27 = vld [vmem:[%s9996_s27] sm:$0xff] }
 0x19f   : > { %2215 = vmatpush.msra.mxu3 %v1726_v15 }
 0x1a0   : > { %2453 = vmatpush.msrb.mxu1 %v1852_v29 }
 0x1a1   : > { %2216 = vmatpush.msra.mxu3 %v1711_v17 }
 0x1a2   : > { %2454 = vmatpush.msrb.mxu1 %v1837_v32 }
 0x1a3   : > { %2034 = vmatmul.f32.gmra.mxu2 %v10167_v0  ;;  %2157 = vmatmul.f32.gmra.mxu1 %v10167_v0 }
 0x1a4   : > { %2069 = vmatmul.f32.gmra.mxu3 %v10132_v40  ;;  %2455 = vmatpush.msrb.mxu1 %v1822_v34 }
 0x1a5   : > { %2217 = vmatpush.msra.mxu3 %v1696_v20 }
 0x1a6   : > { %2456 = vmatpush.msrb.mxu1 %v1807_v36 }
 0x1a7   : > { %2218 = vmatpush.msra.mxu3 %v1681_v21 }
 0x1a8   : > { %2457 = vmatpush.msrb.mxu1 %v1792_v39 }
 0x1a9   : > { %2219 = vmatpush.msra.mxu3 %v1666_v22 }
 0x1aa   : > { %2458 = vmatpush.msrb.mxu1 %v1777_v44 }
 0x1ab   : > { %2037 = vmatmul.f32.gmra.mxu2 %v10185_v12  ;;  %2160 = vmatmul.f32.gmra.mxu1 %v10185_v12 }
 0x1ac   : > { %2072 = vmatmul.f32.gmra.mxu3 %v10149_v51  ;;  %2459 = vmatpush.msrb.mxu1 %v1762_v46 }
 0x1ad   : > { %2220 = vmatpush.msra.mxu3 %v1651_v23 }
 0x1ae   : > { %2460 = vmatpush.msrb.mxu1 %v1747_v49 }
 0x1af   : > { %2369 = vmatpush.msrb.mxu3 %v1880_v24 }
 0x1b0   : > { %2461 = vmatpush.msrb.mxu1 %v1732_v55  ;;  %v1888_v55 = vperm.slane %v10397_v27, 0 }
 0x1b1   : > { %2370 = vmatpush.msrb.mxu3 %v1865_v26 }
 0x1b2   : > { %2462 = vmatpush.msrb.mxu1 %v1717_v57 }
 0x1b3   : > { %2180 = vmatmul.f32.vlgmr.msra.gmra.mxu2 %v10134_v41  ;;  %2303 = vmatmul.f32.vlgmr.msra.gmra.mxu1 %v10134_v41 }
 0x1b4   : > { %2075 = vmatmul.f32.gmra.mxu3 %v10167_v0  ;;  %2463 = vmatpush.msrb.mxu1 %v1702_v59 }
 0x1b5   : > { %2371 = vmatpush.msrb.mxu3 %v1850_v28 }
 0x1b6   : > { %2464 = vmatpush.msrb.mxu1 %v1687_v62 }
 0x1b7   : > { %2372 = vmatpush.msrb.mxu3 %v1835_v31 }
 0x1b8   : > { %2465 = vmatpush.msrb.mxu1 %v1672_v4 }
 0x1b9   : > { %2373 = vmatpush.msrb.mxu3 %v1820_v33 }
 0x1ba   : > { %2466 = vmatpush.msrb.mxu1 %v1657_v6 }
 0x1bb   : > { %2183 = vmatmul.f32.gmra.mxu2 %v10151_v52  ;;  %2306 = vmatmul.f32.gmra.mxu1 %v10151_v52 }
 0x1bc   : > { %2078 = vmatmul.f32.gmra.mxu3 %v10185_v12 }
 0x1bd   : > { %2374 = vmatpush.msrb.mxu3 %v1805_v35 }
 0x1bf   : > { %2375 = vmatpush.msrb.mxu3 %v1790_v38 }
 0x1c1   : > { %2376 = vmatpush.msrb.mxu3 %v1775_v43 }
 0x1c3   : > { %2186 = vmatmul.f32.gmra.mxu2 %v10169_v1  ;;  %2309 = vmatmul.f32.gmra.mxu1 %v10169_v1 }
 0x1c4   : > { %2221 = vmatmul.f32.vlgmr.msra.gmra.mxu3 %v10134_v41 }
 0x1c5   : > { %2377 = vmatpush.msrb.mxu3 %v1760_v45 }
 0x1c7   : > { %2378 = vmatpush.msrb.mxu3 %v1745_v47 }
 0x1c9   : > { %2379 = vmatpush.msrb.mxu3 %v1730_v50 }
 0x1cb   : > { %2189 = vmatmul.f32.gmra.mxu2 %v10187_v13  ;;  %2312 = vmatmul.f32.gmra.mxu1 %v10187_v13 }
 0x1cc   : > { %2224 = vmatmul.f32.gmra.mxu3 %v10151_v52 }
 0x1cd   : > { %2380 = vmatpush.msrb.mxu3 %v1715_v56 }
 0x1cf   : > { %2381 = vmatpush.msrb.mxu3 %v1700_v58 }
 0x1d0   : > { %v10300_v30 = vpop.f32.mrf.mxu1 }
 0x1d1   : > { %2382 = vmatpush.msrb.mxu3 %v1685_v61 }
 0x1d3   : > { %2192 = vmatmul.f32.gmra.mxu2 %v10132_v40  ;;  %2315 = vmatmul.f32.gmra.mxu1 %v10132_v40 }
 0x1d4   : > { %2227 = vmatmul.f32.gmra.mxu3 %v10169_v1  ;;  %v1935_v45 = vpop.f32.mrf.mxu0 }
 0x1d5   : > { %2383 = vmatpush.msrb.mxu3 %v1670_v2  ;;  %v1936_v57 = vadd.f32 %v1935_v45, %v1888_v55 }
 0x1d6   : > { %v10311_v37 = vpop.f32.mrf.mxu2 }
 0x1d7   : > { %2384 = vmatpush.msrb.mxu3 %v1655_v5 }
 0x1d8   : > { %v10315_v42 = vpop.f32.mrf.mxu1 }
 0x1da   : > { %v10331_v54 = vpop.f32.mrf.mxu3 }
 0x1db   : > { %2195 = vmatmul.f32.gmra.mxu2 %v10149_v51  ;;  %2318 = vmatmul.f32.gmra.mxu1 %v10149_v51 }
 0x1dc   : > { %2230 = vmatmul.f32.gmra.mxu3 %v10187_v13 }
 0x1de   : > { %v10325_v48 = vpop.f32.mrf.mxu2 }
 0x1df   : > { %v1951_v45 = vadd.f32 %v10325_v48, %v1888_v55 }
 0x1e0   : > { %v10329_v53 = vpop.f32.mrf.mxu1 }
 0x1e3   : > { %2198 = vmatmul.f32.gmra.mxu2 %v10167_v0  ;;  %2321 = vmatmul.f32.gmra.mxu1 %v10167_v0 }
 0x1e4   : > { %2233 = vmatmul.f32.gmra.mxu3 %v10132_v40 }
 0x1e6   : > { %v10341_v60 = vpop.f32.mrf.mxu2 }
 0x1e8   : > { %v10345_v63 = vpop.f32.mrf.mxu1  ;;  %v10348_v3 = vpop.f32.mrf.mxu3 }
 0x1eb   : > { %2201 = vmatmul.f32.gmra.mxu2 %v10185_v12  ;;  %2324 = vmatmul.f32.gmra.mxu1 %v10185_v12 }
 0x1ec   : > { %2236 = vmatmul.f32.gmra.mxu3 %v10149_v51 }
 0x1ee   : > { %v10356_v7 = vpop.f32.mrf.mxu2 }
 0x1f0   : > { %v10358_v8 = vpop.f32.mrf.mxu1 }
 0x1f3   : > { %2467 = vmatmul.f32.vlgmr.msrb.gmra.mxu1 %v10134_v41 }
 0x1f4   : > { %2239 = vmatmul.f32.gmra.mxu3 %v10167_v0  ;;  %v10361_v9 = vpop.f32.mrf.mxu3 }
 0x1f6   : > { %v10364_v10 = vpop.f32.mrf.mxu2 }
 0x1f8   : > { %v2143_v11 = vpop.f32.mrf.mxu1 }
 0x1fb   : > { %2470 = vmatmul.f32.gmra.mxu1 %v10151_v52 }
 0x1fc   : > { %2242 = vmatmul.f32.gmra.mxu3 %v10185_v12  ;;  %v10368_v14 = vpop.f32.mrf.mxu3 }
 0x1fe   : > { %v10370_v15 = vpop.f32.mrf.mxu2 }
 0x200   : > { %v2146_v16 = vpop.f32.mrf.mxu1 }
 0x203   : > { %2473 = vmatmul.f32.gmra.mxu1 %v10169_v1 }
 0x204   : > { %2385 = vmatmul.f32.vlgmr.msrb.gmra.mxu3 %v10134_v41 }
 0x206   : > { %v10374_v17 = vpop.f32.mrf.mxu2 }
 0x207   : > { %v10376_v18 = vpop.f32.mrf.mxu3 }
 0x208   : > { %13607 = vst [vmem:[#allocation75_spill] sm:$0xff] %v10376_v18  ;;  %v2149_v19 = vpop.f32.mrf.mxu1 }
 0x20b   : > { %2476 = vmatmul.f32.gmra.mxu1 %v10187_v13 }
 0x20c   : > { %2388 = vmatmul.f32.gmra.mxu3 %v10151_v52 }
 0x20e   : > { %v10380_v20 = vpop.f32.mrf.mxu2 }
 0x20f   : > { %v10382_v21 = vpop.f32.mrf.mxu3 }
 0x210   : > { %13608 = vst [vmem:[#allocation76_spill] sm:$0xff] %v10382_v21  ;;  %v2152_v22 = vpop.f32.mrf.mxu1 }
 0x213   : > { %2479 = vmatmul.f32.gmra.mxu1 %v10132_v40 }
 0x214   : > { %2391 = vmatmul.f32.gmra.mxu3 %v10169_v1  ;;  %v1893_v1 = vperm.slane %v10397_v27, 5 }
 0x216   : > { %v10386_v41 = vpop.f32.mrf.mxu2  ;;  %v2153_v36 = vadd.f32 %v2152_v22, %v1893_v1  ;;  %v2150_v39 = vadd.f32 %v2149_v19, %v1893_v1  ;;  %v2147_v44 = vadd.f32 %v2146_v16, %v1893_v1  ;;  %v2144_v47 = vadd.f32 %v2143_v11, %v1893_v1 }
 0x217   : > { %v10388_v23 = vpop.f32.mrf.mxu3  ;;  %v2141_v50 = vadd.f32 %v10358_v8, %v1893_v1 }
 0x218   : > { %13609 = vst [vmem:[#allocation77_spill] sm:$0xff] %v10388_v23  ;;  %v2155_v24 = vpop.f32.mrf.mxu1  ;;  %v1658_v23 = vld [vmem:[%s9988_s1 + $0x70] sm:$0xff] }
 0x219   : > { %v2156_v34 = vadd.f32 %v2155_v24, %v1893_v1 }
 0x21b   : > { %2482 = vmatmul.f32.gmra.mxu1 %v10149_v51 }
 0x21c   : > { %2394 = vmatmul.f32.gmra.mxu3 %v10187_v13 }
 0x21e   : > { %v10392_v52 = vpop.f32.mrf.mxu2 }
 0x21f   : > { %v10394_v25 = vpop.f32.mrf.mxu3 }
 0x220   : > { %13610 = vst [vmem:[#allocation78_spill] sm:$0xff] %v10394_v25  ;;  %v2158_v26 = vpop.f32.mrf.mxu1 }
 0x221   : > { %v2159_v32 = vadd.f32 %v2158_v26, %v1893_v1 }
 0x223   : > { %2485 = vmatmul.f32.gmra.mxu1 %v10167_v0 }
 0x224   : > { %2397 = vmatmul.f32.gmra.mxu3 %v10132_v40 }
 0x226   : > { %v10402_v28 = vpop.f32.mrf.mxu2 }
 0x227   : > { %v10404_v29 = vpop.f32.mrf.mxu3 }
 0x228   : > { %13611 = vst [vmem:[#allocation79_spill] sm:$0xff] %v10404_v29  ;;  %v2161_v13 = vpop.f32.mrf.mxu1 }
 0x229   : > { %v2162_v31 = vadd.f32 %v2161_v13, %v1893_v1 }
 0x22b   : > { %2622 = vmatpush.xpose.msra.mxu3 %v2162_v31  ;;  %2488 = vmatmul.f32.gmra.mxu1 %v10185_v12  ;;  %v1948_v31 = vadd.f32 %v10311_v37, %v1888_v55  ;;  %v1954_v37 = vadd.f32 %v10341_v60, %v1888_v55 }
 0x22c   : > { %2400 = vmatmul.f32.gmra.mxu3 %v10149_v51 }
 0x22e   : > { %v10408_v33 = vpop.f32.mrf.mxu2 }
 0x22f   : > { %2623 = vmatpush.xpose.msra.mxu3 %v2159_v32  ;;  %v10410_v40 = vpop.f32.mrf.mxu3 }
 0x230   : > { %13612 = vst [vmem:[#allocation80_spill] sm:$0xff] %v10410_v40  ;;  %v10412_v35 = vpop.f32.mrf.mxu1 }
 0x233   : > { %2624 = vmatpush.xpose.msra.mxu3 %v2156_v34 }
 0x234   : > { %2403 = vmatmul.f32.gmra.mxu3 %v10167_v0 }
 0x236   : > { %v10415_v38 = vpop.f32.mrf.mxu2 }
 0x237   : > { %2625 = vmatpush.xpose.msra.mxu3 %v2153_v36  ;;  %v10417_v43 = vpop.f32.mrf.mxu3  ;;  %v1894_v36 = vperm.slane %v10397_v27, 6 }
 0x238   : > { %13613 = vst [vmem:[#allocation81_spill] sm:$0xff] %v10417_v43  ;;  %v10419_v51 = vpop.f32.mrf.mxu1 }
 0x23b   : > { %2626 = vmatpush.xpose.msra.mxu3 %v2150_v39 }
 0x23c   : > { %2406 = vmatmul.f32.gmra.mxu3 %v10185_v12  ;;  %v1938_v12 = vpop.f32.mrf.mxu0 }
 0x23d   : > { %v1939_v62 = vadd.f32 %v1938_v12, %v1888_v55 }
 0x23e   : > { %v10422_v46 = vpop.f32.mrf.mxu2 }
 0x23f   : > { %2627 = vmatpush.xpose.msra.mxu3 %v2147_v44  ;;  %v10424_v49 = vpop.f32.mrf.mxu3 }
 0x240   : > { %13614 = vst [vmem:[#allocation82_spill] sm:$0xff] %v10424_v49  ;;  %v10426_v0 = vpop.f32.mrf.mxu1  ;;  %v10683_v49 = vld [vmem:[#allocation2 + $0x38] sm:$0xff] }
 0x243   : > { %2628 = vmatpush.xpose.msra.mxu3 %v2144_v47 }
 0x244   : > { %v1941_v4 = vpop.f32.mrf.mxu0 }
 0x245   : > { %v1942_v8 = vadd.f32 %v1941_v4, %v1888_v55 }
 0x246   : > { %v2187_v56 = vpop.f32.mrf.mxu2 }
 0x247   : > { %2629 = vmatpush.xpose.msra.mxu3 %v2141_v50  ;;  %v10430_v58 = vpop.f32.mrf.mxu3 }
 0x248   : > { %v10432_v59 = vpop.f32.mrf.mxu1 }
 0x24a   : > { %2630 = vmatmul.f32.vlgmr.msra.gmra.mxu3 %v1936_v57 }
 0x24c   : > { %v1944_v19 = vpop.f32.mrf.mxu0 }
 0x24d   : > { %v1945_v24 = vadd.f32 %v1944_v19, %v1888_v55 }
 0x24e   : > { %v2190_v61 = vpop.f32.mrf.mxu2 }
 0x24f   : > { %v10434_v2 = vpop.f32.mrf.mxu3 }
 0x250   : > { %v10436_v5 = vpop.f32.mrf.mxu1 }
 0x252   : > { %2633 = vmatmul.f32.gmra.mxu3 %v1939_v62 }
 0x256   : > { %v2193_v6 = vpop.f32.mrf.mxu2 }
 0x257   : > { %v10438_v11 = vpop.f32.mrf.mxu3  ;;  %v2194_v4 = vadd.f32 %v2193_v6, %v1894_v36 }
 0x258   : > { %v10440_v16 = vpop.f32.mrf.mxu1 }
 0x25a   : > { %2636 = vmatmul.f32.gmra.mxu3 %v1942_v8  ;;  %v2191_v8 = vadd.f32 %v2190_v61, %v1894_v36  ;;  %v2182_v61 = vadd.f32 %v10415_v38, %v1894_v36 }
 0x25e   : > { %v2196_v22 = vpop.f32.mrf.mxu2 }
 0x25f   : > { %v2231_v26 = vpop.f32.mrf.mxu3  ;;  %v2197_v12 = vadd.f32 %v2196_v22, %v1894_v36  ;;  %v2185_v22 = vadd.f32 %v10422_v46, %v1894_v36 }
 0x260   : > { %v10442_v1 = vpop.f32.mrf.mxu1 }
 0x262   : > { %2639 = vmatmul.f32.gmra.mxu3 %v1945_v24  ;;  %v1957_v24 = vadd.f32 %v10356_v7, %v1888_v55 }
 0x266   : > { %v2199_v13 = vpop.f32.mrf.mxu2 }
 0x267   : > { %v2234_v34 = vpop.f32.mrf.mxu3  ;;  %v2200_v50 = vadd.f32 %v2199_v13, %v1894_v36  ;;  %v1895_v13 = vperm.slane %v10397_v27, 7 }
 0x268   : > { %v10445_v32 = vpop.f32.mrf.mxu1 }
 0x26a   : > { %2642 = vmatmul.f32.gmra.mxu3 %v1948_v31  ;;  %v2188_v31 = vadd.f32 %v2187_v56, %v1894_v36 }
 0x26e   : > { %v2202_v39 = vpop.f32.mrf.mxu2 }
 0x26f   : > { %v2203_v44 = vadd.f32 %v2202_v39, %v1894_v36  ;;  %v2237_v57 = vpop.f32.mrf.mxu3  ;;  %v2229_v36 = vadd.f32 %v10438_v11, %v1895_v13 }
 0x270   : > { %v10449_v47 = vpop.f32.mrf.mxu1 }
 0x271   : > { %2833 = vmatpush.xpose.msra.mxu1 %v2203_v44  ;;  %v1889_v44 = vperm.slane %v10397_v27, 1 }
 0x272   : > { %2645 = vmatmul.f32.gmra.mxu3 %v1951_v45  ;;  %v2238_v45 = vadd.f32 %v2237_v57, %v1895_v13  ;;  %v10463_v57 = vld [vmem:[%s9996_s27 + $0x8] sm:$0xff] }
 0x273   : > { %v1977_v7 = vadd.f32 %v10300_v30, %v1889_v44  ;;  %v1980_v46 = vadd.f32 %v10315_v42, %v1889_v44  ;;  %v1983_v38 = vadd.f32 %v10329_v53, %v1889_v44  ;;  %v1986_v42 = vadd.f32 %v10345_v63, %v1889_v44 }
 0x275   : > { %2834 = vmatpush.xpose.msra.mxu1 %v2200_v50  ;;  %v2235_v50 = vadd.f32 %v2234_v34, %v1895_v13  ;;  %v2223_v34 = vadd.f32 %v10430_v58, %v1895_v13 }
 0x277   : > { %v2240_v19 = vpop.f32.mrf.mxu3 }
 0x278   : > { %v2471_v62 = vpop.f32.mrf.mxu1  ;;  %v2241_v55 = vadd.f32 %v2240_v19, %v1895_v13 }
 0x279   : > { %2835 = vmatpush.xpose.msra.mxu1 %v2197_v12 }
 0x27a   : > { %2648 = vmatmul.f32.gmra.mxu3 %v1954_v37  ;;  %v2232_v37 = vadd.f32 %v2231_v26, %v1895_v13 }
 0x27d   : > { %2836 = vmatpush.xpose.msra.mxu1 %v2194_v4  ;;  %v2226_v4 = vadd.f32 %v10434_v2, %v1895_v13 }
 0x27f   : > { %v2243_v39 = vpop.f32.mrf.mxu3 }
 0x280   : > { %v2474_v48 = vpop.f32.mrf.mxu1  ;;  %v2244_v6 = vadd.f32 %v2243_v39, %v1895_v13  ;;  %v1992_v13 = vadd.f32 %v10348_v3, %v1889_v44  ;;  %v1995_v39 = vadd.f32 %v10361_v9, %v1889_v44  ;;  %v1614_v9 = vlaneseq }
 0x281   : > { %2837 = vmatpush.xpose.msra.mxu1 %v2191_v8  ;;  %v1901_v8 = vperm.slane %v10463_v57, 5 }
 0x282   : > { %2651 = vmatmul.f32.gmra.mxu3 %v1957_v24  ;;  %v1989_v24 = vadd.f32 %v10331_v54, %v1889_v44  ;;  %v1998_v54 = vadd.f32 %v10368_v14, %v1889_v44  ;;  %v10480_v14 = vand.u32 127, %v1614_v9 }
 0x283   : > { %v2475_v63 = vadd.f32 %v2474_v48, %v1901_v8  ;;  %v2472_v58 = vadd.f32 %v2471_v62, %v1901_v8 }
 0x284   : > { %13615 = vst [vmem:[#allocation83_spill] sm:$0xff] %v10480_v14  ;;  %vm1641_vm0 = vcmp.ge.s32.totalorder %v10480_v14, 60 }
 0x285   : > { %2838 = vmatpush.xpose.msra.mxu1 %v2188_v31 }
 0x288   : > { %v2477_v60 = vpop.f32.mrf.mxu1 }
 0x289   : > { %2839 = vmatpush.xpose.msra.mxu1 %v2185_v22  ;;  %v2478_v31 = vadd.f32 %v2477_v60, %v1901_v8  ;;  %v2469_v22 = vadd.f32 %v10449_v47, %v1901_v8  ;;  %v1890_v60 = vperm.slane %v10397_v27, 2 }
 0x28b   : > { %v2018_v48 = vadd.f32 %v10364_v10, %v1890_v60  ;;  %v2021_v62 = vadd.f32 %v10370_v15, %v1890_v60  ;;  %v2024_v3 = vadd.f32 %v10374_v17, %v1890_v60  ;;  %v2027_v47 = vadd.f32 %v10380_v20, %v1890_v60 }
 0x28c   : > { %v2030_v27 = vadd.f32 %v10386_v41, %v1890_v60  ;;  %v9439_v10 = vmov 0.0   ;;  %v2033_v20 = vadd.f32 %v10392_v52, %v1890_v60  ;;  %v2036_v44 = vadd.f32 %v10402_v28, %v1890_v60  ;;  %v1843_v52 = vld [vmem:[%s9988_s1 + $0x638] sm:$0xff] }
 0x28d   : > { %2840 = vmatpush.xpose.msra.mxu1 %v2182_v61  ;;  %v10485_v15 = vsel %vm1641_vm0, -1e+30, %v9439_v10  ;;  %v2039_v41 = vadd.f32 %v10408_v33, %v1890_v60  ;;  %v1708_v60 = vld [vmem:[%s9988_s1 + $0x200] sm:$0xff] }
 0x28e   : > { %13616 = vst [vmem:[#allocation84_spill] sm:$0xff] %v10485_v15 }
 0x290   : > { %2841 = vmatmul.f32.vlgmr.msra.gmra.mxu1 %v1977_v7  ;;  %v2480_v56 = vpop.f32.mrf.mxu1  ;;  %v1873_v7 = vld [vmem:[%s9988_s1 + $0x728] sm:$0xff] }
 0x291   : > { %3125 = vmatpush.xpose.msrb.mxu1 %v2244_v6  ;;  %v2481_v2 = vadd.f32 %v2480_v56, %v1901_v8  ;;  %v10478_v6 = vpop.f32.mrf.mxu3  ;;  %2082 = vmatpush.msrb.mxu0 %v1873_v7  ;;  %v10496_v56 = vshrl.u32 %v1614_v9, 7  ;;  %v1663_v9 = vld [vmem:[%s9988_s1 + $0x98] sm:$0xff]  ;;  %v1648_v7 = vld [vmem:[%s9988_s1 + $0x20] sm:$0xff] }
 0x293   : > { %vm1625_vm1 = vcmp.gt.s32.totalorder %v10480_v14, %v10496_v56 }
 0x294   : > { %v10504_v33 = vsel %vm1625_vm1, -1e+30, %v9439_v10 }
 0x295   : > { %3126 = vmatpush.xpose.msrb.mxu1 %v2241_v55  ;;  %v1858_v55 = vld [vmem:[%s9988_s1 + $0x6b0] sm:$0xff]  ;;  %13617 = vst [vmem:[#allocation85_spill] sm:$0xff] %v10504_v33 }
 0x296   : > { %2083 = vmatpush.msrb.mxu0 %v1858_v55  ;;  %v1864_v55 = vld [vmem:[%s9988_s1 + $0x6e0] sm:$0xff] }
 0x298   : > { %2844 = vmatmul.f32.gmra.mxu1 %v1980_v46  ;;  %v2483_v12 = vpop.f32.mrf.mxu1  ;;  %2084 = vmatpush.msrb.mxu0 %v1843_v52  ;;  %v1849_v52 = vld [vmem:[%s9988_s1 + $0x668] sm:$0xff] }
 0x299   : > { %3127 = vmatpush.xpose.msrb.mxu1 %v2238_v45  ;;  %v2484_v11 = vadd.f32 %v2483_v12, %v1901_v8  ;;  %v10487_v17 = vpop.f32.mrf.mxu3  ;;  %v1828_v12 = vld [vmem:[%s9988_s1 + $0x5c0] sm:$0xff] }
 0x29a   : > { %2085 = vmatpush.msrb.mxu0 %v1828_v12  ;;  %v10562_v12 = vld [vmem:[#allocation2 + $0x30] sm:$0xff] }
 0x29d   : > { %3128 = vmatpush.xpose.msrb.mxu1 %v2235_v50  ;;  %v1616_v50 = vadd.s32 8, %v10496_v56 }
 0x29f   : > { %vm1626_vm3 = vcmp.gt.s32.totalorder %v10480_v14, %v1616_v50  ;;  %v1619_v50 = vadd.s32 32, %v10496_v56 }
 0x2a0   : > { %2847 = vmatmul.f32.gmra.mxu1 %v1983_v38  ;;  %v2486_v30 = vpop.f32.mrf.mxu1 }
 0x2a1   : > { %3129 = vmatpush.xpose.msrb.mxu1 %v2232_v37  ;;  %v2487_v53 = vadd.f32 %v2486_v30, %v1901_v8  ;;  %v10491_v61 = vpop.f32.mrf.mxu3  ;;  %v1813_v37 = vld [vmem:[%s9988_s1 + $0x548] sm:$0xff]  ;;  %vm1629_vm6 = vcmp.gt.s32.totalorder %v10480_v14, %v1619_v50  ;;  %v1699_v50 = vld [vmem:[%s9988_s1 + $0x1b8] sm:$0xff] }
 0x2a2   : > { %2086 = vmatpush.msrb.mxu0 %v1813_v37  ;;  %v1834_v37 = vld [vmem:[%s9988_s1 + $0x5f0] sm:$0xff] }
 0x2a5   : > { %3130 = vmatpush.xpose.msrb.mxu1 %v2229_v36  ;;  %v1798_v36 = vld [vmem:[%s9988_s1 + $0x4d0] sm:$0xff] }
 0x2a6   : > { %2087 = vmatpush.msrb.mxu0 %v1798_v36 }
 0x2a8   : > { %2850 = vmatmul.f32.gmra.mxu1 %v1986_v42  ;;  %v2489_v26 = vpop.f32.mrf.mxu1  ;;  %v1783_v42 = vld [vmem:[%s9988_s1 + $0x458] sm:$0xff] }
 0x2a9   : > { %3131 = vmatpush.xpose.msrb.mxu1 %v2226_v4  ;;  %v2490_v19 = vadd.f32 %v2489_v26, %v1901_v8  ;;  %v10498_v45 = vpop.f32.mrf.mxu3  ;;  %v10520_v8 = vsel %vm1626_vm3, -1e+30, %v9439_v10  ;;  %2088 = vmatpush.msrb.mxu0 %v1783_v42 }
 0x2aa   : > { %13618 = vst [vmem:[#allocation86_spill] sm:$0xff] %v10520_v8 }
 0x2ad   : > { %3132 = vmatpush.xpose.msrb.mxu1 %v2223_v34 }
 0x2b0   : > { %2853 = vmatmul.f32.gmra.mxu1 %v1989_v24 }
 0x2b1   : > { %3553 = vmatpush.msra.mxu1 %v2490_v19  ;;  %v10516_v4 = vpop.f32.mrf.mxu3  ;;  %v1768_v19 = vld [vmem:[%s9988_s1 + $0x3e0] sm:$0xff] }
 0x2b2   : > { %2089 = vmatpush.msrb.mxu0 %v1768_v19  ;;  %v10573_v19 = vsel %vm1629_vm6, -1e+30, %v9439_v10 }
 0x2b3   : > { %3554 = vmatpush.msra.mxu1 %v2487_v53  ;;  %v1617_v53 = vadd.s32 16, %v10496_v56  ;;  %13621 = vst [vmem:[#allocation89_spill] sm:$0xff] %v10573_v19 }
 0x2b5   : > { %3555 = vmatpush.msra.mxu1 %v2484_v11  ;;  %v1753_v11 = vld [vmem:[%s9988_s1 + $0x368] sm:$0xff]  ;;  %vm1627_vm4 = vcmp.gt.s32.totalorder %v10480_v14, %v1617_v53 }
 0x2b6   : > { %2090 = vmatpush.msrb.mxu0 %v1753_v11  ;;  %v1789_v53 = vld [vmem:[%s9988_s1 + $0x488] sm:$0xff] }
 0x2b7   : > { %3556 = vmatpush.msra.mxu1 %v2481_v2  ;;  %v1738_v2 = vld [vmem:[%s9988_s1 + $0x2f0] sm:$0xff] }
 0x2b8   : > { %2856 = vmatmul.f32.gmra.mxu1 %v1992_v13  ;;  %2091 = vmatpush.msrb.mxu0 %v1738_v2  ;;  %v1620_v2 = vadd.s32 40, %v10496_v56 }
 0x2b9   : > { %3557 = vmatpush.msra.mxu1 %v2478_v31 }
 0x2ba   : > { %vm1630_vm7 = vcmp.gt.s32.totalorder %v10480_v14, %v1620_v2  ;;  %v10615_v2 = vld [vmem:[#allocation2 + $0x10] sm:$0xff] }
 0x2bb   : > { %3558 = vmatpush.msra.mxu1 %v2475_v63  ;;  %v1723_v63 = vld [vmem:[%s9988_s1 + $0x278] sm:$0xff] }
 0x2bc   : > { %2092 = vmatpush.msrb.mxu0 %v1723_v63  ;;  %v1774_v63 = vld [vmem:[%s9988_s1 + $0x410] sm:$0xff] }
 0x2bd   : > { %3559 = vmatpush.msra.mxu1 %v2472_v58  ;;  %v10533_v58 = vpop.f32.mrf.mxu3 }
 0x2be   : > { %2093 = vmatpush.msrb.mxu0 %v1708_v60 }
 0x2bf   : > { %3560 = vmatpush.msra.mxu1 %v2469_v22  ;;  %v10536_v22 = vsel %vm1627_vm4, -1e+30, %v9439_v10 }
 0x2c0   : > { %2859 = vmatmul.f32.gmra.mxu1 %v1995_v39  ;;  %13619 = vst [vmem:[#allocation87_spill] sm:$0xff] %v10536_v22 }
 0x2c8   : > { %2862 = vmatmul.f32.gmra.mxu1 %v1998_v54  ;;  %v1618_v54 = vadd.s32 24, %v10496_v56 }
 0x2ca   : > { %vm1628_vm5 = vcmp.gt.s32.totalorder %v10480_v14, %v1618_v54  ;;  %v1759_v54 = vld [vmem:[%s9988_s1 + $0x398] sm:$0xff] }
 0x2d0   : > { %3133 = vmatmul.f32.vlgmr.msrb.gmra.mxu1 %v2018_v48  ;;  %v1693_v48 = vld [vmem:[%s9988_s1 + $0x188] sm:$0xff] }
 0x2d1   : > { %2094 = vmatpush.msrb.mxu0 %v1693_v48 }
 0x2d8   : > { %3136 = vmatmul.f32.gmra.mxu1 %v2021_v62 }
 0x2e0   : > { %3139 = vmatmul.f32.gmra.mxu1 %v2024_v3  ;;  %v1678_v3 = vld [vmem:[%s9988_s1 + $0x110] sm:$0xff] }
 0x2e1   : > { %2095 = vmatpush.msrb.mxu0 %v1678_v3  ;;  %v1744_v3 = vld [vmem:[%s9988_s1 + $0x320] sm:$0xff] }
 0x2e3   : > { %2096 = vmatpush.msrb.mxu0 %v1663_v9  ;;  %v10592_v9 = vsel %vm1630_vm7, -1e+30, %v9439_v10 }
 0x2e4   : > { %13622 = vst [vmem:[#allocation90_spill] sm:$0xff] %v10592_v9 }
 0x2e5   : > { %2097 = vmatpush.msrb.mxu0 %v1648_v7  ;;  %v1714_v7 = vld [vmem:[%s9988_s1 + $0x230] sm:$0xff] }
 0x2e6   : > { %2098 = vmatmul.f32.vlgmr.msrb.gmra.mxu0 %v10562_v12 }
 0x2e8   : > { %3142 = vmatmul.f32.gmra.mxu1 %v2027_v47 }
 0x2f0   : > { %3145 = vmatmul.f32.gmra.mxu1 %v2030_v27  ;;  %v1879_v27 = vld [vmem:[%s9988_s1 + $0x758] sm:$0xff] }
 0x2f1   : > { %2328 = vmatpush.msrb.mxu2 %v1879_v27 }
 0x2f3   : > { %2329 = vmatpush.msrb.mxu2 %v1864_v55 }
 0x2f5   : > { %2330 = vmatpush.msrb.mxu2 %v1849_v52 }
 0x2f7   : > { %2331 = vmatpush.msrb.mxu2 %v1834_v37 }
 0x2f8   : > { %3148 = vmatmul.f32.gmra.mxu1 %v2033_v20 }
 0x300   : > { %3151 = vmatmul.f32.gmra.mxu1 %v2036_v44  ;;  %v10551_v44 = vsel %vm1628_vm5, -1e+30, %v9439_v10 }
 0x301   : > { %13620 = vst [vmem:[#allocation88_spill] sm:$0xff] %v10551_v44 }
 0x308   : > { %3154 = vmatmul.f32.gmra.mxu1 %v2039_v41 }
 0x30d   : > { %v2842_v28 = vpop.f32.mrf.mxu1 }
 0x30e   : > { %v2866_v46 = vmul.f32 0.2236068, %v2842_v28  ;;  %v10556_v28 = vpop.f32.mrf.mxu3 }
 0x310   : > { %v10510_v38 = vadd.f32 %v2866_v46, %v10504_v33 }
 0x312   : > { %v2882_v30 = vsel %vm2671_vm2, %v10510_v38, -inf }
 0x313   : > { %2883 = vmax.xlane.f32.xlu0 %v2882_v30  ;;  %v1819_v30 = vld [vmem:[%s9988_s1 + $0x578] sm:$0xff] }
 0x314   : > { %2332 = vmatpush.msrb.mxu2 %v1819_v30  ;;  %v1684_v30 = vld [vmem:[%s9988_s1 + $0x140] sm:$0xff] }
 0x315   : > { %v2845_v34 = vpop.f32.mrf.mxu1 }
 0x316   : > { %v2867_v26 = vmul.f32 0.2236068, %v2845_v34 }
 0x318   : > { %v10526_v24 = vadd.f32 %v2867_v26, %v10520_v8  ;;  %v1804_v26 = vld [vmem:[%s9988_s1 + $0x500] sm:$0xff] }
 0x319   : > { %2333 = vmatpush.msrb.mxu2 %v1804_v26 }
 0x31a   : > { %v2885_v31 = vsel %vm2671_vm2, %v10526_v24, -inf }
 0x31b   : > { %2886 = vmax.xlane.f32.xlu0 %v2885_v31  ;;  %v10579_v31 = vld [vmem:[#allocation2] sm:$0xff]  ;;  %2334 = vmatpush.msrb.mxu2 %v1789_v53  ;;  %v1622_v53 = vadd.s32 56, %v10496_v56 }
 0x31c   : > { %2101 = vmatmul.f32.gmra.mxu0 %v10579_v31 }
 0x31d   : > { %v2848_v13 = vpop.f32.mrf.mxu1  ;;  %2335 = vmatpush.msrb.mxu2 %v1774_v63  ;;  %v1654_v63 = vld [vmem:[%s9988_s1 + $0x50] sm:$0xff]  ;;  %vm1632_vm9 = vcmp.gt.s32.totalorder %v10480_v14, %v1622_v53 }
 0x31e   : > { %v2868_v39 = vmul.f32 0.2236068, %v2848_v13  ;;  %v10583_v13 = vpop.f32.mrf.mxu3 }
 0x31f   : > { %2336 = vmatpush.msrb.mxu2 %v1759_v54 }
 0x320   : > { %v10542_v62 = vadd.f32 %v2868_v39, %v10536_v22 }
 0x321   : > { %2337 = vmatpush.msrb.mxu2 %v1744_v3  ;;  %v1862_v3 = vld [vmem:[%s9988_s1 + $0x6d0] sm:$0xff] }
 0x322   : > { %v2888_v47 = vsel %vm2671_vm2, %v10542_v62, -inf }
 0x323   : > { %2889 = vmax.xlane.f32.xlu1 %v2888_v47  ;;  %v1729_v47 = vld [vmem:[%s9988_s1 + $0x2a8] sm:$0xff] }
 0x324   : > { %2338 = vmatpush.msrb.mxu2 %v1729_v47  ;;  %v10626_v47 = vsel %vm1632_vm9, -1e+30, %v9439_v10 }
 0x325   : > { %v2851_v20 = vpop.f32.mrf.mxu1 }
 0x326   : > { %v2869_v41 = vmul.f32 0.2236068, %v2851_v20  ;;  %v1621_v20 = vadd.s32 48, %v10496_v56  ;;  %v2631_v52 = vpop.f32.mrf.mxu3  ;;  %2339 = vmatpush.msrb.mxu2 %v1714_v7  ;;  %v1877_v56 = vld [vmem:[%s9988_s1 + $0x748] sm:$0xff] }
 0x327   : > { %2246 = vmatpush.msra.mxu0 %v1877_v56 }
 0x328   : > { %v10559_v46 = vadd.f32 %v2869_v41, %v10551_v44  ;;  %v10598_v41 = vld [vmem:[#allocation2 + $0x18] sm:$0xff]  ;;  %vm1631_vm8 = vcmp.gt.s32.totalorder %v10480_v14, %v1621_v20  ;;  %2340 = vmatpush.msrb.mxu2 %v1699_v50  ;;  %v2655_v20 = vmul.f32 0.2236068, %v2631_v52  ;;  %v1832_v52 = vld [vmem:[%s9988_s1 + $0x5e0] sm:$0xff]  ;;  %v1697_v14 = vld [vmem:[%s9988_s1 + $0x1a8] sm:$0xff] }
 0x329   : > { %2104 = vmatmul.f32.gmra.mxu0 %v10598_v41 }
 0x32a   : > { %v2891_v36 = vsel %vm2671_vm2, %v10559_v46, -inf  ;;  %2341 = vmatpush.msrb.mxu2 %v1684_v30  ;;  %2247 = vmatpush.msra.mxu0 %v1862_v3  ;;  %v1817_v30 = vld [vmem:[%s9988_s1 + $0x568] sm:$0xff]  ;;  %v1772_v3 = vld [vmem:[%s9988_s1 + $0x400] sm:$0xff] }
 0x32b   : > { %2892 = vmax.xlane.f32.xlu1 %v2891_v36 }
 0x32d   : > { %v2854_v42 = vpop.f32.mrf.mxu1 }
 0x32e   : > { %v2870_v34 = vmul.f32 0.2236068, %v2854_v42  ;;  %v1669_v42 = vld [vmem:[%s9988_s1 + $0xc8] sm:$0xff]  ;;  %v2634_v54 = vpop.f32.mrf.mxu3 }
 0x32f   : > { %2342 = vmatpush.msrb.mxu2 %v1669_v42  ;;  %v2656_v53 = vmul.f32 0.2236068, %v2634_v54 }
 0x330   : > { %v10576_v11 = vadd.f32 %v2870_v34, %v10573_v19  ;;  %v10609_v34 = vsel %vm1631_vm8, -1e+30, %v9439_v10 }
 0x331   : > { %13623 = vst [vmem:[#allocation91_spill] sm:$0xff] %v10609_v34  ;;  %2107 = vmatmul.f32.gmra.mxu0 %v10615_v2  ;;  %2343 = vmatpush.msrb.mxu2 %v1654_v63  ;;  %v10653_v56 = vadd.f32 %v2656_v53, %v10520_v8  ;;  %v10664_v53 = vld [vmem:[#allocation2 + $0x28] sm:$0xff] }
 0x332   : > { %v2894_v39 = vsel %vm2671_vm2, %v10576_v11, -inf  ;;  %2344 = vmatmul.f32.vlgmr.msrb.gmra.mxu2 %v10562_v12 }
 0x333   : > { %2895 = vmax.xlane.f32.xlu2 %v2894_v39 }
 0x335   : > { %v2857_v60 = vpop.f32.mrf.mxu1 }
 0x336   : > { %v2871_v48 = vmul.f32 0.2236068, %v2857_v60  ;;  %v2637_v42 = vpop.f32.mrf.mxu3 }
 0x338   : > { %v10595_v27 = vadd.f32 %v2871_v48, %v10592_v9 }
 0x33a   : > { %v2897_v55 = vsel %vm2671_vm2, %v10595_v27, -inf  ;;  %2347 = vmatmul.f32.gmra.mxu2 %v10579_v31 }
 0x33b   : > { %2898 = vmax.xlane.f32.xlu2 %v2897_v55  ;;  %v10631_v55 = vld [vmem:[#allocation2 + $0x8] sm:$0xff] }
 0x33c   : > { %2110 = vmatmul.f32.gmra.mxu0 %v10631_v55 }
 0x33d   : > { %v2860_v37 = vpop.f32.mrf.mxu1 }
 0x33e   : > { %v2872_v36 = vmul.f32 0.2236068, %v2860_v37  ;;  %v1847_v37 = vld [vmem:[%s9988_s1 + $0x658] sm:$0xff] }
 0x33f   : > { %2248 = vmatpush.msra.mxu0 %v1847_v37  ;;  %v1868_v37 = vld [vmem:[%s9988_s1 + $0x700] sm:$0xff] }
 0x340   : > { %v10612_v26 = vadd.f32 %v2872_v36, %v10609_v34  ;;  %v10638_v36 = vadd.f32 %v2655_v20, %v10504_v33  ;;  %v1883_v20 = vld [vmem:[%s9988_s1 + $0x778] sm:$0xff] }
 0x341   : > { %2249 = vmatpush.msra.mxu0 %v1832_v52  ;;  %2492 = vmatpush.msra.mxu2 %v1883_v20  ;;  %v2657_v52 = vmul.f32 0.2236068, %v2637_v42  ;;  %v1838_v42 = vld [vmem:[%s9988_s1 + $0x610] sm:$0xff] }
 0x342   : > { %v2900_v39 = vsel %vm2671_vm2, %v10612_v26, -inf  ;;  %v2672_v63 = vsel %vm2671_vm2, %v10638_v36, -inf  ;;  %2350 = vmatmul.f32.gmra.mxu2 %v10598_v41 }
 0x343   : > { %2901 = vmax.xlane.f32.xlu0 %v2900_v39  ;;  %v10647_v39 = vld [vmem:[#allocation2 + $0x20] sm:$0xff]  ;;  %2250 = vmatpush.msra.mxu0 %v1817_v30  ;;  %v2675_v30 = vsel %vm2671_vm2, %v10653_v56, -inf  ;;  %v10672_v20 = vadd.f32 %v2657_v52, %v10536_v22 }
 0x344   : > { %2113 = vmatmul.f32.gmra.mxu0 %v10647_v39  ;;  %2493 = vmatpush.msra.mxu2 %v1868_v37  ;;  %v1823_v37 = vld [vmem:[%s9988_s1 + $0x598] sm:$0xff] }
 0x345   : > { %v2863_v60 = vpop.f32.mrf.mxu1  ;;  %v2678_v52 = vsel %vm2671_vm2, %v10672_v20, -inf }
 0x346   : > { %v2873_v48 = vmul.f32 0.2236068, %v2863_v60  ;;  %v1802_v60 = vld [vmem:[%s9988_s1 + $0x4f0] sm:$0xff] }
 0x347   : > { %2251 = vmatpush.msra.mxu0 %v1802_v60  ;;  %v2640_v60 = vpop.f32.mrf.mxu3 }
 0x348   : > { %v10629_v7 = vadd.f32 %v2873_v48, %v10626_v47  ;;  %v1787_v48 = vld [vmem:[%s9988_s1 + $0x478] sm:$0xff] }
 0x349   : > { %2252 = vmatpush.msra.mxu0 %v1787_v48  ;;  %v1853_v48 = vld [vmem:[%s9988_s1 + $0x688] sm:$0xff] }
 0x34a   : > { %v2903_v50 = vsel %vm2671_vm2, %v10629_v7, -inf  ;;  %2494 = vmatpush.msra.mxu2 %v1853_v48  ;;  %v1682_v48 = vld [vmem:[%s9988_s1 + $0x130] sm:$0xff] }
 0x34b   : > { %2904 = vmax.xlane.f32.xlu2 %v2903_v50  ;;  %v1757_v50 = vld [vmem:[%s9988_s1 + $0x388] sm:$0xff]  ;;  %2253 = vmatpush.msra.mxu0 %v1772_v3  ;;  %v1727_v3 = vld [vmem:[%s9988_s1 + $0x298] sm:$0xff] }
 0x34c   : > { %2116 = vmatmul.f32.gmra.mxu0 %v10664_v53  ;;  %2353 = vmatmul.f32.gmra.mxu2 %v10615_v2 }
 0x34d   : > { %v10641_v10 = vpop.f32.mrf.mxu1  ;;  %2254 = vmatpush.msra.mxu0 %v1757_v50  ;;  %2495 = vmatpush.msra.mxu2 %v1838_v42  ;;  %v1712_v50 = vld [vmem:[%s9988_s1 + $0x220] sm:$0xff] }
 0x34f   : > { %2496 = vmatpush.msra.mxu2 %v1823_v37  ;;  %v2643_v42 = vpop.f32.mrf.mxu3 }
 0x353   : > { %2673 = vmax.xlane.f32.xlu2 %v2672_v63  ;;  %v1742_v63 = vld [vmem:[%s9988_s1 + $0x310] sm:$0xff] }
 0x354   : > { %2255 = vmatpush.msra.mxu0 %v1742_v63  ;;  %v2658_v63 = vmul.f32 0.2236068, %v2640_v60  ;;  %v1778_v60 = vld [vmem:[%s9988_s1 + $0x430] sm:$0xff]  ;;  %2356 = vmatmul.f32.gmra.mxu2 %v10631_v55 }
 0x355   : > { %v10656_v54 = vpop.f32.mrf.mxu1  ;;  %2119 = vmatmul.f32.gmra.mxu0 %v10683_v49 }
 0x356   : > { %2256 = vmatpush.msra.mxu0 %v1727_v3  ;;  %v1793_v3 = vld [vmem:[%s9988_s1 + $0x4a8] sm:$0xff]  ;;  %v10691_v43 = vadd.f32 %v2658_v63, %v10551_v44  ;;  %v1652_v63 = vld [vmem:[%s9988_s1 + $0x40] sm:$0xff] }
 0x358   : > { %2257 = vmatpush.msra.mxu0 %v1712_v50  ;;  %v1667_v50 = vld [vmem:[%s9988_s1 + $0xb8] sm:$0xff]  ;;  %v2681_v37 = vsel %vm2671_vm2, %v10691_v43, -inf }
 0x35a   : > { %2258 = vmatpush.msra.mxu0 %v1697_v14  ;;  %v1763_v14 = vld [vmem:[%s9988_s1 + $0x3b8] sm:$0xff] }
 0x35b   : > { %2676 = vmax.xlane.f32.xlu2 %v2675_v30  ;;  %v1808_v30 = vld [vmem:[%s9988_s1 + $0x520] sm:$0xff] }
 0x35c   : > { %2497 = vmatpush.msra.mxu2 %v1808_v30  ;;  %2259 = vmatpush.msra.mxu0 %v1682_v48  ;;  %v1748_v30 = vld [vmem:[%s9988_s1 + $0x340] sm:$0xff]  ;;  %v1733_v48 = vld [vmem:[%s9988_s1 + $0x2c8] sm:$0xff] }
 0x35d   : > { %v10674_v15 = vpop.f32.mrf.mxu1  ;;  %2359 = vmatmul.f32.gmra.mxu2 %v10647_v39 }
 0x35e   : > { %2498 = vmatpush.msra.mxu2 %v1793_v3  ;;  %2260 = vmatpush.msra.mxu0 %v1667_v50  ;;  %v1718_v3 = vld [vmem:[%s9988_s1 + $0x250] sm:$0xff]  ;;  %v2646_v50 = vpop.f32.mrf.mxu3 }
 0x35f   : > { %v2660_v29 = vmul.f32 0.2236068, %v2646_v50 }
 0x360   : > { %2499 = vmatpush.msra.mxu2 %v1778_v60  ;;  %2261 = vmatpush.msra.mxu0 %v1652_v63  ;;  %v1673_v63 = vld [vmem:[%s9988_s1 + $0xe8] sm:$0xff] }
 0x361   : > { %2262 = vmatmul.f32.vlgmr.msra.gmra.mxu0 %v10562_v12 }
 0x362   : > { %2500 = vmatpush.msra.mxu2 %v1763_v14 }
 0x363   : > { %2679 = vmax.xlane.f32.xlu2 %v2678_v52  ;;  %v2659_v52 = vmul.f32 0.2236068, %v2643_v42  ;;  %v1703_v42 = vld [vmem:[%s9988_s1 + $0x1d8] sm:$0xff] }
 0x364   : > { %2501 = vmatpush.msra.mxu2 %v1748_v30  ;;  %v1688_v30 = vld [vmem:[%s9988_s1 + $0x160] sm:$0xff] }
 0x365   : > { %v10693_v40 = vpop.f32.mrf.mxu1  ;;  %v10708_v14 = vadd.f32 %v2659_v52, %v10573_v19  ;;  %2362 = vmatmul.f32.gmra.mxu2 %v10664_v53 }
 0x366   : > { %2502 = vmatpush.msra.mxu2 %v1733_v48 }
 0x367   : > { %v2684_v48 = vsel %vm2671_vm2, %v10708_v14, -inf }
 0x368   : > { %2503 = vmatpush.msra.mxu2 %v1718_v3  ;;  %v10724_v3 = vadd.f32 %v2660_v29, %v10592_v9 }
 0x369   : > { %2265 = vmatmul.f32.gmra.mxu0 %v10579_v31 }
 0x36a   : > { %2504 = vmatpush.msra.mxu2 %v1703_v42  ;;  %v2649_v42 = vpop.f32.mrf.mxu3 }
 0x36b   : > { %2682 = vmax.xlane.f32.xlu2 %v2681_v37  ;;  %v1899_v37 = vperm.slane %v10463_v57, 3 }
 0x36c   : > { %2505 = vmatpush.msra.mxu2 %v1688_v30  ;;  %v2661_v30 = vmul.f32 0.2236068, %v2649_v42  ;;  %v1881_v42 = vld [vmem:[%s9988_s1 + $0x768] sm:$0xff] }
 0x36d   : > { %v10703_v60 = vpop.f32.mrf.mxu1  ;;  %v2408_v25 = vadd.f32 %v10583_v13, %v1899_v37  ;;  %v2405_v52 = vadd.f32 %v10556_v28, %v1899_v37  ;;  %v2402_v50 = vadd.f32 %v10533_v58, %v1899_v37  ;;  %v2399_v13 = vadd.f32 %v10516_v4, %v1899_v37  ;;  %2365 = vmatmul.f32.gmra.mxu2 %v10683_v49 }
 0x36e   : > { %2506 = vmatpush.msra.mxu2 %v1673_v63  ;;  %v2687_v28 = vsel %vm2671_vm2, %v10724_v3, -inf  ;;  %v2390_v29 = vadd.f32 %v10487_v17, %v1899_v37  ;;  %v2387_v4 = vadd.f32 %v10478_v6, %v1899_v37  ;;  %2410 = vmatpush.msrb.mxu0 %v1881_v42  ;;  %v3159_v42 = vmul.f32 0.2236068, %v10656_v54 }
 0x370   : > { %2507 = vmatpush.msra.mxu2 %v1658_v23  ;;  %v2393_v23 = vadd.f32 %v10491_v61, %v1899_v37 }
 0x371   : > { %2268 = vmatmul.f32.gmra.mxu0 %v10598_v41 }
 0x372   : > { %3002 = vmatpush.msrb.mxu2 %v2408_v25  ;;  %v10737_v25 = vadd.f32 %v2661_v30, %v10609_v34  ;;  %v1851_v30 = vld [vmem:[%s9988_s1 + $0x678] sm:$0xff] }
 0x373   : > { %2685 = vmax.xlane.f32.xlu2 %v2684_v48  ;;  %v2396_v48 = vadd.f32 %v10498_v45, %v1899_v37 }
 0x374   : > { %3003 = vmatpush.msrb.mxu2 %v2405_v52  ;;  %v2690_v45 = vsel %vm2671_vm2, %v10737_v25, -inf }
 0x375   : > { %v10719_v21 = vpop.f32.mrf.mxu1  ;;  %2508 = vmatmul.f32.vlgmr.msra.gmra.mxu2 %v10562_v12 }
 0x376   : > { %3004 = vmatpush.msrb.mxu2 %v2402_v50 }
 0x378   : > { %3005 = vmatpush.msrb.mxu2 %v2399_v13  ;;  %v1866_v13 = vld [vmem:[%s9988_s1 + $0x6f0] sm:$0xff] }
 0x379   : > { %2271 = vmatmul.f32.gmra.mxu0 %v10615_v2 }
 0x37a   : > { %3006 = vmatpush.msrb.mxu2 %v2396_v48  ;;  %2411 = vmatpush.msrb.mxu0 %v1866_v13 }
 0x37b   : > { %2688 = vmax.xlane.f32.xlu2 %v2687_v28 }
 0x37c   : > { %3007 = vmatpush.msrb.mxu2 %v2393_v23  ;;  %2412 = vmatpush.msrb.mxu0 %v1851_v30 }
 0x37d   : > { %v10731_v63 = vpop.f32.mrf.mxu1  ;;  %2511 = vmatmul.f32.gmra.mxu2 %v10579_v31 }
 0x37e   : > { %3008 = vmatpush.msrb.mxu2 %v2390_v29  ;;  %v3158_v29 = vmul.f32 0.2236068, %v10641_v10 }
 0x380   : > { %3009 = vmatpush.msrb.mxu2 %v2387_v4 }
 0x381   : > { %2274 = vmatmul.f32.gmra.mxu0 %v10631_v55 }
 0x383   : > { %2691 = vmax.xlane.f32.xlu2 %v2690_v45  ;;  %v1836_v45 = vld [vmem:[%s9988_s1 + $0x600] sm:$0xff] }
 0x384   : > { %2413 = vmatpush.msrb.mxu0 %v1836_v45 }
 0x385   : > { %v3155_v58 = vpop.f32.mrf.mxu1  ;;  %2514 = vmatmul.f32.gmra.mxu2 %v10598_v41 }
 0x386   : > { %v3165_v61 = vmul.f32 0.2236068, %v3155_v58  ;;  %v2884_v52 = vpop.xlane.xlu0 %2883  ;;  %v1821_v58 = vld [vmem:[%s9988_s1 + $0x588] sm:$0xff] }
 0x387   : > { %v2906_v17 = vsub.f32 %v10510_v38, %v2884_v52  ;;  %v10768_v52 = vadd.f32 %v3158_v29, %v10504_v33  ;;  %2414 = vmatpush.msrb.mxu0 %v1821_v58 }
 0x388   : > { %v10747_v6 = vadd.f32 %v3165_v61, %v10626_v47  ;;  %v1806_v61 = vld [vmem:[%s9988_s1 + $0x510] sm:$0xff] }
 0x389   : > { %v2914_v37 = vmul.f32 1.442695, %v2906_v17  ;;  %2277 = vmatmul.f32.gmra.mxu0 %v10647_v39  ;;  %v1791_v17 = vld [vmem:[%s9988_s1 + $0x498] sm:$0xff]  ;;  %v3174_v30 = vsel %vm2671_vm2, %v10768_v52, -inf }
 0x38a   : > { %v3195_v50 = vsel %vm2671_vm2, %v10747_v6, -inf  ;;  %2415 = vmatpush.msrb.mxu0 %v1806_v61  ;;  %v3160_v61 = vmul.f32 0.2236068, %v10674_v15 }
 0x38b   : > { %8171 = vpow2.f32 %v2914_v37  ;;  %3196 = vmax.xlane.f32.xlu2 %v3195_v50 }
 0x38c   : > { %2416 = vmatpush.msrb.mxu0 %v1791_v17  ;;  %v1701_v17 = vld [vmem:[%s9988_s1 + $0x1c8] sm:$0xff] }
 0x38d   : > { %2517 = vmatmul.f32.gmra.mxu2 %v10615_v2 }
 0x38e   : > { %v2887_v38 = vpop.xlane.xlu0 %2886 }
 0x38f   : > { %v2907_v28 = vsub.f32 %v10526_v24, %v2887_v38  ;;  %v1761_v38 = vld [vmem:[%s9988_s1 + $0x3a8] sm:$0xff] }
 0x391   : > { %v10757_v48 = vpop.eup %8171  ;;  %v2916_v23 = vmul.f32 1.442695, %v2907_v28  ;;  %2280 = vmatmul.f32.gmra.mxu0 %v10664_v53  ;;  %v1746_v28 = vld [vmem:[%s9988_s1 + $0x330] sm:$0xff] }
 0x392   : > { %v2930_v4 = vsel %vm2671_vm2, %v10757_v48, 0.0 }
 0x393   : > { %8173 = vpow2.f32 %v2916_v23  ;;  %2931 = vadd.xlane.f32.xlu1 %v2930_v4  ;;  %v10785_v23 = vadd.f32 %v3159_v42, %v10520_v8  ;;  %v1731_v4 = vld [vmem:[%s9988_s1 + $0x2b8] sm:$0xff]  ;;  %v10800_v42 = vpop.f32.mrf.mxu0 }
 0x395   : > { %2520 = vmatmul.f32.gmra.mxu2 %v10631_v55 }
 0x396   : > { %v2890_v24 = vpop.xlane.xlu1 %2889 }
 0x397   : > { %v2908_v10 = vsub.f32 %v10542_v62, %v2890_v24  ;;  %v1776_v62 = vld [vmem:[%s9988_s1 + $0x420] sm:$0xff] }
 0x398   : > { %2417 = vmatpush.msrb.mxu0 %v1776_v62  ;;  %v1671_v62 = vld [vmem:[%s9988_s1 + $0xd8] sm:$0xff] }
 0x399   : > { %v10772_v37 = vpop.eup %8173  ;;  %v2918_v50 = vmul.f32 1.442695, %v2908_v10  ;;  %v3177_v10 = vsel %vm2671_vm2, %v10785_v23, -inf  ;;  %2283 = vmatmul.f32.gmra.mxu0 %v10683_v49 }
 0x39a   : > { %v2933_v13 = vsel %vm2671_vm2, %v10772_v37, 0.0  ;;  %2418 = vmatpush.msrb.mxu0 %v1761_v38 }
 0x39b   : > { %8175 = vpow2.f32 %v2918_v50  ;;  %2934 = vadd.xlane.f32.xlu0 %v2933_v13  ;;  %3175 = vmax.xlane.f32.xlu1 %v3174_v30  ;;  %v1686_v50 = vld [vmem:[%s9988_s1 + $0x150] sm:$0xff]  ;;  %v10804_v13 = vadd.f32 %v3160_v61, %v10536_v22 }
 0x39c   : > { %2419 = vmatpush.msrb.mxu0 %v1746_v28 }
 0x39d   : > { %2523 = vmatmul.f32.gmra.mxu2 %v10647_v39 }
 0x39e   : > { %v2893_v54 = vpop.xlane.xlu1 %2892  ;;  %2420 = vmatpush.msrb.mxu0 %v1731_v4 }
 0x39f   : > { %v2909_v29 = vsub.f32 %v10559_v46, %v2893_v54  ;;  %v1716_v46 = vld [vmem:[%s9988_s1 + $0x240] sm:$0xff] }
 0x3a0   : > { %2421 = vmatpush.msrb.mxu0 %v1716_v46  ;;  %v1656_v54 = vld [vmem:[%s9988_s1 + $0x60] sm:$0xff] }
 0x3a1   : > { %v10789_v45 = vpop.eup %8175  ;;  %v2920_v58 = vmul.f32 1.442695, %v2909_v29  ;;  %v3161_v29 = vmul.f32 0.2236068, %v10693_v40 }
 0x3a2   : > { %v2936_v24 = vsel %vm2671_vm2, %v10789_v45, 0.0  ;;  %2422 = vmatpush.msrb.mxu0 %v1701_v17  ;;  %v3162_v17 = vmul.f32 0.2236068, %v10703_v60 }
 0x3a3   : > { %8177 = vpow2.f32 %v2920_v58  ;;  %2937 = vadd.xlane.f32.xlu0 %v2936_v24  ;;  %3178 = vmax.xlane.f32.xlu1 %v3177_v10  ;;  %v3180_v58 = vsel %vm2671_vm2, %v10804_v13, -inf  ;;  %v10821_v40 = vadd.f32 %v3161_v29, %v10551_v44 }
 0x3a4   : > { %2423 = vmatpush.msrb.mxu0 %v1686_v50 }
 0x3a5   : > { %2526 = vmatmul.f32.gmra.mxu2 %v10664_v53 }
 0x3a6   : > { %v2896_v15 = vpop.xlane.xlu2 %2895  ;;  %2424 = vmatpush.msrb.mxu0 %v1671_v62 }
 0x3a7   : > { %v2910_v30 = vsub.f32 %v10576_v11, %v2896_v15  ;;  %v10817_v11 = vpop.f32.mrf.mxu0 }
 0x3a8   : > { %2425 = vmatpush.msrb.mxu0 %v1656_v54  ;;  %v3163_v54 = vmul.f32 0.2236068, %v10719_v21 }
 0x3a9   : > { %v10808_v38 = vpop.eup %8177  ;;  %v2922_v28 = vmul.f32 1.442695, %v2910_v30  ;;  %2426 = vmatmul.f32.vlgmr.msrb.gmra.mxu0 %v10562_v12  ;;  %v3183_v12 = vsel %vm2671_vm2, %v10821_v40, -inf  ;;  %v10836_v30 = vadd.f32 %v3162_v17, %v10573_v19 }
 0x3aa   : > { %v2939_v4 = vsel %vm2671_vm2, %v10808_v38, 0.0 }
 0x3ab   : > { %8179 = vpow2.f32 %v2922_v28  ;;  %2940 = vadd.xlane.f32.xlu0 %v2939_v4  ;;  %3181 = vmax.xlane.f32.xlu1 %v3180_v58  ;;  %v10851_v58 = vadd.f32 %v3163_v54, %v10592_v9 }
 0x3ad   : > { %2529 = vmatmul.f32.gmra.mxu2 %v10683_v49 }
 0x3ae   : > { %v2899_v61 = vpop.xlane.xlu2 %2898 }
 0x3af   : > { %v2911_v24 = vsub.f32 %v10595_v27, %v2899_v61  ;;  %v10832_v15 = vpop.f32.mrf.mxu0 }
 0x3b1   : > { %v10824_v10 = vpop.eup %8179  ;;  %v2924_v46 = vmul.f32 1.442695, %v2911_v24  ;;  %2429 = vmatmul.f32.gmra.mxu0 %v10579_v31  ;;  %v3186_v31 = vsel %vm2671_vm2, %v10836_v30, -inf }
 0x3b2   : > { %v2942_v50 = vsel %vm2671_vm2, %v10824_v10, 0.0 }
 0x3b3   : > { %8181 = vpow2.f32 %v2924_v46  ;;  %2943 = vadd.xlane.f32.xlu0 %v2942_v50  ;;  %3184 = vmax.xlane.f32.xlu1 %v3183_v12  ;;  %v3164_v46 = vmul.f32 0.2236068, %v10731_v63 }
 0x3b5   : > { %v2345_v63 = vpop.f32.mrf.mxu2 }
 0x3b6   : > { %v2902_v27 = vpop.xlane.xlu0 %2901 }
 0x3b7   : > { %v2912_v60 = vsub.f32 %v10612_v26, %v2902_v27  ;;  %v10847_v4 = vpop.f32.mrf.mxu0 }
 0x3b9   : > { %v10839_v62 = vpop.eup %8181  ;;  %v2926_v28 = vmul.f32 1.442695, %v2912_v60  ;;  %2432 = vmatmul.f32.gmra.mxu0 %v10598_v41  ;;  %v3189_v41 = vsel %vm2671_vm2, %v10851_v58, -inf }
 0x3ba   : > { %v2945_v29 = vsel %vm2671_vm2, %v10839_v62, 0.0 }
 0x3bb   : > { %8183 = vpow2.f32 %v2926_v28  ;;  %2946 = vadd.xlane.f32.xlu0 %v2945_v29  ;;  %3187 = vmax.xlane.f32.xlu1 %v3186_v31 }
 0x3be   : > { %v2905_v26 = vpop.xlane.xlu2 %2904 }
 0x3bf   : > { %v2913_v21 = vsub.f32 %v10629_v7, %v2905_v26  ;;  %v10862_v50 = vpop.f32.mrf.mxu0  ;;  %v10865_v7 = vadd.f32 %v3164_v46, %v10609_v34  ;;  %v2348_v26 = vpop.f32.mrf.mxu2 }
 0x3c1   : > { %v10854_v61 = vpop.eup %8183  ;;  %v2928_v24 = vmul.f32 1.442695, %v2913_v21  ;;  %2435 = vmatmul.f32.gmra.mxu0 %v10615_v2  ;;  %v3192_v54 = vsel %vm2671_vm2, %v10865_v7, -inf }
 0x3c2   : > { %v2948_v17 = vsel %vm2671_vm2, %v10854_v61, 0.0 }
 0x3c3   : > { %8185 = vpow2.f32 %v2928_v24  ;;  %2949 = vadd.xlane.f32.xlu0 %v2948_v17  ;;  %3190 = vmax.xlane.f32.xlu1 %v3189_v41 }
 0x3c6   : > { %v2674_v12 = vpop.xlane.xlu2 %2673 }
 0x3c7   : > { %v2696_v27 = vsub.f32 %v10638_v36, %v2674_v12  ;;  %v10875_v2 = vpop.f32.mrf.mxu0  ;;  %v2351_v41 = vpop.f32.mrf.mxu2 }
 0x3c9   : > { %v10868_v60 = vpop.eup %8185  ;;  %v2704_v28 = vmul.f32 1.442695, %v2696_v27  ;;  %2438 = vmatmul.f32.gmra.mxu0 %v10631_v55 }
 0x3ca   : > { %v2951_v29 = vsel %vm2671_vm2, %v10868_v60, 0.0 }
 0x3cb   : > { %8187 = vpow2.f32 %v2704_v28  ;;  %3193 = vmax.xlane.f32.xlu1 %v3192_v54  ;;  %2952 = vadd.xlane.f32.xlu0 %v2951_v29 }
 0x3ce   : > { %v2677_v31 = vpop.xlane.xlu2 %2676 }
 0x3cf   : > { %v2697_v36 = vsub.f32 %v10653_v56, %v2677_v31  ;;  %v10883_v17 = vpop.f32.mrf.mxu0  ;;  %v2354_v27 = vpop.f32.mrf.mxu2 }
 0x3d1   : > { %v10878_v21 = vpop.eup %8187  ;;  %v2706_v24 = vmul.f32 1.442695, %v2697_v36  ;;  %2441 = vmatmul.f32.gmra.mxu0 %v10647_v39 }
 0x3d2   : > { %v2720_v46 = vsel %vm2671_vm2, %v10878_v21, 0.0 }
 0x3d3   : > { %8189 = vpow2.f32 %v2706_v24  ;;  %2721 = vadd.xlane.f32.xlu1 %v2720_v46  ;;  %v1898_v24 = vperm.slane %v10463_v57, 2 }
 0x3d5   : > { %v2355_v22 = vadd.f32 %v2354_v27, %v1898_v24  ;;  %v2352_v8 = vadd.f32 %v2351_v41, %v1898_v24  ;;  %v2349_v57 = vadd.f32 %v2348_v26, %v1898_v24  ;;  %v2346_v18 = vadd.f32 %v2345_v63, %v1898_v24  ;;  %v2547_v63 = vld [vmem:[%s10003_s5 + $0x70] sm:$0xff] }
 0x3d6   : > { %v2680_v9 = vpop.xlane.xlu2 %2679 }
 0x3d7   : > { %v10890_v56 = vpop.f32.mrf.mxu0  ;;  %v2357_v28 = vpop.f32.mrf.mxu2 }
 0x3d9   : > { %v10885_v55 = vpop.eup %8189  ;;  %2444 = vmatmul.f32.gmra.mxu0 %v10664_v53 }
 0x3da   : > { %v2723_v12 = vsel %vm2671_vm2, %v10885_v55, 0.0 }
 0x3db   : > { %2724 = vadd.xlane.f32.xlu2 %v2723_v12 }
 0x3df   : > { %v10893_v54 = vpop.f32.mrf.mxu0 }
 0x3e0   : > { %v2360_v39 = vpop.f32.mrf.mxu2 }
 0x3e1   : > { %2447 = vmatmul.f32.gmra.mxu0 %v10683_v49  ;;  %v2361_v19 = vadd.f32 %v2360_v39, %v1898_v24  ;;  %v2358_v49 = vadd.f32 %v2357_v28, %v1898_v24 }
 0x3e7   : > { %v10895_v29 = vpop.f32.mrf.mxu0 }
 0x3e8   : > { %v2363_v31 = vpop.f32.mrf.mxu2 }
 0x3e9   : > { %v2364_v12 = vadd.f32 %v2363_v31, %v1898_v24 }
 0x3ef   : > { %v10897_v36 = vpop.f32.mrf.mxu0 }
 0x3f0   : > { %v2366_v46 = vpop.f32.mrf.mxu2 }
 0x3f1   : > { %v2367_v34 = vadd.f32 %v2366_v46, %v1898_v24  ;;  %v10904_v46 = vpop.xlane.xlu2 %2682  ;;  %v2545_v24 = vld [vmem:[%s10003_s5 + $0x60] sm:$0xff] }
 0x3f3   : > { %2792 = vmatpush.msra.mxu0 %v2367_v34 }
 0x3f5   : > { %2793 = vmatpush.msra.mxu0 %v2364_v12  ;;  %v2652_v12 = vpop.f32.mrf.mxu3 }
 0x3f7   : > { %v10900_v53 = vpop.f32.mrf.mxu0  ;;  %2794 = vmatpush.msra.mxu0 %v2361_v19  ;;  %v2548_v19 = vld [vmem:[%s10003_s5 + $0x78] sm:$0xff] }
 0x3f9   : > { %2795 = vmatpush.msra.mxu0 %v2358_v49  ;;  %v10916_v49 = vpop.xlane.xlu2 %2685 }
 0x3fb   : > { %2796 = vmatpush.msra.mxu0 %v2355_v22 }
 0x3fd   : > { %2797 = vmatpush.msra.mxu0 %v2352_v8  ;;  %v2546_v8 = vld [vmem:[%s10003_s5 + $0x68] sm:$0xff] }
 0x3ff   : > { %v10902_v33 = vpop.f32.mrf.mxu0  ;;  %2798 = vmatpush.msra.mxu0 %v2349_v57  ;;  %v2544_v57 = vld [vmem:[%s10003_s5 + $0x58] sm:$0xff] }
 0x401   : > { %2799 = vmatpush.msra.mxu0 %v2346_v18 }
 0x403   : > { %3076 = vmatpush.msrb.mxu0 %v2548_v19  ;;  %v2543_v19 = vld [vmem:[%s10003_s5 + $0x50] sm:$0xff] }
 0x405   : > { %3077 = vmatpush.msrb.mxu0 %v2547_v63 }
 0x406   : > { %v2932_v44 = vpop.xlane.xlu1 %2931 }
 0x407   : > { %8191 = vrcp.f32 %v2932_v44  ;;  %v10910_v26 = vpop.f32.mrf.mxu0  ;;  %3078 = vmatpush.msrb.mxu0 %v2546_v8 }
 0x409   : > { %3079 = vmatpush.msrb.mxu0 %v2545_v24 }
 0x40b   : > { %3080 = vmatpush.msrb.mxu0 %v2544_v57 }
 0x40d   : > { %v8192_v31 = vpop.eup %8191  ;;  %3081 = vmatpush.msrb.mxu0 %v2543_v19 }
 0x40e   : > { %v2962_v34 = vmul.f32 %v8192_v31, %v10757_v48  ;;  %v2935_v28 = vpop.xlane.xlu0 %2934  ;;  %v3176_v27 = vpop.xlane.xlu1 %3175 }
 0x40f   : > { %8193 = vrcp.f32 %v2935_v28  ;;  %v3198_v44 = vsub.f32 %v10768_v52, %v3176_v27 }
 0x410   : > { %7796 = vmatmul.msk.f32.vlgmr.msrb.gmra.mxu2 %vm2671_vm2, %v2962_v34  ;;  %v2698_v34 = vsub.f32 %v10672_v20, %v2680_v9 }
 0x411   : > { %v3206_v22 = vmul.f32 1.442695, %v3198_v44  ;;  %v10926_v44 = vpop.f32.mrf.mxu0 }
 0x412   : > { %v2708_v63 = vmul.f32 1.442695, %v2698_v34 }
 0x413   : > { %8195 = vpow2.f32 %v3206_v22 }
 0x415   : > { %v8194_v48 = vpop.eup %8193 }
 0x416   : > { %v2938_v41 = vpop.xlane.xlu0 %2937  ;;  %v3179_v39 = vpop.xlane.xlu1 %3178  ;;  %v2963_v52 = vmul.f32 %v8194_v48, %v10772_v37  ;;  %v2662_v37 = vmul.f32 0.2236068, %v2652_v12 }
 0x417   : > { %8197 = vrcp.f32 %v2938_v41  ;;  %v3199_v18 = vsub.f32 %v10785_v23, %v3179_v39  ;;  %v2542_v23 = vld [vmem:[%s10003_s5 + $0x48] sm:$0xff]  ;;  %v2541_v41 = vld [vmem:[%s10003_s5 + $0x40] sm:$0xff]  ;;  %v10942_v12 = vpop.xlane.xlu2 %2688 }
 0x418   : > { %7797 = vmatmul.msk.f32.gmra.mxu2 %vm2671_vm2, %v2963_v52  ;;  %v10932_v20 = vadd.f32 %v2662_v37, %v10626_v47  ;;  %3082 = vmatpush.msrb.mxu0 %v2542_v23  ;;  %v2540_v52 = vld [vmem:[%s10003_s5 + $0x38] sm:$0xff]  ;;  %v2538_v37 = vld [vmem:[%s10003_s5 + $0x28] sm:$0xff] }
 0x419   : > { %v10921_v31 = vpop.eup %8195  ;;  %v3208_v28 = vmul.f32 1.442695, %v3199_v18  ;;  %v10948_v34 = vpop.f32.mrf.mxu0 }
 0x41a   : > { %v3222_v27 = vsel %vm2671_vm2, %v10921_v31, 0.0  ;;  %3083 = vmatpush.msrb.mxu0 %v2541_v41  ;;  %v2700_v41 = vsub.f32 %v10708_v14, %v10916_v49  ;;  %v2534_v14 = vld [vmem:[%s10003_s5 + $0x8] sm:$0xff] }
 0x41b   : > { %8199 = vpow2.f32 %v3208_v28  ;;  %3223 = vadd.xlane.f32.xlu0 %v3222_v27  ;;  %v2539_v28 = vld [vmem:[%s10003_s5 + $0x30] sm:$0xff] }
 0x41c   : > { %3084 = vmatpush.msrb.mxu0 %v2540_v52 }
 0x41d   : > { %v8198_v22 = vpop.eup %8197 }
 0x41e   : > { %v2941_v8 = vpop.xlane.xlu0 %2940  ;;  %v3182_v48 = vpop.xlane.xlu1 %3181  ;;  %v2964_v9 = vmul.f32 %v8198_v22, %v10789_v45  ;;  %v2699_v45 = vsub.f32 %v10691_v43, %v10904_v46  ;;  %3085 = vmatpush.msrb.mxu0 %v2539_v28  ;;  %v2537_v22 = vld [vmem:[%s10003_s5 + $0x20] sm:$0xff] }
 0x41f   : > { %8201 = vrcp.f32 %v2941_v8  ;;  %v3200_v39 = vsub.f32 %v10804_v13, %v3182_v48  ;;  %v2693_v13 = vsel %vm2671_vm2, %v10932_v20, -inf  ;;  %v2536_v48 = vld [vmem:[%s10003_s5 + $0x18] sm:$0xff] }
 0x420   : > { %7798 = vmatmul.msk.f32.gmra.mxu2 %vm2671_vm2, %v2964_v9  ;;  %8203 = vpow2.f32 %v2708_v63  ;;  %v2710_v46 = vmul.f32 1.442695, %v2699_v45  ;;  %3086 = vmatpush.msrb.mxu0 %v2538_v37 }
 0x421   : > { %v10938_v24 = vpop.eup %8199  ;;  %v3210_v18 = vmul.f32 1.442695, %v3200_v39 }
 0x422   : > { %v3225_v57 = vsel %vm2671_vm2, %v10938_v24, 0.0  ;;  %3087 = vmatpush.msrb.mxu0 %v2537_v22 }
 0x423   : > { %8205 = vpow2.f32 %v3210_v18  ;;  %3226 = vadd.xlane.f32.xlu1 %v3225_v57  ;;  %2694 = vmax.xlane.f32.xlu0 %v2693_v13  ;;  %v2692_v18 = vpop.xlane.xlu2 %2691  ;;  %v2712_v13 = vmul.f32 1.442695, %v2700_v41 }
 0x424   : > { %3088 = vmatpush.msrb.mxu0 %v2536_v48 }
 0x425   : > { %v8202_v43 = vpop.eup %8201 }
 0x426   : > { %v2944_v27 = vpop.xlane.xlu0 %2943  ;;  %v3185_v19 = vpop.xlane.xlu1 %3184  ;;  %v2965_v23 = vmul.f32 %v8202_v43, %v10808_v38 }
 0x427   : > { %v10954_v63 = vpop.eup %8203  ;;  %8207 = vrcp.f32 %v2944_v27  ;;  %v3201_v8 = vsub.f32 %v10821_v40, %v3185_v19  ;;  %v10967_v45 = vpop.f32.mrf.mxu0  ;;  %v2535_v40 = vld [vmem:[%s10003_s5 + $0x10] sm:$0xff]  ;;  %v2533_v27 = vld [vmem:[%s10003_s5] sm:$0xff] }
 0x428   : > { %7799 = vmatmul.msk.f32.gmra.mxu2 %vm2671_vm2, %v2965_v23  ;;  %8209 = vpow2.f32 %v2710_v46  ;;  %v2726_v39 = vsel %vm2671_vm2, %v10954_v63, 0.0  ;;  %3089 = vmatpush.msrb.mxu0 %v2535_v40  ;;  %v2701_v23 = vsub.f32 %v10724_v3, %v10942_v12 }
 0x429   : > { %v10959_v9 = vpop.eup %8205  ;;  %v3212_v38 = vmul.f32 1.442695, %v3201_v8 }
 0x42a   : > { %v3228_v52 = vsel %vm2671_vm2, %v10959_v9, 0.0  ;;  %3090 = vmatpush.msrb.mxu0 %v2534_v14  ;;  %v2714_v41 = vmul.f32 1.442695, %v2701_v23  ;;  %v2561_v23 = vld [vmem:[%s10003_s5 + $0xe0] sm:$0xff] }
 0x42b   : > { %8211 = vpow2.f32 %v3212_v38  ;;  %2727 = vadd.xlane.f32.xlu1 %v2726_v39  ;;  %3229 = vadd.xlane.f32.xlu0 %v3228_v52  ;;  %v3197_v38 = vpop.xlane.xlu2 %3196  ;;  %v2564_v39 = vld [vmem:[%s10003_s5 + $0xf8] sm:$0xff] }
 0x42c   : > { %3091 = vmatpush.msrb.mxu0 %v2533_v27  ;;  %3035 = vmatpush.msrb.mxu3 %v2564_v39  ;;  %v2559_v39 = vld [vmem:[%s10003_s5 + $0xd0] sm:$0xff] }
 0x42d   : > { %v8208_v57 = vpop.eup %8207 }
 0x42e   : > { %v2947_v49 = vpop.xlane.xlu0 %2946  ;;  %v3188_v28 = vpop.xlane.xlu1 %3187  ;;  %v2966_v37 = vmul.f32 %v8208_v57, %v10824_v10 }
 0x42f   : > { %v10972_v43 = vpop.eup %8209  ;;  %8213 = vrcp.f32 %v2947_v49  ;;  %v3202_v46 = vsub.f32 %v10836_v30, %v3188_v28  ;;  %v10985_v48 = vpop.f32.mrf.mxu0  ;;  %v3205_v49 = vsub.f32 %v10747_v6, %v3197_v38 }
 0x430   : > { %7800 = vmatmul.msk.f32.gmra.mxu2 %vm2671_vm2, %v2966_v37  ;;  %8215 = vpow2.f32 %v2712_v13  ;;  %v2729_v8 = vsel %vm2671_vm2, %v10972_v43, 0.0  ;;  %v2563_v13 = vld [vmem:[%s10003_s5 + $0xf0] sm:$0xff]  ;;  %v2562_v37 = vld [vmem:[%s10003_s5 + $0xe8] sm:$0xff] }
 0x431   : > { %v10977_v19 = vpop.eup %8211  ;;  %v3214_v22 = vmul.f32 1.442695, %v3202_v46  ;;  %3036 = vmatpush.msrb.mxu3 %v2563_v13  ;;  %v11022_v13 = vpop.f32.mrf.mxu2 }
 0x432   : > { %v3231_v10 = vsel %vm2671_vm2, %v10977_v19, 0.0 }
 0x433   : > { %8217 = vpow2.f32 %v3214_v22  ;;  %3232 = vadd.xlane.f32.xlu2 %v3231_v10  ;;  %2730 = vadd.xlane.f32.xlu0 %v2729_v8  ;;  %v3220_v22 = vmul.f32 1.442695, %v3205_v49  ;;  %v2560_v10 = vld [vmem:[%s10003_s5 + $0xd8] sm:$0xff]  ;;  %v2557_v49 = vld [vmem:[%s10003_s5 + $0xc0] sm:$0xff] }
 0x434   : > { %3037 = vmatpush.msrb.mxu3 %v2562_v37  ;;  %v2556_v37 = vld [vmem:[%s10003_s5 + $0xb8] sm:$0xff] }
 0x435   : > { %v8214_v30 = vpop.eup %8213 }
 0x436   : > { %v2950_v52 = vpop.xlane.xlu0 %2949  ;;  %v3191_v3 = vpop.xlane.xlu1 %3190  ;;  %v2967_v12 = vmul.f32 %v8214_v30, %v10839_v62  ;;  %v2702_v62 = vsub.f32 %v10737_v25, %v2692_v18  ;;  %3038 = vmatpush.msrb.mxu3 %v2561_v23  ;;  %v2555_v23 = vld [vmem:[%s10003_s5 + $0xb0] sm:$0xff] }
 0x437   : > { %v10989_v40 = vpop.eup %8215  ;;  %8219 = vrcp.f32 %v2950_v52  ;;  %v3203_v57 = vsub.f32 %v10851_v58, %v3191_v3  ;;  %v11003_v27 = vpop.f32.mrf.mxu0 }
 0x438   : > { %7801 = vmatmul.msk.f32.gmra.mxu2 %vm2671_vm2, %v2967_v12  ;;  %8221 = vpow2.f32 %v2714_v41  ;;  %v2732_v58 = vsel %vm2671_vm2, %v10989_v40, 0.0  ;;  %v2716_v8 = vmul.f32 1.442695, %v2702_v62  ;;  %3039 = vmatpush.msrb.mxu3 %v2560_v10  ;;  %v2558_v12 = vld [vmem:[%s10003_s5 + $0xc8] sm:$0xff] }
 0x439   : > { %v10994_v14 = vpop.eup %8217  ;;  %v3216_v28 = vmul.f32 1.442695, %v3203_v57  ;;  %v11036_v10 = vld [vmem:[%s9996_s27 + $0x8] sm:$0xff] }
 0x43a   : > { %v3234_v46 = vsel %vm2671_vm2, %v10994_v14, 0.0  ;;  %3040 = vmatpush.msrb.mxu3 %v2559_v39  ;;  %v2553_v39 = vld [vmem:[%s10003_s5 + $0xa0] sm:$0xff] }
 0x43b   : > { %8223 = vpow2.f32 %v3216_v28  ;;  %3235 = vadd.xlane.f32.xlu1 %v3234_v46  ;;  %2733 = vadd.xlane.f32.xlu2 %v2732_v58 }
 0x43c   : > { %3041 = vmatpush.msrb.mxu3 %v2558_v12 }
 0x43d   : > { %v8220_v6 = vpop.eup %8219 }
 0x43e   : > { %v3194_v25 = vpop.xlane.xlu1 %3193  ;;  %v2953_v18 = vpop.xlane.xlu0 %2952  ;;  %v2968_v30 = vmul.f32 %v8220_v6, %v10854_v61  ;;  %3042 = vmatpush.msrb.mxu3 %v2557_v49 }
 0x43f   : > { %v11008_v41 = vpop.eup %8221  ;;  %v3204_v38 = vsub.f32 %v10865_v7, %v3194_v25  ;;  %8225 = vrcp.f32 %v2953_v18  ;;  %v11020_v7 = vpop.f32.mrf.mxu0 }
 0x440   : > { %7802 = vmatmul.msk.f32.gmra.mxu2 %vm2671_vm2, %v2968_v30  ;;  %8227 = vpow2.f32 %v3220_v22  ;;  %v2735_v61 = vsel %vm2671_vm2, %v11008_v41, 0.0  ;;  %3043 = vmatpush.msrb.mxu3 %v2556_v37  ;;  %v2551_v37 = vld [vmem:[%s10003_s5 + $0x90] sm:$0xff] }
 0x441   : > { %v11013_v52 = vpop.eup %8223  ;;  %v3218_v3 = vmul.f32 1.442695, %v3204_v38  ;;  %8229 = vpow2.f32 %v2716_v8  ;;  %v11039_v8 = vperm.slane %v11036_v10, 0 }
 0x442   : > { %v3237_v57 = vsel %vm2671_vm2, %v11013_v52, 0.0  ;;  %3044 = vmatpush.msrb.mxu3 %v2555_v23  ;;  %v2549_v23 = vld [vmem:[%s10003_s5 + $0x80] sm:$0xff] }
 0x443   : > { %8231 = vpow2.f32 %v3218_v3  ;;  %2736 = vadd.xlane.f32.xlu1 %v2735_v61  ;;  %3238 = vadd.xlane.f32.xlu0 %v3237_v57  ;;  %v2285_v12 = vadd.f32 %v10948_v34, %v11039_v8  ;;  %v11053_v61 = vpop.f32.mrf.mxu2  ;;  %v2552_v57 = vld [vmem:[%s10003_s5 + $0x98] sm:$0xff]  ;;  %v2550_v34 = vld [vmem:[%s10003_s5 + $0x88] sm:$0xff] }
 0x445   : > { %v8226_v28 = vpop.eup %8225 }
 0x446   : > { %v2722_v62 = vpop.xlane.xlu1 %2721  ;;  %v2969_v46 = vmul.f32 %v8226_v28, %v10868_v60  ;;  %v11027_v58 = vpop.eup %8227  ;;  %v2554_v60 = vld [vmem:[%s10003_s5 + $0xa8] sm:$0xff] }
 0x447   : > { %8233 = vrcp.f32 %v2722_v62  ;;  %v11030_v6 = vpop.eup %8229  ;;  %v3243_v18 = vsel %vm2671_vm2, %v11027_v58, 0.0  ;;  %v11046_v30 = vpop.f32.mrf.mxu0  ;;  %3045 = vmatpush.msrb.mxu3 %v2554_v60  ;;  %v2282_v62 = vadd.f32 %v10926_v44, %v11039_v8  ;;  %v2579_v44 = vld [vmem:[%s10003_s5 + $0x170] sm:$0xff] }
 0x448   : > { %7803 = vmatmul.msk.f32.gmra.mxu2 %vm2671_vm2, %v2969_v46  ;;  %v2738_v38 = vsel %vm2671_vm2, %v11030_v6, 0.0 }
 0x449   : > { %v11033_v22 = vpop.eup %8231  ;;  %3046 = vmatpush.msrb.mxu3 %v2553_v39  ;;  %v2578_v39 = vld [vmem:[%s10003_s5 + $0x168] sm:$0xff] }
 0x44a   : > { %v3240_v25 = vsel %vm2671_vm2, %v11033_v22, 0.0 }
 0x44b   : > { %3241 = vadd.xlane.f32.xlu2 %v3240_v25  ;;  %3244 = vadd.xlane.f32.xlu1 %v3243_v18  ;;  %v2279_v25 = vadd.f32 %v10910_v26, %v11039_v8  ;;  %v2577_v26 = vld [vmem:[%s10003_s5 + $0x160] sm:$0xff] }
 0x44c   : > { %2739 = vadd.xlane.f32.xlu0 %v2738_v38  ;;  %3047 = vmatpush.msrb.mxu3 %v2552_v57  ;;  %v11068_v38 = vpop.f32.mrf.mxu2  ;;  %v2576_v57 = vld [vmem:[%s10003_s5 + $0x158] sm:$0xff] }
 0x44d   : > { %v8234_v3 = vpop.eup %8233 }
 0x44e   : > { %v2752_v49 = vmul.f32 %v8234_v3, %v10878_v21  ;;  %v2725_v28 = vpop.xlane.xlu2 %2724  ;;  %3048 = vmatpush.msrb.mxu3 %v2551_v37  ;;  %v2580_v21 = vld [vmem:[%s10003_s5 + $0x178] sm:$0xff]  ;;  %v2276_v3 = vadd.f32 %v10902_v33, %v11039_v8  ;;  %v2574_v37 = vld [vmem:[%s10003_s5 + $0x148] sm:$0xff]  ;;  %v2270_v33 = vadd.f32 %v10897_v36, %v11039_v8  ;;  %v2267_v36 = vadd.f32 %v10895_v29, %v11039_v8 }
 0x44f   : > { %8235 = vrcp.f32 %v2725_v28  ;;  %v2442_v46 = vpop.f32.mrf.mxu0  ;;  %v1900_v28 = vperm.slane %v11036_v10, 4 }
 0x450   : > { %7788 = vmatmul.msk.f32.vlgmr.msra.gmra.mxu0 %vm2671_vm2, %v2752_v49  ;;  %3049 = vmatpush.msrb.mxu3 %v2550_v34  ;;  %v2575_v49 = vld [vmem:[%s10003_s5 + $0x150] sm:$0xff] }
 0x451   : > { %3384 = vmatpush.xpose.msra.mxu0 %v2285_v12 }
 0x452   : > { %3050 = vmatpush.msrb.mxu3 %v2549_v23 }
 0x454   : > { %3327 = vmatpush.msra.mxu3 %v2580_v21 }
 0x455   : > { %v8236_v60 = vpop.eup %8235  ;;  %3385 = vmatpush.xpose.msra.mxu0 %v2282_v62  ;;  %v11083_v62 = vpop.f32.mrf.mxu2 }
 0x456   : > { %v2753_v18 = vmul.f32 %v8236_v60, %v10885_v55  ;;  %3328 = vmatpush.msra.mxu3 %v2579_v44  ;;  %v2273_v55 = vadd.f32 %v10900_v53, %v11039_v8  ;;  %v2573_v53 = vld [vmem:[%s10003_s5 + $0x140] sm:$0xff]  ;;  %v2443_v60 = vadd.f32 %v2442_v46, %v1900_v28  ;;  %v2571_v44 = vld [vmem:[%s10003_s5 + $0x130] sm:$0xff]  ;;  %v2264_v46 = vadd.f32 %v10893_v54, %v11039_v8  ;;  %v2566_v54 = vld [vmem:[%s10003_s5 + $0x108] sm:$0xff] }
 0x457   : > { %v2445_v12 = vpop.f32.mrf.mxu0 }
 0x458   : > { %7789 = vmatmul.msk.f32.gmra.mxu0 %vm2671_vm2, %v2753_v18  ;;  %3329 = vmatpush.msra.mxu3 %v2578_v39  ;;  %v2446_v23 = vadd.f32 %v2445_v12, %v1900_v28  ;;  %v2440_v18 = vadd.f32 %v11046_v30, %v1900_v28  ;;  %v2437_v39 = vadd.f32 %v11020_v7, %v1900_v28  ;;  %v2569_v30 = vld [vmem:[%s10003_s5 + $0x120] sm:$0xff]  ;;  %v2568_v7 = vld [vmem:[%s10003_s5 + $0x118] sm:$0xff] }
 0x459   : > { %3386 = vmatpush.xpose.msra.mxu0 %v2279_v25  ;;  %v2572_v25 = vld [vmem:[%s10003_s5 + $0x138] sm:$0xff]  ;;  %v2434_v12 = vadd.f32 %v11003_v27, %v1900_v28  ;;  %v2565_v27 = vld [vmem:[%s10003_s5 + $0x100] sm:$0xff] }
 0x45a   : > { %3330 = vmatpush.msra.mxu3 %v2577_v26  ;;  %v2431_v26 = vadd.f32 %v10985_v48, %v1900_v28 }
 0x45c   : > { %3331 = vmatpush.msra.mxu3 %v2576_v57  ;;  %v2428_v57 = vadd.f32 %v10967_v45, %v1900_v28  ;;  %v1897_v45 = vperm.slane %v11036_v10, 1 }
 0x45d   : > { %3387 = vmatpush.xpose.msra.mxu0 %v2276_v3  ;;  %v2570_v3 = vld [vmem:[%s10003_s5 + $0x128] sm:$0xff]  ;;  %v11096_v29 = vpop.f32.mrf.mxu2 }
 0x45e   : > { %3332 = vmatpush.msra.mxu3 %v2575_v49 }
 0x45f   : > { %v2448_v34 = vpop.f32.mrf.mxu0 }
 0x460   : > { %v2449_v21 = vadd.f32 %v2448_v34, %v1900_v28  ;;  %3333 = vmatpush.msra.mxu3 %v2574_v37  ;;  %v2326_v28 = vadd.f32 %v10445_v32, %v1897_v45 }
 0x461   : > { %3388 = vmatpush.xpose.msra.mxu0 %v2273_v55  ;;  %v2567_v55 = vld [vmem:[%s10003_s5 + $0x110] sm:$0xff] }
 0x462   : > { %3294 = vmatpush.msra.mxu2 %v2449_v21  ;;  %3334 = vmatpush.msra.mxu3 %v2573_v53 }
 0x464   : > { %3295 = vmatpush.msra.mxu2 %v2446_v23  ;;  %3335 = vmatpush.msra.mxu3 %v2572_v25 }
 0x465   : > { %3389 = vmatpush.xpose.msra.mxu0 %v2270_v33  ;;  %v11105_v8 = vpop.f32.mrf.mxu2 }
 0x466   : > { %3296 = vmatpush.msra.mxu2 %v2443_v60  ;;  %3336 = vmatpush.msra.mxu3 %v2571_v44  ;;  %v2323_v60 = vadd.f32 %v10442_v1, %v1897_v45  ;;  %v2317_v1 = vadd.f32 %v10436_v5, %v1897_v45 }
 0x468   : > { %3297 = vmatpush.msra.mxu2 %v2440_v18  ;;  %3337 = vmatpush.msra.mxu3 %v2570_v3  ;;  %v2320_v18 = vadd.f32 %v10440_v16, %v1897_v45 }
 0x469   : > { %3390 = vmatpush.xpose.msra.mxu0 %v2267_v36 }
 0x46a   : > { %3298 = vmatpush.msra.mxu2 %v2437_v39  ;;  %3338 = vmatpush.msra.mxu3 %v2569_v30 }
 0x46c   : > { %3299 = vmatpush.msra.mxu2 %v2434_v12  ;;  %3339 = vmatpush.msra.mxu3 %v2568_v7 }
 0x46d   : > { %3391 = vmatpush.xpose.msra.mxu0 %v2264_v46  ;;  %v11107_v49 = vpop.f32.mrf.mxu2  ;;  %v2314_v46 = vadd.f32 %v10432_v59, %v1897_v45  ;;  %v2308_v59 = vadd.f32 %v10419_v51, %v1897_v45 }
 0x46e   : > { %3300 = vmatpush.msra.mxu2 %v2431_v26  ;;  %3340 = vmatpush.msra.mxu3 %v2567_v55 }
 0x470   : > { %3301 = vmatpush.msra.mxu2 %v2428_v57  ;;  %3341 = vmatpush.msra.mxu3 %v2566_v54  ;;  %v2311_v57 = vadd.f32 %v10426_v0, %v1897_v45 }
 0x472   : > { %3342 = vmatpush.msra.mxu3 %v2565_v27 }
 0x475   : > { %v11109_v48 = vpop.f32.mrf.mxu2 }
 0x48e   : > { %v3224_v37 = vpop.xlane.xlu0 %3223 }
 0x48f   : > { %8237 = vrcp.f32 %v3224_v37 }
 0x493   : > { %v3011_v33 = vpop.f32.mrf.mxu2 }
 0x494   : > { %3051 = vmatmul.f32.vlgmr.msrb.gmra.mxu3 %v3011_v33  ;;  %v2305_v33 = vadd.f32 %v10412_v35, %v1897_v45 }
 0x495   : > { %v8238_v34 = vpop.eup %8237  ;;  %3643 = vmatpush.xpose.msrb.mxu3 %v2326_v28 }
 0x496   : > { %v3254_v23 = vmul.f32 %v8238_v34, %v10921_v31  ;;  %v3227_v21 = vpop.xlane.xlu1 %3226  ;;  %v2695_v53 = vpop.xlane.xlu0 %2694 }
 0x497   : > { %8239 = vrcp.f32 %v3227_v21  ;;  %v2703_v25 = vsub.f32 %v10932_v20, %v2695_v53 }
 0x498   : > { %7804 = vmatmul.msk.f32.vlgmr.msra.gmra.mxu2 %vm2671_vm2, %v3254_v23 }
 0x499   : > { %v2718_v36 = vmul.f32 1.442695, %v2703_v25  ;;  %3644 = vmatpush.xpose.msrb.mxu3 %v2323_v60 }
 0x49b   : > { %8241 = vpow2.f32 %v2718_v36  ;;  %v3014_v32 = vpop.f32.mrf.mxu2 }
 0x49c   : > { %3054 = vmatmul.f32.gmra.mxu3 %v3014_v32 }
 0x49d   : > { %v8240_v44 = vpop.eup %8239  ;;  %3645 = vmatpush.xpose.msrb.mxu3 %v2320_v18 }
 0x49e   : > { %v2728_v39 = vpop.xlane.xlu1 %2727  ;;  %v3230_v31 = vpop.xlane.xlu0 %3229  ;;  %v3255_v3 = vmul.f32 %v8240_v44, %v10938_v24 }
 0x49f   : > { %8243 = vrcp.f32 %v2728_v39 }
 0x4a0   : > { %8245 = vrcp.f32 %v3230_v31  ;;  %7805 = vmatmul.msk.f32.gmra.mxu2 %vm2671_vm2, %v3255_v3 }
 0x4a1   : > { %v11121_v20 = vpop.eup %8241  ;;  %3646 = vmatpush.xpose.msrb.mxu3 %v2317_v1 }
 0x4a2   : > { %v2741_v16 = vsel %vm2671_vm2, %v11121_v20, 0.0 }
 0x4a3   : > { %v3017_v12 = vpop.f32.mrf.mxu2  ;;  %2742 = vadd.xlane.f32.xlu2 %v2741_v16 }
 0x4a4   : > { %3057 = vmatmul.f32.gmra.mxu3 %v3017_v12 }
 0x4a5   : > { %v8244_v30 = vpop.eup %8243  ;;  %3647 = vmatpush.xpose.msrb.mxu3 %v2314_v46 }
 0x4a6   : > { %v8246_v24 = vpop.eup %8245  ;;  %v3233_v26 = vpop.xlane.xlu2 %3232  ;;  %v2754_v7 = vmul.f32 %v8244_v30, %v10954_v63 }
 0x4a7   : > { %v2731_v5 = vpop.xlane.xlu0 %2730  ;;  %8247 = vrcp.f32 %v3233_v26  ;;  %v3256_v55 = vmul.f32 %v8246_v24, %v10959_v9  ;;  %v1902_v24 = vperm.slane %v11036_v10, 6 }
 0x4a8   : > { %8249 = vrcp.f32 %v2731_v5  ;;  %7790 = vmatmul.msk.f32.gmra.mxu0 %vm2671_vm2, %v2754_v7 }
 0x4a9   : > { %7806 = vmatmul.msk.f32.gmra.mxu2 %vm2671_vm2, %v3256_v55  ;;  %3648 = vmatpush.xpose.msrb.mxu3 %v2311_v57  ;;  %v2531_v26 = vadd.f32 %v11109_v48, %v1902_v24  ;;  %v2525_v7 = vadd.f32 %v11105_v8, %v1902_v24  ;;  %v2522_v55 = vadd.f32 %v11096_v29, %v1902_v24 }
 0x4aa   : > { %v2516_v10 = vadd.f32 %v11068_v38, %v1902_v24  ;;  %v2513_v48 = vadd.f32 %v11053_v61, %v1902_v24  ;;  %v2510_v8 = vadd.f32 %v11022_v13, %v1902_v24 }
 0x4ab   : > { %v3020_v54 = vpop.f32.mrf.mxu2 }
 0x4ac   : > { %3060 = vmatmul.f32.gmra.mxu3 %v3020_v54 }
 0x4ad   : > { %v8248_v27 = vpop.eup %8247  ;;  %3649 = vmatpush.xpose.msrb.mxu3 %v2308_v59 }
 0x4ae   : > { %v8250_v37 = vpop.eup %8249  ;;  %v3236_v28 = vpop.xlane.xlu1 %3235  ;;  %v3257_v0 = vmul.f32 %v8248_v27, %v10977_v19 }
 0x4af   : > { %v2734_v63 = vpop.xlane.xlu2 %2733  ;;  %8251 = vrcp.f32 %v3236_v28  ;;  %v2755_v9 = vmul.f32 %v8250_v37, %v10972_v43  ;;  %v8548_v28 = vld [vmem:[%s9996_s27] sm:$0xff] }
 0x4b0   : > { %8253 = vrcp.f32 %v2734_v63  ;;  %v1892_v63 = vperm.slane %v8548_v28, 4 }
 0x4b1   : > { %7791 = vmatmul.msk.f32.gmra.mxu0 %vm2671_vm2, %v2755_v9  ;;  %7807 = vmatmul.msk.f32.gmra.mxu2 %vm2671_vm2, %v3257_v0 }
 0x4b2   : > { %3650 = vmatpush.xpose.msrb.mxu3 %v2305_v33  ;;  %v2100_v9 = vadd.f32 %v10800_v42, %v1892_v63  ;;  %v2112_v42 = vadd.f32 %v10862_v50, %v1892_v63  ;;  %v1891_v50 = vperm.slane %v8548_v28, 3 }
 0x4b3   : > { %v3023_v51 = vpop.f32.mrf.mxu2 }
 0x4b4   : > { %3063 = vmatmul.f32.gmra.mxu3 %v3023_v51  ;;  %v2103_v51 = vadd.f32 %v10817_v11, %v1892_v63  ;;  %v2118_v11 = vadd.f32 %v10883_v17, %v1892_v63 }
 0x4b5   : > { %v8252_v34 = vpop.eup %8251 }
 0x4b6   : > { %v8254_v23 = vpop.eup %8253  ;;  %v2737_v21 = vpop.xlane.xlu1 %2736  ;;  %v3258_v60 = vmul.f32 %v8252_v34, %v10994_v14 }
 0x4b7   : > { %v3239_v53 = vpop.xlane.xlu0 %3238  ;;  %8255 = vrcp.f32 %v2737_v21  ;;  %v2756_v19 = vmul.f32 %v8254_v23, %v10989_v40  ;;  %v2106_v23 = vadd.f32 %v10832_v15, %v1892_v63  ;;  %v2121_v15 = vadd.f32 %v10890_v56, %v1892_v63 }
 0x4b8   : > { %8257 = vrcp.f32 %v3239_v53  ;;  %v2109_v53 = vadd.f32 %v10847_v4, %v1892_v63 }
 0x4b9   : > { %7792 = vmatmul.msk.f32.gmra.mxu0 %vm2671_vm2, %v2756_v19  ;;  %7808 = vmatmul.msk.f32.gmra.mxu2 %vm2671_vm2, %v3258_v60  ;;  %v2115_v19 = vadd.f32 %v10875_v2, %v1892_v63 }
 0x4bb   : > { %v3026_v35 = vpop.f32.mrf.mxu2 }
 0x4bc   : > { %3066 = vmatmul.f32.gmra.mxu3 %v3026_v35 }
 0x4bd   : > { %v8256_v43 = vpop.eup %8255 }
 0x4be   : > { %v8258_v45 = vpop.eup %8257  ;;  %v3242_v25 = vpop.xlane.xlu2 %3241  ;;  %v2757_v36 = vmul.f32 %v8256_v43, %v11008_v41 }
 0x4bf   : > { %v2740_v18 = vpop.xlane.xlu0 %2739  ;;  %v3259_v32 = vmul.f32 %v8258_v45, %v11013_v52  ;;  %8259 = vrcp.f32 %v3242_v25  ;;  %v3245_v40 = vpop.xlane.xlu1 %3244 }
 0x4c0   : > { %8261 = vrcp.f32 %v2740_v18 }
 0x4c1   : > { %7793 = vmatmul.msk.f32.gmra.mxu0 %vm2671_vm2, %v2757_v36  ;;  %7809 = vmatmul.msk.f32.gmra.mxu2 %vm2671_vm2, %v3259_v32  ;;  %8263 = vrcp.f32 %v3245_v40  ;;  %v13624_v36 = vld [vmem:[#allocation75_spill] sm:$0xff]  ;;  %v13625_v32 = vld [vmem:[#allocation76_spill] sm:$0xff] }
 0x4c2   : > { %v2059_v2 = vadd.f32 %v13624_v36, %v1891_v50  ;;  %v2062_v17 = vadd.f32 %v13625_v32, %v1891_v50 }
 0x4c3   : > { %v3029_v14 = vpop.f32.mrf.mxu2 }
 0x4c4   : > { %3069 = vmatmul.f32.gmra.mxu3 %v3029_v14  ;;  %v13626_v14 = vld [vmem:[#allocation77_spill] sm:$0xff] }
 0x4c5   : > { %v8260_v44 = vpop.eup %8259  ;;  %v2065_v56 = vadd.f32 %v13626_v14, %v1891_v50 }
 0x4c6   : > { %v8262_v39 = vpop.eup %8261  ;;  %v3260_v31 = vmul.f32 %v8260_v44, %v11033_v22 }
 0x4c7   : > { %v2758_v3 = vmul.f32 %v8262_v39, %v11030_v6  ;;  %v8264_v52 = vpop.eup %8263  ;;  %v13627_v39 = vld [vmem:[#allocation78_spill] sm:$0xff] }
 0x4c8   : > { %v3261_v1 = vmul.f32 %v8264_v52, %v11027_v58  ;;  %v2528_v58 = vadd.f32 %v11107_v49, %v1902_v24 }
 0x4c9   : > { %7810 = vmatmul.msk.f32.gmra.mxu2 %vm2671_vm2, %v3260_v31  ;;  %7794 = vmatmul.msk.f32.gmra.mxu0 %vm2671_vm2, %v2758_v3  ;;  %v2068_v31 = vadd.f32 %v13627_v39, %v1891_v50  ;;  %v13635_v39 = vld [vmem:[#allocation88_spill] sm:$0xff] }
 0x4cb   : > { %v3032_v41 = vpop.f32.mrf.mxu2 }
 0x4cc   : > { %3072 = vmatmul.f32.gmra.mxu3 %v3032_v41  ;;  %v13628_v41 = vld [vmem:[#allocation79_spill] sm:$0xff] }
 0x4cd   : > { %v2801_v30 = vpop.f32.mrf.mxu0  ;;  %v2071_v52 = vadd.f32 %v13628_v41, %v1891_v50 }
 0x4d1   : > { %7811 = vmatmul.msk.f32.gmra.mxu2 %vm2671_vm2, %v3261_v1 }
 0x4d5   : > { %v2804_v5 = vpop.f32.mrf.mxu0 }
 0x516   : > { %v2743_v16 = vpop.xlane.xlu2 %2742 }
 0x517   : > { %8265 = vrcp.f32 %v2743_v16  ;;  %v11162_v61 = vpop.f32.mrf.mxu3  ;;  %v13629_v16 = vld [vmem:[#allocation80_spill] sm:$0xff] }
 0x51b   : > { %v3303_v46 = vpop.f32.mrf.mxu2 }
 0x51c   : > { %3343 = vmatmul.f32.vlgmr.msra.gmra.mxu3 %v3303_v46  ;;  %v2074_v46 = vadd.f32 %v13629_v16, %v1891_v50 }
 0x51d   : > { %v8266_v12 = vpop.eup %8265 }
 0x51e   : > { %v2759_v22 = vmul.f32 %v8266_v12, %v11121_v20  ;;  %v2519_v20 = vadd.f32 %v11083_v62, %v1902_v24 }
 0x51f   : > { %v11166_v33 = vpop.f32.mrf.mxu3 }
 0x520   : > { %7795 = vmatmul.msk.f32.gmra.mxu0 %vm2671_vm2, %v2759_v22 }
 0x523   : > { %v3306_v6 = vpop.f32.mrf.mxu2 }
 0x524   : > { %3346 = vmatmul.f32.gmra.mxu3 %v3306_v6 }
 0x525   : > { %v2807_v59 = vpop.f32.mrf.mxu0 }
 0x527   : > { %v11169_v34 = vpop.f32.mrf.mxu3 }
 0x528   : > { %3092 = vmatmul.f32.vlgmr.msrb.gmra.mxu0 %v2801_v30  ;;  %v13630_v30 = vld [vmem:[#allocation81_spill] sm:$0xff] }
 0x529   : > { %3812 = vmatpush.msrb.mxu0 %v2531_v26  ;;  %v2077_v22 = vadd.f32 %v13630_v30, %v1891_v50  ;;  %v13631_v26 = vld [vmem:[#allocation82_spill] sm:$0xff] }
 0x52b   : > { %3813 = vmatpush.msrb.mxu0 %v2528_v58 }
 0x52c   : > { %v3309_v57 = vpop.f32.mrf.mxu2 }
 0x52d   : > { %3349 = vmatmul.f32.gmra.mxu3 %v3309_v57  ;;  %3814 = vmatpush.msrb.mxu0 %v2525_v7 }
 0x52e   : > { %v2810_v29 = vpop.f32.mrf.mxu0 }
 0x52f   : > { %3815 = vmatpush.msrb.mxu0 %v2522_v55  ;;  %v11172_v21 = vpop.f32.mrf.mxu3  ;;  %v13632_v55 = vld [vmem:[#allocation85_spill] sm:$0xff] }
 0x530   : > { %3095 = vmatmul.f32.gmra.mxu0 %v2804_v5  ;;  %v2080_v5 = vadd.f32 %v13631_v26, %v1891_v50 }
 0x531   : > { %3816 = vmatpush.msrb.mxu0 %v2519_v20 }
 0x533   : > { %3817 = vmatpush.msrb.mxu0 %v2516_v10 }
 0x534   : > { %v3312_v49 = vpop.f32.mrf.mxu2 }
 0x535   : > { %3352 = vmatmul.f32.gmra.mxu3 %v3312_v49  ;;  %3818 = vmatpush.msrb.mxu0 %v2513_v48 }
 0x536   : > { %v2813_v62 = vpop.f32.mrf.mxu0 }
 0x537   : > { %3819 = vmatpush.msrb.mxu0 %v2510_v8  ;;  %v11175_v60 = vpop.f32.mrf.mxu3 }
 0x538   : > { %3098 = vmatmul.f32.gmra.mxu0 %v2807_v59 }
 0x53c   : > { %v3315_v54 = vpop.f32.mrf.mxu2 }
 0x53d   : > { %3355 = vmatmul.f32.gmra.mxu3 %v3315_v54 }
 0x53e   : > { %v2816_v37 = vpop.f32.mrf.mxu0 }
 0x53f   : > { %v11179_v35 = vpop.f32.mrf.mxu3 }
 0x540   : > { %3101 = vmatmul.f32.gmra.mxu0 %v2810_v29 }
 0x544   : > { %v3318_v27 = vpop.f32.mrf.mxu2 }
 0x545   : > { %3358 = vmatmul.f32.gmra.mxu3 %v3318_v27 }
 0x546   : > { %v2819_v0 = vpop.f32.mrf.mxu0 }
 0x547   : > { %v11182_v43 = vpop.f32.mrf.mxu3 }
 0x548   : > { %3104 = vmatmul.f32.gmra.mxu0 %v2813_v62 }
 0x54c   : > { %v3321_v38 = vpop.f32.mrf.mxu2 }
 0x54d   : > { %3361 = vmatmul.f32.gmra.mxu3 %v3321_v38 }
 0x54f   : > { %v11185_v4 = vpop.f32.mrf.mxu3 }
 0x550   : > { %3107 = vmatmul.f32.gmra.mxu0 %v2816_v37 }
 0x554   : > { %v3324_v13 = vpop.f32.mrf.mxu2 }
 0x555   : > { %3364 = vmatmul.f32.gmra.mxu3 %v3324_v13 }
 0x558   : > { %3110 = vmatmul.f32.gmra.mxu0 %v2819_v0 }
 0x55d   : > { %3651 = vmatmul.f32.vlgmr.msrb.gmra.mxu3 %v2100_v9  ;;  %v13633_v9 = vld [vmem:[#allocation86_spill] sm:$0xff] }
 0x565   : > { %3654 = vmatmul.f32.gmra.mxu3 %v2103_v51 }
 0x56d   : > { %3657 = vmatmul.f32.gmra.mxu3 %v2106_v23 }
 0x575   : > { %3660 = vmatmul.f32.gmra.mxu3 %v2109_v53 }
 0x57d   : > { %3663 = vmatmul.f32.gmra.mxu3 %v2112_v42 }
 0x585   : > { %3666 = vmatmul.f32.gmra.mxu3 %v2115_v19 }
 0x58d   : > { %3669 = vmatmul.f32.gmra.mxu3 %v2118_v11 }
 0x595   : > { %3672 = vmatmul.f32.gmra.mxu3 %v2121_v15 }
 0x59d   : > { %v2822_v45 = vpop.f32.mrf.mxu0 }
 0x59e   : > { %3113 = vmatmul.f32.gmra.mxu0 %v2822_v45  ;;  %v13634_v45 = vld [vmem:[#allocation87_spill] sm:$0xff] }
 0x59f   : > { %v11187_v25 = vpop.f32.mrf.mxu3 }
 0x5a5   : > { %v11208_v6 = vpop.f32.mrf.mxu0 }
 0x5a6   : > { %3392 = vmatmul.f32.vlgmr.msra.gmra.mxu0 %v2059_v2 }
 0x5a7   : > { %v11190_v18 = vpop.f32.mrf.mxu3 }
 0x5ad   : > { %v11213_v7 = vpop.f32.mrf.mxu0 }
 0x5ae   : > { %3395 = vmatmul.f32.gmra.mxu0 %v2062_v17 }
 0x5b0   : > { %v11193_v40 = vpop.f32.mrf.mxu3 }
 0x5b5   : > { %v11220_v10 = vpop.f32.mrf.mxu0 }
 0x5b6   : > { %3398 = vmatmul.f32.gmra.mxu0 %v2065_v56 }
 0x5b8   : > { %v11196_v44 = vpop.f32.mrf.mxu3 }
 0x5bd   : > { %v11222_v48 = vpop.f32.mrf.mxu0 }
 0x5be   : > { %3401 = vmatmul.f32.gmra.mxu0 %v2068_v31 }
 0x5c0   : > { %v11199_v3 = vpop.f32.mrf.mxu3 }
 0x5c5   : > { %v11224_v49 = vpop.f32.mrf.mxu0 }
 0x5c6   : > { %3404 = vmatmul.f32.gmra.mxu0 %v2071_v52 }
 0x5c8   : > { %v11202_v1 = vpop.f32.mrf.mxu3 }
 0x5cd   : > { %v11226_v8 = vpop.f32.mrf.mxu0 }
 0x5ce   : > { %3407 = vmatmul.f32.gmra.mxu0 %v2074_v46 }
 0x5d0   : > { %v11205_v12 = vpop.f32.mrf.mxu3 }
 0x5d5   : > { %v11228_v29 = vpop.f32.mrf.mxu0 }
 0x5d6   : > { %3410 = vmatmul.f32.gmra.mxu0 %v2077_v22 }
 0x5d8   : > { %v11210_v24 = vpop.f32.mrf.mxu3 }
 0x5de   : > { %3413 = vmatmul.f32.gmra.mxu0 %v2080_v5  ;;  %v13636_v5 = vld [vmem:[#allocation89_spill] sm:$0xff] }
 0x5e0   : > { %v3652_v58 = vpop.f32.mrf.mxu3 }
 0x5e1   : > { %v3676_v57 = vmul.f32 0.2236068, %v3652_v58 }
 0x5e3   : > { %v11216_v20 = vadd.f32 %v3676_v57, %v13632_v55 }
 0x5e5   : > { %v3692_v59 = vsel %vm2671_vm2, %v11216_v20, -inf }
 0x5e6   : > { %3693 = vmax.xlane.f32.xlu2 %v3692_v59 }
 0x5e8   : > { %v3655_v62 = vpop.f32.mrf.mxu3 }
 0x5e9   : > { %v3677_v23 = vmul.f32 0.2236068, %v3655_v62 }
 0x5eb   : > { %v11243_v11 = vadd.f32 %v3677_v23, %v13633_v9 }
 0x5ed   : > { %v3695_v2 = vsel %vm2671_vm2, %v11243_v11, -inf }
 0x5f0   : > { %v3658_v28 = vpop.f32.mrf.mxu3 }
 0x5f1   : > { %v3678_v36 = vmul.f32 0.2236068, %v3658_v28  ;;  %v13637_v28 = vld [vmem:[#allocation90_spill] sm:$0xff] }
 0x5f3   : > { %v11253_v56 = vadd.f32 %v3678_v36, %v13634_v45 }
 0x5f5   : > { %v3698_v16 = vsel %vm2671_vm2, %v11253_v56, -inf }
 0x5f8   : > { %v3661_v15 = vpop.f32.mrf.mxu3 }
 0x5f9   : > { %v3679_v52 = vmul.f32 0.2236068, %v3661_v15 }
 0x5fb   : > { %v11263_v26 = vadd.f32 %v3679_v52, %v13635_v39 }
 0x600   : > { %v3664_v41 = vpop.f32.mrf.mxu3 }
 0x601   : > { %v3680_v57 = vmul.f32 0.2236068, %v3664_v41 }
 0x608   : > { %v3667_v62 = vpop.f32.mrf.mxu3 }
 0x61b   : > { %v11230_v54 = vpop.f32.mrf.mxu0 }
 0x623   : > { %v3393_v27 = vpop.f32.mrf.mxu0 }
 0x624   : > { %v3417_v38 = vmul.f32 0.2236068, %v3393_v27 }
 0x626   : > { %v11233_v37 = vadd.f32 %v3417_v38, %v13632_v55  ;;  %v3701_v55 = vsel %vm2671_vm2, %v11263_v26, -inf }
 0x628   : > { %v3433_v13 = vsel %vm2671_vm2, %v11233_v37, -inf }
 0x629   : > { %3434 = vmax.xlane.f32.xlu0 %v3433_v13  ;;  %v11273_v13 = vadd.f32 %v3680_v57, %v13636_v5 }
 0x62b   : > { %v3396_v63 = vpop.f32.mrf.mxu0 }
 0x62c   : > { %v3418_v0 = vmul.f32 0.2236068, %v3396_v63 }
 0x62e   : > { %v11238_v51 = vadd.f32 %v3418_v0, %v13633_v9  ;;  %v3681_v0 = vmul.f32 0.2236068, %v3667_v62  ;;  %v3704_v9 = vsel %vm2671_vm2, %v11273_v13, -inf }
 0x630   : > { %v3436_v53 = vsel %vm2671_vm2, %v11238_v51, -inf  ;;  %v11283_v15 = vadd.f32 %v3681_v0, %v13637_v28 }
 0x631   : > { %3437 = vmax.xlane.f32.xlu1 %v3436_v53  ;;  %v3670_v53 = vpop.f32.mrf.mxu3 }
 0x633   : > { %v3399_v42 = vpop.f32.mrf.mxu0 }
 0x634   : > { %v3419_v19 = vmul.f32 0.2236068, %v3399_v42 }
 0x636   : > { %v11246_v50 = vadd.f32 %v3419_v19, %v13634_v45  ;;  %v13638_v45 = vld [vmem:[#allocation91_spill] sm:$0xff] }
 0x638   : > { %v3439_v32 = vsel %vm2671_vm2, %v11246_v50, -inf }
 0x639   : > { %3696 = vmax.xlane.f32.xlu1 %v3695_v2  ;;  %3440 = vmax.xlane.f32.xlu0 %v3439_v32  ;;  %v3682_v2 = vmul.f32 0.2236068, %v3670_v53  ;;  %v3707_v32 = vsel %vm2671_vm2, %v11283_v15, -inf }
 0x63b   : > { %v3402_v17 = vpop.f32.mrf.mxu0 }
 0x63c   : > { %v3420_v14 = vmul.f32 0.2236068, %v3402_v17 }
 0x63e   : > { %v11256_v31 = vadd.f32 %v3420_v14, %v13635_v39 }
 0x640   : > { %v3442_v46 = vsel %vm2671_vm2, %v11256_v31, -inf }
 0x641   : > { %3699 = vmax.xlane.f32.xlu0 %v3698_v16  ;;  %3443 = vmax.xlane.f32.xlu2 %v3442_v46  ;;  %v11294_v46 = vadd.f32 %v3682_v2, %v13638_v45 }
 0x643   : > { %v3405_v30 = vpop.f32.mrf.mxu0  ;;  %v3710_v57 = vsel %vm2671_vm2, %v11294_v46, -inf }
 0x644   : > { %v3421_v22 = vmul.f32 0.2236068, %v3405_v30  ;;  %v3673_v30 = vpop.f32.mrf.mxu3 }
 0x646   : > { %v11266_v58 = vadd.f32 %v3421_v22, %v13636_v5  ;;  %v3683_v5 = vmul.f32 0.2236068, %v3673_v30 }
 0x648   : > { %v3445_v59 = vsel %vm2671_vm2, %v11266_v58, -inf }
 0x649   : > { %3702 = vmax.xlane.f32.xlu2 %v3701_v55  ;;  %3446 = vmax.xlane.f32.xlu1 %v3445_v59 }
 0x64b   : > { %v3408_v27 = vpop.f32.mrf.mxu0 }
 0x64c   : > { %v3422_v38 = vmul.f32 0.2236068, %v3408_v27 }
 0x64e   : > { %v11276_v63 = vadd.f32 %v3422_v38, %v13637_v28 }
 0x650   : > { %v3448_v23 = vsel %vm2671_vm2, %v11276_v63, -inf }
 0x651   : > { %3705 = vmax.xlane.f32.xlu1 %v3704_v9  ;;  %3449 = vmax.xlane.f32.xlu0 %v3448_v23 }
 0x653   : > { %v3411_v42 = vpop.f32.mrf.mxu0 }
 0x654   : > { %v3423_v19 = vmul.f32 0.2236068, %v3411_v42 }
 0x656   : > { %v11286_v36 = vadd.f32 %v3423_v19, %v13638_v45 }
 0x658   : > { %v3451_v17 = vsel %vm2671_vm2, %v11286_v36, -inf }
 0x659   : > { %v3694_v14 = vpop.xlane.xlu2 %3693  ;;  %3708 = vmax.xlane.f32.xlu0 %v3707_v32  ;;  %3452 = vmax.xlane.f32.xlu2 %v3451_v17 }
 0x65a   : > { %v3716_v39 = vsub.f32 %v11216_v20, %v3694_v14  ;;  %v11304_v20 = vadd.f32 %v3683_v5, %v10626_v47 }
 0x65b   : > { %v3414_v41 = vpop.f32.mrf.mxu0 }
 0x65c   : > { %v3724_v52 = vmul.f32 1.442695, %v3716_v39  ;;  %v3424_v16 = vmul.f32 0.2236068, %v3414_v41  ;;  %v3713_v62 = vsel %vm2671_vm2, %v11304_v20, -inf }
 0x65e   : > { %v11297_v22 = vadd.f32 %v3424_v16, %v10626_v47  ;;  %8267 = vpow2.f32 %v3724_v52 }
 0x660   : > { %v3454_v55 = vsel %vm2671_vm2, %v11297_v22, -inf }
 0x661   : > { %3711 = vmax.xlane.f32.xlu0 %v3710_v57  ;;  %3455 = vmax.xlane.f32.xlu2 %v3454_v55 }
 0x664   : > { %v11306_v59 = vpop.eup %8267 }
 0x665   : > { %v3740_v27 = vsel %vm2671_vm2, %v11306_v59, 0.0 }
 0x669   : > { %3714 = vmax.xlane.f32.xlu0 %v3713_v62  ;;  %3741 = vadd.xlane.f32.xlu2 %v3740_v27 }
 0x69c   : > { %v3435_v38 = vpop.xlane.xlu0 %3434 }
 0x69d   : > { %v3457_v28 = vsub.f32 %v11233_v37, %v3435_v38 }
 0x69f   : > { %v3465_v0 = vmul.f32 1.442695, %v3457_v28 }
 0x6a1   : > { %8269 = vpow2.f32 %v3465_v0 }
 0x6a4   : > { %v3438_v9 = vpop.xlane.xlu1 %3437 }
 0x6a5   : > { %v3458_v23 = vsub.f32 %v11238_v51, %v3438_v9 }
 0x6a7   : > { %v11314_v47 = vpop.eup %8269  ;;  %v3467_v53 = vmul.f32 1.442695, %v3458_v23 }
 0x6a8   : > { %v3481_v42 = vsel %vm2671_vm2, %v11314_v47, 0.0 }
 0x6a9   : > { %8271 = vpow2.f32 %v3467_v53  ;;  %3482 = vadd.xlane.f32.xlu1 %v3481_v42 }
 0x6ac   : > { %v3697_v19 = vpop.xlane.xlu1 %3696  ;;  %v3441_v45 = vpop.xlane.xlu0 %3440 }
 0x6ad   : > { %v3717_v2 = vsub.f32 %v11243_v11, %v3697_v19  ;;  %v3459_v32 = vsub.f32 %v11246_v50, %v3441_v45 }
 0x6af   : > { %v11320_v37 = vpop.eup %8271  ;;  %v3726_v17 = vmul.f32 1.442695, %v3717_v2  ;;  %v3469_v14 = vmul.f32 1.442695, %v3459_v32 }
 0x6b0   : > { %v3484_v51 = vsel %vm2671_vm2, %v11320_v37, 0.0 }
 0x6b1   : > { %8273 = vpow2.f32 %v3726_v17  ;;  %3485 = vadd.xlane.f32.xlu1 %v3484_v51 }
 0x6b2   : > { %8275 = vpow2.f32 %v3469_v14 }
 0x6b4   : > { %v3700_v39 = vpop.xlane.xlu0 %3699  ;;  %v3444_v41 = vpop.xlane.xlu2 %3443 }
 0x6b5   : > { %v3718_v52 = vsub.f32 %v11253_v56, %v3700_v39  ;;  %v3460_v16 = vsub.f32 %v11256_v31, %v3444_v41 }
 0x6b7   : > { %v11326_v30 = vpop.eup %8273  ;;  %v3728_v11 = vmul.f32 1.442695, %v3718_v52  ;;  %v3471_v50 = vmul.f32 1.442695, %v3460_v16 }
 0x6b8   : > { %v11328_v5 = vpop.eup %8275  ;;  %v3743_v57 = vsel %vm2671_vm2, %v11326_v30, 0.0 }
 0x6b9   : > { %8277 = vpow2.f32 %v3728_v11  ;;  %v3487_v55 = vsel %vm2671_vm2, %v11328_v5, 0.0  ;;  %3744 = vadd.xlane.f32.xlu2 %v3743_v57 }
 0x6ba   : > { %8279 = vpow2.f32 %v3471_v50  ;;  %3488 = vadd.xlane.f32.xlu1 %v3487_v55 }
 0x6bc   : > { %v3703_v62 = vpop.xlane.xlu2 %3702  ;;  %v3447_v56 = vpop.xlane.xlu1 %3446 }
 0x6bd   : > { %v3719_v31 = vsub.f32 %v11263_v26, %v3703_v62  ;;  %v3461_v27 = vsub.f32 %v11266_v58, %v3447_v56 }
 0x6bf   : > { %v11336_v38 = vpop.eup %8277  ;;  %v3730_v28 = vmul.f32 1.442695, %v3719_v31  ;;  %v3473_v0 = vmul.f32 1.442695, %v3461_v27 }
 0x6c0   : > { %v11338_v9 = vpop.eup %8279  ;;  %v3746_v23 = vsel %vm2671_vm2, %v11336_v38, 0.0 }
 0x6c1   : > { %8281 = vpow2.f32 %v3730_v28  ;;  %v3490_v53 = vsel %vm2671_vm2, %v11338_v9, 0.0 }
 0x6c2   : > { %8283 = vpow2.f32 %v3473_v0  ;;  %3747 = vadd.xlane.f32.xlu1 %v3746_v23  ;;  %3491 = vadd.xlane.f32.xlu0 %v3490_v53 }
 0x6c4   : > { %v3706_v42 = vpop.xlane.xlu1 %3705  ;;  %v3450_v26 = vpop.xlane.xlu0 %3449 }
 0x6c5   : > { %v3720_v58 = vsub.f32 %v11273_v13, %v3706_v42  ;;  %v3462_v19 = vsub.f32 %v11276_v63, %v3450_v26 }
 0x6c7   : > { %v11346_v45 = vpop.eup %8281  ;;  %v3732_v2 = vmul.f32 1.442695, %v3720_v58  ;;  %v3475_v32 = vmul.f32 1.442695, %v3462_v19 }
 0x6c8   : > { %v11348_v17 = vpop.eup %8283  ;;  %v3749_v14 = vsel %vm2671_vm2, %v11346_v45, 0.0 }
 0x6c9   : > { %8285 = vpow2.f32 %v3732_v2  ;;  %v3493_v51 = vsel %vm2671_vm2, %v11348_v17, 0.0 }
 0x6ca   : > { %8287 = vpow2.f32 %v3475_v32  ;;  %3750 = vadd.xlane.f32.xlu0 %v3749_v14  ;;  %3494 = vadd.xlane.f32.xlu2 %v3493_v51 }
 0x6cc   : > { %v3709_v39 = vpop.xlane.xlu0 %3708  ;;  %v3453_v13 = vpop.xlane.xlu2 %3452 }
 0x6cd   : > { %v3721_v63 = vsub.f32 %v11283_v15, %v3709_v39  ;;  %v3463_v41 = vsub.f32 %v11286_v36, %v3453_v13 }
 0x6cf   : > { %v11356_v52 = vpop.eup %8285  ;;  %v3734_v16 = vmul.f32 1.442695, %v3721_v63  ;;  %v3477_v11 = vmul.f32 1.442695, %v3463_v41 }
 0x6d0   : > { %v11358_v50 = vpop.eup %8287  ;;  %v3752_v57 = vsel %vm2671_vm2, %v11356_v52, 0.0 }
 0x6d1   : > { %8289 = vpow2.f32 %v3734_v16  ;;  %v3496_v55 = vsel %vm2671_vm2, %v11358_v50, 0.0 }
 0x6d2   : > { %8291 = vpow2.f32 %v3477_v11  ;;  %3497 = vadd.xlane.f32.xlu1 %v3496_v55  ;;  %3753 = vadd.xlane.f32.xlu2 %v3752_v57  ;;  %v2611_v11 = vld [vmem:[%s10003_s5 + $0x270] sm:$0xff]  ;;  %v2610_v57 = vld [vmem:[%s10003_s5 + $0x268] sm:$0xff] }
 0x6d4   : > { %v3712_v62 = vpop.xlane.xlu0 %3711  ;;  %v3456_v15 = vpop.xlane.xlu2 %3455 }
 0x6d5   : > { %v3722_v36 = vsub.f32 %v11294_v46, %v3712_v62  ;;  %v3464_v56 = vsub.f32 %v11297_v22, %v3456_v15 }
 0x6d7   : > { %v11366_v31 = vpop.eup %8289  ;;  %v3736_v27 = vmul.f32 1.442695, %v3722_v36  ;;  %v3479_v28 = vmul.f32 1.442695, %v3464_v56  ;;  %v2608_v56 = vld [vmem:[%s10003_s5 + $0x258] sm:$0xff] }
 0x6d8   : > { %v11368_v0 = vpop.eup %8291  ;;  %v3755_v23 = vsel %vm2671_vm2, %v11366_v31, 0.0 }
 0x6d9   : > { %8293 = vpow2.f32 %v3736_v27  ;;  %v3499_v53 = vsel %vm2671_vm2, %v11368_v0, 0.0  ;;  %v2607_v27 = vld [vmem:[%s10003_s5 + $0x250] sm:$0xff] }
 0x6da   : > { %8295 = vpow2.f32 %v3479_v28  ;;  %3756 = vadd.xlane.f32.xlu1 %v3755_v23  ;;  %3500 = vadd.xlane.f32.xlu0 %v3499_v53  ;;  %v2606_v28 = vld [vmem:[%s10003_s5 + $0x248] sm:$0xff] }
 0x6dc   : > { %v3715_v42 = vpop.xlane.xlu0 %3714  ;;  %v3742_v46 = vpop.xlane.xlu2 %3741 }
 0x6dd   : > { %v3723_v22 = vsub.f32 %v11304_v20, %v3715_v42  ;;  %8297 = vrcp.f32 %v3742_v46 }
 0x6df   : > { %v11375_v26 = vpop.eup %8293  ;;  %v3738_v58 = vmul.f32 1.442695, %v3723_v22 }
 0x6e0   : > { %v11377_v19 = vpop.eup %8295  ;;  %v3758_v2 = vsel %vm2671_vm2, %v11375_v26, 0.0 }
 0x6e1   : > { %8299 = vpow2.f32 %v3738_v58  ;;  %v3502_v32 = vsel %vm2671_vm2, %v11377_v19, 0.0  ;;  %v2605_v58 = vld [vmem:[%s10003_s5 + $0x240] sm:$0xff] }
 0x6e2   : > { %3759 = vadd.xlane.f32.xlu0 %v3758_v2  ;;  %3503 = vadd.xlane.f32.xlu2 %v3502_v32  ;;  %v2604_v2 = vld [vmem:[%s10003_s5 + $0x238] sm:$0xff]  ;;  %v2603_v32 = vld [vmem:[%s10003_s5 + $0x230] sm:$0xff] }
 0x6e3   : > { %v8298_v14 = vpop.eup %8297 }
 0x6e4   : > { %v3772_v20 = vmul.f32 %v8298_v14, %v11306_v59  ;;  %v2612_v59 = vld [vmem:[%s10003_s5 + $0x278] sm:$0xff]  ;;  %v2602_v14 = vld [vmem:[%s10003_s5 + $0x228] sm:$0xff] }
 0x6e5   : > { %3845 = vmatpush.msrb.mxu1 %v2612_v59  ;;  %v2599_v59 = vld [vmem:[%s10003_s5 + $0x210] sm:$0xff] }
 0x6e6   : > { %7820 = vmatmul.msk.f32.vlgmr.msrb.gmra.mxu0 %vm2671_vm2, %v3772_v20 }
 0x6e7   : > { %v11385_v51 = vpop.eup %8299  ;;  %3846 = vmatpush.msrb.mxu1 %v2611_v11 }
 0x6e8   : > { %v3761_v39 = vsel %vm2671_vm2, %v11385_v51, 0.0 }
 0x6e9   : > { %3762 = vadd.xlane.f32.xlu1 %v3761_v39  ;;  %3847 = vmatpush.msrb.mxu1 %v2610_v57  ;;  %v2598_v57 = vld [vmem:[%s10003_s5 + $0x208] sm:$0xff] }
 0x71c   : > { %v3483_v13 = vpop.xlane.xlu1 %3482 }
 0x71d   : > { %8301 = vrcp.f32 %v3483_v13 }
 0x723   : > { %v8302_v63 = vpop.eup %8301 }
 0x724   : > { %v3513_v41 = vmul.f32 %v8302_v63, %v11314_v47  ;;  %v3486_v16 = vpop.xlane.xlu1 %3485  ;;  %v2609_v47 = vld [vmem:[%s10003_s5 + $0x260] sm:$0xff] }
 0x725   : > { %8303 = vrcp.f32 %v3486_v16  ;;  %3848 = vmatpush.msrb.mxu1 %v2609_v47  ;;  %v2600_v16 = vld [vmem:[%s10003_s5 + $0x218] sm:$0xff] }
 0x726   : > { %7812 = vmatmul.msk.f32.vlgmr.msra.gmra.mxu1 %vm2671_vm2, %v3513_v41  ;;  %v2601_v41 = vld [vmem:[%s10003_s5 + $0x220] sm:$0xff]  ;;  %v2596_v47 = vld [vmem:[%s10003_s5 + $0x1f8] sm:$0xff] }
 0x727   : > { %3849 = vmatpush.msrb.mxu1 %v2608_v56  ;;  %v2595_v56 = vld [vmem:[%s10003_s5 + $0x1f0] sm:$0xff]  ;;  %3586 = vmatpush.msrb.mxu2 %v2596_v47 }
 0x729   : > { %3850 = vmatpush.msrb.mxu1 %v2607_v27  ;;  %v2594_v27 = vld [vmem:[%s10003_s5 + $0x1e8] sm:$0xff]  ;;  %3587 = vmatpush.msrb.mxu2 %v2595_v56 }
 0x72b   : > { %v8304_v55 = vpop.eup %8303  ;;  %3851 = vmatpush.msrb.mxu1 %v2606_v28  ;;  %v2593_v28 = vld [vmem:[%s10003_s5 + $0x1e0] sm:$0xff]  ;;  %3588 = vmatpush.msrb.mxu2 %v2594_v27 }
 0x72c   : > { %v3745_v62 = vpop.xlane.xlu2 %3744  ;;  %v3514_v15 = vmul.f32 %v8304_v55, %v11320_v37 }
 0x72d   : > { %v3489_v36 = vpop.xlane.xlu1 %3488  ;;  %8305 = vrcp.f32 %v3745_v62  ;;  %3852 = vmatpush.msrb.mxu1 %v2605_v58  ;;  %3589 = vmatpush.msrb.mxu2 %v2593_v28  ;;  %v2590_v58 = vld [vmem:[%s10003_s5 + $0x1c8] sm:$0xff] }
 0x72e   : > { %8307 = vrcp.f32 %v3489_v36  ;;  %7813 = vmatmul.msk.f32.gmra.mxu1 %vm2671_vm2, %v3514_v15  ;;  %v2597_v36 = vld [vmem:[%s10003_s5 + $0x200] sm:$0xff] }
 0x72f   : > { %3853 = vmatpush.msrb.mxu1 %v2604_v2 }
 0x731   : > { %3854 = vmatpush.msrb.mxu1 %v2603_v32 }
 0x733   : > { %v8306_v23 = vpop.eup %8305  ;;  %3855 = vmatpush.msrb.mxu1 %v2602_v14 }
 0x734   : > { %v8308_v53 = vpop.eup %8307  ;;  %v3773_v37 = vmul.f32 %v8306_v23, %v11326_v30 }
 0x735   : > { %v3748_v42 = vpop.xlane.xlu1 %3747  ;;  %v3492_v46 = vpop.xlane.xlu0 %3491  ;;  %v3515_v22 = vmul.f32 %v8308_v53, %v11328_v5  ;;  %3856 = vmatpush.msrb.mxu1 %v2601_v41  ;;  %v2585_v41 = vld [vmem:[%s10003_s5 + $0x1a0] sm:$0xff] }
 0x736   : > { %8309 = vrcp.f32 %v3748_v42  ;;  %7821 = vmatmul.msk.f32.gmra.mxu0 %vm2671_vm2, %v3773_v37 }
 0x737   : > { %8311 = vrcp.f32 %v3492_v46  ;;  %7814 = vmatmul.msk.f32.gmra.mxu1 %vm2671_vm2, %v3515_v22  ;;  %v2592_v46 = vld [vmem:[%s10003_s5 + $0x1d8] sm:$0xff]  ;;  %v2591_v22 = vld [vmem:[%s10003_s5 + $0x1d0] sm:$0xff] }
 0x738   : > { %3857 = vmatpush.msrb.mxu1 %v2600_v16  ;;  %3590 = vmatpush.msrb.mxu2 %v2592_v46 }
 0x73a   : > { %3858 = vmatpush.msrb.mxu1 %v2599_v59  ;;  %3591 = vmatpush.msrb.mxu2 %v2591_v22  ;;  %v3094_v22 = vadd.f32 %v11208_v6, %v11162_v61 }
 0x73c   : > { %v8310_v30 = vpop.eup %8309  ;;  %3859 = vmatpush.msrb.mxu1 %v2598_v57  ;;  %3592 = vmatpush.msrb.mxu2 %v2590_v58  ;;  %v2583_v57 = vld [vmem:[%s10003_s5 + $0x190] sm:$0xff]  ;;  %v3368_v58 = vadd.f32 %v11187_v25, %v3094_v22 }
 0x73d   : > { %v8312_v20 = vpop.eup %8311  ;;  %v3751_v5 = vpop.xlane.xlu0 %3750  ;;  %v3774_v13 = vmul.f32 %v8310_v30, %v11336_v38 }
 0x73e   : > { %v3495_v39 = vpop.xlane.xlu2 %3494  ;;  %8313 = vrcp.f32 %v3751_v5  ;;  %v3516_v63 = vmul.f32 %v8312_v20, %v11338_v9  ;;  %3860 = vmatpush.msrb.mxu1 %v2597_v36  ;;  %v2588_v5 = vld [vmem:[%s10003_s5 + $0x1b8] sm:$0xff] }
 0x73f   : > { %8315 = vrcp.f32 %v3495_v39  ;;  %7822 = vmatmul.msk.f32.gmra.mxu0 %vm2671_vm2, %v3774_v13  ;;  %v2587_v39 = vld [vmem:[%s10003_s5 + $0x1b0] sm:$0xff]  ;;  %v2586_v13 = vld [vmem:[%s10003_s5 + $0x1a8] sm:$0xff] }
 0x740   : > { %7815 = vmatmul.msk.f32.gmra.mxu1 %vm2671_vm2, %v3516_v63 }
 0x744   : > { %v8314_v11 = vpop.eup %8313 }
 0x745   : > { %v8316_v38 = vpop.eup %8315  ;;  %v3498_v55 = vpop.xlane.xlu1 %3497  ;;  %v3775_v62 = vmul.f32 %v8314_v11, %v11346_v45  ;;  %v2584_v11 = vld [vmem:[%s10003_s5 + $0x198] sm:$0xff] }
 0x746   : > { %v3754_v9 = vpop.xlane.xlu2 %3753  ;;  %8317 = vrcp.f32 %v3498_v55  ;;  %v3517_v15 = vmul.f32 %v8316_v38, %v11348_v17  ;;  %v2582_v38 = vld [vmem:[%s10003_s5 + $0x188] sm:$0xff] }
 0x747   : > { %8319 = vrcp.f32 %v3754_v9  ;;  %7823 = vmatmul.msk.f32.gmra.mxu0 %vm2671_vm2, %v3775_v62 }
 0x748   : > { %7816 = vmatmul.msk.f32.gmra.mxu1 %vm2671_vm2, %v3517_v15 }
 0x74c   : > { %v8318_v45 = vpop.eup %8317 }
 0x74d   : > { %v8320_v23 = vpop.eup %8319  ;;  %v3757_v17 = vpop.xlane.xlu1 %3756  ;;  %v3518_v37 = vmul.f32 %v8318_v45, %v11358_v50  ;;  %v2589_v50 = vld [vmem:[%s10003_s5 + $0x1c0] sm:$0xff] }
 0x74e   : > { %v3501_v53 = vpop.xlane.xlu0 %3500  ;;  %8321 = vrcp.f32 %v3757_v17  ;;  %v3776_v42 = vmul.f32 %v8320_v23, %v11356_v52  ;;  %3593 = vmatpush.msrb.mxu2 %v2589_v50 }
 0x74f   : > { %8323 = vrcp.f32 %v3501_v53 }
 0x750   : > { %7817 = vmatmul.msk.f32.gmra.mxu1 %vm2671_vm2, %v3518_v37  ;;  %7824 = vmatmul.msk.f32.gmra.mxu0 %vm2671_vm2, %v3776_v42 }
 0x751   : > { %3594 = vmatpush.msrb.mxu2 %v2588_v5 }
 0x753   : > { %3595 = vmatpush.msrb.mxu2 %v2587_v39  ;;  %v8549_v39 = vld [vmem:[#allocation2 + $0x30] sm:$0xff] }
 0x754   : > { %v8322_v2 = vpop.eup %8321 }
 0x755   : > { %v8324_v32 = vpop.eup %8323  ;;  %v3504_v30 = vpop.xlane.xlu2 %3503  ;;  %v3777_v52 = vmul.f32 %v8322_v2, %v11366_v31  ;;  %3596 = vmatpush.msrb.mxu2 %v2586_v13 }
 0x756   : > { %v3760_v14 = vpop.xlane.xlu0 %3759  ;;  %v3519_v20 = vmul.f32 %v8324_v32, %v11368_v0  ;;  %v11456_v32 = vld [vmem:[%s13639_s15] ss:$0 sm:$0xff] }
 0x757   : > { %8325 = vrcp.f32 %v3760_v14  ;;  %3597 = vmatpush.msrb.mxu2 %v2585_v41 }
 0x758   : > { %8327 = vrcp.f32 %v3504_v30  ;;  %7818 = vmatmul.msk.f32.gmra.mxu1 %vm2671_vm2, %v3519_v20  ;;  %7825 = vmatmul.msk.f32.gmra.mxu0 %vm2671_vm2, %v3777_v52  ;;  %v3097_v30 = vadd.f32 %v11213_v7, %v11166_v33  ;;  %v8550_v33 = vld [vmem:[#allocation2] sm:$0xff] }
 0x759   : > { %3598 = vmatpush.msrb.mxu2 %v2584_v11 }
 0x75a   : > { %v3369_v5 = vadd.f32 %v11190_v18, %v3097_v30 }
 0x75b   : > { %3599 = vmatpush.msrb.mxu2 %v2583_v57  ;;  %v3103_v57 = vadd.f32 %v11222_v48, %v11172_v21  ;;  %v8552_v48 = vld [vmem:[#allocation2 + $0x10] sm:$0xff] }
 0x75c   : > { %v3763_v31 = vpop.xlane.xlu1 %3762 }
 0x75d   : > { %v8326_v63 = vpop.eup %8325  ;;  %8329 = vrcp.f32 %v3763_v31  ;;  %3600 = vmatpush.msrb.mxu2 %v2582_v38  ;;  %v3100_v31 = vadd.f32 %v11220_v10, %v11169_v34  ;;  %v3371_v10 = vadd.f32 %v11196_v44, %v3103_v57 }
 0x75e   : > { %v8328_v16 = vpop.eup %8327  ;;  %v3778_v0 = vmul.f32 %v8326_v63, %v11375_v26  ;;  %v2581_v26 = vld [vmem:[%s10003_s5 + $0x180] sm:$0xff] }
 0x75f   : > { %v3520_v59 = vmul.f32 %v8328_v16, %v11377_v19  ;;  %3601 = vmatpush.msrb.mxu2 %v2581_v26  ;;  %v3370_v16 = vadd.f32 %v11193_v40, %v3100_v31  ;;  %v3106_v26 = vadd.f32 %v11224_v49, %v11175_v60  ;;  %v8553_v49 = vld [vmem:[#allocation2 + $0x8] sm:$0xff] }
 0x760   : > { %7826 = vmatmul.msk.f32.gmra.mxu0 %vm2671_vm2, %v3778_v0 }
 0x761   : > { %7819 = vmatmul.msk.f32.gmra.mxu1 %vm2671_vm2, %v3520_v59  ;;  %v3372_v21 = vadd.f32 %v11199_v3, %v3106_v26  ;;  %v4177_v26 = vld [vmem:[%s10012_s20 + $0x240] sm:$0xff] }
 0x763   : > { %v8330_v55 = vpop.eup %8329  ;;  %v3821_v62 = vpop.f32.mrf.mxu0 }
 0x764   : > { %v3779_v9 = vmul.f32 %v8330_v55, %v11385_v51  ;;  %v8551_v55 = vld [vmem:[#allocation2 + $0x18] sm:$0xff] }
 0x768   : > { %7827 = vmatmul.msk.f32.gmra.mxu0 %vm2671_vm2, %v3779_v9 }
 0x769   : > { %3861 = vmatmul.f32.vlgmr.msrb.gmra.mxu1 %v3821_v62 }
 0x7a3   : > { %v3562_v19 = vpop.f32.mrf.mxu1 }
 0x7a4   : > { %3602 = vmatmul.f32.vlgmr.msrb.gmra.mxu2 %v3562_v19 }
 0x7ab   : > { %v3565_v15 = vpop.f32.mrf.mxu1 }
 0x7ac   : > { %3605 = vmatmul.f32.gmra.mxu2 %v3565_v15 }
 0x7b3   : > { %v3824_v36 = vpop.f32.mrf.mxu0 }
 0x7b4   : > { %v3568_v47 = vpop.f32.mrf.mxu1  ;;  %3864 = vmatmul.f32.gmra.mxu1 %v3824_v36 }
 0x7b5   : > { %3608 = vmatmul.f32.gmra.mxu2 %v3568_v47 }
 0x7bc   : > { %v3827_v56 = vpop.f32.mrf.mxu0 }
 0x7bd   : > { %v3571_v27 = vpop.f32.mrf.mxu1  ;;  %3867 = vmatmul.f32.gmra.mxu1 %v3827_v56 }
 0x7be   : > { %3611 = vmatmul.f32.gmra.mxu2 %v3571_v27  ;;  %v3109_v27 = vadd.f32 %v11226_v8, %v11179_v35  ;;  %v8554_v8 = vld [vmem:[#allocation2 + $0x20] sm:$0xff] }
 0x7c0   : > { %v3373_v60 = vadd.f32 %v11202_v1, %v3109_v27 }
 0x7c4   : > { %v3830_v51 = vpop.f32.mrf.mxu0 }
 0x7c5   : > { %v3574_v45 = vpop.f32.mrf.mxu1  ;;  %3870 = vmatmul.f32.gmra.mxu1 %v3830_v51 }
 0x7c6   : > { %3614 = vmatmul.f32.gmra.mxu2 %v3574_v45 }
 0x7cd   : > { %v3577_v28 = vpop.f32.mrf.mxu1  ;;  %v3833_v23 = vpop.f32.mrf.mxu0 }
 0x7ce   : > { %3617 = vmatmul.f32.gmra.mxu2 %v3577_v28  ;;  %3873 = vmatmul.f32.gmra.mxu1 %v3833_v23 }
 0x7d5   : > { %v3580_v17 = vpop.f32.mrf.mxu1  ;;  %v3836_v53 = vpop.f32.mrf.mxu0 }
 0x7d6   : > { %3620 = vmatmul.f32.gmra.mxu2 %v3580_v17  ;;  %3876 = vmatmul.f32.gmra.mxu1 %v3836_v53  ;;  %v3112_v53 = vadd.f32 %v11228_v29, %v11182_v43  ;;  %v3115_v43 = vadd.f32 %v11230_v54, %v11185_v4 }
 0x7d8   : > { %v3374_v35 = vadd.f32 %v11205_v12, %v3112_v53  ;;  %v3375_v29 = vadd.f32 %v11210_v24, %v3115_v43  ;;  %v4163_v43 = vld [vmem:[%s10012_s20 + $0x1d0] sm:$0xff] }
 0x7dd   : > { %v3839_v42 = vpop.f32.mrf.mxu0 }
 0x7de   : > { %v3583_v37 = vpop.f32.mrf.mxu1  ;;  %3879 = vmatmul.f32.gmra.mxu1 %v3839_v42 }
 0x7df   : > { %3623 = vmatmul.f32.gmra.mxu2 %v3583_v37 }
 0x7e5   : > { %v3842_v46 = vpop.f32.mrf.mxu0 }
 0x7e6   : > { %3882 = vmatmul.f32.gmra.mxu1 %v3842_v46  ;;  %v3862_v14 = vpop.f32.mrf.mxu1 }
 0x827   : > { %v3603_v2 = vpop.f32.mrf.mxu2 }
 0x828   : > { %v3627_v50 = vadd.f32 %v3603_v2, %v3368_v58 }
 0x82a   : > { %v3886_v52 = vadd.f32 %v3862_v14, %v3627_v50  ;;  %v8555_v14 = vld [vmem:[#allocation2 + $0x28] sm:$0xff] }
 0x82c   : > { %v3897_v20 = vadd.f32 %v11456_v32, %v3886_v52 }
 0x82e   : > { %v11462_v13 = vadd.f32 %v8549_v39, %v3897_v20 }
 0x82f   : > { %v3606_v61 = vpop.f32.mrf.mxu2 }
 0x830   : > { %v3628_v6 = vadd.f32 %v3606_v61, %v3369_v5  ;;  %3915 = vadd.xlane.f32.xlu2 %v11462_v13  ;;  %v13640_v5 = vld [vmem:[#allocation83_spill] sm:$0xff] }
 0x831   : > { %v3865_v25 = vpop.f32.mrf.mxu1  ;;  %vm1643_vm10 = vcmp.lt.s32.totalorder %v13640_v5, 100 }
 0x832   : > { %v3887_v63 = vadd.f32 %v3865_v25, %v3628_v6 }
 0x834   : > { %v3898_v41 = vadd.f32 %v11456_v32, %v3887_v63 }
 0x836   : > { %v11468_v7 = vadd.f32 %v8550_v33, %v3898_v41 }
 0x838   : > { %v3609_v18 = vpop.f32.mrf.mxu2  ;;  %3917 = vadd.xlane.f32.xlu0 %v11468_v7 }
 0x839   : > { %v3629_v0 = vadd.f32 %v3609_v18, %v3370_v16  ;;  %v8556_v16 = vld [vmem:[#allocation2 + $0x38] sm:$0xff] }
 0x83a   : > { %v3868_v59 = vpop.f32.mrf.mxu1 }
 0x83b   : > { %v3888_v11 = vadd.f32 %v3868_v59, %v3629_v0 }
 0x83d   : > { %v3899_v38 = vadd.f32 %v11456_v32, %v3888_v11 }
 0x83f   : > { %v11475_v34 = vadd.f32 %v8551_v55, %v3899_v38  ;;  %v4180_v38 = vld [vmem:[%s10012_s20 + $0x258] sm:$0xff]  ;;  %v4181_v55 = vld [vmem:[%s10012_s20 + $0x260] sm:$0xff] }
 0x840   : > { %4197 = vmatpush.msra.mxu2 %v4180_v38  ;;  %4238 = vmatpush.msra.mxu3 %v4181_v55  ;;  %v4130_v38 = vld [vmem:[%s10012_s20 + $0xc8] sm:$0xff]  ;;  %v4131_v55 = vld [vmem:[%s10012_s20 + $0xd0] sm:$0xff] }
 0x841   : > { %v3612_v9 = vpop.f32.mrf.mxu2  ;;  %3919 = vadd.xlane.f32.xlu1 %v11475_v34 }
 0x842   : > { %v3630_v40 = vadd.f32 %v3612_v9, %v3371_v10  ;;  %v3871_v62 = vpop.f32.mrf.mxu1  ;;  %v4182_v10 = vld [vmem:[%s10012_s20 + $0x268] sm:$0xff] }
 0x843   : > { %4279 = vmatpush.msra.mxu0 %v4182_v10  ;;  %v4132_v10 = vld [vmem:[%s10012_s20 + $0xd8] sm:$0xff] }
 0x844   : > { %v3889_v19 = vadd.f32 %v3871_v62, %v3630_v40  ;;  %v4183_v40 = vld [vmem:[%s10012_s20 + $0x270] sm:$0xff] }
 0x845   : > { %v4175_v62 = vld [vmem:[%s10012_s20 + $0x230] sm:$0xff]  ;;  %4320 = vmatpush.msra.mxu1 %v4183_v40  ;;  %4280 = vmatpush.msra.mxu0 %v4177_v26  ;;  %v4125_v40 = vld [vmem:[%s10012_s20 + $0xa0] sm:$0xff]  ;;  %v4128_v26 = vld [vmem:[%s10012_s20 + $0xb8] sm:$0xff] }
 0x846   : > { %v3900_v15 = vadd.f32 %v11456_v32, %v3889_v19  ;;  %v4178_v19 = vld [vmem:[%s10012_s20 + $0x248] sm:$0xff]  ;;  %4198 = vmatpush.msra.mxu2 %v4175_v62 }
 0x847   : > { %4321 = vmatpush.msra.mxu1 %v4178_v19  ;;  %v4126_v62 = vld [vmem:[%s10012_s20 + $0xa8] sm:$0xff]  ;;  %v4120_v19 = vld [vmem:[%s10012_s20 + $0x78] sm:$0xff] }
 0x848   : > { %v11483_v36 = vadd.f32 %v8552_v48, %v3900_v15 }
 0x849   : > { %v3615_v47 = vpop.f32.mrf.mxu2 }
 0x84a   : > { %v3631_v56 = vadd.f32 %v3615_v47, %v3372_v21  ;;  %3921 = vadd.xlane.f32.xlu2 %v11483_v36 }
 0x84b   : > { %v3874_v44 = vpop.f32.mrf.mxu1 }
 0x84c   : > { %v3890_v51 = vadd.f32 %v3874_v44, %v3631_v56 }
 0x84e   : > { %v3901_v45 = vadd.f32 %v11456_v32, %v3890_v51 }
 0x850   : > { %v11490_v28 = vadd.f32 %v8553_v49, %v3901_v45 }
 0x851   : > { %v3618_v3 = vpop.f32.mrf.mxu2 }
 0x852   : > { %v3632_v23 = vadd.f32 %v3618_v3, %v3373_v60  ;;  %3923 = vadd.xlane.f32.xlu0 %v11490_v28 }
 0x853   : > { %v3877_v17 = vpop.f32.mrf.mxu1 }
 0x854   : > { %v3891_v37 = vadd.f32 %v3877_v17, %v3632_v23 }
 0x856   : > { %v3902_v42 = vadd.f32 %v11456_v32, %v3891_v37 }
 0x858   : > { %v11497_v46 = vadd.f32 %v8554_v8, %v3902_v42  ;;  %v4170_v42 = vld [vmem:[%s10012_s20 + $0x208] sm:$0xff]  ;;  %v4172_v8 = vld [vmem:[%s10012_s20 + $0x218] sm:$0xff] }
 0x859   : > { %v3621_v1 = vpop.f32.mrf.mxu2  ;;  %4199 = vmatpush.msra.mxu2 %v4170_v42  ;;  %4281 = vmatpush.msra.mxu0 %v4172_v8  ;;  %v4108_v42 = vld [vmem:[%s10012_s20 + $0x18] sm:$0xff] }
 0x85a   : > { %v3633_v22 = vadd.f32 %v3621_v1, %v3374_v35  ;;  %3925 = vadd.xlane.f32.xlu1 %v11497_v46  ;;  %v4171_v35 = vld [vmem:[%s10012_s20 + $0x210] sm:$0xff]  ;;  %v4165_v1 = vld [vmem:[%s10012_s20 + $0x1e0] sm:$0xff] }
 0x85b   : > { %v3880_v58 = vpop.f32.mrf.mxu1  ;;  %4200 = vmatpush.msra.mxu2 %v4165_v1 }
 0x85c   : > { %v3892_v2 = vadd.f32 %v3880_v58, %v3633_v22  ;;  %v4166_v22 = vld [vmem:[%s10012_s20 + $0x1e8] sm:$0xff]  ;;  %v4167_v58 = vld [vmem:[%s10012_s20 + $0x1f0] sm:$0xff] }
 0x85d   : > { %4282 = vmatpush.msra.mxu0 %v4167_v58 }
 0x85e   : > { %v3903_v50 = vadd.f32 %v11456_v32, %v3892_v2  ;;  %v4168_v2 = vld [vmem:[%s10012_s20 + $0x1f8] sm:$0xff] }
 0x860   : > { %v11501_v30 = vadd.f32 %v8555_v14, %v3903_v50  ;;  %v4160_v50 = vld [vmem:[%s10012_s20 + $0x1b8] sm:$0xff]  ;;  %v4161_v14 = vld [vmem:[%s10012_s20 + $0x1c0] sm:$0xff] }
 0x861   : > { %4201 = vmatpush.msra.mxu2 %v4160_v50 }
 0x862   : > { %3927 = vadd.xlane.f32.xlu0 %v11501_v30  ;;  %v3624_v12 = vpop.f32.mrf.mxu2 }
 0x863   : > { %v3634_v39 = vadd.f32 %v3624_v12, %v3375_v29  ;;  %v3883_v61 = vpop.f32.mrf.mxu1  ;;  %v4155_v12 = vld [vmem:[%s10012_s20 + $0x190] sm:$0xff]  ;;  %v4156_v29 = vld [vmem:[%s10012_s20 + $0x198] sm:$0xff] }
 0x864   : > { %4202 = vmatpush.msra.mxu2 %v4155_v12 }
 0x865   : > { %v3893_v63 = vadd.f32 %v3883_v61, %v3634_v39  ;;  %v4150_v39 = vld [vmem:[%s10012_s20 + $0x168] sm:$0xff]  ;;  %v4151_v61 = vld [vmem:[%s10012_s20 + $0x170] sm:$0xff] }
 0x866   : > { %4203 = vmatpush.msra.mxu2 %v4150_v39 }
 0x867   : > { %v3904_v24 = vadd.f32 %v11456_v32, %v3893_v63  ;;  %v4153_v63 = vld [vmem:[%s10012_s20 + $0x180] sm:$0xff] }
 0x869   : > { %v11523_v18 = vadd.f32 %v8556_v16, %v3904_v24  ;;  %v4148_v24 = vld [vmem:[%s10012_s20 + $0x158] sm:$0xff]  ;;  %v4142_v16 = vld [vmem:[%s10012_s20 + $0x128] sm:$0xff] }
 0x8a3   : > { %v3916_v52 = vpop.xlane.xlu2 %3915 }
 0x8a4   : > { %v3931_v20 = vmul.f32 0.01, %v3916_v52  ;;  %v4157_v52 = vld [vmem:[%s10012_s20 + $0x1a0] sm:$0xff] }
 0x8a6   : > { %v3939_v6 = vsub.f32 %v11462_v13, %v3931_v20  ;;  %v4158_v20 = vld [vmem:[%s10012_s20 + $0x1a8] sm:$0xff] }
 0x8a8   : > { %v11511_v25 = vsel %vm1643_vm10, %v3939_v6, 0.0  ;;  %v4152_v6 = vld [vmem:[%s10012_s20 + $0x178] sm:$0xff] }
 0x8a9   : > { %v3955_v31 = vmul.f32 %v11511_v25, %v11511_v25 }
 0x8ab   : > { %v3918_v4 = vpop.xlane.xlu0 %3917  ;;  %3963 = vadd.xlane.f32.xlu2 %v3955_v31  ;;  %v4145_v31 = vld [vmem:[%s10012_s20 + $0x140] sm:$0xff] }
 0x8ac   : > { %v3932_v54 = vmul.f32 0.01, %v3918_v4  ;;  %v4146_v4 = vld [vmem:[%s10012_s20 + $0x148] sm:$0xff]  ;;  %4204 = vmatpush.msra.mxu2 %v4145_v31 }
 0x8ae   : > { %v3940_v41 = vsub.f32 %v11468_v7, %v3932_v54  ;;  %v4147_v54 = vld [vmem:[%s10012_s20 + $0x150] sm:$0xff] }
 0x8b0   : > { %v11519_v13 = vsel %vm1643_vm10, %v3940_v41, 0.0  ;;  %v4140_v41 = vld [vmem:[%s10012_s20 + $0x118] sm:$0xff] }
 0x8b1   : > { %v3956_v33 = vmul.f32 %v11519_v13, %v11519_v13  ;;  %4205 = vmatpush.msra.mxu2 %v4140_v41 }
 0x8b3   : > { %3965 = vadd.xlane.f32.xlu1 %v3956_v33  ;;  %3929 = vadd.xlane.f32.xlu2 %v11523_v18  ;;  %v4141_v33 = vld [vmem:[%s10012_s20 + $0x120] sm:$0xff] }
 0x8b4   : > { %v3920_v32 = vpop.xlane.xlu1 %3919 }
 0x8b5   : > { %v3933_v0 = vmul.f32 0.01, %v3920_v32  ;;  %v4143_v32 = vld [vmem:[%s10012_s20 + $0x130] sm:$0xff] }
 0x8b7   : > { %v3941_v7 = vsub.f32 %v11475_v34, %v3933_v0  ;;  %v4176_v34 = vld [vmem:[%s10012_s20 + $0x238] sm:$0xff]  ;;  %v4135_v0 = vld [vmem:[%s10012_s20 + $0xf0] sm:$0xff] }
 0x8b8   : > { %4239 = vmatpush.msra.mxu3 %v4176_v34  ;;  %4206 = vmatpush.msra.mxu2 %v4135_v0  ;;  %v4127_v34 = vld [vmem:[%s10012_s20 + $0xb0] sm:$0xff] }
 0x8b9   : > { %v11529_v59 = vsel %vm1643_vm10, %v3941_v7, 0.0  ;;  %v4136_v7 = vld [vmem:[%s10012_s20 + $0xf8] sm:$0xff] }
 0x8ba   : > { %v3957_v11 = vmul.f32 %v11529_v59, %v11529_v59  ;;  %4240 = vmatpush.msra.mxu3 %v4171_v35  ;;  %4207 = vmatpush.msra.mxu2 %v4130_v38 }
 0x8bc   : > { %3967 = vadd.xlane.f32.xlu0 %v3957_v11  ;;  %4241 = vmatpush.msra.mxu3 %v4166_v22  ;;  %v4137_v11 = vld [vmem:[%s10012_s20 + $0x100] sm:$0xff] }
 0x8bd   : > { %v3922_v57 = vpop.xlane.xlu2 %3921  ;;  %4208 = vmatpush.msra.mxu2 %v4125_v40 }
 0x8be   : > { %v3934_v9 = vmul.f32 0.01, %v3922_v57  ;;  %4242 = vmatpush.msra.mxu3 %v4161_v14  ;;  %v4138_v57 = vld [vmem:[%s10012_s20 + $0x108] sm:$0xff] }
 0x8bf   : > { %4209 = vmatpush.msra.mxu2 %v4120_v19 }
 0x8c0   : > { %v3942_v15 = vsub.f32 %v11483_v36, %v3934_v9  ;;  %4243 = vmatpush.msra.mxu3 %v4156_v29  ;;  %v4133_v9 = vld [vmem:[%s10012_s20 + $0xe0] sm:$0xff] }
 0x8c2   : > { %v11544_v21 = vsel %vm1643_vm10, %v3942_v15, 0.0  ;;  %4244 = vmatpush.msra.mxu3 %v4151_v61  ;;  %v4121_v15 = vld [vmem:[%s10012_s20 + $0x80] sm:$0xff] }
 0x8c3   : > { %v3958_v48 = vmul.f32 %v11544_v21, %v11544_v21 }
 0x8c4   : > { %4245 = vmatpush.msra.mxu3 %v4146_v4 }
 0x8c5   : > { %v3924_v47 = vpop.xlane.xlu0 %3923  ;;  %3969 = vadd.xlane.f32.xlu1 %v3958_v48  ;;  %v4122_v48 = vld [vmem:[%s10012_s20 + $0x88] sm:$0xff] }
 0x8c6   : > { %v3935_v56 = vmul.f32 0.01, %v3924_v47  ;;  %4246 = vmatpush.msra.mxu3 %v4141_v33  ;;  %v4123_v47 = vld [vmem:[%s10012_s20 + $0x90] sm:$0xff]  ;;  %v11638_v33 = vld [vmem:[%s13642_s23] ss:$0 sm:$0xff] }
 0x8c8   : > { %v3943_v44 = vsub.f32 %v11490_v28, %v3935_v56  ;;  %4247 = vmatpush.msra.mxu3 %v4136_v7  ;;  %v4115_v56 = vld [vmem:[%s10012_s20 + $0x50] sm:$0xff] }
 0x8c9   : > { %4210 = vmatpush.msra.mxu2 %v4115_v56 }
 0x8ca   : > { %v11551_v36 = vsel %vm1643_vm10, %v3943_v44, 0.0  ;;  %4248 = vmatpush.msra.mxu3 %v4131_v55  ;;  %v4116_v44 = vld [vmem:[%s10012_s20 + $0x58] sm:$0xff] }
 0x8cb   : > { %v3959_v27 = vmul.f32 %v11551_v36, %v11551_v36 }
 0x8cc   : > { %4249 = vmatpush.msra.mxu3 %v4126_v62 }
 0x8cd   : > { %v3926_v51 = vpop.xlane.xlu1 %3925  ;;  %3971 = vadd.xlane.f32.xlu2 %v3959_v27  ;;  %v4117_v27 = vld [vmem:[%s10012_s20 + $0x60] sm:$0xff] }
 0x8ce   : > { %v3936_v45 = vmul.f32 0.01, %v3926_v51  ;;  %4250 = vmatpush.msra.mxu3 %v4121_v15  ;;  %v4118_v51 = vld [vmem:[%s10012_s20 + $0x68] sm:$0xff] }
 0x8d0   : > { %v3944_v60 = vsub.f32 %v11497_v46, %v3936_v45  ;;  %v4173_v46 = vld [vmem:[%s10012_s20 + $0x220] sm:$0xff]  ;;  %4251 = vmatpush.msra.mxu3 %v4116_v44  ;;  %v4110_v45 = vld [vmem:[%s10012_s20 + $0x28] sm:$0xff] }
 0x8d1   : > { %4322 = vmatpush.msra.mxu1 %v4173_v46  ;;  %4211 = vmatpush.msra.mxu2 %v4110_v45 }
 0x8d2   : > { %v11558_v49 = vsel %vm1643_vm10, %v3944_v60, 0.0  ;;  %v4111_v60 = vld [vmem:[%s10012_s20 + $0x30] sm:$0xff] }
 0x8d3   : > { %v3960_v28 = vmul.f32 %v11558_v49, %v11558_v49  ;;  %4323 = vmatpush.msra.mxu1 %v4168_v2  ;;  %4252 = vmatpush.msra.mxu3 %v4111_v60 }
 0x8d5   : > { %3973 = vadd.xlane.f32.xlu0 %v3960_v28  ;;  %v3928_v3 = vpop.xlane.xlu0 %3927  ;;  %4324 = vmatpush.msra.mxu1 %v4163_v43  ;;  %v4112_v28 = vld [vmem:[%s10012_s20 + $0x38] sm:$0xff] }
 0x8d6   : > { %v3937_v23 = vmul.f32 0.01, %v3928_v3  ;;  %v4113_v3 = vld [vmem:[%s10012_s20 + $0x40] sm:$0xff] }
 0x8d7   : > { %4325 = vmatpush.msra.mxu1 %v4158_v20 }
 0x8d8   : > { %v3945_v17 = vsub.f32 %v11501_v30, %v3937_v23  ;;  %v4162_v30 = vld [vmem:[%s10012_s20 + $0x1c8] sm:$0xff]  ;;  %v4105_v23 = vld [vmem:[%s10012_s20] sm:$0xff] }
 0x8d9   : > { %4283 = vmatpush.msra.mxu0 %v4162_v30  ;;  %4326 = vmatpush.msra.mxu1 %v4153_v63 }
 0x8da   : > { %v11565_v53 = vsel %vm1643_vm10, %v3945_v17, 0.0  ;;  %v4106_v17 = vld [vmem:[%s10012_s20 + $0x8] sm:$0xff]  ;;  %4212 = vmatpush.msra.mxu2 %v4105_v23 }
 0x8db   : > { %v3961_v37 = vmul.f32 %v11565_v53, %v11565_v53  ;;  %4284 = vmatpush.msra.mxu0 %v4157_v52  ;;  %4327 = vmatpush.msra.mxu1 %v4148_v24 }
 0x8dc   : > { %4253 = vmatpush.msra.mxu3 %v4106_v17 }
 0x8dd   : > { %3975 = vadd.xlane.f32.xlu1 %v3961_v37  ;;  %4285 = vmatpush.msra.mxu0 %v4152_v6  ;;  %v4107_v37 = vld [vmem:[%s10012_s20 + $0x10] sm:$0xff] }
 0x8de   : > { %4328 = vmatpush.msra.mxu1 %v4143_v32 }
 0x8df   : > { %4286 = vmatpush.msra.mxu0 %v4147_v54  ;;  %v11634_v54 = vld [vmem:[%s13641_s21] ss:$0 sm:$0xff] }
 0x8e0   : > { %4329 = vmatpush.msra.mxu1 %v4138_v57 }
 0x8e1   : > { %4287 = vmatpush.msra.mxu0 %v4142_v16 }
 0x8e2   : > { %4330 = vmatpush.msra.mxu1 %v4133_v9 }
 0x8e3   : > { %4288 = vmatpush.msra.mxu0 %v4137_v11 }
 0x8e4   : > { %4331 = vmatpush.msra.mxu1 %v4128_v26 }
 0x8e5   : > { %4289 = vmatpush.msra.mxu0 %v4132_v10 }
 0x8e6   : > { %4332 = vmatpush.msra.mxu1 %v4123_v47 }
 0x8e7   : > { %4290 = vmatpush.msra.mxu0 %v4127_v34 }
 0x8e8   : > { %4333 = vmatpush.msra.mxu1 %v4118_v51 }
 0x8e9   : > { %4291 = vmatpush.msra.mxu0 %v4122_v48 }
 0x8ea   : > { %4334 = vmatpush.msra.mxu1 %v4113_v3 }
 0x8eb   : > { %4292 = vmatpush.msra.mxu0 %v4117_v27 }
 0x8ec   : > { %4335 = vmatpush.msra.mxu1 %v4108_v42 }
 0x8ed   : > { %4293 = vmatpush.msra.mxu0 %v4112_v28 }
 0x8ef   : > { %4294 = vmatpush.msra.mxu0 %v4107_v37 }
 0x91e   : > { %v3964_v35 = vpop.xlane.xlu2 %3963 }
 0x91f   : > { %v3979_v8 = vmul.f32 0.01, %v3964_v35 }
 0x921   : > { %v3987_v46 = vadd.f32 1e-05, %v3979_v8 }
 0x923   : > { %8331 = vrsqrt.f32 %v3987_v46  ;;  %vm4001_vm12 = vweird.f32 %v3987_v46 }
 0x926   : > { %v3966_v1 = vpop.xlane.xlu1 %3965  ;;  %v3930_v22 = vpop.xlane.xlu2 %3929 }
 0x927   : > { %v3980_v58 = vmul.f32 0.01, %v3966_v1  ;;  %v3938_v2 = vmul.f32 0.01, %v3930_v22 }
 0x929   : > { %v8332_v50 = vpop.eup %8331  ;;  %v3988_v14 = vadd.f32 1e-05, %v3980_v58  ;;  %v3946_v30 = vsub.f32 %v11523_v18, %v3938_v2 }
 0x92a   : > { %v3996_v43 = vmul.f32 %v8332_v50, %v3987_v46  ;;  %vm4002_vm11 = vweird.f32 %v8332_v50 }
 0x92b   : > { %8333 = vrsqrt.f32 %v3988_v14  ;;  %v11628_v12 = vsel %vm1643_vm10, %v3946_v30, 0.0  ;;  %vm4003_vm13 = vmor %vm4001_vm12, %vm4002_vm11  ;;  %vm4011_vm15 = vweird.f32 %v3988_v14 }
 0x92c   : > { %v3997_v29 = vmul.f32 %v8332_v50, %v3996_v43  ;;  %v3962_v52 = vmul.f32 %v11628_v12, %v11628_v12 }
 0x92e   : > { %v3998_v20 = vmul.f32 0.5, %v3997_v29  ;;  %3977 = vadd.xlane.f32.xlu2 %v3962_v52 }
 0x92f   : > { %v3968_v39 = vpop.xlane.xlu0 %3967 }
 0x930   : > { %v3999_v61 = vsub.f32 1.5, %v3998_v20  ;;  %v3981_v6 = vmul.f32 0.01, %v3968_v39 }
 0x931   : > { %v8334_v63 = vpop.eup %8333 }
 0x932   : > { %v4000_v18 = vmul.f32 %v8332_v50, %v3999_v61  ;;  %v4006_v31 = vmul.f32 %v8334_v63, %v3988_v14  ;;  %v3989_v4 = vadd.f32 1e-05, %v3981_v6  ;;  %vm4012_vm14 = vweird.f32 %v8334_v63 }
 0x933   : > { %vm4013_vm0 = vmor %vm4011_vm15, %vm4012_vm14 }
 0x934   : > { %v4004_v24 = vsel %vm4003_vm13, %v8332_v50, %v4000_v18  ;;  %v4007_v41 = vmul.f32 %v8334_v63, %v4006_v31  ;;  %8335 = vrsqrt.f32 %v3989_v4  ;;  %vm4021_vm3 = vweird.f32 %v3989_v4 }
 0x935   : > { %v4075_v16 = vmul.f32 %v4004_v24, %v11511_v25 }
 0x936   : > { %v4008_v32 = vmul.f32 0.5, %v4007_v41 }
 0x937   : > { %v4086_v0 = vmul.f32 %v11634_v54, %v4075_v16 }
 0x938   : > { %v4009_v7 = vsub.f32 1.5, %v4008_v32  ;;  %v3970_v11 = vpop.xlane.xlu1 %3969 }
 0x939   : > { %v11643_v57 = vadd.f32 %v11638_v33, %v4086_v0  ;;  %v3982_v38 = vmul.f32 0.01, %v3970_v11 }
 0x93a   : > { %v8336_v55 = vpop.eup %8335  ;;  %v4010_v10 = vmul.f32 %v8334_v63, %v4009_v7 }
 0x93b   : > { %13643 = vst [vmem:[#allocation75_spill] sm:$0xff] %v11643_v57  ;;  %v4016_v9 = vmul.f32 %v8336_v55, %v3989_v4  ;;  %v3990_v40 = vadd.f32 1e-05, %v3982_v38  ;;  %4213 = vmatmul.f32.vlgmr.msra.gmra.mxu2 %v11643_v57  ;;  %4254 = vmatmul.f32.vlgmr.msra.gmra.mxu3 %v11643_v57  ;;  %vm4022_vm1 = vweird.f32 %v8336_v55 }
 0x93c   : > { %v4014_v25 = vsel %vm4013_vm0, %v8334_v63, %v4010_v10  ;;  %4295 = vmatmul.f32.vlgmr.msra.gmra.mxu0 %v11643_v57  ;;  %4336 = vmatmul.f32.vlgmr.msra.gmra.mxu1 %v11643_v57  ;;  %vm4023_vm4 = vmor %vm4021_vm3, %vm4022_vm1 }
 0x93d   : > { %v4076_v62 = vmul.f32 %v4014_v25, %v11519_v13  ;;  %v4017_v34 = vmul.f32 %v8336_v55, %v4016_v9  ;;  %8337 = vrsqrt.f32 %v3990_v40  ;;  %vm4031_vm6 = vweird.f32 %v3990_v40 }
 0x93f   : > { %v4087_v26 = vmul.f32 %v11634_v54, %v4076_v62  ;;  %v4018_v19 = vmul.f32 0.5, %v4017_v34 }
 0x940   : > { %v3972_v15 = vpop.xlane.xlu2 %3971 }
 0x941   : > { %v11652_v48 = vadd.f32 %v11638_v33, %v4087_v26  ;;  %v4019_v47 = vsub.f32 1.5, %v4018_v19  ;;  %v3983_v56 = vmul.f32 0.01, %v3972_v15  ;;  %v4184_v26 = vld [vmem:[%s10012_s20 + $0x278] sm:$0xff]  ;;  %v4553_v15 = vld [vmem:[%s10023_s6 + $0x4b8] sm:$0xff] }
 0x942   : > { %v4552_v19 = vld [vmem:[%s10023_s6 + $0x4b0] sm:$0xff]  ;;  %4361 = vmatpush.msrb.mxu2 %v4184_v26  ;;  %4627 = vmatpush.msrb.mxu0 %v4553_v15 }
 0x943   : > { %13644 = vst [vmem:[#allocation76_spill] sm:$0xff] %v11652_v48  ;;  %v8338_v44 = vpop.eup %8337  ;;  %v4020_v27 = vmul.f32 %v8336_v55, %v4019_v47  ;;  %v3991_v51 = vadd.f32 1e-05, %v3983_v56  ;;  %4216 = vmatmul.f32.gmra.mxu2 %v11652_v48  ;;  %4257 = vmatmul.f32.gmra.mxu3 %v11652_v48  ;;  %v4542_v47 = vld [vmem:[%s10023_s6 + $0x460] sm:$0xff]  ;;  %v4543_v56 = vld [vmem:[%s10023_s6 + $0x468] sm:$0xff] }
 0x944   : > { %v4026_v13 = vmul.f32 %v8338_v44, %v3990_v40  ;;  %4298 = vmatmul.f32.gmra.mxu0 %v11652_v48  ;;  %4339 = vmatmul.f32.gmra.mxu1 %v11652_v48  ;;  %vm4032_vm5 = vweird.f32 %v8338_v44 }
 0x945   : > { %v4024_v45 = vsel %vm4023_vm4, %v8336_v55, %v4020_v27  ;;  %8339 = vrsqrt.f32 %v3991_v51  ;;  %vm4033_vm7 = vmor %vm4031_vm6, %vm4032_vm5  ;;  %vm4041_vm9 = vweird.f32 %v3991_v51  ;;  %4586 = vmatpush.msrb.mxu3 %v4552_v19  ;;  %4628 = vmatpush.msrb.mxu0 %v4543_v56  ;;  %v4532_v27 = vld [vmem:[%s10023_s6 + $0x410] sm:$0xff] }
 0x946   : > { %v4077_v60 = vmul.f32 %v4024_v45, %v11529_v59  ;;  %v4027_v28 = vmul.f32 %v8338_v44, %v4026_v13  ;;  %v4169_v13 = vld [vmem:[%s10012_s20 + $0x200] sm:$0xff]  ;;  %v4522_v45 = vld [vmem:[%s10023_s6 + $0x3c0] sm:$0xff] }
 0x947   : > { %4587 = vmatpush.msrb.mxu3 %v4542_v47 }
 0x948   : > { %v4088_v3 = vmul.f32 %v11634_v54, %v4077_v60  ;;  %v4028_v23 = vmul.f32 0.5, %v4027_v28  ;;  %v3974_v17 = vpop.xlane.xlu0 %3973  ;;  %v4523_v60 = vld [vmem:[%s10023_s6 + $0x3c8] sm:$0xff] }
 0x949   : > { %v3984_v37 = vmul.f32 0.01, %v3974_v17  ;;  %4588 = vmatpush.msrb.mxu3 %v4532_v27  ;;  %v4164_v28 = vld [vmem:[%s10012_s20 + $0x1d8] sm:$0xff]  ;;  %v4159_v17 = vld [vmem:[%s10012_s20 + $0x1b0] sm:$0xff] }
 0x94a   : > { %v11661_v42 = vadd.f32 %v11638_v33, %v4088_v3  ;;  %v4029_v35 = vsub.f32 1.5, %v4028_v23  ;;  %v4512_v3 = vld [vmem:[%s10023_s6 + $0x370] sm:$0xff]  ;;  %v4513_v23 = vld [vmem:[%s10023_s6 + $0x378] sm:$0xff] }
 0x94b   : > { %v8340_v8 = vpop.eup %8339  ;;  %v3992_v46 = vadd.f32 1e-05, %v3984_v37  ;;  %4589 = vmatpush.msrb.mxu3 %v4522_v45  ;;  %v4502_v37 = vld [vmem:[%s10023_s6 + $0x320] sm:$0xff] }
 0x94c   : > { %13645 = vst [vmem:[#allocation77_spill] sm:$0xff] %v11661_v42  ;;  %v4030_v1 = vmul.f32 %v8338_v44, %v4029_v35  ;;  %v4036_v22 = vmul.f32 %v8340_v8, %v3991_v51  ;;  %4219 = vmatmul.f32.gmra.mxu2 %v11661_v42  ;;  %4260 = vmatmul.f32.gmra.mxu3 %v11661_v42  ;;  %vm4042_vm8 = vweird.f32 %v8340_v8  ;;  %v4533_v51 = vld [vmem:[%s10023_s6 + $0x418] sm:$0xff]  ;;  %v4503_v35 = vld [vmem:[%s10023_s6 + $0x328] sm:$0xff] }
 0x94d   : > { %8341 = vrsqrt.f32 %v3992_v46  ;;  %4301 = vmatmul.f32.gmra.mxu0 %v11661_v42  ;;  %4342 = vmatmul.f32.gmra.mxu1 %v11661_v42  ;;  %vm4043_vm11 = vmor %vm4041_vm9, %vm4042_vm8  ;;  %vm4051_vm13 = vweird.f32 %v3992_v46  ;;  %v11771_v45 = vld [vmem:[%s9978_s24 + $0x8] sm:$0xff] }
 0x94e   : > { %v4034_v59 = vsel %vm4033_vm7, %v8338_v44, %v4030_v1  ;;  %v4037_v58 = vmul.f32 %v8340_v8, %v4036_v22  ;;  %v4174_v44 = vld [vmem:[%s10012_s20 + $0x228] sm:$0xff]  ;;  %4629 = vmatpush.msrb.mxu0 %v4533_v51  ;;  %4590 = vmatpush.msrb.mxu3 %v4512_v3  ;;  %v4149_v22 = vld [vmem:[%s10012_s20 + $0x160] sm:$0xff] }
 0x94f   : > { %v4078_v2 = vmul.f32 %v4034_v59, %v11544_v21  ;;  %v4493_v1 = vld [vmem:[%s10023_s6 + $0x2d8] sm:$0xff]  ;;  %v4482_v59 = vld [vmem:[%s10023_s6 + $0x280] sm:$0xff] }
 0x950   : > { %v4038_v50 = vmul.f32 0.5, %v4037_v58  ;;  %v3976_v14 = vpop.xlane.xlu1 %3975  ;;  %4630 = vmatpush.msrb.mxu0 %v4523_v60  ;;  %4591 = vmatpush.msrb.mxu3 %v4502_v37  ;;  %v4483_v58 = vld [vmem:[%s10023_s6 + $0x288] sm:$0xff]  ;;  %v11761_v51 = vld [vmem:[%s9978_s24] sm:$0xff]  ;;  %v4514_v3 = vld [vmem:[%s10023_s6 + $0x380] sm:$0xff] }
 0x951   : > { %v4089_v30 = vmul.f32 %v11634_v54, %v4078_v2  ;;  %v3985_v43 = vmul.f32 0.01, %v3976_v14  ;;  %v4144_v2 = vld [vmem:[%s10012_s20 + $0x138] sm:$0xff]  ;;  %v4473_v14 = vld [vmem:[%s10023_s6 + $0x238] sm:$0xff]  ;;  %v4526_v37 = vld [vmem:[%s10023_s6 + $0x3e0] sm:$0xff] }
 0x952   : > { %v4039_v29 = vsub.f32 1.5, %v4038_v50  ;;  %4631 = vmatpush.msrb.mxu0 %v4513_v23  ;;  %v4472_v50 = vld [vmem:[%s10023_s6 + $0x230] sm:$0xff] }
 0x953   : > { %v8342_v52 = vpop.eup %8341  ;;  %v11670_v20 = vadd.f32 %v11638_v33, %v4089_v30  ;;  %v3993_v39 = vadd.f32 1e-05, %v3985_v43  ;;  %v4139_v30 = vld [vmem:[%s10012_s20 + $0x110] sm:$0xff]  ;;  %v4524_v60 = vld [vmem:[%s10023_s6 + $0x3d0] sm:$0xff] }
 0x954   : > { %v4040_v61 = vmul.f32 %v8340_v8, %v4039_v29  ;;  %v4046_v6 = vmul.f32 %v8342_v52, %v3992_v46  ;;  %vm4052_vm12 = vweird.f32 %v8342_v52  ;;  %4632 = vmatpush.msrb.mxu0 %v4503_v35  ;;  %v4492_v46 = vld [vmem:[%s10023_s6 + $0x2d0] sm:$0xff]  ;;  %v4462_v43 = vld [vmem:[%s10023_s6 + $0x1e0] sm:$0xff]  ;;  %v4463_v29 = vld [vmem:[%s10023_s6 + $0x1e8] sm:$0xff] }
 0x955   : > { %13646 = vst [vmem:[#allocation78_spill] sm:$0xff] %v11670_v20  ;;  %8343 = vrsqrt.f32 %v3993_v39  ;;  %4222 = vmatmul.f32.gmra.mxu2 %v11670_v20  ;;  %4263 = vmatmul.f32.gmra.mxu3 %v11670_v20  ;;  %vm4053_vm14 = vmor %vm4051_vm13, %vm4052_vm12  ;;  %vm4061_vm0 = vweird.f32 %v3993_v39  ;;  %v4536_v23 = vld [vmem:[%s10023_s6 + $0x430] sm:$0xff]  ;;  %v4494_v35 = vld [vmem:[%s10023_s6 + $0x2e0] sm:$0xff] }
 0x956   : > { %v4044_v21 = vsel %vm4043_vm11, %v8340_v8, %v4040_v61  ;;  %v4047_v63 = vmul.f32 %v8342_v52, %v4046_v6  ;;  %4304 = vmatmul.f32.gmra.mxu0 %v11670_v20  ;;  %4345 = vmatmul.f32.gmra.mxu1 %v11670_v20  ;;  %v4154_v8 = vld [vmem:[%s10012_s20 + $0x188] sm:$0xff]  ;;  %v4129_v6 = vld [vmem:[%s10012_s20 + $0xc0] sm:$0xff] }
 0x957   : > { %v4079_v18 = vmul.f32 %v4044_v21, %v11551_v36  ;;  %4592 = vmatpush.msrb.mxu3 %v4492_v46  ;;  %4633 = vmatpush.msrb.mxu0 %v4493_v1  ;;  %v4453_v61 = vld [vmem:[%s10023_s6 + $0x198] sm:$0xff]  ;;  %v4442_v21 = vld [vmem:[%s10023_s6 + $0x140] sm:$0xff]  ;;  %v4484_v46 = vld [vmem:[%s10023_s6 + $0x290] sm:$0xff] }
 0x958   : > { %v4048_v31 = vmul.f32 0.5, %v4047_v63  ;;  %v4443_v63 = vld [vmem:[%s10023_s6 + $0x148] sm:$0xff] }
 0x959   : > { %v4090_v4 = vmul.f32 %v11634_v54, %v4079_v18  ;;  %4593 = vmatpush.msrb.mxu3 %v4482_v59  ;;  %4634 = vmatpush.msrb.mxu0 %v4483_v58  ;;  %v4124_v18 = vld [vmem:[%s10012_s20 + $0x98] sm:$0xff]  ;;  %v11786_v1 = vld [vmem:[%s9978_s24 + $0x10] sm:$0xff] }
 0x95a   : > { %v4049_v24 = vsub.f32 1.5, %v4048_v31  ;;  %v4432_v31 = vld [vmem:[%s10023_s6 + $0xf0] sm:$0xff]  ;;  %v4474_v59 = vld [vmem:[%s10023_s6 + $0x240] sm:$0xff] }
 0x95b   : > { %v8344_v41 = vpop.eup %8343  ;;  %v11679_v16 = vadd.f32 %v11638_v33, %v4090_v4  ;;  %4594 = vmatpush.msrb.mxu3 %v4472_v50  ;;  %4635 = vmatpush.msrb.mxu0 %v4473_v14  ;;  %v4433_v4 = vld [vmem:[%s10023_s6 + $0xf8] sm:$0xff]  ;;  %v4496_v58 = vld [vmem:[%s10023_s6 + $0x2f0] sm:$0xff]  ;;  %v4486_v50 = vld [vmem:[%s10023_s6 + $0x2a0] sm:$0xff] }
 0x95c   : > { %v4050_v32 = vmul.f32 %v8342_v52, %v4049_v24  ;;  %v4056_v0 = vmul.f32 %v8344_v41, %v3993_v39  ;;  %vm4062_vm15 = vweird.f32 %v8344_v41  ;;  %v4452_v39 = vld [vmem:[%s10023_s6 + $0x190] sm:$0xff]  ;;  %v4454_v14 = vld [vmem:[%s10023_s6 + $0x1a0] sm:$0xff] }
 0x95d   : > { %13647 = vst [vmem:[#allocation79_spill] sm:$0xff] %v11679_v16  ;;  %4225 = vmatmul.f32.gmra.mxu2 %v11679_v16  ;;  %4266 = vmatmul.f32.gmra.mxu3 %v11679_v16  ;;  %vm4063_vm1 = vmor %vm4061_vm0, %vm4062_vm15 }
 0x95e   : > { %v4054_v7 = vsel %vm4053_vm14, %v8342_v52, %v4050_v32  ;;  %v4057_v11 = vmul.f32 %v8344_v41, %v4056_v0  ;;  %4307 = vmatmul.f32.gmra.mxu0 %v11679_v16  ;;  %4348 = vmatmul.f32.gmra.mxu1 %v11679_v16  ;;  %v4134_v52 = vld [vmem:[%s10012_s20 + $0xe8] sm:$0xff]  ;;  %v4119_v32 = vld [vmem:[%s10012_s20 + $0x70] sm:$0xff] }
 0x95f   : > { %v4080_v36 = vmul.f32 %v4054_v7, %v11558_v49  ;;  %4595 = vmatpush.msrb.mxu3 %v4462_v43  ;;  %4636 = vmatpush.msrb.mxu0 %v4463_v29  ;;  %v4422_v0 = vld [vmem:[%s10023_s6 + $0xa0] sm:$0xff]  ;;  %v4423_v7 = vld [vmem:[%s10023_s6 + $0xa8] sm:$0xff]  ;;  %v4444_v29 = vld [vmem:[%s10023_s6 + $0x150] sm:$0xff] }
 0x960   : > { %v4058_v38 = vmul.f32 0.5, %v4057_v11  ;;  %v4114_v11 = vld [vmem:[%s10012_s20 + $0x48] sm:$0xff]  ;;  %v11799_v43 = vld [vmem:[%s9978_s24 + $0x18] sm:$0xff] }
 0x961   : > { %v4091_v55 = vmul.f32 %v11634_v54, %v4080_v36  ;;  %4596 = vmatpush.msrb.mxu3 %v4452_v39  ;;  %4637 = vmatpush.msrb.mxu0 %v4453_v61  ;;  %v4412_v36 = vld [vmem:[%s10023_s6 + $0x50] sm:$0xff]  ;;  %v4434_v39 = vld [vmem:[%s10023_s6 + $0x100] sm:$0xff] }
 0x962   : > { %v4059_v10 = vsub.f32 1.5, %v4058_v38  ;;  %v4456_v61 = vld [vmem:[%s10023_s6 + $0x1b0] sm:$0xff] }
 0x963   : > { %v11688_v9 = vadd.f32 %v11638_v33, %v4091_v55  ;;  %4597 = vmatpush.msrb.mxu3 %v4442_v21  ;;  %4638 = vmatpush.msrb.mxu0 %v4443_v63  ;;  %v4413_v55 = vld [vmem:[%s10023_s6 + $0x58] sm:$0xff]  ;;  %v4446_v21 = vld [vmem:[%s10023_s6 + $0x160] sm:$0xff] }
 0x964   : > { %v4060_v40 = vmul.f32 %v8344_v41, %v4059_v10  ;;  %v4109_v10 = vld [vmem:[%s10012_s20 + $0x20] sm:$0xff]  ;;  %v4414_v63 = vld [vmem:[%s10023_s6 + $0x60] sm:$0xff] }
 0x965   : > { %13648 = vst [vmem:[#allocation80_spill] sm:$0xff] %v11688_v9  ;;  %4228 = vmatmul.f32.gmra.mxu2 %v11688_v9  ;;  %4269 = vmatmul.f32.gmra.mxu3 %v11688_v9 }
 0x966   : > { %v4064_v25 = vsel %vm4063_vm1, %v8344_v41, %v4060_v40  ;;  %4310 = vmatmul.f32.gmra.mxu0 %v11688_v9  ;;  %4351 = vmatmul.f32.gmra.mxu1 %v11688_v9  ;;  %v4402_v40 = vld [vmem:[%s10023_s6] sm:$0xff] }
 0x967   : > { %v4081_v49 = vmul.f32 %v4064_v25, %v11565_v53  ;;  %v4179_v53 = vld [vmem:[%s10012_s20 + $0x250] sm:$0xff]  ;;  %4598 = vmatpush.msrb.mxu3 %v4432_v31  ;;  %4639 = vmatpush.msrb.mxu0 %v4433_v4  ;;  %v4436_v31 = vld [vmem:[%s10023_s6 + $0x110] sm:$0xff] }
 0x968   : > { %4362 = vmatpush.msrb.mxu2 %v4179_v53  ;;  %v4403_v25 = vld [vmem:[%s10023_s6 + $0x8] sm:$0xff]  ;;  %v4404_v4 = vld [vmem:[%s10023_s6 + $0x10] sm:$0xff] }
 0x969   : > { %v4092_v62 = vmul.f32 %v11634_v54, %v4081_v49  ;;  %4599 = vmatpush.msrb.mxu3 %v4422_v0  ;;  %4640 = vmatpush.msrb.mxu0 %v4423_v7  ;;  %v11824_v0 = vld [vmem:[%s9978_s24 + $0x28] sm:$0xff]  ;;  %v11831_v7 = vld [vmem:[%s9978_s24 + $0x30] sm:$0xff] }
 0x96a   : > { %4363 = vmatpush.msrb.mxu2 %v4174_v44 }
 0x96b   : > { %v11697_v34 = vadd.f32 %v11638_v33, %v4092_v62  ;;  %4600 = vmatpush.msrb.mxu3 %v4412_v36  ;;  %4641 = vmatpush.msrb.mxu0 %v4413_v55  ;;  %v11840_v36 = vld [vmem:[%s9978_s24 + $0x38] sm:$0xff] }
 0x96c   : > { %4364 = vmatpush.msrb.mxu2 %v4169_v13  ;;  %v4544_v13 = vld [vmem:[%s10023_s6 + $0x470] sm:$0xff] }
 0x96d   : > { %13649 = vst [vmem:[#allocation81_spill] sm:$0xff] %v11697_v34  ;;  %4231 = vmatmul.f32.gmra.mxu2 %v11697_v34  ;;  %4272 = vmatmul.f32.gmra.mxu3 %v11697_v34 }
 0x96e   : > { %4313 = vmatmul.f32.gmra.mxu0 %v11697_v34  ;;  %4354 = vmatmul.f32.gmra.mxu1 %v11697_v34 }
 0x96f   : > { %4365 = vmatpush.msrb.mxu2 %v4164_v28  ;;  %4601 = vmatpush.msrb.mxu3 %v4402_v40  ;;  %v4546_v28 = vld [vmem:[%s10023_s6 + $0x480] sm:$0xff] }
 0x970   : > { %4642 = vmatpush.msrb.mxu0 %v4403_v25  ;;  %v4550_v40 = vld [vmem:[%s10023_s6 + $0x4a0] sm:$0xff] }
 0x971   : > { %4366 = vmatpush.msrb.mxu2 %v4159_v17  ;;  %v4504_v17 = vld [vmem:[%s10023_s6 + $0x330] sm:$0xff] }
 0x973   : > { %4367 = vmatpush.msrb.mxu2 %v4154_v8  ;;  %v4516_v8 = vld [vmem:[%s10023_s6 + $0x390] sm:$0xff] }
 0x975   : > { %4368 = vmatpush.msrb.mxu2 %v4149_v22  ;;  %v4506_v22 = vld [vmem:[%s10023_s6 + $0x340] sm:$0xff] }
 0x977   : > { %4369 = vmatpush.msrb.mxu2 %v4144_v2  ;;  %v4464_v2 = vld [vmem:[%s10023_s6 + $0x1f0] sm:$0xff] }
 0x979   : > { %4370 = vmatpush.msrb.mxu2 %v4139_v30  ;;  %v4476_v30 = vld [vmem:[%s10023_s6 + $0x250] sm:$0xff] }
 0x97b   : > { %4371 = vmatpush.msrb.mxu2 %v4134_v52  ;;  %v4466_v52 = vld [vmem:[%s10023_s6 + $0x200] sm:$0xff] }
 0x97d   : > { %4372 = vmatpush.msrb.mxu2 %v4129_v6  ;;  %v4424_v6 = vld [vmem:[%s10023_s6 + $0xb0] sm:$0xff] }
 0x97f   : > { %4373 = vmatpush.msrb.mxu2 %v4124_v18  ;;  %v11812_v18 = vld [vmem:[%s9978_s24 + $0x20] sm:$0xff] }
 0x981   : > { %4374 = vmatpush.msrb.mxu2 %v4119_v32  ;;  %v4406_v32 = vld [vmem:[%s10023_s6 + $0x20] sm:$0xff] }
 0x983   : > { %4375 = vmatpush.msrb.mxu2 %v4114_v11 }
 0x985   : > { %4376 = vmatpush.msrb.mxu2 %v4109_v10  ;;  %v4560_v10 = vld [vmem:[%s10023_s6 + $0x4f0] sm:$0xff] }
 0x9a1   : > { %v3978_v24 = vpop.xlane.xlu2 %3977 }
 0x9a2   : > { %v3986_v41 = vmul.f32 0.01, %v3978_v24  ;;  %v4426_v24 = vld [vmem:[%s10023_s6 + $0xc0] sm:$0xff] }
 0x9a4   : > { %v3994_v38 = vadd.f32 1e-05, %v3986_v41  ;;  %v4416_v41 = vld [vmem:[%s10023_s6 + $0x70] sm:$0xff] }
 0x9a6   : > { %8345 = vrsqrt.f32 %v3994_v38  ;;  %vm4071_vm4 = vweird.f32 %v3994_v38 }
 0x9ac   : > { %v8346_v49 = vpop.eup %8345 }
 0x9ad   : > { %v4066_v62 = vmul.f32 %v8346_v49, %v3994_v38  ;;  %vm4072_vm3 = vweird.f32 %v8346_v49 }
 0x9ae   : > { %vm4073_vm5 = vmor %vm4071_vm4, %vm4072_vm3 }
 0x9af   : > { %v4067_v26 = vmul.f32 %v8346_v49, %v4066_v62  ;;  %v4530_v62 = vld [vmem:[%s10023_s6 + $0x400] sm:$0xff] }
 0x9b1   : > { %v4068_v19 = vmul.f32 0.5, %v4067_v26 }
 0x9b3   : > { %v4069_v15 = vsub.f32 1.5, %v4068_v19  ;;  %v4520_v19 = vld [vmem:[%s10023_s6 + $0x3b0] sm:$0xff] }
 0x9b5   : > { %v4070_v53 = vmul.f32 %v8346_v49, %v4069_v15  ;;  %v4510_v15 = vld [vmem:[%s10023_s6 + $0x360] sm:$0xff] }
 0x9b7   : > { %v4074_v47 = vsel %vm4073_vm5, %v8346_v49, %v4070_v53  ;;  %v4540_v49 = vld [vmem:[%s10023_s6 + $0x450] sm:$0xff] }
 0x9b8   : > { %v4082_v56 = vmul.f32 %v4074_v47, %v11628_v12  ;;  %v4554_v12 = vld [vmem:[%s10023_s6 + $0x4c0] sm:$0xff]  ;;  %v4500_v53 = vld [vmem:[%s10023_s6 + $0x310] sm:$0xff] }
 0x9b9   : > { %4668 = vmatpush.msrb.mxu1 %v4554_v12  ;;  %v11836_v11 = vpop.f32.mrf.mxu0  ;;  %v4480_v12 = vld [vmem:[%s10023_s6 + $0x270] sm:$0xff] }
 0x9ba   : > { %v4093_v44 = vmul.f32 %v11634_v54, %v4082_v56  ;;  %v4534_v54 = vld [vmem:[%s10023_s6 + $0x420] sm:$0xff] }
 0x9bb   : > { %4669 = vmatpush.msrb.mxu1 %v4544_v13  ;;  %v4490_v56 = vld [vmem:[%s10023_s6 + $0x2c0] sm:$0xff] }
 0x9bc   : > { %v11754_v27 = vadd.f32 %v11638_v33, %v4093_v44  ;;  %v4556_v33 = vld [vmem:[%s10023_s6 + $0x4d0] sm:$0xff]  ;;  %v4470_v13 = vld [vmem:[%s10023_s6 + $0x220] sm:$0xff] }
 0x9bd   : > { %4670 = vmatpush.msrb.mxu1 %v4534_v54  ;;  %4750 = vmatpush.msra.mxu3 %v4556_v33  ;;  %v4558_v54 = vld [vmem:[%s10023_s6 + $0x4e0] sm:$0xff]  ;;  %v11875_v33 = vpop.f32.mrf.mxu1 }
 0x9be   : > { %13650 = vst [vmem:[#allocation82_spill] sm:$0xff] %v11754_v27  ;;  %4234 = vmatmul.f32.gmra.mxu2 %v11754_v27  ;;  %4275 = vmatmul.f32.gmra.mxu3 %v11754_v27  ;;  %v11842_v38 = vpop.f32.mrf.mxu3 }
 0x9bf   : > { %4316 = vmatmul.f32.gmra.mxu0 %v11754_v27  ;;  %4357 = vmatmul.f32.gmra.mxu1 %v11754_v27 }
 0x9c0   : > { %4671 = vmatpush.msrb.mxu1 %v4524_v60  ;;  %4751 = vmatpush.msra.mxu3 %v4546_v28  ;;  %v4548_v60 = vld [vmem:[%s10023_s6 + $0x490] sm:$0xff] }
 0x9c1   : > { %v11848_v55 = vpop.f32.mrf.mxu0 }
 0x9c2   : > { %4672 = vmatpush.msrb.mxu1 %v4514_v3  ;;  %4752 = vmatpush.msra.mxu3 %v4536_v23  ;;  %v4538_v3 = vld [vmem:[%s10023_s6 + $0x440] sm:$0xff]  ;;  %v4460_v23 = vld [vmem:[%s10023_s6 + $0x1d0] sm:$0xff] }
 0x9c4   : > { %4673 = vmatpush.msrb.mxu1 %v4504_v17  ;;  %4753 = vmatpush.msra.mxu3 %v4526_v37  ;;  %v4450_v17 = vld [vmem:[%s10023_s6 + $0x180] sm:$0xff]  ;;  %v4528_v37 = vld [vmem:[%s10023_s6 + $0x3f0] sm:$0xff] }
 0x9c6   : > { %4377 = vmatmul.f32.vlgmr.msrb.gmra.mxu2 %v11643_v57  ;;  %4602 = vmatmul.f32.vlgmr.msrb.gmra.mxu3 %v11761_v51  ;;  %v11853_v25 = vpop.f32.mrf.mxu3 }
 0x9c7   : > { %4643 = vmatmul.f32.vlgmr.msrb.gmra.mxu0 %v11761_v51  ;;  %4674 = vmatpush.msrb.mxu1 %v4494_v35 }
 0x9c8   : > { %4754 = vmatpush.msra.mxu3 %v4516_v8  ;;  %v4440_v8 = vld [vmem:[%s10023_s6 + $0x130] sm:$0xff] }
 0x9c9   : > { %4675 = vmatpush.msrb.mxu1 %v4484_v46  ;;  %v4518_v46 = vld [vmem:[%s10023_s6 + $0x3a0] sm:$0xff] }
 0x9ca   : > { %4755 = vmatpush.msra.mxu3 %v4506_v22  ;;  %v11858_v26 = vpop.f32.mrf.mxu0  ;;  %v4430_v22 = vld [vmem:[%s10023_s6 + $0xe0] sm:$0xff] }
 0x9cb   : > { %4676 = vmatpush.msrb.mxu1 %v4474_v59  ;;  %v4508_v59 = vld [vmem:[%s10023_s6 + $0x350] sm:$0xff] }
 0x9cc   : > { %4756 = vmatpush.msra.mxu3 %v4496_v58  ;;  %v11892_v58 = vpop.f32.mrf.mxu1 }
 0x9cd   : > { %4677 = vmatpush.msrb.mxu1 %v4464_v2  ;;  %v4498_v2 = vld [vmem:[%s10023_s6 + $0x300] sm:$0xff] }
 0x9ce   : > { %4380 = vmatmul.f32.gmra.mxu2 %v11652_v48  ;;  %4605 = vmatmul.f32.gmra.mxu3 %v11771_v45 }
 0x9cf   : > { %4646 = vmatmul.f32.gmra.mxu0 %v11771_v45  ;;  %4757 = vmatpush.msra.mxu3 %v4486_v50  ;;  %v11864_v47 = vpop.f32.mrf.mxu3 }
 0x9d0   : > { %4678 = vmatpush.msrb.mxu1 %v4454_v14  ;;  %v4420_v14 = vld [vmem:[%s10023_s6 + $0x90] sm:$0xff] }
 0x9d1   : > { %4758 = vmatpush.msra.mxu3 %v4476_v30  ;;  %v4410_v30 = vld [vmem:[%s10023_s6 + $0x40] sm:$0xff] }
 0x9d2   : > { %4679 = vmatpush.msrb.mxu1 %v4444_v29  ;;  %v4488_v29 = vld [vmem:[%s10023_s6 + $0x2b0] sm:$0xff] }
 0x9d3   : > { %4759 = vmatpush.msra.mxu3 %v4466_v52  ;;  %v11868_v44 = vpop.f32.mrf.mxu0  ;;  %v4478_v52 = vld [vmem:[%s10023_s6 + $0x260] sm:$0xff] }
 0x9d4   : > { %4680 = vmatpush.msrb.mxu1 %v4434_v39 }
 0x9d5   : > { %4760 = vmatpush.msra.mxu3 %v4456_v61  ;;  %v4468_v61 = vld [vmem:[%s10023_s6 + $0x210] sm:$0xff] }
 0x9d6   : > { %4383 = vmatmul.f32.gmra.mxu2 %v11661_v42  ;;  %4608 = vmatmul.f32.gmra.mxu3 %v11786_v1 }
 0x9d7   : > { %4649 = vmatmul.f32.gmra.mxu0 %v11786_v1  ;;  %4681 = vmatpush.msrb.mxu1 %v4424_v6  ;;  %v4458_v6 = vld [vmem:[%s10023_s6 + $0x1c0] sm:$0xff] }
 0x9d8   : > { %4761 = vmatpush.msra.mxu3 %v4446_v21  ;;  %v11878_v28 = vpop.f32.mrf.mxu3  ;;  %v11906_v21 = vpop.f32.mrf.mxu1 }
 0x9d9   : > { %4682 = vmatpush.msrb.mxu1 %v4414_v63  ;;  %13651 = vst [vmem:[#allocation85_spill] sm:$0xff] %v11906_v21  ;;  %v4448_v63 = vld [vmem:[%s10023_s6 + $0x170] sm:$0xff] }
 0x9da   : > { %4762 = vmatpush.msra.mxu3 %v4436_v31 }
 0x9db   : > { %4683 = vmatpush.msrb.mxu1 %v4404_v4  ;;  %v11885_v35 = vpop.f32.mrf.mxu0  ;;  %v4438_v4 = vld [vmem:[%s10023_s6 + $0x120] sm:$0xff] }
 0x9dc   : > { %4763 = vmatpush.msra.mxu3 %v4426_v24  ;;  %4684 = vmatmul.f32.vlgmr.msrb.gmra.mxu1 %v11761_v51  ;;  %v4428_v24 = vld [vmem:[%s10023_s6 + $0xd0] sm:$0xff] }
 0x9dd   : > { %4832 = vmatpush.msra.mxu1 %v4558_v54 }
 0x9de   : > { %4386 = vmatmul.f32.gmra.mxu2 %v11670_v20  ;;  %4611 = vmatmul.f32.gmra.mxu3 %v11799_v43 }
 0x9df   : > { %4652 = vmatmul.f32.gmra.mxu0 %v11799_v43  ;;  %4764 = vmatpush.msra.mxu3 %v4416_v41 }
 0x9e0   : > { %4833 = vmatpush.msra.mxu1 %v4548_v60  ;;  %v11895_v50 = vpop.f32.mrf.mxu3 }
 0x9e1   : > { %4765 = vmatpush.msra.mxu3 %v4406_v32  ;;  %v4418_v32 = vld [vmem:[%s10023_s6 + $0x80] sm:$0xff] }
 0x9e2   : > { %4834 = vmatpush.msra.mxu1 %v4538_v3 }
 0x9e3   : > { %4914 = vmatpush.msrb.mxu3 %v4560_v10  ;;  %v11902_v39 = vpop.f32.mrf.mxu0  ;;  %v4408_v10 = vld [vmem:[%s10023_s6 + $0x30] sm:$0xff] }
 0x9e4   : > { %4687 = vmatmul.f32.gmra.mxu1 %v11771_v45 }
 0x9e5   : > { %4915 = vmatpush.msrb.mxu3 %v4550_v40  ;;  %4835 = vmatpush.msra.mxu1 %v4528_v37  ;;  %v11919_v40 = vpop.f32.mrf.mxu1 }
 0x9e6   : > { %4389 = vmatmul.f32.gmra.mxu2 %v11679_v16  ;;  %4614 = vmatmul.f32.gmra.mxu3 %v11812_v18  ;;  %13652 = vst [vmem:[#allocation86_spill] sm:$0xff] %v11919_v40 }
 0x9e7   : > { %4655 = vmatmul.f32.gmra.mxu0 %v11812_v18  ;;  %4916 = vmatpush.msrb.mxu3 %v4540_v49 }
 0x9e8   : > { %4836 = vmatpush.msra.mxu1 %v4518_v46  ;;  %v11910_v31 = vpop.f32.mrf.mxu3 }
 0x9e9   : > { %4917 = vmatpush.msrb.mxu3 %v4530_v62 }
 0x9ea   : > { %4837 = vmatpush.msra.mxu1 %v4508_v59 }
 0x9eb   : > { %4918 = vmatpush.msrb.mxu3 %v4520_v19  ;;  %v11914_v41 = vpop.f32.mrf.mxu0 }
 0x9ec   : > { %4690 = vmatmul.f32.gmra.mxu1 %v11786_v1 }
 0x9ed   : > { %4919 = vmatpush.msrb.mxu3 %v4510_v15  ;;  %4838 = vmatpush.msra.mxu1 %v4498_v2  ;;  %v11930_v15 = vpop.f32.mrf.mxu1 }
 0x9ee   : > { %4392 = vmatmul.f32.gmra.mxu2 %v11688_v9  ;;  %4617 = vmatmul.f32.gmra.mxu3 %v11824_v0  ;;  %13653 = vst [vmem:[#allocation87_spill] sm:$0xff] %v11930_v15 }
 0x9ef   : > { %4658 = vmatmul.f32.gmra.mxu0 %v11824_v0  ;;  %4920 = vmatpush.msrb.mxu3 %v4500_v53 }
 0x9f0   : > { %4839 = vmatpush.msra.mxu1 %v4488_v29  ;;  %v11921_v49 = vpop.f32.mrf.mxu3 }
 0x9f1   : > { %4921 = vmatpush.msrb.mxu3 %v4490_v56 }
 0x9f2   : > { %4840 = vmatpush.msra.mxu1 %v4478_v52 }
 0x9f3   : > { %4922 = vmatpush.msrb.mxu3 %v4480_v12 }
 0x9f4   : > { %4693 = vmatmul.f32.gmra.mxu1 %v11799_v43 }
 0x9f5   : > { %4923 = vmatpush.msrb.mxu3 %v4470_v13  ;;  %4841 = vmatpush.msra.mxu1 %v4468_v61  ;;  %v11938_v12 = vpop.f32.mrf.mxu1  ;;  %v11964_v61 = vld [vmem:[%s10026_s3] sm:$0xff] }
 0x9f6   : > { %4395 = vmatmul.f32.gmra.mxu2 %v11697_v34  ;;  %4620 = vmatmul.f32.gmra.mxu3 %v11831_v7  ;;  %13654 = vst [vmem:[#allocation88_spill] sm:$0xff] %v11938_v12 }
 0x9f7   : > { %4661 = vmatmul.f32.gmra.mxu0 %v11831_v7  ;;  %4924 = vmatpush.msrb.mxu3 %v4460_v23 }
 0x9f8   : > { %4842 = vmatpush.msra.mxu1 %v4458_v6 }
 0x9f9   : > { %4925 = vmatpush.msrb.mxu3 %v4450_v17 }
 0x9fa   : > { %4843 = vmatpush.msra.mxu1 %v4448_v63  ;;  %v4567_v63 = vperm.slane %v11964_v61, 1 }
 0x9fb   : > { %4926 = vmatpush.msrb.mxu3 %v4440_v8 }
 0x9fc   : > { %4696 = vmatmul.f32.gmra.mxu1 %v11812_v18 }
 0x9fd   : > { %4927 = vmatpush.msrb.mxu3 %v4430_v22  ;;  %4844 = vmatpush.msra.mxu1 %v4438_v4  ;;  %v11944_v3 = vpop.f32.mrf.mxu1 }
 0x9fe   : > { %4398 = vmatmul.f32.gmra.mxu2 %v11754_v27  ;;  %4623 = vmatmul.f32.gmra.mxu3 %v11840_v36  ;;  %13655 = vst [vmem:[#allocation89_spill] sm:$0xff] %v11944_v3 }
 0x9ff   : > { %4664 = vmatmul.f32.gmra.mxu0 %v11840_v36  ;;  %4928 = vmatpush.msrb.mxu3 %v4420_v14 }
 0xa00   : > { %4845 = vmatpush.msra.mxu1 %v4428_v24 }
 0xa01   : > { %4929 = vmatpush.msrb.mxu3 %v4410_v30 }
 0xa02   : > { %4846 = vmatpush.msra.mxu1 %v4418_v32 }
 0xa04   : > { %4699 = vmatmul.f32.gmra.mxu1 %v11824_v0 }
 0xa05   : > { %4847 = vmatpush.msra.mxu1 %v4408_v10  ;;  %v4566_v10 = vperm.slane %v11964_v61, 0 }
 0xa06   : > { %4766 = vmatmul.f32.vlgmr.msra.gmra.mxu3 %v11761_v51 }
 0xa0c   : > { %4702 = vmatmul.f32.gmra.mxu1 %v11831_v7 }
 0xa0e   : > { %4769 = vmatmul.f32.gmra.mxu3 %v11771_v45 }
 0xa14   : > { %4705 = vmatmul.f32.gmra.mxu1 %v11840_v36 }
 0xa16   : > { %4772 = vmatmul.f32.gmra.mxu3 %v11786_v1 }
 0xa1c   : > { %4848 = vmatmul.f32.vlgmr.msra.gmra.mxu1 %v11761_v51 }
 0xa1e   : > { %4775 = vmatmul.f32.gmra.mxu3 %v11799_v43 }
 0xa24   : > { %4851 = vmatmul.f32.gmra.mxu1 %v11771_v45 }
 0xa26   : > { %4778 = vmatmul.f32.gmra.mxu3 %v11812_v18 }
 0xa2c   : > { %4854 = vmatmul.f32.gmra.mxu1 %v11786_v1 }
 0xa2e   : > { %4781 = vmatmul.f32.gmra.mxu3 %v11824_v0 }
 0xa34   : > { %4857 = vmatmul.f32.gmra.mxu1 %v11799_v43 }
 0xa36   : > { %4784 = vmatmul.f32.gmra.mxu3 %v11831_v7 }
 0xa3c   : > { %v11924_v62 = vpop.f32.mrf.mxu0  ;;  %4860 = vmatmul.f32.gmra.mxu1 %v11812_v18  ;;  %v11948_v37 = vpop.f32.mrf.mxu1 }
 0xa3d   : > { %13656 = vst [vmem:[#allocation90_spill] sm:$0xff] %v11948_v37 }
 0xa3e   : > { %4787 = vmatmul.f32.gmra.mxu3 %v11840_v36 }
 0xa41   : > { %v11927_v19 = vpop.f32.mrf.mxu3 }
 0xa44   : > { %v11932_v53 = vpop.f32.mrf.mxu0  ;;  %4863 = vmatmul.f32.gmra.mxu1 %v11824_v0 }
 0xa46   : > { %4930 = vmatmul.f32.vlgmr.msrb.gmra.mxu3 %v11761_v51 }
 0xa49   : > { %v11935_v56 = vpop.f32.mrf.mxu3 }
 0xa4c   : > { %v4647_v13 = vpop.f32.mrf.mxu0  ;;  %4866 = vmatmul.f32.gmra.mxu1 %v11831_v7 }
 0xa4e   : > { %4933 = vmatmul.f32.gmra.mxu3 %v11771_v45 }
 0xa51   : > { %v11941_v54 = vpop.f32.mrf.mxu3 }
 0xa54   : > { %v4650_v60 = vpop.f32.mrf.mxu0  ;;  %4869 = vmatmul.f32.gmra.mxu1 %v11840_v36 }
 0xa56   : > { %4936 = vmatmul.f32.gmra.mxu3 %v11786_v1 }
 0xa59   : > { %v4609_v23 = vpop.f32.mrf.mxu3  ;;  %v11953_v22 = vpop.f32.mrf.mxu1 }
 0xa5c   : > { %v4653_v17 = vpop.f32.mrf.mxu0 }
 0xa5e   : > { %4939 = vmatmul.f32.gmra.mxu3 %v11799_v43 }
 0xa61   : > { %v4612_v8 = vpop.f32.mrf.mxu3  ;;  %v11957_v14 = vpop.f32.mrf.mxu1 }
 0xa64   : > { %v4656_v46 = vpop.f32.mrf.mxu0 }
 0xa65   : > { %v4657_v48 = vadd.f32 %v4656_v46, %v4567_v63 }
 0xa66   : > { %4942 = vmatmul.f32.gmra.mxu3 %v11812_v18 }
 0xa69   : > { %v4615_v59 = vpop.f32.mrf.mxu3  ;;  %v11961_v52 = vpop.f32.mrf.mxu1 }
 0xa6a   : > { %v4616_v57 = vadd.f32 %v4615_v59, %v4566_v10  ;;  %v4604_v59 = vadd.f32 %v11935_v56, %v4566_v10 }
 0xa6c   : > { %v4659_v2 = vpop.f32.mrf.mxu0 }
 0xa6d   : > { %v4660_v16 = vadd.f32 %v4659_v2, %v4567_v63  ;;  %v4613_v2 = vadd.f32 %v4612_v8, %v4566_v10 }
 0xa6e   : > { %4945 = vmatmul.f32.gmra.mxu3 %v11824_v0 }
 0xa71   : > { %v4618_v30 = vpop.f32.mrf.mxu3  ;;  %v11968_v32 = vpop.f32.mrf.mxu1 }
 0xa72   : > { %v4619_v42 = vadd.f32 %v4618_v30, %v4566_v10  ;;  %v11976_v30 = vld [vmem:[%s10015_s28] sm:$0x1f] }
 0xa73   : > { %v11989_v8 = vperm.slane %v11976_v30, 0 }
 0xa74   : > { %v4662_v29 = vpop.f32.mrf.mxu0 }
 0xa75   : > { %v4663_v27 = vadd.f32 %v4662_v29, %v4567_v63 }
 0xa76   : > { %4948 = vmatmul.f32.gmra.mxu3 %v11831_v7 }
 0xa79   : > { %v4621_v6 = vpop.f32.mrf.mxu3  ;;  %v4697_v20 = vpop.f32.mrf.mxu1 }
 0xa7a   : > { %v4622_v9 = vadd.f32 %v4621_v6, %v4566_v10 }
 0xa7c   : > { %v4665_v4 = vpop.f32.mrf.mxu0 }
 0xa7d   : > { %v4666_v24 = vadd.f32 %v4665_v4, %v4567_v63 }
 0xa7e   : > { %4951 = vmatmul.f32.gmra.mxu3 %v11840_v36 }
 0xa7f   : > { %5295 = vmatpush.xpose.msra.mxu3 %v4666_v24  ;;  %v4654_v24 = vadd.f32 %v4653_v17, %v4567_v63  ;;  %v4568_v17 = vperm.slane %v11964_v61, 2 }
 0xa81   : > { %v4624_v5 = vpop.f32.mrf.mxu3  ;;  %v4700_v37 = vpop.f32.mrf.mxu1 }
 0xa82   : > { %v4625_v34 = vadd.f32 %v4624_v5, %v4566_v10  ;;  %v4651_v5 = vadd.f32 %v4650_v60, %v4567_v63  ;;  %v4607_v60 = vadd.f32 %v11941_v54, %v4566_v10 }
 0xa83   : > { %5296 = vmatpush.xpose.msra.mxu3 %v4663_v27 }
 0xa84   : > { %5085 = vmatpush.xpose.msrb.mxu1 %v4625_v34  ;;  %v4214_v34 = vpop.f32.mrf.mxu2 }
 0xa85   : > { %v4215_v6 = vadd.f32 %v4214_v34, %v11989_v8 }
 0xa87   : > { %5297 = vmatpush.xpose.msra.mxu3 %v4660_v16  ;;  %v4648_v16 = vadd.f32 %v4647_v13, %v4567_v63 }
 0xa88   : > { %5086 = vmatpush.xpose.msrb.mxu1 %v4622_v9  ;;  %v4610_v9 = vadd.f32 %v4609_v23, %v4566_v10  ;;  %v4698_v10 = vadd.f32 %v4697_v20, %v4568_v17 }
 0xa89   : > { %v11971_v4 = vpop.f32.mrf.mxu3  ;;  %v4703_v46 = vpop.f32.mrf.mxu1 }
 0xa8b   : > { %5298 = vmatpush.xpose.msra.mxu3 %v4657_v48  ;;  %v11979_v48 = vperm.slane %v11976_v30, 1 }
 0xa8c   : > { %5087 = vmatpush.xpose.msrb.mxu1 %v4619_v42  ;;  %v4645_v42 = vadd.f32 %v11932_v53, %v4567_v63  ;;  %v4217_v23 = vpop.f32.mrf.mxu2  ;;  %v4704_v63 = vadd.f32 %v4703_v46, %v4568_v17  ;;  %v4557_v46 = vld [vmem:[%s10023_s6 + $0x4d8] sm:$0xff] }
 0xa8d   : > { %v4256_v13 = vadd.f32 %v11842_v38, %v11979_v48  ;;  %v4259_v38 = vadd.f32 %v11853_v25, %v11979_v48  ;;  %v4218_v56 = vadd.f32 %v4217_v23, %v11989_v8  ;;  %v4262_v34 = vadd.f32 %v11864_v47, %v11979_v48  ;;  %4791 = vmatpush.msra.mxu0 %v4557_v46  ;;  %v4437_v46 = vld [vmem:[%s10023_s6 + $0x118] sm:$0xff] }
 0xa8e   : > { %v4265_v47 = vadd.f32 %v11878_v28, %v11979_v48  ;;  %v4517_v28 = vld [vmem:[%s10023_s6 + $0x398] sm:$0xff] }
 0xa8f   : > { %5299 = vmatpush.xpose.msra.mxu3 %v4654_v24  ;;  %v4701_v24 = vadd.f32 %v4700_v37, %v4568_v17 }
 0xa90   : > { %5088 = vmatpush.xpose.msrb.mxu1 %v4616_v57 }
 0xa91   : > { %v11973_v27 = vpop.f32.mrf.mxu3  ;;  %v4706_v29 = vpop.f32.mrf.mxu1 }
 0xa92   : > { %v4707_v53 = vadd.f32 %v4706_v29, %v4568_v17 }
 0xa93   : > { %5300 = vmatpush.xpose.msra.mxu3 %v4651_v5 }
 0xa94   : > { %5089 = vmatpush.xpose.msrb.mxu1 %v4613_v2  ;;  %v4220_v5 = vpop.f32.mrf.mxu2 }
 0xa95   : > { %v4221_v37 = vadd.f32 %v4220_v5, %v11989_v8  ;;  %v4477_v5 = vld [vmem:[%s10023_s6 + $0x258] sm:$0xff] }
 0xa97   : > { %5301 = vmatpush.xpose.msra.mxu3 %v4648_v16  ;;  %v4695_v16 = vadd.f32 %v11968_v32, %v4568_v17  ;;  %v4689_v32 = vadd.f32 %v11957_v14, %v4568_v17 }
 0xa98   : > { %5090 = vmatpush.xpose.msrb.mxu1 %v4610_v9  ;;  %v4692_v9 = vadd.f32 %v11961_v52, %v4568_v17  ;;  %v4527_v52 = vld [vmem:[%s10023_s6 + $0x3e8] sm:$0xff] }
 0xa99   : > { %v11982_v57 = vpop.f32.mrf.mxu3 }
 0xa9b   : > { %5302 = vmatpush.xpose.msra.mxu3 %v4645_v42  ;;  %v4547_v42 = vld [vmem:[%s10023_s6 + $0x488] sm:$0xff] }
 0xa9c   : > { %5091 = vmatpush.xpose.msrb.mxu1 %v4607_v60  ;;  %v4223_v25 = vpop.f32.mrf.mxu2  ;;  %4792 = vmatpush.msra.mxu0 %v4547_v42  ;;  %v4537_v60 = vld [vmem:[%s10023_s6 + $0x438] sm:$0xff]  ;;  %v4274_v42 = vadd.f32 %v11921_v49, %v11979_v48  ;;  %v4277_v49 = vadd.f32 %v11927_v19, %v11979_v48  ;;  %v4511_v19 = vld [vmem:[%s10023_s6 + $0x368] sm:$0xff] }
 0xa9d   : > { %v4224_v23 = vadd.f32 %v4223_v25, %v11989_v8  ;;  %v4447_v25 = vld [vmem:[%s10023_s6 + $0x168] sm:$0xff] }
 0xa9e   : > { %5303 = vmatmul.f32.vlgmr.msra.gmra.mxu3 %v4256_v13  ;;  %v12013_v13 = vpop.f32.mrf.mxu1  ;;  %4793 = vmatpush.msra.mxu0 %v4537_v60 }
 0xa9f   : > { %5587 = vmatpush.xpose.msrb.mxu3 %v4707_v53  ;;  %v4507_v53 = vld [vmem:[%s10023_s6 + $0x348] sm:$0xff] }
 0xaa0   : > { %5092 = vmatpush.xpose.msrb.mxu1 %v4604_v59  ;;  %4794 = vmatpush.msra.mxu0 %v4527_v52  ;;  %v4686_v59 = vadd.f32 %v11953_v22, %v4568_v17  ;;  %v4487_v22 = vld [vmem:[%s10023_s6 + $0x2a8] sm:$0xff] }
 0xaa1   : > { %v11993_v54 = vpop.f32.mrf.mxu3  ;;  %v4407_v52 = vld [vmem:[%s10023_s6 + $0x28] sm:$0xff] }
 0xaa2   : > { %4795 = vmatpush.msra.mxu0 %v4517_v28 }
 0xaa3   : > { %5093 = vmatmul.f32.vlgmr.msrb.gmra.mxu1 %v4215_v6  ;;  %5588 = vmatpush.xpose.msrb.mxu3 %v4704_v63  ;;  %v4268_v6 = vadd.f32 %v11895_v50, %v11979_v48  ;;  %v4497_v63 = vld [vmem:[%s10023_s6 + $0x2f8] sm:$0xff]  ;;  %v4467_v50 = vld [vmem:[%s10023_s6 + $0x208] sm:$0xff] }
 0xaa4   : > { %v4226_v14 = vpop.f32.mrf.mxu2  ;;  %4796 = vmatpush.msra.mxu0 %v4507_v53  ;;  %v4541_v53 = vld [vmem:[%s10023_s6 + $0x458] sm:$0xff] }
 0xaa5   : > { %v4227_v17 = vadd.f32 %v4226_v14, %v11989_v8  ;;  %v4551_v14 = vld [vmem:[%s10023_s6 + $0x4a8] sm:$0xff] }
 0xaa6   : > { %5306 = vmatmul.f32.gmra.mxu3 %v4259_v38  ;;  %v12025_v38 = vpop.f32.mrf.mxu1  ;;  %4797 = vmatpush.msra.mxu0 %v4497_v63 }
 0xaa7   : > { %5589 = vmatpush.xpose.msrb.mxu3 %v4701_v24 }
 0xaa8   : > { %4798 = vmatpush.msra.mxu0 %v4487_v22  ;;  %v4531_v22 = vld [vmem:[%s10023_s6 + $0x408] sm:$0xff] }
 0xaa9   : > { %v11998_v2 = vpop.f32.mrf.mxu3 }
 0xaaa   : > { %4799 = vmatpush.msra.mxu0 %v4477_v5  ;;  %v4521_v5 = vld [vmem:[%s10023_s6 + $0x3b8] sm:$0xff] }
 0xaab   : > { %5096 = vmatmul.f32.gmra.mxu1 %v4218_v56  ;;  %5590 = vmatpush.xpose.msrb.mxu3 %v4698_v10  ;;  %v4271_v10 = vadd.f32 %v11910_v31, %v11979_v48  ;;  %v4427_v31 = vld [vmem:[%s10023_s6 + $0xc8] sm:$0xff] }
 0xaac   : > { %v4229_v56 = vpop.f32.mrf.mxu2  ;;  %4800 = vmatpush.msra.mxu0 %v4467_v50 }
 0xaae   : > { %5309 = vmatmul.f32.gmra.mxu3 %v4262_v34  ;;  %v4457_v34 = vld [vmem:[%s10023_s6 + $0x1b8] sm:$0xff] }
 0xaaf   : > { %5591 = vmatpush.xpose.msrb.mxu3 %v4695_v16  ;;  %v12036_v16 = vpop.f32.mrf.mxu1  ;;  %4801 = vmatpush.msra.mxu0 %v4457_v34  ;;  %v4481_v34 = vld [vmem:[%s10023_s6 + $0x278] sm:$0xff] }
 0xab1   : > { %v12005_v20 = vpop.f32.mrf.mxu3  ;;  %4802 = vmatpush.msra.mxu0 %v4447_v25 }
 0xab3   : > { %5099 = vmatmul.f32.gmra.mxu1 %v4221_v37  ;;  %5592 = vmatpush.xpose.msrb.mxu3 %v4692_v9  ;;  %v4230_v37 = vadd.f32 %v4229_v56, %v11989_v8 }
 0xab4   : > { %4803 = vmatpush.msra.mxu0 %v4437_v46  ;;  %v4461_v46 = vld [vmem:[%s10023_s6 + $0x1d8] sm:$0xff] }
 0xab6   : > { %5312 = vmatmul.f32.gmra.mxu3 %v4265_v47  ;;  %4804 = vmatpush.msra.mxu0 %v4427_v31  ;;  %v4417_v47 = vld [vmem:[%s10023_s6 + $0x78] sm:$0xff] }
 0xab7   : > { %5593 = vmatpush.xpose.msrb.mxu3 %v4689_v32  ;;  %v4232_v32 = vpop.f32.mrf.mxu2  ;;  %v12047_v60 = vpop.f32.mrf.mxu1 }
 0xab8   : > { %4805 = vmatpush.msra.mxu0 %v4417_v47  ;;  %v4441_v47 = vld [vmem:[%s10023_s6 + $0x138] sm:$0xff] }
 0xab9   : > { %v12018_v29 = vpop.f32.mrf.mxu3 }
 0xaba   : > { %4806 = vmatpush.msra.mxu0 %v4407_v52  ;;  %v4431_v52 = vld [vmem:[%s10023_s6 + $0xe8] sm:$0xff] }
 0xabb   : > { %5102 = vmatmul.f32.gmra.mxu1 %v4224_v23  ;;  %5594 = vmatpush.xpose.msrb.mxu3 %v4686_v59  ;;  %v4561_v23 = vld [vmem:[%s10023_s6 + $0x4f8] sm:$0xff]  ;;  %v4233_v59 = vadd.f32 %v4232_v32, %v11989_v8 }
 0xabc   : > { %4955 = vmatpush.msrb.mxu0 %v4561_v23  ;;  %v4572_v23 = vperm.slane %v11964_v61, 6 }
 0xabd   : > { %4807 = vmatmul.f32.vlgmr.msra.gmra.mxu0 %v11761_v51 }
 0xabe   : > { %5315 = vmatmul.f32.gmra.mxu3 %v4268_v6  ;;  %4956 = vmatpush.msrb.mxu0 %v4551_v14 }
 0xabf   : > { %v4235_v6 = vpop.f32.mrf.mxu2  ;;  %v4861_v63 = vpop.f32.mrf.mxu1 }
 0xac0   : > { %4957 = vmatpush.msrb.mxu0 %v4541_v53  ;;  %v4236_v50 = vadd.f32 %v4235_v6, %v11989_v8  ;;  %v4491_v8 = vld [vmem:[%s10023_s6 + $0x2c8] sm:$0xff] }
 0xac1   : > { %v12029_v24 = vpop.f32.mrf.mxu3 }
 0xac2   : > { %4958 = vmatpush.msrb.mxu0 %v4531_v22 }
 0xac3   : > { %5105 = vmatmul.f32.gmra.mxu1 %v4227_v17  ;;  %v12061_v17 = vperm.slane %v11976_v30, 2 }
 0xac4   : > { %4959 = vmatpush.msrb.mxu0 %v4521_v5 }
 0xac5   : > { %4810 = vmatmul.f32.gmra.mxu0 %v11771_v45  ;;  %v4297_v48 = vadd.f32 %v11836_v11, %v12061_v17  ;;  %v4300_v11 = vadd.f32 %v11848_v55, %v12061_v17  ;;  %v4421_v55 = vld [vmem:[%s10023_s6 + $0x98] sm:$0xff]  ;;  %v4306_v61 = vadd.f32 %v11868_v44, %v12061_v17  ;;  %v4563_v44 = vld [vmem:[%s10026_s3 + $0x8] sm:$0x3] }
 0xac6   : > { %5318 = vmatmul.f32.gmra.mxu3 %v4271_v10  ;;  %4960 = vmatpush.msrb.mxu0 %v4511_v19  ;;  %v4501_v10 = vld [vmem:[%s10023_s6 + $0x318] sm:$0xff]  ;;  %v4856_v19 = vadd.f32 %v12036_v16, %v4572_v23 }
 0xac7   : > { %v4864_v30 = vpop.f32.mrf.mxu1 }
 0xac8   : > { %4961 = vmatpush.msrb.mxu0 %v4501_v10  ;;  %v4865_v5 = vadd.f32 %v4864_v30, %v4572_v23  ;;  %v4850_v30 = vadd.f32 %v12013_v13, %v4572_v23 }
 0xac9   : > { %v12040_v9 = vpop.f32.mrf.mxu3 }
 0xaca   : > { %4962 = vmatpush.msrb.mxu0 %v4491_v8 }
 0xacb   : > { %5108 = vmatmul.f32.gmra.mxu1 %v4230_v37  ;;  %v4471_v37 = vld [vmem:[%s10023_s6 + $0x228] sm:$0xff] }
 0xacc   : > { %4963 = vmatpush.msrb.mxu0 %v4481_v34  ;;  %v4312_v34 = vadd.f32 %v11902_v39, %v12061_v17 }
 0xacd   : > { %4813 = vmatmul.f32.gmra.mxu0 %v11786_v1 }
 0xace   : > { %5321 = vmatmul.f32.gmra.mxu3 %v4274_v42  ;;  %4964 = vmatpush.msrb.mxu0 %v4471_v37  ;;  %v4451_v42 = vld [vmem:[%s10023_s6 + $0x188] sm:$0xff] }
 0xacf   : > { %v4867_v31 = vpop.f32.mrf.mxu1 }
 0xad0   : > { %4965 = vmatpush.msrb.mxu0 %v4461_v46  ;;  %v4868_v53 = vadd.f32 %v4867_v31, %v4572_v23 }
 0xad1   : > { %v12052_v28 = vpop.f32.mrf.mxu3 }
 0xad2   : > { %4966 = vmatpush.msrb.mxu0 %v4451_v42  ;;  %v4555_v42 = vld [vmem:[%s10023_s6 + $0x4c8] sm:$0xff] }
 0xad3   : > { %5111 = vmatmul.f32.gmra.mxu1 %v4233_v59  ;;  %v4303_v59 = vadd.f32 %v11858_v26, %v12061_v17  ;;  %v4859_v26 = vadd.f32 %v12047_v60, %v4572_v23  ;;  %v4574_v60 = vperm.slane %v4563_v44, 0  ;;  %4709 = vmatpush.msra.mxu2 %v4555_v42 }
 0xad4   : > { %4967 = vmatpush.msrb.mxu0 %v4441_v47  ;;  %v4505_v47 = vld [vmem:[%s10023_s6 + $0x338] sm:$0xff] }
 0xad5   : > { %4816 = vmatmul.f32.gmra.mxu0 %v11799_v43  ;;  %v4935_v39 = vadd.f32 %v12052_v28, %v4574_v60  ;;  %v4932_v31 = vadd.f32 %v12040_v9, %v4574_v60  ;;  %v4525_v28 = vld [vmem:[%s10023_s6 + $0x3d8] sm:$0xff]  ;;  %v4515_v9 = vld [vmem:[%s10023_s6 + $0x388] sm:$0xff] }
 0xad6   : > { %5324 = vmatmul.f32.gmra.mxu3 %v4277_v49  ;;  %4968 = vmatpush.msrb.mxu0 %v4431_v52  ;;  %v4411_v49 = vld [vmem:[%s10023_s6 + $0x48] sm:$0xff] }
 0xad7   : > { %v4870_v14 = vpop.f32.mrf.mxu1  ;;  %v4475_v52 = vld [vmem:[%s10023_s6 + $0x248] sm:$0xff] }
 0xad8   : > { %4969 = vmatpush.msrb.mxu0 %v4421_v55  ;;  %v4871_v6 = vadd.f32 %v4870_v14, %v4572_v23 }
 0xad9   : > { %v12065_v56 = vpop.f32.mrf.mxu3 }
 0xada   : > { %4970 = vmatpush.msrb.mxu0 %v4411_v49  ;;  %v4938_v46 = vadd.f32 %v12065_v56, %v4574_v60  ;;  %v4535_v56 = vld [vmem:[%s10023_s6 + $0x428] sm:$0xff]  ;;  %v4445_v49 = vld [vmem:[%s10023_s6 + $0x158] sm:$0xff] }
 0xadb   : > { %5114 = vmatmul.f32.gmra.mxu1 %v4236_v50  ;;  %v4862_v50 = vadd.f32 %v4861_v63, %v4572_v23  ;;  %v4309_v63 = vadd.f32 %v11885_v35, %v12061_v17 }
 0xadc   : > { %5464 = vmatpush.msra.mxu0 %v4871_v6 }
 0xadd   : > { %4819 = vmatmul.f32.gmra.mxu0 %v11812_v18 }
 0xade   : > { %5595 = vmatmul.f32.vlgmr.msrb.gmra.mxu3 %v4297_v48  ;;  %5465 = vmatpush.msra.mxu0 %v4868_v53  ;;  %v4853_v48 = vadd.f32 %v12025_v38, %v4572_v23  ;;  %v4465_v23 = vld [vmem:[%s10023_s6 + $0x1f8] sm:$0xff] }
 0xae0   : > { %5466 = vmatpush.msra.mxu0 %v4865_v5 }
 0xae1   : > { %v12074_v25 = vpop.f32.mrf.mxu3 }
 0xae2   : > { %5467 = vmatpush.msra.mxu0 %v4862_v50  ;;  %v4941_v13 = vadd.f32 %v12074_v25, %v4574_v60  ;;  %v4545_v25 = vld [vmem:[%s10023_s6 + $0x478] sm:$0xff]  ;;  %v4415_v50 = vld [vmem:[%s10023_s6 + $0x68] sm:$0xff] }
 0xae3   : > { %4710 = vmatpush.msra.mxu2 %v4545_v25 }
 0xae4   : > { %5468 = vmatpush.msra.mxu0 %v4859_v26  ;;  %v4405_v26 = vld [vmem:[%s10023_s6 + $0x18] sm:$0xff] }
 0xae5   : > { %4822 = vmatmul.f32.gmra.mxu0 %v11824_v0  ;;  %4711 = vmatpush.msra.mxu2 %v4535_v56 }
 0xae6   : > { %5598 = vmatmul.f32.gmra.mxu3 %v4300_v11  ;;  %5469 = vmatpush.msra.mxu0 %v4856_v19  ;;  %v4315_v11 = vadd.f32 %v11914_v41, %v12061_v17  ;;  %v4318_v41 = vadd.f32 %v11924_v62, %v12061_v17 }
 0xae7   : > { %4712 = vmatpush.msra.mxu2 %v4525_v28 }
 0xae8   : > { %5470 = vmatpush.msra.mxu0 %v4853_v48 }
 0xae9   : > { %v4943_v32 = vpop.f32.mrf.mxu3  ;;  %4713 = vmatpush.msra.mxu2 %v4515_v9 }
 0xaea   : > { %5471 = vmatpush.msra.mxu0 %v4850_v30  ;;  %v4944_v35 = vadd.f32 %v4943_v32, %v4574_v60  ;;  %v4485_v32 = vld [vmem:[%s10023_s6 + $0x298] sm:$0xff] }
 0xaeb   : > { %4714 = vmatpush.msra.mxu2 %v4505_v47  ;;  %v4549_v47 = vld [vmem:[%s10023_s6 + $0x498] sm:$0xff] }
 0xaed   : > { %4825 = vmatmul.f32.gmra.mxu0 %v11831_v7 }
 0xaee   : > { %5601 = vmatmul.f32.gmra.mxu3 %v4303_v59  ;;  %v13657_v59 = vld [vmem:[#allocation84_spill] sm:$0xff] }
 0xaf1   : > { %v4946_v22 = vpop.f32.mrf.mxu3 }
 0xaf2   : > { %v4947_v37 = vadd.f32 %v4946_v22, %v4574_v60  ;;  %v4435_v22 = vld [vmem:[%s10023_s6 + $0x108] sm:$0xff] }
 0xaf5   : > { %4828 = vmatmul.f32.gmra.mxu0 %v11840_v36 }
 0xaf6   : > { %5604 = vmatmul.f32.gmra.mxu3 %v4306_v61 }
 0xaf9   : > { %v4949_v10 = vpop.f32.mrf.mxu3 }
 0xafa   : > { %v4950_v38 = vadd.f32 %v4949_v10, %v4574_v60  ;;  %v12144_v10 = vld [vmem:[%s9978_s24] sm:$0xff] }
 0xafd   : > { %4971 = vmatmul.f32.vlgmr.msrb.gmra.mxu0 %v11761_v51  ;;  %v4495_v51 = vld [vmem:[%s10023_s6 + $0x2e8] sm:$0xff] }
 0xafe   : > { %5607 = vmatmul.f32.gmra.mxu3 %v4309_v63  ;;  %4715 = vmatpush.msra.mxu2 %v4495_v51 }
 0xb00   : > { %4716 = vmatpush.msra.mxu2 %v4485_v32  ;;  %v4539_v32 = vld [vmem:[%s10023_s6 + $0x448] sm:$0xff] }
 0xb01   : > { %v4952_v8 = vpop.f32.mrf.mxu3 }
 0xb02   : > { %v4953_v16 = vadd.f32 %v4952_v8, %v4574_v60  ;;  %4717 = vmatpush.msra.mxu2 %v4475_v52  ;;  %v12154_v8 = vld [vmem:[%s9978_s24 + $0x8] sm:$0xff] }
 0xb04   : > { %6015 = vmatpush.msra.mxu3 %v4953_v16  ;;  %4718 = vmatpush.msra.mxu2 %v4465_v23 }
 0xb05   : > { %4974 = vmatmul.f32.gmra.mxu0 %v11771_v45  ;;  %v4455_v45 = vld [vmem:[%s10023_s6 + $0x1a8] sm:$0xff] }
 0xb06   : > { %5610 = vmatmul.f32.gmra.mxu3 %v4312_v34  ;;  %4719 = vmatpush.msra.mxu2 %v4455_v45 }
 0xb07   : > { %6016 = vmatpush.msra.mxu3 %v4950_v38 }
 0xb08   : > { %4720 = vmatpush.msra.mxu2 %v4445_v49  ;;  %v4519_v49 = vld [vmem:[%s10023_s6 + $0x3a8] sm:$0xff] }
 0xb09   : > { %6017 = vmatpush.msra.mxu3 %v4947_v37 }
 0xb0a   : > { %4721 = vmatpush.msra.mxu2 %v4435_v22 }
 0xb0b   : > { %6018 = vmatpush.msra.mxu3 %v4944_v35 }
 0xb0d   : > { %6019 = vmatpush.msra.mxu3 %v4941_v13  ;;  %4977 = vmatmul.f32.gmra.mxu0 %v11786_v1  ;;  %v4425_v1 = vld [vmem:[%s10023_s6 + $0xb8] sm:$0xff]  ;;  %v12164_v13 = vld [vmem:[%s9978_s24 + $0x10] sm:$0xff] }
 0xb0e   : > { %5613 = vmatmul.f32.gmra.mxu3 %v4315_v11  ;;  %4722 = vmatpush.msra.mxu2 %v4425_v1  ;;  %v4499_v1 = vld [vmem:[%s10023_s6 + $0x308] sm:$0xff] }
 0xb0f   : > { %6020 = vmatpush.msra.mxu3 %v4938_v46 }
 0xb10   : > { %4723 = vmatpush.msra.mxu2 %v4415_v50 }
 0xb11   : > { %6021 = vmatpush.msra.mxu3 %v4935_v39 }
 0xb12   : > { %4724 = vmatpush.msra.mxu2 %v4405_v26 }
 0xb13   : > { %6022 = vmatpush.msra.mxu3 %v4932_v31  ;;  %4725 = vmatmul.f32.vlgmr.msra.gmra.mxu2 %v12144_v10 }
 0xb15   : > { %4980 = vmatmul.f32.gmra.mxu0 %v11799_v43 }
 0xb16   : > { %5616 = vmatmul.f32.gmra.mxu3 %v4318_v41 }
 0xb1b   : > { %4728 = vmatmul.f32.gmra.mxu2 %v12154_v8 }
 0xb1d   : > { %4983 = vmatmul.f32.gmra.mxu0 %v11812_v18 }
 0xb20   : > { %v5094_v34 = vpop.f32.mrf.mxu1 }
 0xb21   : > { %v5304_v62 = vpop.f32.mrf.mxu3 }
 0xb22   : > { %v5328_v17 = vmul.f32 0.2236068, %v5304_v62 }
 0xb23   : > { %4731 = vmatmul.f32.gmra.mxu2 %v12164_v13 }
 0xb24   : > { %v12127_v55 = vadd.f32 %v5328_v17, %v13657_v59 }
 0xb25   : > { %4986 = vmatmul.f32.gmra.mxu0 %v11824_v0 }
 0xb26   : > { %v5344_v14 = vsel %vm2671_vm2, %v12127_v55, -inf }
 0xb27   : > { %5345 = vmax.xlane.f32.xlu0 %v5344_v14 }
 0xb28   : > { %v5097_v39 = vpop.f32.mrf.mxu1 }
 0xb29   : > { %v5307_v53 = vpop.f32.mrf.mxu3  ;;  %v5119_v62 = vmul.f32 0.2236068, %v5097_v39 }
 0xb2a   : > { %v5329_v6 = vmul.f32 0.2236068, %v5307_v53  ;;  %v4509_v53 = vld [vmem:[%s10023_s6 + $0x358] sm:$0xff] }
 0xb2b   : > { %4734 = vmatmul.f32.gmra.mxu2 %v11799_v43  ;;  %v4559_v43 = vld [vmem:[%s10023_s6 + $0x4e8] sm:$0xff]  ;;  %v12196_v14 = vadd.f32 %v5119_v62, %v13657_v59 }
 0xb2c   : > { %v12137_v5 = vadd.f32 %v5329_v6, %v13657_v59  ;;  %4873 = vmatpush.msrb.mxu2 %v4559_v43  ;;  %v4439_v43 = vld [vmem:[%s10023_s6 + $0x128] sm:$0xff] }
 0xb2d   : > { %4989 = vmatmul.f32.gmra.mxu0 %v11831_v7  ;;  %v5118_v7 = vmul.f32 0.2236068, %v5094_v34  ;;  %v4419_v62 = vld [vmem:[%s10023_s6 + $0x88] sm:$0xff] }
 0xb2e   : > { %v5347_v61 = vsel %vm2671_vm2, %v12137_v5, -inf  ;;  %4874 = vmatpush.msrb.mxu2 %v4549_v47  ;;  %v12235_v47 = vld [vmem:[%s9978_s24 + $0x38] sm:$0xff] }
 0xb2f   : > { %5348 = vmax.xlane.f32.xlu1 %v5347_v61  ;;  %v12181_v9 = vadd.f32 %v5118_v7, %v13657_v59  ;;  %v5137_v61 = vsel %vm2671_vm2, %v12196_v14, -inf }
 0xb30   : > { %v5100_v51 = vpop.f32.mrf.mxu1  ;;  %4875 = vmatpush.msrb.mxu2 %v4539_v32 }
 0xb31   : > { %v5310_v19 = vpop.f32.mrf.mxu3  ;;  %v5134_v52 = vsel %vm2671_vm2, %v12181_v9, -inf  ;;  %v5120_v50 = vmul.f32 0.2236068, %v5100_v51  ;;  %v4429_v51 = vld [vmem:[%s10023_s6 + $0xd8] sm:$0xff] }
 0xb32   : > { %v5330_v48 = vmul.f32 0.2236068, %v5310_v19 }
 0xb33   : > { %4737 = vmatmul.f32.gmra.mxu2 %v11812_v18  ;;  %v4529_v18 = vld [vmem:[%s10023_s6 + $0x3f8] sm:$0xff] }
 0xb34   : > { %v12149_v30 = vadd.f32 %v5330_v48, %v13657_v59  ;;  %4876 = vmatpush.msrb.mxu2 %v4529_v18 }
 0xb35   : > { %4992 = vmatmul.f32.gmra.mxu0 %v11840_v36 }
 0xb36   : > { %v5350_v63 = vsel %vm2671_vm2, %v12149_v30, -inf  ;;  %4877 = vmatpush.msrb.mxu2 %v4519_v49 }
 0xb37   : > { %5351 = vmax.xlane.f32.xlu2 %v5350_v63  ;;  %v12211_v63 = vadd.f32 %v5120_v50, %v13657_v59 }
 0xb38   : > { %v5103_v22 = vpop.f32.mrf.mxu1  ;;  %4878 = vmatpush.msrb.mxu2 %v4509_v53 }
 0xb39   : > { %v5313_v44 = vpop.f32.mrf.mxu3 }
 0xb3a   : > { %v5331_v60 = vmul.f32 0.2236068, %v5313_v44  ;;  %4879 = vmatpush.msrb.mxu2 %v4499_v1  ;;  %v4479_v44 = vld [vmem:[%s10023_s6 + $0x268] sm:$0xff] }
 0xb3b   : > { %4740 = vmatmul.f32.gmra.mxu2 %v11824_v0  ;;  %v4489_v0 = vld [vmem:[%s10023_s6 + $0x2b8] sm:$0xff] }
 0xb3c   : > { %v12159_v16 = vadd.f32 %v5331_v60, %v13657_v59  ;;  %4880 = vmatpush.msrb.mxu2 %v4489_v0  ;;  %v12215_v60 = vld [vmem:[%s9978_s24 + $0x30] sm:$0xff] }
 0xb3e   : > { %v5353_v38 = vsel %vm2671_vm2, %v12159_v16, -inf  ;;  %4881 = vmatpush.msrb.mxu2 %v4479_v44 }
 0xb3f   : > { %5354 = vmax.xlane.f32.xlu0 %v5353_v38  ;;  %v4469_v38 = vld [vmem:[%s10023_s6 + $0x218] sm:$0xff] }
 0xb40   : > { %4882 = vmatpush.msrb.mxu2 %v4469_v38 }
 0xb41   : > { %v5316_v37 = vpop.f32.mrf.mxu3 }
 0xb42   : > { %v5332_v35 = vmul.f32 0.2236068, %v5316_v37  ;;  %v4459_v37 = vld [vmem:[%s10023_s6 + $0x1c8] sm:$0xff] }
 0xb43   : > { %4743 = vmatmul.f32.gmra.mxu2 %v12215_v60 }
 0xb44   : > { %v12169_v11 = vadd.f32 %v5332_v35, %v13657_v59  ;;  %v5121_v35 = vmul.f32 0.2236068, %v5103_v22  ;;  %4883 = vmatpush.msrb.mxu2 %v4459_v37 }
 0xb46   : > { %v5356_v46 = vsel %vm2671_vm2, %v12169_v11, -inf }
 0xb47   : > { %5357 = vmax.xlane.f32.xlu1 %v5356_v46  ;;  %v5140_v46 = vsel %vm2671_vm2, %v12211_v63, -inf }
 0xb49   : > { %v5319_v31 = vpop.f32.mrf.mxu3 }
 0xb4a   : > { %v5333_v42 = vmul.f32 0.2236068, %v5319_v31  ;;  %v5106_v31 = vpop.f32.mrf.mxu1 }
 0xb4b   : > { %4746 = vmatmul.f32.gmra.mxu2 %v12235_v47 }
 0xb4c   : > { %v12176_v25 = vadd.f32 %v5333_v42, %v13657_v59  ;;  %v4449_v42 = vld [vmem:[%s10023_s6 + $0x178] sm:$0xff] }
 0xb4d   : > { %4884 = vmatpush.msrb.mxu2 %v4449_v42 }
 0xb4e   : > { %v5359_v41 = vsel %vm2671_vm2, %v12176_v25, -inf }
 0xb4f   : > { %5360 = vmax.xlane.f32.xlu2 %v5359_v41  ;;  %v12228_v41 = vpop.f32.mrf.mxu2  ;;  %4885 = vmatpush.msrb.mxu2 %v4439_v43 }
 0xb50   : > { %13658 = vst [vmem:[#allocation91_spill] sm:$0xff] %v12228_v41 }
 0xb51   : > { %v5322_v56 = vpop.f32.mrf.mxu3  ;;  %4886 = vmatpush.msrb.mxu2 %v4429_v51 }
 0xb52   : > { %v5334_v28 = vmul.f32 0.2236068, %v5322_v56 }
 0xb53   : > { %4887 = vmatpush.msrb.mxu2 %v4419_v62 }
 0xb54   : > { %v12187_v36 = vadd.f32 %v5334_v28, %v13657_v59  ;;  %v12231_v28 = vadd.f32 %v5121_v35, %v13657_v59 }
 0xb56   : > { %v5362_v17 = vsel %vm2671_vm2, %v12187_v36, -inf }
 0xb57   : > { %5363 = vmax.xlane.f32.xlu0 %v5362_v17  ;;  %5135 = vmax.xlane.f32.xlu2 %v5134_v52  ;;  %v5122_v17 = vmul.f32 0.2236068, %v5106_v31  ;;  %v5143_v52 = vsel %vm2671_vm2, %v12231_v28, -inf  ;;  %v12252_v1 = vpop.f32.mrf.mxu2 }
 0xb58   : > { %13659 = vst [vmem:[#allocation92_spill] sm:$0xff] %v12252_v1 }
 0xb59   : > { %v5325_v23 = vpop.f32.mrf.mxu3  ;;  %v12249_v22 = vadd.f32 %v5122_v17, %v13657_v59 }
 0xb5a   : > { %v5335_v45 = vmul.f32 0.2236068, %v5325_v23  ;;  %v4409_v23 = vld [vmem:[%s10023_s6 + $0x38] sm:$0xff] }
 0xb5b   : > { %4888 = vmatpush.msrb.mxu2 %v4409_v23 }
 0xb5c   : > { %v12202_v6 = vadd.f32 %v5335_v45, %v13657_v59  ;;  %v5109_v45 = vpop.f32.mrf.mxu1  ;;  %4889 = vmatmul.f32.vlgmr.msrb.gmra.mxu2 %v12144_v10 }
 0xb5e   : > { %v5365_v26 = vsel %vm2671_vm2, %v12202_v6, -inf }
 0xb5f   : > { %5138 = vmax.xlane.f32.xlu2 %v5137_v61  ;;  %5366 = vmax.xlane.f32.xlu0 %v5365_v26  ;;  %v5123_v61 = vmul.f32 0.2236068, %v5109_v45  ;;  %v5146_v26 = vsel %vm2671_vm2, %v12249_v22, -inf  ;;  %v12268_v37 = vpop.f32.mrf.mxu2 }
 0xb60   : > { %13660 = vst [vmem:[#allocation93_spill] sm:$0xff] %v12268_v37 }
 0xb61   : > { %v5596_v19 = vpop.f32.mrf.mxu3  ;;  %v12262_v44 = vadd.f32 %v5123_v61, %v13657_v59  ;;  %v8563_v61 = vld [vmem:[%s9978_s24 + $0x20] sm:$0xff] }
 0xb62   : > { %v5620_v48 = vmul.f32 0.2236068, %v5596_v19 }
 0xb64   : > { %v12220_v34 = vadd.f32 %v5620_v48, %v13657_v59  ;;  %v5112_v10 = vpop.f32.mrf.mxu1  ;;  %4892 = vmatmul.f32.gmra.mxu2 %v12154_v8 }
 0xb65   : > { %v5124_v35 = vmul.f32 0.2236068, %v5112_v10 }
 0xb66   : > { %v5636_v39 = vsel %vm2671_vm2, %v12220_v34, -inf }
 0xb67   : > { %5141 = vmax.xlane.f32.xlu2 %v5140_v46  ;;  %5637 = vmax.xlane.f32.xlu0 %v5636_v39  ;;  %v5149_v46 = vsel %vm2671_vm2, %v12262_v44, -inf  ;;  %v12285_v51 = vpop.f32.mrf.mxu2 }
 0xb68   : > { %13661 = vst [vmem:[#allocation94_spill] sm:$0xff] %v12285_v51 }
 0xb69   : > { %v5599_v7 = vpop.f32.mrf.mxu3 }
 0xb6a   : > { %v5621_v56 = vmul.f32 0.2236068, %v5599_v7  ;;  %v12275_v7 = vadd.f32 %v5124_v35, %v13657_v59 }
 0xb6c   : > { %v12240_v32 = vadd.f32 %v5621_v56, %v13657_v59  ;;  %4895 = vmatmul.f32.gmra.mxu2 %v12164_v13  ;;  %v5152_v56 = vsel %vm2671_vm2, %v12275_v7, -inf }
 0xb6e   : > { %v5639_v18 = vsel %vm2671_vm2, %v12240_v32, -inf }
 0xb6f   : > { %5144 = vmax.xlane.f32.xlu2 %v5143_v52  ;;  %5640 = vmax.xlane.f32.xlu0 %v5639_v18  ;;  %v5115_v52 = vpop.f32.mrf.mxu1  ;;  %v8562_v18 = vld [vmem:[%s9978_s24 + $0x18] sm:$0xff] }
 0xb70   : > { %v5125_v23 = vmul.f32 0.2236068, %v5115_v52 }
 0xb71   : > { %v5602_v49 = vpop.f32.mrf.mxu3 }
 0xb72   : > { %v5622_v53 = vmul.f32 0.2236068, %v5602_v49  ;;  %v12293_v49 = vpop.f32.mrf.mxu2 }
 0xb73   : > { %13662 = vst [vmem:[#allocation95_spill] sm:$0xff] %v12293_v49 }
 0xb74   : > { %v12255_v50 = vadd.f32 %v5622_v53, %v13657_v59  ;;  %4898 = vmatmul.f32.gmra.mxu2 %v8562_v18  ;;  %v12296_v53 = vadd.f32 %v5125_v23, %v13657_v59 }
 0xb76   : > { %v5642_v0 = vsel %vm2671_vm2, %v12255_v50, -inf }
 0xb77   : > { %5147 = vmax.xlane.f32.xlu2 %v5146_v26  ;;  %5643 = vmax.xlane.f32.xlu0 %v5642_v0  ;;  %v5155_v26 = vsel %vm2671_vm2, %v12296_v53, -inf }
 0xb79   : > { %v5605_v19 = vpop.f32.mrf.mxu3 }
 0xb7a   : > { %v5623_v48 = vmul.f32 0.2236068, %v5605_v19  ;;  %v12303_v10 = vpop.f32.mrf.mxu2 }
 0xb7b   : > { %13663 = vst [vmem:[#allocation96_spill] sm:$0xff] %v12303_v10 }
 0xb7c   : > { %v12266_v38 = vadd.f32 %v5623_v48, %v13657_v59  ;;  %4901 = vmatmul.f32.gmra.mxu2 %v8563_v61  ;;  %v8564_v48 = vld [vmem:[%s9978_s24 + $0x28] sm:$0xff]  ;;  %s13692_s24 = sld [smem:[#allocation62_spill]] }
 0xb7e   : > { %v5645_v39 = vsel %vm2671_vm2, %v12266_v38, -inf }
 0xb7f   : > { %5150 = vmax.xlane.f32.xlu2 %v5149_v46  ;;  %5646 = vmax.xlane.f32.xlu0 %v5645_v39 }
 0xb81   : > { %v5608_v31 = vpop.f32.mrf.mxu3 }
 0xb82   : > { %v5624_v42 = vmul.f32 0.2236068, %v5608_v31  ;;  %p7868_p6 = scmp.ne.s32.totalorder %s13692_s24, 4 }
 0xb84   : > { %v12279_v8 = vadd.f32 %v5624_v42, %v13657_v59  ;;  %4904 = vmatmul.f32.gmra.mxu2 %v8564_v48 }
 0xb86   : > { %v5648_v43 = vsel %vm2671_vm2, %v12279_v8, -inf }
 0xb87   : > { %5153 = vmax.xlane.f32.xlu2 %v5152_v56  ;;  %5649 = vmax.xlane.f32.xlu0 %v5648_v43  ;;  %v12309_v56 = vpop.f32.mrf.mxu2 }
 0xb88   : > { %13664 = vst [vmem:[#allocation97_spill] sm:$0xff] %v12309_v56 }
 0xb89   : > { %v5611_v62 = vpop.f32.mrf.mxu3 }
 0xb8a   : > { %v5625_v17 = vmul.f32 0.2236068, %v5611_v62 }
 0xb8c   : > { %v12289_v13 = vadd.f32 %v5625_v17, %v13657_v59  ;;  %4907 = vmatmul.f32.gmra.mxu2 %v12215_v60 }
 0xb8e   : > { %v5651_v45 = vsel %vm2671_vm2, %v12289_v13, -inf }
 0xb8f   : > { %5652 = vmax.xlane.f32.xlu0 %v5651_v45  ;;  %v12319_v52 = vpop.f32.mrf.mxu2 }
 0xb90   : > { %13665 = vst [vmem:[#allocation98_spill] sm:$0xff] %v12319_v52 }
 0xb94   : > { %4910 = vmatmul.f32.gmra.mxu2 %v12235_v47 }
 0xb97   : > { %5156 = vmax.xlane.f32.xlu0 %v5155_v26  ;;  %v12326_v47 = vpop.f32.mrf.mxu2 }
 0xb9a   : > { %v5346_v0 = vpop.xlane.xlu0 %5345 }
 0xb9b   : > { %v5368_v19 = vsub.f32 %v12127_v55, %v5346_v0 }
 0xb9d   : > { %v5376_v35 = vmul.f32 1.442695, %v5368_v19 }
 0xb9f   : > { %8347 = vpow2.f32 %v5376_v35 }
 0xba2   : > { %v5349_v46 = vpop.xlane.xlu1 %5348 }
 0xba3   : > { %v5369_v39 = vsub.f32 %v12137_v5, %v5349_v46 }
 0xba5   : > { %v12307_v31 = vpop.eup %8347  ;;  %v5378_v42 = vmul.f32 1.442695, %v5369_v39 }
 0xba6   : > { %v5392_v43 = vsel %vm2671_vm2, %v12307_v31, 0.0 }
 0xba7   : > { %8349 = vpow2.f32 %v5378_v42  ;;  %5393 = vadd.xlane.f32.xlu1 %v5392_v43 }
 0xbaa   : > { %v5352_v55 = vpop.xlane.xlu2 %5351 }
 0xbab   : > { %v5370_v62 = vsub.f32 %v12149_v30, %v5352_v55 }
 0xbad   : > { %v12315_v17 = vpop.eup %8349  ;;  %v5380_v5 = vmul.f32 1.442695, %v5370_v62 }
 0xbae   : > { %v5395_v60 = vsel %vm2671_vm2, %v12315_v17, 0.0 }
 0xbaf   : > { %8351 = vpow2.f32 %v5380_v5  ;;  %5396 = vadd.xlane.f32.xlu1 %v5395_v60 }
 0xbb2   : > { %v5355_v18 = vpop.xlane.xlu0 %5354 }
 0xbb3   : > { %v5371_v23 = vsub.f32 %v12159_v16, %v5355_v18  ;;  %v12333_v16 = vpop.f32.mrf.mxu2 }
 0xbb5   : > { %v12322_v45 = vpop.eup %8351  ;;  %v5382_v61 = vmul.f32 1.442695, %v5371_v23 }
 0xbb6   : > { %v5398_v30 = vsel %vm2671_vm2, %v12322_v45, 0.0 }
 0xbb7   : > { %8353 = vpow2.f32 %v5382_v61  ;;  %5399 = vadd.xlane.f32.xlu1 %v5398_v30 }
 0xbba   : > { %v5358_v26 = vpop.xlane.xlu1 %5357 }
 0xbbb   : > { %v5372_v0 = vsub.f32 %v12169_v11, %v5358_v26  ;;  %v12340_v11 = vpop.f32.mrf.mxu2 }
 0xbbd   : > { %v12329_v19 = vpop.eup %8353  ;;  %v5384_v48 = vmul.f32 1.442695, %v5372_v0 }
 0xbbe   : > { %v5401_v35 = vsel %vm2671_vm2, %v12329_v19, 0.0 }
 0xbbf   : > { %8355 = vpow2.f32 %v5384_v48  ;;  %5402 = vadd.xlane.f32.xlu1 %v5401_v35 }
 0xbc2   : > { %v5361_v46 = vpop.xlane.xlu2 %5360 }
 0xbc3   : > { %v5373_v39 = vsub.f32 %v12176_v25, %v5361_v46  ;;  %v12348_v30 = vpop.f32.mrf.mxu2 }
 0xbc5   : > { %v12336_v42 = vpop.eup %8355  ;;  %v5386_v43 = vmul.f32 1.442695, %v5373_v39  ;;  %v12353_v39 = vpop.f32.mrf.mxu0 }
 0xbc6   : > { %v5404_v55 = vsel %vm2671_vm2, %v12336_v42, 0.0 }
 0xbc7   : > { %8357 = vpow2.f32 %v5386_v43  ;;  %5405 = vadd.xlane.f32.xlu1 %v5404_v55 }
 0xbca   : > { %v5364_v62 = vpop.xlane.xlu0 %5363  ;;  %v5136_v5 = vpop.xlane.xlu2 %5135 }
 0xbcb   : > { %v5374_v60 = vsub.f32 %v12187_v36, %v5364_v62  ;;  %v5158_v61 = vsub.f32 %v12181_v9, %v5136_v5  ;;  %v12358_v55 = vpop.f32.mrf.mxu2  ;;  %v5614_v62 = vpop.f32.mrf.mxu3 }
 0xbcd   : > { %v12343_v18 = vpop.eup %8357  ;;  %v5388_v23 = vmul.f32 1.442695, %v5374_v60  ;;  %v5166_v26 = vmul.f32 1.442695, %v5158_v61 }
 0xbce   : > { %v5407_v25 = vsel %vm2671_vm2, %v12343_v18, 0.0 }
 0xbcf   : > { %8359 = vpow2.f32 %v5388_v23  ;;  %5408 = vadd.xlane.f32.xlu1 %v5407_v25 }
 0xbd0   : > { %8361 = vpow2.f32 %v5166_v26  ;;  %v12363_v26 = vpop.f32.mrf.mxu0 }
 0xbd2   : > { %v5139_v0 = vpop.xlane.xlu2 %5138  ;;  %v5367_v48 = vpop.xlane.xlu0 %5366 }
 0xbd3   : > { %v5375_v35 = vsub.f32 %v12202_v6, %v5367_v48  ;;  %v5159_v9 = vsub.f32 %v12196_v14, %v5139_v0  ;;  %v5626_v14 = vmul.f32 0.2236068, %v5614_v62  ;;  %v5617_v62 = vpop.f32.mrf.mxu3 }
 0xbd5   : > { %v12351_v46 = vpop.eup %8359  ;;  %v5390_v36 = vmul.f32 1.442695, %v5375_v35  ;;  %v5168_v5 = vmul.f32 1.442695, %v5159_v9  ;;  %v12372_v9 = vpop.f32.mrf.mxu2 }
 0xbd6   : > { %v5410_v43 = vsel %vm2671_vm2, %v12351_v46, 0.0  ;;  %v12360_v6 = vpop.eup %8361 }
 0xbd7   : > { %5411 = vadd.xlane.f32.xlu1 %v5410_v43  ;;  %8363 = vpow2.f32 %v5390_v36  ;;  %v5182_v35 = vsel %vm2671_vm2, %v12360_v6, 0.0 }
 0xbd8   : > { %8365 = vpow2.f32 %v5168_v5  ;;  %v12381_v52 = vpop.f32.mrf.mxu0 }
 0xbda   : > { %v5142_v60 = vpop.xlane.xlu2 %5141  ;;  %v5638_v23 = vpop.xlane.xlu0 %5637 }
 0xbdb   : > { %v5660_v61 = vsub.f32 %v12220_v34, %v5638_v23  ;;  %v5160_v0 = vsub.f32 %v12211_v63, %v5142_v60 }
 0xbdd   : > { %v5668_v25 = vmul.f32 1.442695, %v5660_v61  ;;  %v12365_v48 = vpop.eup %8363  ;;  %v5170_v34 = vmul.f32 1.442695, %v5160_v0  ;;  %v12375_v61 = vadd.f32 %v5626_v14, %v13657_v59 }
 0xbde   : > { %v5413_v36 = vsel %vm2671_vm2, %v12365_v48, 0.0  ;;  %v12378_v5 = vpop.eup %8365 }
 0xbdf   : > { %5183 = vadd.xlane.f32.xlu1 %v5182_v35  ;;  %8367 = vpow2.f32 %v5668_v25  ;;  %5414 = vadd.xlane.f32.xlu2 %v5413_v36  ;;  %v5627_v36 = vmul.f32 0.2236068, %v5617_v62  ;;  %v5654_v0 = vsel %vm2671_vm2, %v12375_v61, -inf  ;;  %v5185_v14 = vsel %vm2671_vm2, %v12378_v5, 0.0 }
 0xbe0   : > { %8369 = vpow2.f32 %v5170_v34 }
 0xbe1   : > { %v12394_v34 = vadd.f32 %v5627_v36, %v13657_v59 }
 0xbe2   : > { %v5145_v43 = vpop.xlane.xlu2 %5144  ;;  %v5641_v23 = vpop.xlane.xlu0 %5640 }
 0xbe3   : > { %v5661_v63 = vsub.f32 %v12240_v32, %v5641_v23  ;;  %v5161_v60 = vsub.f32 %v12231_v28, %v5145_v43  ;;  %v12391_v28 = vpop.f32.mrf.mxu2 }
 0xbe5   : > { %v5670_v35 = vmul.f32 1.442695, %v5661_v63  ;;  %v12383_v25 = vpop.eup %8367  ;;  %v5172_v43 = vmul.f32 1.442695, %v5161_v60  ;;  %v5657_v60 = vsel %vm2671_vm2, %v12394_v34, -inf }
 0xbe6   : > { %v5684_v32 = vsel %vm2671_vm2, %v12383_v25, 0.0  ;;  %v12398_v56 = vpop.eup %8369 }
 0xbe7   : > { %5655 = vmax.xlane.f32.xlu1 %v5654_v0  ;;  %8371 = vpow2.f32 %v5670_v35  ;;  %5186 = vadd.xlane.f32.xlu2 %v5185_v14  ;;  %v12400_v35 = vpop.f32.mrf.mxu0  ;;  %v5188_v36 = vsel %vm2671_vm2, %v12398_v56, 0.0 }
 0xbe8   : > { %5685 = vadd.xlane.f32.xlu0 %v5684_v32  ;;  %8373 = vpow2.f32 %v5172_v43 }
 0xbea   : > { %v5148_v23 = vpop.xlane.xlu2 %5147  ;;  %v5644_v63 = vpop.xlane.xlu0 %5643 }
 0xbeb   : > { %v5162_v62 = vsub.f32 %v12249_v22, %v5148_v23  ;;  %v5662_v0 = vsub.f32 %v12255_v50, %v5644_v63  ;;  %v12410_v50 = vpop.f32.mrf.mxu2 }
 0xbed   : > { %v5174_v10 = vmul.f32 1.442695, %v5162_v62  ;;  %v5672_v49 = vmul.f32 1.442695, %v5662_v0  ;;  %v12402_v14 = vpop.eup %8371 }
 0xbee   : > { %v5687_v22 = vsel %vm2671_vm2, %v12402_v14, 0.0  ;;  %v12412_v23 = vpop.eup %8373 }
 0xbef   : > { %8375 = vpow2.f32 %v5174_v10  ;;  %5658 = vmax.xlane.f32.xlu1 %v5657_v60  ;;  %5189 = vadd.xlane.f32.xlu2 %v5188_v36  ;;  %v4820_v59 = vpop.f32.mrf.mxu0 }
 0xbf0   : > { %8377 = vpow2.f32 %v5672_v49  ;;  %5688 = vadd.xlane.f32.xlu0 %v5687_v22  ;;  %v5191_v49 = vsel %vm2671_vm2, %v12412_v23, 0.0 }
 0xbf2   : > { %v5151_v32 = vpop.xlane.xlu2 %5150  ;;  %v5647_v43 = vpop.xlane.xlu0 %5646 }
 0xbf3   : > { %v5163_v63 = vsub.f32 %v12262_v44, %v5151_v32  ;;  %v5663_v10 = vsub.f32 %v12266_v38, %v5647_v43  ;;  %v12426_v38 = vpop.f32.mrf.mxu2 }
 0xbf5   : > { %v12416_v62 = vpop.eup %8375  ;;  %v5176_v0 = vmul.f32 1.442695, %v5163_v63  ;;  %v5674_v60 = vmul.f32 1.442695, %v5663_v10 }
 0xbf6   : > { %v12418_v51 = vpop.eup %8377  ;;  %v5194_v36 = vsel %vm2671_vm2, %v12416_v62, 0.0 }
 0xbf7   : > { %8379 = vpow2.f32 %v5176_v0  ;;  %5192 = vadd.xlane.f32.xlu1 %v5191_v49  ;;  %v5690_v44 = vsel %vm2671_vm2, %v12418_v51, 0.0  ;;  %v4823_v0 = vpop.f32.mrf.mxu0 }
 0xbf8   : > { %8381 = vpow2.f32 %v5674_v60  ;;  %5691 = vadd.xlane.f32.xlu2 %v5690_v44  ;;  %5195 = vadd.xlane.f32.xlu0 %v5194_v36 }
 0xbfa   : > { %v5154_v22 = vpop.xlane.xlu2 %5153  ;;  %v5650_v32 = vpop.xlane.xlu0 %5649 }
 0xbfb   : > { %v5164_v43 = vsub.f32 %v12275_v7, %v5154_v22  ;;  %v5664_v63 = vsub.f32 %v12279_v8, %v5650_v32  ;;  %v12438_v8 = vpop.f32.mrf.mxu2 }
 0xbfd   : > { %v12430_v10 = vpop.eup %8379  ;;  %v5178_v37 = vmul.f32 1.442695, %v5164_v43  ;;  %v5676_v1 = vmul.f32 1.442695, %v5664_v63 }
 0xbfe   : > { %v12432_v49 = vpop.eup %8381  ;;  %v5197_v60 = vsel %vm2671_vm2, %v12430_v10, 0.0 }
 0xbff   : > { %8383 = vpow2.f32 %v5178_v37  ;;  %v5693_v36 = vsel %vm2671_vm2, %v12432_v49, 0.0  ;;  %v4826_v43 = vpop.f32.mrf.mxu0 }
 0xc00   : > { %8385 = vpow2.f32 %v5676_v1  ;;  %5198 = vadd.xlane.f32.xlu2 %v5197_v60  ;;  %5694 = vadd.xlane.f32.xlu1 %v5693_v36  ;;  %v12450_v60 = vld [vmem:[%s10026_s3] sm:$0xff] }
 0xc01   : > { %v4571_v36 = vperm.slane %v12450_v60, 5 }
 0xc02   : > { %v5653_v7 = vpop.xlane.xlu0 %5652 }
 0xc03   : > { %v5665_v44 = vsub.f32 %v12289_v13, %v5653_v7  ;;  %v12453_v7 = vpop.f32.mrf.mxu2  ;;  %v4827_v15 = vadd.f32 %v4826_v43, %v4571_v36 }
 0xc05   : > { %v12441_v22 = vpop.eup %8383  ;;  %v5678_v32 = vmul.f32 1.442695, %v5665_v44 }
 0xc06   : > { %v12443_v63 = vpop.eup %8385  ;;  %v5200_v37 = vsel %vm2671_vm2, %v12441_v22, 0.0 }
 0xc07   : > { %8387 = vpow2.f32 %v5678_v32  ;;  %v5696_v1 = vsel %vm2671_vm2, %v12443_v63, 0.0  ;;  %v4829_v12 = vpop.f32.mrf.mxu0 }
 0xc08   : > { %5201 = vadd.xlane.f32.xlu1 %v5200_v37  ;;  %5697 = vadd.xlane.f32.xlu0 %v5696_v1  ;;  %v4830_v40 = vadd.f32 %v4829_v12, %v4571_v36  ;;  %v4824_v37 = vadd.f32 %v4823_v0, %v4571_v36  ;;  %v4821_v1 = vadd.f32 %v4820_v59, %v4571_v36  ;;  %v5009_v0 = vld [vmem:[%s10032_s29 + $0x68] sm:$0xff] }
 0xc0a   : > { %v5157_v13 = vpop.xlane.xlu0 %5156  ;;  %5254 = vmatpush.msra.mxu2 %v4830_v40  ;;  %v4812_v40 = vadd.f32 %v12363_v26, %v4571_v36 }
 0xc0b   : > { %v5165_v44 = vsub.f32 %v12296_v53, %v5157_v13  ;;  %v12460_v21 = vpop.f32.mrf.mxu2  ;;  %v4818_v53 = vadd.f32 %v12400_v35, %v4571_v36  ;;  %v5011_v35 = vld [vmem:[%s10032_s29 + $0x78] sm:$0xff] }
 0xc0c   : > { %5255 = vmatpush.msra.mxu2 %v4827_v15  ;;  %v4809_v15 = vadd.f32 %v12353_v39, %v4571_v36 }
 0xc0d   : > { %v12456_v41 = vpop.eup %8387  ;;  %v5180_v3 = vmul.f32 1.442695, %v5165_v44  ;;  %v4815_v44 = vadd.f32 %v12381_v52, %v4571_v36  ;;  %v5010_v52 = vld [vmem:[%s10032_s29 + $0x70] sm:$0xff]  ;;  %v5008_v36 = vld [vmem:[%s10032_s29 + $0x60] sm:$0xff] }
 0xc0e   : > { %v5699_v32 = vsel %vm2671_vm2, %v12456_v41, 0.0  ;;  %5256 = vmatpush.msra.mxu2 %v4824_v37  ;;  %v5007_v37 = vld [vmem:[%s10032_s29 + $0x58] sm:$0xff] }
 0xc0f   : > { %8389 = vpow2.f32 %v5180_v3  ;;  %5700 = vadd.xlane.f32.xlu2 %v5699_v32 }
 0xc10   : > { %5257 = vmatpush.msra.mxu2 %v4821_v1  ;;  %v5006_v1 = vld [vmem:[%s10032_s29 + $0x50] sm:$0xff] }
 0xc12   : > { %5258 = vmatpush.msra.mxu2 %v4818_v53  ;;  %v5005_v53 = vld [vmem:[%s10032_s29 + $0x48] sm:$0xff] }
 0xc13   : > { %v4902_v59 = vpop.f32.mrf.mxu2 }
 0xc14   : > { %5259 = vmatpush.msra.mxu2 %v4815_v44 }
 0xc15   : > { %v12463_v13 = vpop.eup %8389 }
 0xc16   : > { %v5203_v12 = vsel %vm2671_vm2, %v12463_v13, 0.0  ;;  %5260 = vmatpush.msra.mxu2 %v4812_v40 }
 0xc17   : > { %5204 = vadd.xlane.f32.xlu0 %v5203_v12 }
 0xc18   : > { %5261 = vmatpush.msra.mxu2 %v4809_v15  ;;  %v5004_v15 = vld [vmem:[%s10032_s29 + $0x40] sm:$0xff] }
 0xc1a   : > { %v5394_v3 = vpop.xlane.xlu1 %5393  ;;  %5538 = vmatpush.msrb.mxu2 %v5011_v35  ;;  %v5002_v35 = vld [vmem:[%s10032_s29 + $0x30] sm:$0xff] }
 0xc1b   : > { %8391 = vrcp.f32 %v5394_v3  ;;  %v4905_v39 = vpop.f32.mrf.mxu2  ;;  %v5003_v3 = vld [vmem:[%s10032_s29 + $0x38] sm:$0xff] }
 0xc1c   : > { %5539 = vmatpush.msrb.mxu2 %v5010_v52  ;;  %v4573_v52 = vperm.slane %v12450_v60, 7 }
 0xc1e   : > { %5540 = vmatpush.msrb.mxu2 %v5009_v0  ;;  %v5001_v0 = vld [vmem:[%s10032_s29 + $0x28] sm:$0xff] }
 0xc20   : > { %5541 = vmatpush.msrb.mxu2 %v5008_v36 }
 0xc21   : > { %v8392_v43 = vpop.eup %8391 }
 0xc22   : > { %v5424_v26 = vmul.f32 %v8392_v43, %v12307_v31  ;;  %v5397_v32 = vpop.xlane.xlu1 %5396  ;;  %5542 = vmatpush.msrb.mxu2 %v5007_v37 }
 0xc23   : > { %8393 = vrcp.f32 %v5397_v32  ;;  %v4908_v40 = vpop.f32.mrf.mxu2 }
 0xc24   : > { %7836 = vmatmul.msk.f32.vlgmr.msra.gmra.mxu0 %vm2671_vm2, %v5424_v26  ;;  %5543 = vmatpush.msrb.mxu2 %v5006_v1  ;;  %v4909_v36 = vadd.f32 %v4908_v40, %v4573_v52  ;;  %v5000_v1 = vld [vmem:[%s10032_s29 + $0x20] sm:$0xff] }
 0xc26   : > { %5544 = vmatpush.msrb.mxu2 %v5005_v53  ;;  %v4906_v53 = vadd.f32 %v4905_v39, %v4573_v52  ;;  %v4894_v39 = vadd.f32 %v12438_v8, %v4573_v52  ;;  %v5026_v8 = vld [vmem:[%s10032_s29 + $0xf0] sm:$0xff] }
 0xc28   : > { %5545 = vmatpush.msrb.mxu2 %v5004_v15 }
 0xc29   : > { %v8394_v44 = vpop.eup %8393 }
 0xc2a   : > { %v5400_v12 = vpop.xlane.xlu1 %5399  ;;  %v5425_v31 = vmul.f32 %v8394_v44, %v12315_v17  ;;  %5546 = vmatpush.msrb.mxu2 %v5003_v3  ;;  %v4999_v44 = vld [vmem:[%s10032_s29 + $0x18] sm:$0xff] }
 0xc2b   : > { %8395 = vrcp.f32 %v5400_v12  ;;  %v4911_v32 = vpop.f32.mrf.mxu2  ;;  %v4903_v12 = vadd.f32 %v4902_v59, %v4573_v52  ;;  %v4996_v59 = vld [vmem:[%s10032_s29] sm:$0xff] }
 0xc2c   : > { %7837 = vmatmul.msk.f32.gmra.mxu0 %vm2671_vm2, %v5425_v31  ;;  %5547 = vmatpush.msrb.mxu2 %v5002_v35  ;;  %v4912_v37 = vadd.f32 %v4911_v32, %v4573_v52  ;;  %v4998_v31 = vld [vmem:[%s10032_s29 + $0x10] sm:$0xff]  ;;  %v4997_v35 = vld [vmem:[%s10032_s29 + $0x8] sm:$0xff] }
 0xc2e   : > { %5548 = vmatpush.msrb.mxu2 %v5001_v0  ;;  %5756 = vmatpush.msrb.mxu0 %v4912_v37  ;;  %v4897_v0 = vadd.f32 %v12453_v7, %v4573_v52  ;;  %v5022_v37 = vld [vmem:[%s10032_s29 + $0xd0] sm:$0xff] }
 0xc30   : > { %5549 = vmatpush.msrb.mxu2 %v5000_v1  ;;  %5757 = vmatpush.msrb.mxu0 %v4909_v36  ;;  %v5024_v36 = vld [vmem:[%s10032_s29 + $0xe0] sm:$0xff]  ;;  %v5021_v1 = vld [vmem:[%s10032_s29 + $0xc8] sm:$0xff] }
 0xc31   : > { %v8396_v43 = vpop.eup %8395 }
 0xc32   : > { %v5403_v26 = vpop.xlane.xlu1 %5402  ;;  %v5426_v17 = vmul.f32 %v8396_v43, %v12322_v45  ;;  %5550 = vmatpush.msrb.mxu2 %v4999_v44  ;;  %v4900_v45 = vadd.f32 %v12460_v21, %v4573_v52  ;;  %5758 = vmatpush.msrb.mxu0 %v4906_v53  ;;  %v4891_v21 = vadd.f32 %v12426_v38, %v4573_v52  ;;  %v12510_v53 = vpop.f32.mrf.mxu0 }
 0xc33   : > { %8397 = vrcp.f32 %v5403_v26  ;;  %v5027_v26 = vld [vmem:[%s10032_s29 + $0xf8] sm:$0xff] }
 0xc34   : > { %7838 = vmatmul.msk.f32.gmra.mxu0 %vm2671_vm2, %v5426_v17  ;;  %5551 = vmatpush.msrb.mxu2 %v4998_v31  ;;  %v5025_v17 = vld [vmem:[%s10032_s29 + $0xe8] sm:$0xff]  ;;  %v5020_v31 = vld [vmem:[%s10032_s29 + $0xc0] sm:$0xff] }
 0xc35   : > { %5759 = vmatpush.msrb.mxu0 %v4903_v12  ;;  %5497 = vmatpush.msra.mxu1 %v5027_v26 }
 0xc36   : > { %5552 = vmatpush.msrb.mxu2 %v4997_v35  ;;  %v5017_v35 = vld [vmem:[%s10032_s29 + $0xa8] sm:$0xff] }
 0xc37   : > { %5760 = vmatpush.msrb.mxu0 %v4900_v45  ;;  %5498 = vmatpush.msra.mxu1 %v5026_v8  ;;  %v5019_v45 = vld [vmem:[%s10032_s29 + $0xb8] sm:$0xff] }
 0xc38   : > { %5553 = vmatpush.msrb.mxu2 %v4996_v59 }
 0xc39   : > { %v8398_v15 = vpop.eup %8397  ;;  %5761 = vmatpush.msrb.mxu0 %v4897_v0  ;;  %5499 = vmatpush.msra.mxu1 %v5025_v17 }
 0xc3a   : > { %v5406_v40 = vpop.xlane.xlu1 %5405  ;;  %v5427_v3 = vmul.f32 %v8398_v15, %v12329_v19 }
 0xc3b   : > { %8399 = vrcp.f32 %v5406_v40  ;;  %5762 = vmatpush.msrb.mxu0 %v4894_v39  ;;  %5500 = vmatpush.msra.mxu1 %v5024_v36  ;;  %v5018_v40 = vld [vmem:[%s10032_s29 + $0xb0] sm:$0xff] }
 0xc3c   : > { %7839 = vmatmul.msk.f32.gmra.mxu0 %vm2671_vm2, %v5427_v3  ;;  %v12518_v3 = vperm.slane %v12450_v60, 3 }
 0xc3d   : > { %5763 = vmatpush.msrb.mxu0 %v4891_v21 }
 0xc41   : > { %v8400_v19 = vpop.eup %8399 }
 0xc42   : > { %v5409_v7 = vpop.xlane.xlu1 %5408  ;;  %v5428_v43 = vmul.f32 %v8400_v19, %v12336_v42  ;;  %v5023_v42 = vld [vmem:[%s10032_s29 + $0xd8] sm:$0xff]  ;;  %v12524_v19 = vpop.f32.mrf.mxu0 }
 0xc43   : > { %8401 = vrcp.f32 %v5409_v7  ;;  %5501 = vmatpush.msra.mxu1 %v5023_v42  ;;  %v5016_v7 = vld [vmem:[%s10032_s29 + $0xa0] sm:$0xff] }
 0xc44   : > { %7840 = vmatmul.msk.f32.gmra.mxu0 %vm2671_vm2, %v5428_v43 }
 0xc45   : > { %5502 = vmatpush.msra.mxu1 %v5022_v37 }
 0xc47   : > { %5503 = vmatpush.msra.mxu1 %v5021_v1 }
 0xc49   : > { %v8402_v38 = vpop.eup %8401  ;;  %5504 = vmatpush.msra.mxu1 %v5020_v31 }
 0xc4a   : > { %v5412_v52 = vpop.xlane.xlu1 %5411  ;;  %v5429_v32 = vmul.f32 %v8402_v38, %v12343_v18  ;;  %v5014_v38 = vld [vmem:[%s10032_s29 + $0x90] sm:$0xff] }
 0xc4b   : > { %8403 = vrcp.f32 %v5412_v52  ;;  %5505 = vmatpush.msra.mxu1 %v5019_v45  ;;  %v5013_v52 = vld [vmem:[%s10032_s29 + $0x88] sm:$0xff] }
 0xc4c   : > { %7841 = vmatmul.msk.f32.gmra.mxu0 %vm2671_vm2, %v5429_v32 }
 0xc4d   : > { %5506 = vmatpush.msra.mxu1 %v5018_v40  ;;  %v4739_v40 = vadd.f32 %v12358_v55, %v12518_v3 }
 0xc4f   : > { %5507 = vmatpush.msra.mxu1 %v5017_v35  ;;  %v5040_v35 = vld [vmem:[%s10032_s29 + $0x160] sm:$0xff] }
 0xc51   : > { %v8404_v44 = vpop.eup %8403  ;;  %5508 = vmatpush.msra.mxu1 %v5016_v7  ;;  %v5039_v7 = vld [vmem:[%s10032_s29 + $0x158] sm:$0xff] }
 0xc52   : > { %v5184_v12 = vpop.xlane.xlu1 %5183  ;;  %v5430_v18 = vmul.f32 %v8404_v44, %v12351_v46  ;;  %v5415_v15 = vpop.xlane.xlu2 %5414  ;;  %v4748_v46 = vadd.f32 %v12410_v50, %v12518_v3  ;;  %v5015_v50 = vld [vmem:[%s10032_s29 + $0x98] sm:$0xff] }
 0xc53   : > { %8405 = vrcp.f32 %v5184_v12  ;;  %5509 = vmatpush.msra.mxu1 %v5015_v50  ;;  %v5036_v50 = vld [vmem:[%s10032_s29 + $0x140] sm:$0xff] }
 0xc54   : > { %8407 = vrcp.f32 %v5415_v15  ;;  %7842 = vmatmul.msk.f32.gmra.mxu0 %vm2671_vm2, %v5430_v18  ;;  %v5043_v18 = vld [vmem:[%s10032_s29 + $0x178] sm:$0xff] }
 0xc55   : > { %5510 = vmatpush.msra.mxu1 %v5014_v38 }
 0xc57   : > { %5511 = vmatpush.msra.mxu1 %v5013_v52 }
 0xc59   : > { %v8406_v0 = vpop.eup %8405 }
 0xc5a   : > { %v8408_v59 = vpop.eup %8407  ;;  %v5214_v39 = vmul.f32 %v8406_v0, %v12360_v6  ;;  %v5656_v21 = vpop.xlane.xlu1 %5655 }
 0xc5b   : > { %v5666_v43 = vsub.f32 %v12375_v61, %v5656_v21  ;;  %v5187_v26 = vpop.xlane.xlu2 %5186  ;;  %v5686_v8 = vpop.xlane.xlu0 %5685  ;;  %v5431_v17 = vmul.f32 %v8408_v59, %v12365_v48  ;;  %v4745_v61 = vadd.f32 %v12391_v28, %v12518_v3  ;;  %v5012_v48 = vld [vmem:[%s10032_s29 + $0x80] sm:$0xff]  ;;  %v4742_v28 = vadd.f32 %v12372_v9, %v12518_v3 }
 0xc5c   : > { %8409 = vrcp.f32 %v5187_v26  ;;  %7828 = vmatmul.msk.f32.vlgmr.msra.gmra.mxu2 %vm2671_vm2, %v5214_v39  ;;  %5512 = vmatpush.msra.mxu1 %v5012_v48  ;;  %v5035_v48 = vld [vmem:[%s10032_s29 + $0x138] sm:$0xff] }
 0xc5d   : > { %v5680_v6 = vmul.f32 1.442695, %v5666_v43  ;;  %8411 = vrcp.f32 %v5686_v8  ;;  %7843 = vmatmul.msk.f32.gmra.mxu0 %vm2671_vm2, %v5431_v17  ;;  %5846 = vmatpush.xpose.msra.mxu2 %v4748_v46  ;;  %v4736_v43 = vadd.f32 %v12348_v30, %v12518_v3  ;;  %v5038_v8 = vld [vmem:[%s10032_s29 + $0x150] sm:$0xff]  ;;  %v5037_v17 = vld [vmem:[%s10032_s29 + $0x148] sm:$0xff] }
 0xc5e   : > { %5789 = vmatpush.msrb.mxu1 %v5043_v18 }
 0xc5f   : > { %8413 = vpow2.f32 %v5680_v6 }
 0xc61   : > { %5847 = vmatpush.xpose.msra.mxu2 %v4745_v61 }
 0xc62   : > { %v8410_v32 = vpop.eup %8409  ;;  %v5659_v36 = vpop.xlane.xlu1 %5658 }
 0xc63   : > { %v8412_v42 = vpop.eup %8411  ;;  %v5667_v37 = vsub.f32 %v12394_v34, %v5659_v36  ;;  %v5190_v1 = vpop.xlane.xlu2 %5189  ;;  %v5215_v12 = vmul.f32 %v8410_v32, %v12378_v5  ;;  %v5042_v5 = vld [vmem:[%s10032_s29 + $0x170] sm:$0xff] }
 0xc64   : > { %v5689_v44 = vpop.xlane.xlu0 %5688  ;;  %v5716_v31 = vmul.f32 %v8412_v42, %v12383_v25  ;;  %8415 = vrcp.f32 %v5190_v1  ;;  %v12546_v34 = vpop.f32.mrf.mxu0  ;;  %v5041_v25 = vld [vmem:[%s10032_s29 + $0x168] sm:$0xff]  ;;  %5790 = vmatpush.msrb.mxu1 %v5042_v5  ;;  %v4730_v42 = vadd.f32 %v12333_v16, %v12518_v3 }
 0xc65   : > { %v12543_v15 = vpop.eup %8413  ;;  %v5682_v45 = vmul.f32 1.442695, %v5667_v37  ;;  %8417 = vrcp.f32 %v5689_v44  ;;  %7829 = vmatmul.msk.f32.gmra.mxu2 %vm2671_vm2, %v5215_v12  ;;  %v5033_v37 = vld [vmem:[%s10032_s29 + $0x128] sm:$0xff]  ;;  %v5032_v44 = vld [vmem:[%s10032_s29 + $0x120] sm:$0xff]  ;;  %v5031_v12 = vld [vmem:[%s10032_s29 + $0x118] sm:$0xff] }
 0xc66   : > { %7844 = vmatmul.msk.f32.vlgmr.msrb.gmra.mxu0 %vm2671_vm2, %v5716_v31  ;;  %5848 = vmatpush.xpose.msra.mxu2 %v4742_v28  ;;  %v5702_v9 = vsel %vm2671_vm2, %v12543_v15, 0.0 }
 0xc67   : > { %8419 = vpow2.f32 %v5682_v45  ;;  %5703 = vadd.xlane.f32.xlu1 %v5702_v9  ;;  %5791 = vmatpush.msrb.mxu1 %v5041_v25  ;;  %v5030_v9 = vld [vmem:[%s10032_s29 + $0x110] sm:$0xff]  ;;  %v5028_v25 = vld [vmem:[%s10032_s29 + $0x100] sm:$0xff] }
 0xc69   : > { %5792 = vmatpush.msrb.mxu1 %v5040_v35 }
 0xc6a   : > { %v8416_v0 = vpop.eup %8415  ;;  %5849 = vmatpush.xpose.msra.mxu2 %v4739_v40  ;;  %v5193_v46 = vpop.xlane.xlu1 %5192 }
 0xc6b   : > { %v8418_v59 = vpop.eup %8417  ;;  %8421 = vrcp.f32 %v5193_v46  ;;  %v5692_v39 = vpop.xlane.xlu2 %5691  ;;  %v5216_v21 = vmul.f32 %v8416_v0, %v12398_v56  ;;  %5793 = vmatpush.msrb.mxu1 %v5039_v7 }
 0xc6c   : > { %8423 = vrcp.f32 %v5692_v39  ;;  %v5717_v55 = vmul.f32 %v8418_v59, %v12402_v14  ;;  %v5196_v6 = vpop.xlane.xlu0 %5195  ;;  %v12569_v30 = vpop.f32.mrf.mxu0  ;;  %v4733_v14 = vadd.f32 %v12340_v11, %v12518_v3  ;;  %v5034_v11 = vld [vmem:[%s10032_s29 + $0x130] sm:$0xff] }
 0xc6d   : > { %v12561_v26 = vpop.eup %8419  ;;  %7830 = vmatmul.msk.f32.gmra.mxu2 %vm2671_vm2, %v5216_v21  ;;  %5794 = vmatpush.msrb.mxu1 %v5038_v8  ;;  %8425 = vrcp.f32 %v5196_v6 }
 0xc6e   : > { %7845 = vmatmul.msk.f32.gmra.mxu0 %vm2671_vm2, %v5717_v55  ;;  %5850 = vmatpush.xpose.msra.mxu2 %v4736_v43  ;;  %v5705_v56 = vsel %vm2671_vm2, %v12561_v26, 0.0 }
 0xc6f   : > { %5706 = vadd.xlane.f32.xlu2 %v5705_v56  ;;  %5795 = vmatpush.msrb.mxu1 %v5037_v17  ;;  %v4570_v56 = vperm.slane %v12450_v60, 4 }
 0xc71   : > { %v8422_v38 = vpop.eup %8421  ;;  %5796 = vmatpush.msrb.mxu1 %v5036_v50  ;;  %v4789_v8 = vadd.f32 %v12029_v24, %v4570_v56  ;;  %v4774_v24 = vadd.f32 %v11982_v57, %v4570_v56 }
 0xc72   : > { %v8424_v61 = vpop.eup %8423  ;;  %5851 = vmatpush.xpose.msra.mxu2 %v4733_v14  ;;  %v5217_v52 = vmul.f32 %v8422_v38, %v12412_v23  ;;  %v4777_v14 = vadd.f32 %v11993_v54, %v4570_v56 }
 0xc73   : > { %v5695_v32 = vpop.xlane.xlu1 %5694  ;;  %v5718_v36 = vmul.f32 %v8424_v61, %v12418_v51  ;;  %5797 = vmatpush.msrb.mxu1 %v5035_v48  ;;  %v5199_v23 = vpop.xlane.xlu2 %5198  ;;  %v4727_v51 = vadd.f32 %v12326_v47, %v12518_v3  ;;  %v5029_v47 = vld [vmem:[%s10032_s29 + $0x108] sm:$0xff]  ;;  %v8566_v48 = vld [vmem:[%s10026_s3 + $0x8] sm:$0x3] }
 0xc74   : > { %8427 = vrcp.f32 %v5695_v32  ;;  %v8426_v1 = vpop.eup %8425  ;;  %v12586_v16 = vpop.f32.mrf.mxu0  ;;  %v4575_v57 = vperm.slane %v8566_v48, 1 }
 0xc75   : > { %7831 = vmatmul.msk.f32.gmra.mxu2 %vm2671_vm2, %v5217_v52  ;;  %5798 = vmatpush.msrb.mxu1 %v5034_v11  ;;  %8429 = vrcp.f32 %v5199_v23  ;;  %v5218_v31 = vmul.f32 %v8426_v1, %v12416_v62 }
 0xc76   : > { %7846 = vmatmul.msk.f32.gmra.mxu0 %vm2671_vm2, %v5718_v36  ;;  %5852 = vmatpush.xpose.msra.mxu2 %v4730_v42  ;;  %v4985_v1 = vadd.f32 %v12586_v16, %v4575_v57  ;;  %v4973_v16 = vadd.f32 %v12510_v53, %v4575_v57 }
 0xc77   : > { %5799 = vmatpush.msrb.mxu1 %v5033_v37 }
 0xc79   : > { %5800 = vmatpush.msrb.mxu1 %v5032_v44 }
 0xc7a   : > { %5853 = vmatpush.xpose.msra.mxu2 %v4727_v51  ;;  %v8428_v18 = vpop.eup %8427  ;;  %v4982_v51 = vadd.f32 %v12569_v30, %v4575_v57 }
 0xc7b   : > { %v5698_v28 = vpop.xlane.xlu0 %5697  ;;  %v5719_v45 = vmul.f32 %v8428_v18, %v12432_v49  ;;  %5801 = vmatpush.msrb.mxu1 %v5031_v12  ;;  %v5202_v3 = vpop.xlane.xlu1 %5201  ;;  %v4979_v18 = vadd.f32 %v12546_v34, %v4575_v57 }
 0xc7c   : > { %8431 = vrcp.f32 %v5698_v28  ;;  %v8430_v5 = vpop.eup %8429  ;;  %v12597_v49 = vpop.f32.mrf.mxu0 }
 0xc7d   : > { %7832 = vmatmul.msk.f32.gmra.mxu2 %vm2671_vm2, %v5218_v31  ;;  %5802 = vmatpush.msrb.mxu1 %v5030_v9  ;;  %8433 = vrcp.f32 %v5202_v3  ;;  %v5219_v62 = vmul.f32 %v8430_v5, %v12430_v10  ;;  %v4988_v37 = vadd.f32 %v12597_v49, %v4575_v57  ;;  %v4976_v31 = vadd.f32 %v12524_v19, %v4575_v57  ;;  %v13666_v49 = vld [vmem:[#allocation85_spill] sm:$0xff] }
 0xc7e   : > { %7847 = vmatmul.msk.f32.gmra.mxu0 %vm2671_vm2, %v5719_v45 }
 0xc7f   : > { %5803 = vmatpush.msrb.mxu1 %v5029_v47 }
 0xc81   : > { %5804 = vmatpush.msrb.mxu1 %v5028_v25  ;;  %v8567_v25 = vld [vmem:[%s10015_s28] sm:$0x1f] }
 0xc82   : > { %v5701_v40 = vpop.xlane.xlu2 %5700  ;;  %v8432_v35 = vpop.eup %8431 }
 0xc83   : > { %8435 = vrcp.f32 %v5701_v40  ;;  %v5720_v0 = vmul.f32 %v8432_v35, %v12443_v63  ;;  %v8434_v46 = vpop.eup %8433  ;;  %v4190_v40 = vperm.slane %v8567_v25, 3 }
 0xc84   : > { %v5220_v7 = vmul.f32 %v8434_v46, %v12441_v22  ;;  %v4990_v10 = vpop.f32.mrf.mxu0  ;;  %v4783_v22 = vadd.f32 %v12005_v20, %v4570_v56  ;;  %v4768_v20 = vadd.f32 %v11971_v4, %v4570_v56  ;;  %v13667_v46 = vld [vmem:[#allocation86_spill] sm:$0xff] }
 0xc85   : > { %7833 = vmatmul.msk.f32.gmra.mxu2 %vm2671_vm2, %v5219_v62  ;;  %v4338_v35 = vadd.f32 %v11875_v33, %v4190_v40  ;;  %v4341_v62 = vadd.f32 %v11892_v58, %v4190_v40 }
 0xc86   : > { %7848 = vmatmul.msk.f32.gmra.mxu0 %vm2671_vm2, %v5720_v0  ;;  %v4344_v0 = vadd.f32 %v13666_v49, %v4190_v40 }
 0xc89   : > { %v8436_v59 = vpop.eup %8435 }
 0xc8a   : > { %v5205_v39 = vpop.xlane.xlu0 %5204  ;;  %v5721_v21 = vmul.f32 %v8436_v59, %v12456_v41  ;;  %v4786_v41 = vadd.f32 %v12018_v29, %v4570_v56  ;;  %v4771_v29 = vadd.f32 %v11973_v27, %v4570_v56  ;;  %v4991_v27 = vadd.f32 %v4990_v10, %v4575_v57 }
 0xc8b   : > { %8437 = vrcp.f32 %v5205_v39  ;;  %v4347_v59 = vadd.f32 %v13667_v46, %v4190_v40  ;;  %v13668_v39 = vld [vmem:[#allocation87_spill] sm:$0xff] }
 0xc8c   : > { %v4993_v55 = vpop.f32.mrf.mxu0 }
 0xc8d   : > { %7834 = vmatmul.msk.f32.gmra.mxu2 %vm2671_vm2, %v5220_v7  ;;  %v4994_v32 = vadd.f32 %v4993_v55, %v4575_v57  ;;  %v13669_v7 = vld [vmem:[#allocation88_spill] sm:$0xff]  ;;  %v13671_v55 = vld [vmem:[#allocation90_spill] sm:$0xff] }
 0xc8e   : > { %7849 = vmatmul.msk.f32.gmra.mxu0 %vm2671_vm2, %v5721_v21  ;;  %v4350_v21 = vadd.f32 %v13668_v39, %v4190_v40  ;;  %v4353_v10 = vadd.f32 %v13669_v7, %v4190_v40  ;;  %v4359_v58 = vadd.f32 %v13671_v55, %v4190_v40  ;;  %v13675_v57 = vld [vmem:[#allocation94_spill] sm:$0xff] }
 0xc91   : > { %v8438_v43 = vpop.eup %8437 }
 0xc92   : > { %v5221_v63 = vmul.f32 %v8438_v43, %v12463_v13  ;;  %v4780_v13 = vadd.f32 %v11998_v2, %v4570_v56  ;;  %v13670_v43 = vld [vmem:[#allocation89_spill] sm:$0xff] }
 0xc95   : > { %7835 = vmatmul.msk.f32.gmra.mxu2 %vm2671_vm2, %v5221_v63  ;;  %v4356_v63 = vadd.f32 %v13670_v43, %v4190_v40 }
 0xca1   : > { %v5473_v17 = vpop.f32.mrf.mxu0 }
 0xca2   : > { %5513 = vmatmul.f32.vlgmr.msra.gmra.mxu1 %v5473_v17 }
 0xca3   : > { %6105 = vmatpush.xpose.msra.mxu1 %v4789_v8 }
 0xca7   : > { %6106 = vmatpush.xpose.msra.mxu1 %v4786_v41 }
 0xca9   : > { %v5476_v6 = vpop.f32.mrf.mxu0 }
 0xcaa   : > { %5516 = vmatmul.f32.gmra.mxu1 %v5476_v6 }
 0xcab   : > { %6107 = vmatpush.xpose.msra.mxu1 %v4783_v22 }
 0xcaf   : > { %6108 = vmatpush.xpose.msra.mxu1 %v4780_v13  ;;  %v4191_v13 = vperm.slane %v8567_v25, 4 }
 0xcb1   : > { %v5479_v50 = vpop.f32.mrf.mxu0 }
 0xcb2   : > { %5519 = vmatmul.f32.gmra.mxu1 %v5479_v50 }
 0xcb3   : > { %6109 = vmatpush.xpose.msra.mxu1 %v4777_v14  ;;  %v13672_v14 = vld [vmem:[#allocation91_spill] sm:$0xff] }
 0xcb4   : > { %v4379_v50 = vadd.f32 %v13672_v14, %v4191_v13 }
 0xcb7   : > { %6110 = vmatpush.xpose.msra.mxu1 %v4774_v24 }
 0xcb9   : > { %v5482_v60 = vpop.f32.mrf.mxu0 }
 0xcba   : > { %5522 = vmatmul.f32.gmra.mxu1 %v5482_v60  ;;  %v13673_v60 = vld [vmem:[#allocation92_spill] sm:$0xff] }
 0xcbb   : > { %6111 = vmatpush.xpose.msra.mxu1 %v4771_v29 }
 0xcbf   : > { %6112 = vmatpush.xpose.msra.mxu1 %v4768_v20  ;;  %v4382_v20 = vadd.f32 %v13673_v60, %v4191_v13 }
 0xcc1   : > { %v5485_v38 = vpop.f32.mrf.mxu0 }
 0xcc2   : > { %5525 = vmatmul.f32.gmra.mxu1 %v5485_v38 }
 0xcc9   : > { %v5488_v2 = vpop.f32.mrf.mxu0 }
 0xcca   : > { %5528 = vmatmul.f32.gmra.mxu1 %v5488_v2 }
 0xcd1   : > { %v5491_v54 = vpop.f32.mrf.mxu0 }
 0xcd2   : > { %5531 = vmatmul.f32.gmra.mxu1 %v5491_v54  ;;  %v13674_v54 = vld [vmem:[#allocation93_spill] sm:$0xff] }
 0xcda   : > { %v5494_v61 = vpop.f32.mrf.mxu0  ;;  %v5704_v52 = vpop.xlane.xlu1 %5703 }
 0xcdb   : > { %8439 = vrcp.f32 %v5704_v52  ;;  %5534 = vmatmul.f32.gmra.mxu1 %v5494_v61  ;;  %v4385_v61 = vadd.f32 %v13674_v54, %v4191_v13 }
 0xcdf   : > { %v5263_v36 = vpop.f32.mrf.mxu2 }
 0xce0   : > { %5554 = vmatmul.f32.vlgmr.msrb.gmra.mxu2 %v5263_v36  ;;  %v13676_v36 = vld [vmem:[#allocation95_spill] sm:$0xff] }
 0xce1   : > { %v8440_v42 = vpop.eup %8439  ;;  %6274 = vmatpush.msrb.mxu2 %v4994_v32  ;;  %v4388_v32 = vadd.f32 %v13675_v57, %v4191_v13 }
 0xce2   : > { %v5707_v4 = vpop.xlane.xlu2 %5706  ;;  %v5722_v11 = vmul.f32 %v8440_v42, %v12543_v15  ;;  %v4391_v42 = vadd.f32 %v13676_v36, %v4191_v13 }
 0xce3   : > { %v5765_v23 = vpop.f32.mrf.mxu0  ;;  %8441 = vrcp.f32 %v5707_v4  ;;  %6275 = vmatpush.msrb.mxu2 %v4991_v27 }
 0xce4   : > { %5805 = vmatmul.f32.vlgmr.msrb.gmra.mxu1 %v5765_v23  ;;  %7850 = vmatmul.msk.f32.gmra.mxu0 %vm2671_vm2, %v5722_v11 }
 0xce5   : > { %6276 = vmatpush.msrb.mxu2 %v4988_v37  ;;  %v13677_v37 = vld [vmem:[#allocation96_spill] sm:$0xff] }
 0xce6   : > { %v4394_v23 = vadd.f32 %v13677_v37, %v4191_v13 }
 0xce7   : > { %6277 = vmatpush.msrb.mxu2 %v4985_v1 }
 0xce8   : > { %v5266_v44 = vpop.f32.mrf.mxu2 }
 0xce9   : > { %v8442_v12 = vpop.eup %8441  ;;  %5557 = vmatmul.f32.gmra.mxu2 %v5266_v44  ;;  %v13678_v44 = vld [vmem:[#allocation97_spill] sm:$0xff] }
 0xcea   : > { %6278 = vmatpush.msrb.mxu2 %v4982_v51  ;;  %v5723_v15 = vmul.f32 %v8442_v12, %v12561_v26  ;;  %v4397_v12 = vadd.f32 %v13678_v44, %v4191_v13 }
 0xceb   : > { %v5768_v28 = vpop.f32.mrf.mxu0 }
 0xcec   : > { %5808 = vmatmul.f32.gmra.mxu1 %v5768_v28  ;;  %6279 = vmatpush.msrb.mxu2 %v4979_v18 }
 0xced   : > { %7851 = vmatmul.msk.f32.gmra.mxu0 %vm2671_vm2, %v5723_v15 }
 0xcee   : > { %6280 = vmatpush.msrb.mxu2 %v4976_v31  ;;  %v13679_v31 = vld [vmem:[#allocation84_spill] sm:$0xff] }
 0xcf0   : > { %6281 = vmatpush.msrb.mxu2 %v4973_v16  ;;  %v5269_v30 = vpop.f32.mrf.mxu2 }
 0xcf1   : > { %5560 = vmatmul.f32.gmra.mxu2 %v5269_v30  ;;  %v13680_v30 = vld [vmem:[#allocation98_spill] sm:$0xff] }
 0xcf3   : > { %v5771_v45 = vpop.f32.mrf.mxu0 }
 0xcf4   : > { %5811 = vmatmul.f32.gmra.mxu1 %v5771_v45  ;;  %v4400_v45 = vadd.f32 %v13680_v30, %v4191_v13 }
 0xcf8   : > { %v5272_v9 = vpop.f32.mrf.mxu2 }
 0xcf9   : > { %5563 = vmatmul.f32.gmra.mxu2 %v5272_v9 }
 0xcfb   : > { %v5774_v34 = vpop.f32.mrf.mxu0 }
 0xcfc   : > { %5814 = vmatmul.f32.gmra.mxu1 %v5774_v34 }
 0xd00   : > { %v5275_v26 = vpop.f32.mrf.mxu2 }
 0xd01   : > { %5566 = vmatmul.f32.gmra.mxu2 %v5275_v26 }
 0xd03   : > { %v5777_v19 = vpop.f32.mrf.mxu0 }
 0xd04   : > { %5817 = vmatmul.f32.gmra.mxu1 %v5777_v19 }
 0xd08   : > { %v5278_v47 = vpop.f32.mrf.mxu2 }
 0xd09   : > { %5569 = vmatmul.f32.gmra.mxu2 %v5278_v47 }
 0xd0b   : > { %v5780_v3 = vpop.f32.mrf.mxu0 }
 0xd0c   : > { %5820 = vmatmul.f32.gmra.mxu1 %v5780_v3 }
 0xd10   : > { %v5281_v53 = vpop.f32.mrf.mxu2 }
 0xd11   : > { %5572 = vmatmul.f32.gmra.mxu2 %v5281_v53 }
 0xd18   : > { %v5284_v5 = vpop.f32.mrf.mxu2 }
 0xd19   : > { %5575 = vmatmul.f32.gmra.mxu2 %v5284_v5 }
 0xd1f   : > { %v12636_v33 = vpop.f32.mrf.mxu1 }
 0xd21   : > { %5854 = vmatmul.f32.vlgmr.msra.gmra.mxu2 %v4338_v35 }
 0xd27   : > { %v12639_v56 = vpop.f32.mrf.mxu1 }
 0xd29   : > { %5857 = vmatmul.f32.gmra.mxu2 %v4341_v62 }
 0xd2f   : > { %v12643_v41 = vpop.f32.mrf.mxu1 }
 0xd31   : > { %5860 = vmatmul.f32.gmra.mxu2 %v4344_v0 }
 0xd37   : > { %v12648_v24 = vpop.f32.mrf.mxu1 }
 0xd39   : > { %5863 = vmatmul.f32.gmra.mxu2 %v4347_v59 }
 0xd3f   : > { %v12655_v2 = vpop.f32.mrf.mxu1 }
 0xd41   : > { %5866 = vmatmul.f32.gmra.mxu2 %v4350_v21 }
 0xd47   : > { %v12660_v48 = vpop.f32.mrf.mxu1 }
 0xd49   : > { %5869 = vmatmul.f32.gmra.mxu2 %v4353_v10 }
 0xd4f   : > { %v12666_v4 = vpop.f32.mrf.mxu1 }
 0xd51   : > { %5872 = vmatmul.f32.gmra.mxu2 %v4356_v63 }
 0xd58   : > { %v12671_v1 = vpop.f32.mrf.mxu1 }
 0xd59   : > { %5875 = vmatmul.f32.gmra.mxu2 %v4359_v58 }
 0xd61   : > { %v5783_v8 = vpop.f32.mrf.mxu0  ;;  %v12676_v15 = vpop.f32.mrf.mxu1 }
 0xd62   : > { %5823 = vmatmul.f32.gmra.mxu1 %v5783_v8 }
 0xd63   : > { %v12641_v17 = vpop.f32.mrf.mxu2 }
 0xd69   : > { %v12684_v34 = vpop.f32.mrf.mxu1 }
 0xd6a   : > { %v5786_v22 = vpop.f32.mrf.mxu0 }
 0xd6b   : > { %5826 = vmatmul.f32.gmra.mxu1 %v5786_v22 }
 0xd6c   : > { %v12645_v6 = vpop.f32.mrf.mxu2 }
 0xd71   : > { %v12686_v26 = vpop.f32.mrf.mxu1 }
 0xd73   : > { %6113 = vmatmul.f32.vlgmr.msra.gmra.mxu1 %v4379_v50 }
 0xd74   : > { %v12650_v29 = vpop.f32.mrf.mxu2 }
 0xd79   : > { %v12688_v19 = vpop.f32.mrf.mxu1 }
 0xd7b   : > { %6116 = vmatmul.f32.gmra.mxu1 %v4382_v20 }
 0xd7c   : > { %v12653_v38 = vpop.f32.mrf.mxu2 }
 0xd81   : > { %v12690_v47 = vpop.f32.mrf.mxu1 }
 0xd83   : > { %6119 = vmatmul.f32.gmra.mxu1 %v4385_v61 }
 0xd84   : > { %v12658_v52 = vpop.f32.mrf.mxu2 }
 0xd89   : > { %v12692_v3 = vpop.f32.mrf.mxu1 }
 0xd8b   : > { %6122 = vmatmul.f32.gmra.mxu1 %v4388_v32 }
 0xd8c   : > { %v12663_v27 = vpop.f32.mrf.mxu2 }
 0xd93   : > { %6125 = vmatmul.f32.gmra.mxu1 %v4391_v42 }
 0xd94   : > { %v12668_v11 = vpop.f32.mrf.mxu2 }
 0xd9b   : > { %6128 = vmatmul.f32.gmra.mxu1 %v4394_v23 }
 0xd9c   : > { %v12673_v51 = vpop.f32.mrf.mxu2 }
 0xda3   : > { %6131 = vmatmul.f32.gmra.mxu1 %v4397_v12 }
 0xda4   : > { %v5855_v18 = vpop.f32.mrf.mxu2 }
 0xda5   : > { %v5879_v28 = vmul.f32 0.2236068, %v5855_v18 }
 0xda7   : > { %v12679_v16 = vadd.f32 %v5879_v28, %v13679_v31 }
 0xda9   : > { %v5895_v9 = vsel %vm2671_vm2, %v12679_v16, -inf }
 0xdaa   : > { %5896 = vmax.xlane.f32.xlu1 %v5895_v9 }
 0xdab   : > { %6134 = vmatmul.f32.gmra.mxu1 %v4400_v45 }
 0xdac   : > { %v5858_v5 = vpop.f32.mrf.mxu2 }
 0xdad   : > { %v5880_v0 = vmul.f32 0.2236068, %v5858_v5 }
 0xdaf   : > { %v12704_v39 = vadd.f32 %v5880_v0, %v13679_v31 }
 0xdb1   : > { %v5898_v55 = vsel %vm2671_vm2, %v12704_v39, -inf }
 0xdb4   : > { %v5861_v62 = vpop.f32.mrf.mxu2 }
 0xdb5   : > { %v5881_v43 = vmul.f32 0.2236068, %v5861_v62 }
 0xdb7   : > { %v12714_v8 = vadd.f32 %v5881_v43, %v13679_v31 }
 0xdb9   : > { %v5901_v60 = vsel %vm2671_vm2, %v12714_v8, -inf }
 0xdbc   : > { %v5864_v10 = vpop.f32.mrf.mxu2 }
 0xdbd   : > { %v5882_v14 = vmul.f32 0.2236068, %v5864_v10 }
 0xdbf   : > { %v12724_v61 = vadd.f32 %v5882_v14, %v13679_v31 }
 0xdc1   : > { %v5904_v37 = vsel %vm2671_vm2, %v12724_v61, -inf }
 0xdc4   : > { %v5867_v20 = vpop.f32.mrf.mxu2 }
 0xdc5   : > { %v5883_v36 = vmul.f32 0.2236068, %v5867_v20 }
 0xdc7   : > { %v12734_v12 = vadd.f32 %v5883_v36, %v13679_v31 }
 0xdc9   : > { %v5907_v9 = vsel %vm2671_vm2, %v12734_v12, -inf }
 0xdcc   : > { %v5870_v23 = vpop.f32.mrf.mxu2 }
 0xdcd   : > { %v5884_v30 = vmul.f32 0.2236068, %v5870_v23 }
 0xdd4   : > { %v5873_v62 = vpop.f32.mrf.mxu2 }
 0xddf   : > { %v12694_v53 = vpop.f32.mrf.mxu1 }
 0xde8   : > { %v12696_v25 = vpop.f32.mrf.mxu1 }
 0xdf0   : > { %v6114_v40 = vpop.f32.mrf.mxu1 }
 0xdf1   : > { %v6138_v35 = vmul.f32 0.2236068, %v6114_v40  ;;  %v12744_v40 = vadd.f32 %v5884_v30, %v13679_v31 }
 0xdf3   : > { %v12699_v49 = vadd.f32 %v6138_v35, %v13679_v31  ;;  %v5910_v10 = vsel %vm2671_vm2, %v12744_v40, -inf }
 0xdf5   : > { %v6154_v46 = vsel %vm2671_vm2, %v12699_v49, -inf }
 0xdf6   : > { %6155 = vmax.xlane.f32.xlu0 %v6154_v46  ;;  %v5885_v46 = vmul.f32 0.2236068, %v5873_v62 }
 0xdf8   : > { %v6117_v59 = vpop.f32.mrf.mxu1 }
 0xdf9   : > { %v6139_v21 = vmul.f32 0.2236068, %v6117_v59 }
 0xdfb   : > { %v12707_v7 = vadd.f32 %v6139_v21, %v13679_v31 }
 0xdfd   : > { %v6157_v63 = vsel %vm2671_vm2, %v12707_v7, -inf }
 0xdfe   : > { %6158 = vmax.xlane.f32.xlu2 %v6157_v63  ;;  %5899 = vmax.xlane.f32.xlu0 %v5898_v55 }
 0xe00   : > { %v6120_v58 = vpop.f32.mrf.mxu1 }
 0xe01   : > { %v6140_v22 = vmul.f32 0.2236068, %v6120_v58  ;;  %v12755_v58 = vadd.f32 %v5885_v46, %v13679_v31 }
 0xe03   : > { %v12717_v13 = vadd.f32 %v6140_v22, %v13679_v31 }
 0xe05   : > { %v6160_v50 = vsel %vm2671_vm2, %v12717_v13, -inf }
 0xe06   : > { %6161 = vmax.xlane.f32.xlu1 %v6160_v50  ;;  %5902 = vmax.xlane.f32.xlu2 %v5901_v60  ;;  %v5913_v60 = vsel %vm2671_vm2, %v12755_v58, -inf }
 0xe08   : > { %v6123_v54 = vpop.f32.mrf.mxu1 }
 0xe09   : > { %v6141_v57 = vmul.f32 0.2236068, %v6123_v54 }
 0xe0b   : > { %v12727_v32 = vadd.f32 %v6141_v57, %v13679_v31 }
 0xe0d   : > { %v6163_v42 = vsel %vm2671_vm2, %v12727_v32, -inf }
 0xe0e   : > { %6164 = vmax.xlane.f32.xlu0 %v6163_v42  ;;  %5905 = vmax.xlane.f32.xlu1 %v5904_v37 }
 0xe10   : > { %v6126_v44 = vpop.f32.mrf.mxu1 }
 0xe11   : > { %v6142_v18 = vmul.f32 0.2236068, %v6126_v44 }
 0xe13   : > { %v12737_v28 = vadd.f32 %v6142_v18, %v13679_v31 }
 0xe15   : > { %v6166_v45 = vsel %vm2671_vm2, %v12737_v28, -inf }
 0xe16   : > { %6167 = vmax.xlane.f32.xlu2 %v6166_v45  ;;  %5908 = vmax.xlane.f32.xlu0 %v5907_v9  ;;  %v5876_v45 = vpop.f32.mrf.mxu2 }
 0xe18   : > { %v6129_v5 = vpop.f32.mrf.mxu1 }
 0xe19   : > { %v6143_v35 = vmul.f32 0.2236068, %v6129_v5 }
 0xe1b   : > { %v12747_v0 = vadd.f32 %v6143_v35, %v13679_v31 }
 0xe1d   : > { %v5897_v59 = vpop.xlane.xlu1 %5896  ;;  %v6169_v21 = vsel %vm2671_vm2, %v12747_v0, -inf }
 0xe1e   : > { %v5919_v43 = vsub.f32 %v12679_v16, %v5897_v59  ;;  %6170 = vmax.xlane.f32.xlu1 %v6169_v21  ;;  %5911 = vmax.xlane.f32.xlu2 %v5910_v10  ;;  %v5886_v59 = vmul.f32 0.2236068, %v5876_v45 }
 0xe20   : > { %v5927_v63 = vmul.f32 1.442695, %v5919_v43  ;;  %v6132_v55 = vpop.f32.mrf.mxu1 }
 0xe21   : > { %v6144_v22 = vmul.f32 0.2236068, %v6132_v55 }
 0xe22   : > { %8443 = vpow2.f32 %v5927_v63 }
 0xe23   : > { %v12758_v14 = vadd.f32 %v6144_v22, %v13679_v31 }
 0xe25   : > { %v6172_v50 = vsel %vm2671_vm2, %v12758_v14, -inf }
 0xe26   : > { %6173 = vmax.xlane.f32.xlu0 %v6172_v50  ;;  %5914 = vmax.xlane.f32.xlu1 %v5913_v60 }
 0xe28   : > { %v6135_v16 = vpop.f32.mrf.mxu1  ;;  %v12764_v54 = vpop.eup %8443 }
 0xe29   : > { %v6145_v20 = vmul.f32 0.2236068, %v6135_v16  ;;  %v5943_v36 = vsel %vm2671_vm2, %v12764_v54, 0.0 }
 0xe2b   : > { %v12767_v57 = vadd.f32 %v6145_v20, %v13679_v31 }
 0xe2d   : > { %v6175_v42 = vsel %vm2671_vm2, %v12767_v57, -inf }
 0xe2e   : > { %5944 = vadd.xlane.f32.xlu0 %v5943_v36  ;;  %6176 = vmax.xlane.f32.xlu1 %v6175_v42 }
 0xe69   : > { %v6156_v37 = vpop.xlane.xlu0 %6155 }
 0xe6a   : > { %v6178_v23 = vsub.f32 %v12699_v49, %v6156_v37  ;;  %v12781_v49 = vadd.f32 %v5886_v59, %v13679_v31 }
 0xe6c   : > { %v6186_v44 = vmul.f32 1.442695, %v6178_v23  ;;  %v5916_v16 = vsel %vm2671_vm2, %v12781_v49, -inf }
 0xe6e   : > { %8445 = vpow2.f32 %v6186_v44 }
 0xe71   : > { %v6159_v18 = vpop.xlane.xlu2 %6158  ;;  %v5900_v30 = vpop.xlane.xlu0 %5899 }
 0xe72   : > { %v6179_v9 = vsub.f32 %v12707_v7, %v6159_v18  ;;  %v5920_v5 = vsub.f32 %v12704_v39, %v5900_v30 }
 0xe74   : > { %v12776_v35 = vpop.eup %8445  ;;  %v6188_v62 = vmul.f32 1.442695, %v6179_v9  ;;  %v5929_v46 = vmul.f32 1.442695, %v5920_v5 }
 0xe75   : > { %v6202_v21 = vsel %vm2671_vm2, %v12776_v35, 0.0 }
 0xe76   : > { %8447 = vpow2.f32 %v6188_v62  ;;  %6203 = vadd.xlane.f32.xlu2 %v6202_v21 }
 0xe77   : > { %8449 = vpow2.f32 %v5929_v46 }
 0xe79   : > { %v6162_v10 = vpop.xlane.xlu1 %6161  ;;  %v5903_v43 = vpop.xlane.xlu2 %5902 }
 0xe7a   : > { %v6180_v7 = vsub.f32 %v12717_v13, %v6162_v10  ;;  %v5921_v39 = vsub.f32 %v12714_v8, %v5903_v43 }
 0xe7c   : > { %v12785_v63 = vpop.eup %8447  ;;  %v6190_v55 = vmul.f32 1.442695, %v6180_v7  ;;  %v5931_v22 = vmul.f32 1.442695, %v5921_v39 }
 0xe7d   : > { %v12787_v50 = vpop.eup %8449  ;;  %v6205_v60 = vsel %vm2671_vm2, %v12785_v63, 0.0 }
 0xe7e   : > { %8451 = vpow2.f32 %v6190_v55  ;;  %6206 = vadd.xlane.f32.xlu0 %v6205_v60  ;;  %5917 = vmax.xlane.f32.xlu2 %v5916_v16  ;;  %v5946_v31 = vsel %vm2671_vm2, %v12787_v50, 0.0 }
 0xe7f   : > { %8453 = vpow2.f32 %v5931_v22  ;;  %5947 = vadd.xlane.f32.xlu1 %v5946_v31 }
 0xe81   : > { %v5906_v8 = vpop.xlane.xlu1 %5905  ;;  %v6165_v13 = vpop.xlane.xlu0 %6164 }
 0xe82   : > { %v5922_v20 = vsub.f32 %v12724_v61, %v5906_v8  ;;  %v6181_v36 = vsub.f32 %v12727_v32, %v6165_v13 }
 0xe84   : > { %v12797_v42 = vpop.eup %8451  ;;  %v5933_v37 = vmul.f32 1.442695, %v5922_v20  ;;  %v6192_v23 = vmul.f32 1.442695, %v6181_v36 }
 0xe85   : > { %v12799_v44 = vpop.eup %8453  ;;  %v6208_v18 = vsel %vm2671_vm2, %v12797_v42, 0.0 }
 0xe86   : > { %8455 = vpow2.f32 %v5933_v37  ;;  %v5949_v30 = vsel %vm2671_vm2, %v12799_v44, 0.0  ;;  %6209 = vadd.xlane.f32.xlu2 %v6208_v18 }
 0xe87   : > { %8457 = vpow2.f32 %v6192_v23  ;;  %5950 = vadd.xlane.f32.xlu0 %v5949_v30 }
 0xe89   : > { %v6168_v45 = vpop.xlane.xlu2 %6167  ;;  %v5909_v61 = vpop.xlane.xlu0 %5908 }
 0xe8a   : > { %v6182_v32 = vsub.f32 %v12737_v28, %v6168_v45  ;;  %v5923_v9 = vsub.f32 %v12734_v12, %v5909_v61 }
 0xe8c   : > { %v12807_v5 = vpop.eup %8455  ;;  %v6194_v62 = vmul.f32 1.442695, %v6182_v32  ;;  %v5935_v46 = vmul.f32 1.442695, %v5923_v9 }
 0xe8d   : > { %v12809_v59 = vpop.eup %8457  ;;  %v5952_v21 = vsel %vm2671_vm2, %v12807_v5, 0.0 }
 0xe8e   : > { %8459 = vpow2.f32 %v6194_v62  ;;  %5953 = vadd.xlane.f32.xlu2 %v5952_v21  ;;  %v6211_v10 = vsel %vm2671_vm2, %v12809_v59, 0.0 }
 0xe8f   : > { %8461 = vpow2.f32 %v5935_v46  ;;  %6212 = vadd.xlane.f32.xlu1 %v6211_v10 }
 0xe91   : > { %v6171_v43 = vpop.xlane.xlu1 %6170  ;;  %v5912_v28 = vpop.xlane.xlu2 %5911 }
 0xe92   : > { %v6183_v12 = vsub.f32 %v12747_v0, %v6171_v43  ;;  %v5924_v7 = vsub.f32 %v12744_v40, %v5912_v28 }
 0xe94   : > { %v12817_v39 = vpop.eup %8459  ;;  %v6196_v55 = vmul.f32 1.442695, %v6183_v12  ;;  %v5937_v22 = vmul.f32 1.442695, %v5924_v7  ;;  %v5059_v12 = vld [vmem:[%s10032_s29 + $0x1f8] sm:$0xff] }
 0xe95   : > { %v12819_v60 = vpop.eup %8461  ;;  %v6214_v16 = vsel %vm2671_vm2, %v12817_v39, 0.0  ;;  %6048 = vmatpush.msra.mxu0 %v5059_v12 }
 0xe96   : > { %8463 = vpow2.f32 %v6196_v55  ;;  %6215 = vadd.xlane.f32.xlu0 %v6214_v16  ;;  %v5955_v31 = vsel %vm2671_vm2, %v12819_v60, 0.0 }
 0xe97   : > { %8465 = vpow2.f32 %v5937_v22  ;;  %5956 = vadd.xlane.f32.xlu1 %v5955_v31 }
 0xe99   : > { %v5915_v8 = vpop.xlane.xlu1 %5914  ;;  %v6174_v0 = vpop.xlane.xlu0 %6173 }
 0xe9a   : > { %v5925_v40 = vsub.f32 %v12755_v58, %v5915_v8  ;;  %v6184_v13 = vsub.f32 %v12758_v14, %v6174_v0  ;;  %v5058_v8 = vld [vmem:[%s10032_s29 + $0x1f0] sm:$0xff] }
 0xe9b   : > { %6049 = vmatpush.msra.mxu0 %v5058_v8 }
 0xe9c   : > { %v12827_v20 = vpop.eup %8463  ;;  %v5939_v36 = vmul.f32 1.442695, %v5925_v40  ;;  %v6198_v37 = vmul.f32 1.442695, %v6184_v13  ;;  %v5057_v40 = vld [vmem:[%s10032_s29 + $0x1e8] sm:$0xff]  ;;  %v5056_v13 = vld [vmem:[%s10032_s29 + $0x1e0] sm:$0xff] }
 0xe9d   : > { %v12829_v23 = vpop.eup %8465  ;;  %v6217_v18 = vsel %vm2671_vm2, %v12827_v20, 0.0  ;;  %6050 = vmatpush.msra.mxu0 %v5057_v40 }
 0xe9e   : > { %8467 = vpow2.f32 %v5939_v36  ;;  %v5958_v30 = vsel %vm2671_vm2, %v12829_v23, 0.0  ;;  %6218 = vadd.xlane.f32.xlu2 %v6217_v18  ;;  %v5055_v36 = vld [vmem:[%s10032_s29 + $0x1d8] sm:$0xff] }
 0xe9f   : > { %8469 = vpow2.f32 %v6198_v37  ;;  %5959 = vadd.xlane.f32.xlu0 %v5958_v30  ;;  %6051 = vmatpush.msra.mxu0 %v5056_v13  ;;  %v5045_v13 = vld [vmem:[%s10032_s29 + $0x188] sm:$0xff] }
 0xea1   : > { %v6177_v45 = vpop.xlane.xlu1 %6176  ;;  %v5945_v58 = vpop.xlane.xlu0 %5944  ;;  %6052 = vmatpush.msra.mxu0 %v5055_v36  ;;  %v5044_v36 = vld [vmem:[%s10032_s29 + $0x180] sm:$0xff] }
 0xea2   : > { %v6185_v14 = vsub.f32 %v12767_v57, %v6177_v45  ;;  %8471 = vrcp.f32 %v5945_v58  ;;  %v5054_v58 = vld [vmem:[%s10032_s29 + $0x1d0] sm:$0xff] }
 0xea3   : > { %6053 = vmatpush.msra.mxu0 %v5054_v58  ;;  %v5073_v58 = vld [vmem:[%s10032_s29 + $0x268] sm:$0xff] }
 0xea4   : > { %v12836_v61 = vpop.eup %8467  ;;  %v6200_v32 = vmul.f32 1.442695, %v6185_v14 }
 0xea5   : > { %v12838_v9 = vpop.eup %8469  ;;  %v5961_v62 = vsel %vm2671_vm2, %v12836_v61, 0.0 }
 0xea6   : > { %8473 = vpow2.f32 %v6200_v32  ;;  %5962 = vadd.xlane.f32.xlu2 %v5961_v62  ;;  %v6220_v46 = vsel %vm2671_vm2, %v12838_v9, 0.0  ;;  %v5053_v32 = vld [vmem:[%s10032_s29 + $0x1c8] sm:$0xff]  ;;  %v5052_v62 = vld [vmem:[%s10032_s29 + $0x1c0] sm:$0xff] }
 0xea7   : > { %6221 = vadd.xlane.f32.xlu1 %v6220_v46  ;;  %6054 = vmatpush.msra.mxu0 %v5053_v32  ;;  %v5051_v46 = vld [vmem:[%s10032_s29 + $0x1b8] sm:$0xff]  ;;  %v5072_v32 = vld [vmem:[%s10032_s29 + $0x260] sm:$0xff] }
 0xea8   : > { %v8472_v21 = vpop.eup %8471 }
 0xea9   : > { %v5975_v10 = vmul.f32 %v8472_v21, %v12764_v54  ;;  %6055 = vmatpush.msra.mxu0 %v5052_v62  ;;  %v5071_v62 = vld [vmem:[%s10032_s29 + $0x258] sm:$0xff] }
 0xeab   : > { %7852 = vmatmul.msk.f32.vlgmr.msra.gmra.mxu3 %vm2671_vm2, %v5975_v10  ;;  %6056 = vmatpush.msra.mxu0 %v5051_v46  ;;  %v5070_v46 = vld [vmem:[%s10032_s29 + $0x250] sm:$0xff] }
 0xeac   : > { %v12846_v57 = vpop.eup %8473 }
 0xead   : > { %v6223_v43 = vsel %vm2671_vm2, %v12846_v57, 0.0 }
 0xeae   : > { %6224 = vadd.xlane.f32.xlu0 %v6223_v43 }
 0xee9   : > { %v6204_v28 = vpop.xlane.xlu2 %6203 }
 0xeea   : > { %8475 = vrcp.f32 %v6204_v28 }
 0xef0   : > { %v8476_v7 = vpop.eup %8475 }
 0xef1   : > { %v6234_v55 = vmul.f32 %v8476_v7, %v12776_v35  ;;  %v5918_v54 = vpop.xlane.xlu2 %5917  ;;  %v6207_v22 = vpop.xlane.xlu0 %6206  ;;  %v5050_v7 = vld [vmem:[%s10032_s29 + $0x1b0] sm:$0xff] }
 0xef2   : > { %v5926_v16 = vsub.f32 %v12781_v49, %v5918_v54  ;;  %v5948_v31 = vpop.xlane.xlu1 %5947  ;;  %8477 = vrcp.f32 %v6207_v22  ;;  %6057 = vmatpush.msra.mxu0 %v5050_v7  ;;  %v5048_v54 = vld [vmem:[%s10032_s29 + $0x1a0] sm:$0xff]  ;;  %v5047_v22 = vld [vmem:[%s10032_s29 + $0x198] sm:$0xff] }
 0xef3   : > { %8479 = vrcp.f32 %v5948_v31  ;;  %7860 = vmatmul.msk.f32.vlgmr.msrb.gmra.mxu2 %vm2671_vm2, %v6234_v55  ;;  %v5049_v55 = vld [vmem:[%s10032_s29 + $0x1a8] sm:$0xff] }
 0xef4   : > { %v5941_v0 = vmul.f32 1.442695, %v5926_v16  ;;  %6058 = vmatpush.msra.mxu0 %v5049_v55  ;;  %v5046_v16 = vld [vmem:[%s10032_s29 + $0x190] sm:$0xff] }
 0xef6   : > { %8481 = vpow2.f32 %v5941_v0  ;;  %6059 = vmatpush.msra.mxu0 %v5048_v54 }
 0xef8   : > { %v8478_v35 = vpop.eup %8477  ;;  %6060 = vmatpush.msra.mxu0 %v5047_v22 }
 0xef9   : > { %v8480_v37 = vpop.eup %8479  ;;  %v6210_v49 = vpop.xlane.xlu2 %6209  ;;  %v6235_v18 = vmul.f32 %v8478_v35, %v12785_v63  ;;  %v5075_v35 = vld [vmem:[%s10032_s29 + $0x278] sm:$0xff] }
 0xefa   : > { %8483 = vrcp.f32 %v6210_v49  ;;  %v5951_v30 = vpop.xlane.xlu0 %5950  ;;  %v5976_v45 = vmul.f32 %v8480_v37, %v12787_v50  ;;  %6061 = vmatpush.msra.mxu0 %v5046_v16  ;;  %v5074_v37 = vld [vmem:[%s10032_s29 + $0x270] sm:$0xff]  ;;  %6307 = vmatpush.msrb.mxu3 %v5075_v35  ;;  %v5065_v16 = vld [vmem:[%s10032_s29 + $0x228] sm:$0xff] }
 0xefb   : > { %8485 = vrcp.f32 %v5951_v30  ;;  %7861 = vmatmul.msk.f32.gmra.mxu2 %vm2671_vm2, %v6235_v18 }
 0xefc   : > { %v12862_v14 = vpop.eup %8481  ;;  %7853 = vmatmul.msk.f32.gmra.mxu3 %vm2671_vm2, %v5976_v45  ;;  %6062 = vmatpush.msra.mxu0 %v5045_v13 }
 0xefd   : > { %v5964_v63 = vsel %vm2671_vm2, %v12862_v14, 0.0  ;;  %6308 = vmatpush.msrb.mxu3 %v5074_v37 }
 0xefe   : > { %5965 = vadd.xlane.f32.xlu1 %v5964_v63  ;;  %6063 = vmatpush.msra.mxu0 %v5044_v36 }
 0xeff   : > { %6309 = vmatpush.msrb.mxu3 %v5073_v58 }
 0xf00   : > { %v8484_v50 = vpop.eup %8483 }
 0xf01   : > { %v8486_v21 = vpop.eup %8485  ;;  %v5954_v10 = vpop.xlane.xlu2 %5953  ;;  %v6236_v43 = vmul.f32 %v8484_v50, %v12797_v42  ;;  %6310 = vmatpush.msrb.mxu3 %v5072_v32 }
 0xf02   : > { %8487 = vrcp.f32 %v5954_v10  ;;  %v6213_v28 = vpop.xlane.xlu1 %6212  ;;  %v5977_v12 = vmul.f32 %v8486_v21, %v12799_v44 }
 0xf03   : > { %8489 = vrcp.f32 %v6213_v28  ;;  %7862 = vmatmul.msk.f32.gmra.mxu2 %vm2671_vm2, %v6236_v43  ;;  %6311 = vmatpush.msrb.mxu3 %v5071_v62  ;;  %v5069_v43 = vld [vmem:[%s10032_s29 + $0x248] sm:$0xff] }
 0xf04   : > { %7854 = vmatmul.msk.f32.gmra.mxu3 %vm2671_vm2, %v5977_v12 }
 0xf05   : > { %6312 = vmatpush.msrb.mxu3 %v5070_v46 }
 0xf07   : > { %6313 = vmatpush.msrb.mxu3 %v5069_v43 }
 0xf08   : > { %v8488_v42 = vpop.eup %8487 }
 0xf09   : > { %v8490_v31 = vpop.eup %8489  ;;  %v6216_v44 = vpop.xlane.xlu0 %6215  ;;  %v5978_v8 = vmul.f32 %v8488_v42, %v12807_v5  ;;  %v5067_v42 = vld [vmem:[%s10032_s29 + $0x238] sm:$0xff] }
 0xf0a   : > { %v5957_v0 = vpop.xlane.xlu1 %5956  ;;  %8491 = vrcp.f32 %v6216_v44  ;;  %v6237_v40 = vmul.f32 %v8490_v31, %v12809_v59  ;;  %v5064_v31 = vld [vmem:[%s10032_s29 + $0x220] sm:$0xff]  ;;  %v5063_v44 = vld [vmem:[%s10032_s29 + $0x218] sm:$0xff] }
 0xf0b   : > { %8493 = vrcp.f32 %v5957_v0  ;;  %v5060_v0 = vld [vmem:[%s10032_s29 + $0x200] sm:$0xff] }
 0xf0c   : > { %7855 = vmatmul.msk.f32.gmra.mxu3 %vm2671_vm2, %v5978_v8  ;;  %7863 = vmatmul.msk.f32.gmra.mxu2 %vm2671_vm2, %v6237_v40  ;;  %v5061_v8 = vld [vmem:[%s10032_s29 + $0x208] sm:$0xff] }
 0xf10   : > { %v8492_v5 = vpop.eup %8491 }
 0xf11   : > { %v8494_v49 = vpop.eup %8493  ;;  %v6219_v59 = vpop.xlane.xlu2 %6218  ;;  %v6238_v18 = vmul.f32 %v8492_v5, %v12817_v39 }
 0xf12   : > { %8495 = vrcp.f32 %v6219_v59  ;;  %v5960_v30 = vpop.xlane.xlu0 %5959  ;;  %v5979_v45 = vmul.f32 %v8494_v49, %v12819_v60 }
 0xf13   : > { %8497 = vrcp.f32 %v5960_v30 }
 0xf14   : > { %7856 = vmatmul.msk.f32.gmra.mxu3 %vm2671_vm2, %v5979_v45  ;;  %7864 = vmatmul.msk.f32.gmra.mxu2 %vm2671_vm2, %v6238_v18 }
 0xf18   : > { %v8496_v63 = vpop.eup %8495 }
 0xf19   : > { %v8498_v50 = vpop.eup %8497  ;;  %v5963_v39 = vpop.xlane.xlu2 %5962  ;;  %v6239_v21 = vmul.f32 %v8496_v63, %v12827_v20 }
 0xf1a   : > { %8499 = vrcp.f32 %v5963_v39  ;;  %v6222_v60 = vpop.xlane.xlu1 %6221  ;;  %v5980_v10 = vmul.f32 %v8498_v50, %v12829_v23 }
 0xf1b   : > { %8501 = vrcp.f32 %v6222_v60 }
 0xf1c   : > { %7857 = vmatmul.msk.f32.gmra.mxu3 %vm2671_vm2, %v5980_v10  ;;  %7865 = vmatmul.msk.f32.gmra.mxu2 %vm2671_vm2, %v6239_v21  ;;  %v5556_v21 = vadd.f32 %v12641_v17, %v12636_v33 }
 0xf1e   : > { %v5830_v10 = vadd.f32 %v12676_v15, %v5556_v21  ;;  %v5562_v15 = vadd.f32 %v12650_v29, %v12643_v41  ;;  %v13684_v41 = vld [vmem:[#allocation77_spill] sm:$0xff] }
 0xf20   : > { %v8500_v28 = vpop.eup %8499 }
 0xf21   : > { %v8502_v12 = vpop.eup %8501  ;;  %v6225_v7 = vpop.xlane.xlu0 %6224  ;;  %v5981_v20 = vmul.f32 %v8500_v28, %v12836_v61  ;;  %v5068_v61 = vld [vmem:[%s10032_s29 + $0x240] sm:$0xff] }
 0xf22   : > { %8503 = vrcp.f32 %v6225_v7  ;;  %v6240_v23 = vmul.f32 %v8502_v12, %v12838_v9  ;;  %6314 = vmatpush.msrb.mxu3 %v5068_v61  ;;  %v5066_v9 = vld [vmem:[%s10032_s29 + $0x230] sm:$0xff]  ;;  %v12922_v28 = vld [vmem:[%s13681_s14] ss:$0 sm:$0xff]  ;;  %v5559_v7 = vadd.f32 %v12645_v6, %v12639_v56 }
 0xf23   : > { %v13683_v56 = vld [vmem:[#allocation76_spill] sm:$0xff] }
 0xf24   : > { %7858 = vmatmul.msk.f32.gmra.mxu3 %vm2671_vm2, %v5981_v20  ;;  %7866 = vmatmul.msk.f32.gmra.mxu2 %vm2671_vm2, %v6240_v23 }
 0xf25   : > { %6315 = vmatpush.msrb.mxu3 %v5067_v42 }
 0xf27   : > { %6316 = vmatpush.msrb.mxu3 %v5066_v9 }
 0xf28   : > { %v8504_v55 = vpop.eup %8503 }
 0xf29   : > { %v6241_v54 = vmul.f32 %v8504_v55, %v12846_v57  ;;  %6317 = vmatpush.msrb.mxu3 %v5065_v16  ;;  %v5062_v57 = vld [vmem:[%s10032_s29 + $0x210] sm:$0xff]  ;;  %v5832_v16 = vadd.f32 %v12686_v26, %v5562_v15 }
 0xf2b   : > { %6318 = vmatpush.msrb.mxu3 %v5064_v31 }
 0xf2c   : > { %7867 = vmatmul.msk.f32.gmra.mxu2 %vm2671_vm2, %v6241_v54  ;;  %v5831_v54 = vadd.f32 %v12684_v34, %v5559_v7  ;;  %v5565_v34 = vadd.f32 %v12653_v38, %v12648_v24  ;;  %v13685_v24 = vld [vmem:[#allocation78_spill] sm:$0xff] }
 0xf2d   : > { %6319 = vmatpush.msrb.mxu3 %v5063_v44 }
 0xf2e   : > { %v6024_v22 = vpop.f32.mrf.mxu3 }
 0xf2f   : > { %6064 = vmatmul.f32.vlgmr.msra.gmra.mxu0 %v6024_v22  ;;  %6320 = vmatpush.msrb.mxu3 %v5062_v57  ;;  %v13682_v22 = vld [vmem:[#allocation75_spill] sm:$0xff] }
 0xf31   : > { %6321 = vmatpush.msrb.mxu3 %v5061_v8 }
 0xf33   : > { %6322 = vmatpush.msrb.mxu3 %v5060_v0 }
 0xf71   : > { %v5966_v40 = vpop.xlane.xlu1 %5965 }
 0xf72   : > { %8505 = vrcp.f32 %v5966_v40  ;;  %v5833_v40 = vadd.f32 %v12688_v19, %v5565_v34 }
 0xf76   : > { %v6283_v13 = vpop.f32.mrf.mxu2 }
 0xf78   : > { %v8506_v36 = vpop.eup %8505 }
 0xf79   : > { %v5982_v35 = vmul.f32 %v8506_v36, %v12862_v14 }
 0xf7b   : > { %7859 = vmatmul.msk.f32.gmra.mxu3 %vm2671_vm2, %v5982_v35  ;;  %v5568_v35 = vadd.f32 %v12658_v52, %v12655_v2  ;;  %v13686_v52 = vld [vmem:[#allocation79_spill] sm:$0xff] }
 0xf7e   : > { %v6286_v37 = vpop.f32.mrf.mxu2 }
 0xf7f   : > { %v6027_v5 = vpop.f32.mrf.mxu3 }
 0xf80   : > { %6067 = vmatmul.f32.gmra.mxu0 %v6027_v5 }
 0xf83   : > { %6323 = vmatmul.f32.vlgmr.msrb.gmra.mxu3 %v6283_v13 }
 0xf86   : > { %v6289_v59 = vpop.f32.mrf.mxu2 }
 0xf87   : > { %v6030_v49 = vpop.f32.mrf.mxu3 }
 0xf88   : > { %6070 = vmatmul.f32.gmra.mxu0 %v6030_v49  ;;  %v5834_v49 = vadd.f32 %v12690_v47, %v5568_v35 }
 0xf8b   : > { %6326 = vmatmul.f32.gmra.mxu3 %v6286_v37 }
 0xf8f   : > { %v6033_v18 = vpop.f32.mrf.mxu3  ;;  %v6292_v30 = vpop.f32.mrf.mxu2 }
 0xf90   : > { %6073 = vmatmul.f32.gmra.mxu0 %v6033_v18  ;;  %v5571_v18 = vadd.f32 %v12663_v27, %v12660_v48 }
 0xf92   : > { %v5835_v2 = vadd.f32 %v12692_v3, %v5571_v18 }
 0xf93   : > { %6329 = vmatmul.f32.gmra.mxu3 %v6289_v59 }
 0xf97   : > { %v6036_v45 = vpop.f32.mrf.mxu3  ;;  %v6295_v58 = vpop.f32.mrf.mxu2 }
 0xf98   : > { %6076 = vmatmul.f32.gmra.mxu0 %v6036_v45 }
 0xf9b   : > { %6332 = vmatmul.f32.gmra.mxu3 %v6292_v30 }
 0xf9f   : > { %v6039_v32 = vpop.f32.mrf.mxu3  ;;  %v6298_v14 = vpop.f32.mrf.mxu2 }
 0xfa0   : > { %6079 = vmatmul.f32.gmra.mxu0 %v6039_v32 }
 0xfa3   : > { %6335 = vmatmul.f32.gmra.mxu3 %v6295_v58 }
 0xfa7   : > { %v6042_v62 = vpop.f32.mrf.mxu3  ;;  %v6301_v63 = vpop.f32.mrf.mxu2 }
 0xfa8   : > { %6082 = vmatmul.f32.gmra.mxu0 %v6042_v62 }
 0xfab   : > { %6338 = vmatmul.f32.gmra.mxu3 %v6298_v14 }
 0xfac   : > { %v6065_v50 = vpop.f32.mrf.mxu0 }
 0xfad   : > { %v6089_v43 = vadd.f32 %v6065_v50, %v5830_v10  ;;  %v13687_v50 = vld [vmem:[#allocation80_spill] sm:$0xff] }
 0xfaf   : > { %v6304_v46 = vpop.f32.mrf.mxu2 }
 0xfb3   : > { %6341 = vmatmul.f32.gmra.mxu3 %v6301_v63  ;;  %v5574_v63 = vadd.f32 %v12668_v11, %v12666_v4  ;;  %v5577_v4 = vadd.f32 %v12673_v51, %v12671_v1 }
 0xfb5   : > { %v5836_v27 = vadd.f32 %v12694_v53, %v5574_v63  ;;  %v5837_v53 = vadd.f32 %v12696_v25, %v5577_v4  ;;  %v6607_v63 = vld [vmem:[%s10042_s0 + $0x140] sm:$0xff] }
 0xfb6   : > { %v6595_v4 = vld [vmem:[%s10042_s0 + $0xe0] sm:$0xff] }
 0xfbb   : > { %6344 = vmatmul.f32.gmra.mxu3 %v6304_v46 }
 0xffd   : > { %v6068_v60 = vpop.f32.mrf.mxu0 }
 0xffe   : > { %v6045_v39 = vpop.f32.mrf.mxu3  ;;  %v6090_v17 = vadd.f32 %v6068_v60, %v5831_v54 }
 0xfff   : > { %6085 = vmatmul.f32.gmra.mxu0 %v6045_v39 }
0x1005   : > { %v6071_v55 = vpop.f32.mrf.mxu0 }
0x1006   : > { %v6324_v12 = vpop.f32.mrf.mxu3  ;;  %v6091_v44 = vadd.f32 %v6071_v55, %v5832_v16 }
0x1007   : > { %v6348_v20 = vadd.f32 %v6324_v12, %v6089_v43  ;;  %v13688_v43 = vld [vmem:[#allocation81_spill] sm:$0xff] }
0x1009   : > { %v6359_v23 = vadd.f32 %v12922_v28, %v6348_v20 }
0x100b   : > { %v6367_v33 = vadd.f32 %v6359_v23, %v13682_v22 }
0x100d   : > { %6377 = vadd.xlane.f32.xlu2 %v6367_v33  ;;  %v6074_v31 = vpop.f32.mrf.mxu0 }
0x100e   : > { %v6327_v61 = vpop.f32.mrf.mxu3  ;;  %v6092_v13 = vadd.f32 %v6074_v31, %v5833_v40  ;;  %v6614_v40 = vld [vmem:[%s10042_s0 + $0x178] sm:$0xff] }
0x100f   : > { %v6349_v42 = vadd.f32 %v6327_v61, %v6090_v17  ;;  %6705 = vmatpush.msra.mxu2 %v6614_v40  ;;  %v6570_v40 = vld [vmem:[%s10042_s0 + $0x18] sm:$0xff] }
0x1011   : > { %v6360_v9 = vadd.f32 %v12922_v28, %v6349_v42 }
0x1013   : > { %v6368_v6 = vadd.f32 %v6360_v9, %v13683_v56  ;;  %v13690_v9 = vld [vmem:[#allocation82_spill] sm:$0xff] }
0x1015   : > { %6379 = vadd.xlane.f32.xlu0 %v6368_v6  ;;  %v6077_v36 = vpop.f32.mrf.mxu0 }
0x1016   : > { %v6330_v57 = vpop.f32.mrf.mxu3  ;;  %v6093_v59 = vadd.f32 %v6077_v36, %v5834_v49  ;;  %v6610_v36 = vld [vmem:[%s10042_s0 + $0x158] sm:$0xff] }
0x1017   : > { %v6350_v8 = vadd.f32 %v6330_v57, %v6091_v44 }
0x1019   : > { %v6361_v0 = vadd.f32 %v12922_v28, %v6350_v8  ;;  %v6612_v8 = vld [vmem:[%s10042_s0 + $0x168] sm:$0xff] }
0x101a   : > { %6623 = vmatpush.msrb.mxu0 %v6612_v8  ;;  %v6574_v8 = vld [vmem:[%s10042_s0 + $0x38] sm:$0xff] }
0x101b   : > { %v6369_v29 = vadd.f32 %v6361_v0, %v13684_v41  ;;  %v6613_v0 = vld [vmem:[%s10042_s0 + $0x170] sm:$0xff] }
0x101c   : > { %6664 = vmatpush.msrb.mxu1 %v6613_v0  ;;  %v6575_v0 = vld [vmem:[%s10042_s0 + $0x40] sm:$0xff] }
0x101d   : > { %6381 = vadd.xlane.f32.xlu1 %v6369_v29  ;;  %v6080_v45 = vpop.f32.mrf.mxu0 }
0x101e   : > { %v6333_v26 = vpop.f32.mrf.mxu3  ;;  %v6094_v47 = vadd.f32 %v6080_v45, %v5835_v2  ;;  %6665 = vmatpush.msrb.mxu1 %v6610_v36  ;;  %v6567_v36 = vld [vmem:[%s10042_s0] sm:$0xff] }
0x101f   : > { %v6351_v37 = vadd.f32 %v6333_v26, %v6092_v13  ;;  %v6609_v13 = vld [vmem:[%s10042_s0 + $0x150] sm:$0xff]  ;;  %v6611_v26 = vld [vmem:[%s10042_s0 + $0x160] sm:$0xff] }
0x1020   : > { %6624 = vmatpush.msrb.mxu0 %v6609_v13  ;;  %6706 = vmatpush.msra.mxu2 %v6611_v26  ;;  %v6572_v13 = vld [vmem:[%s10042_s0 + $0x28] sm:$0xff] }
0x1021   : > { %v6362_v5 = vadd.f32 %v12922_v28, %v6351_v37  ;;  %6666 = vmatpush.msrb.mxu1 %v6607_v63  ;;  %v6568_v26 = vld [vmem:[%s10042_s0 + $0x8] sm:$0xff] }
0x1023   : > { %v12944_v38 = vadd.f32 %v6362_v5, %v13685_v24 }
0x1025   : > { %6383 = vadd.xlane.f32.xlu2 %v12944_v38  ;;  %v6083_v48 = vpop.f32.mrf.mxu0 }
0x1026   : > { %v6336_v19 = vpop.f32.mrf.mxu3  ;;  %v6095_v3 = vadd.f32 %v6083_v48, %v5836_v27  ;;  %v6603_v48 = vld [vmem:[%s10042_s0 + $0x120] sm:$0xff]  ;;  %v6604_v27 = vld [vmem:[%s10042_s0 + $0x128] sm:$0xff] }
0x1027   : > { %v6352_v30 = vadd.f32 %v6336_v19, %v6093_v59  ;;  %6667 = vmatpush.msrb.mxu1 %v6604_v27 }
0x1029   : > { %v6363_v58 = vadd.f32 %v12922_v28, %v6352_v30 }
0x102b   : > { %v12952_v32 = vadd.f32 %v6363_v58, %v13686_v52 }
0x102d   : > { %6385 = vadd.xlane.f32.xlu0 %v12952_v32 }
0x102e   : > { %v6339_v14 = vpop.f32.mrf.mxu3 }
0x102f   : > { %v6353_v62 = vadd.f32 %v6339_v14, %v6094_v47 }
0x1031   : > { %v6364_v46 = vadd.f32 %v12922_v28, %v6353_v62  ;;  %v6606_v62 = vld [vmem:[%s10042_s0 + $0x138] sm:$0xff] }
0x1032   : > { %6625 = vmatpush.msrb.mxu0 %v6606_v62 }
0x1033   : > { %v12960_v39 = vadd.f32 %v6364_v46, %v13687_v50  ;;  %v6608_v46 = vld [vmem:[%s10042_s0 + $0x148] sm:$0xff]  ;;  %v6605_v50 = vld [vmem:[%s10042_s0 + $0x130] sm:$0xff] }
0x1034   : > { %6707 = vmatpush.msra.mxu2 %v6608_v46  ;;  %6626 = vmatpush.msrb.mxu0 %v6603_v48 }
0x1035   : > { %6387 = vadd.xlane.f32.xlu1 %v12960_v39 }
0x1036   : > { %v6342_v21 = vpop.f32.mrf.mxu3  ;;  %6708 = vmatpush.msra.mxu2 %v6605_v50 }
0x1037   : > { %v6354_v60 = vadd.f32 %v6342_v21, %v6095_v3  ;;  %v6601_v3 = vld [vmem:[%s10042_s0 + $0x110] sm:$0xff]  ;;  %v6602_v21 = vld [vmem:[%s10042_s0 + $0x118] sm:$0xff] }
0x1038   : > { %6668 = vmatpush.msrb.mxu1 %v6601_v3  ;;  %6709 = vmatpush.msra.mxu2 %v6602_v21  ;;  %v13079_v21 = vld [vmem:[%s1379_s12] ss:$0 sm:$0xff] }
0x1039   : > { %v6365_v10 = vadd.f32 %v12922_v28, %v6354_v60  ;;  %v6597_v60 = vld [vmem:[%s10042_s0 + $0xf0] sm:$0xff] }
0x103b   : > { %v12965_v12 = vadd.f32 %v6365_v10, %v13688_v43  ;;  %v6598_v10 = vld [vmem:[%s10042_s0 + $0xf8] sm:$0xff]  ;;  %v6599_v43 = vld [vmem:[%s10042_s0 + $0x100] sm:$0xff] }
0x103c   : > { %6669 = vmatpush.msrb.mxu1 %v6598_v10  ;;  %6710 = vmatpush.msra.mxu2 %v6599_v43 }
0x103d   : > { %6389 = vadd.xlane.f32.xlu0 %v12965_v12 }
0x103e   : > { %v6345_v54 = vpop.f32.mrf.mxu3  ;;  %6670 = vmatpush.msrb.mxu1 %v6595_v4 }
0x107c   : > { %v6086_v11 = vpop.f32.mrf.mxu0 }
0x107d   : > { %v6096_v23 = vadd.f32 %v6086_v11, %v5837_v53  ;;  %v6596_v11 = vld [vmem:[%s10042_s0 + $0xe8] sm:$0xff]  ;;  %v6591_v53 = vld [vmem:[%s10042_s0 + $0xc0] sm:$0xff] }
0x107e   : > { %6711 = vmatpush.msra.mxu2 %v6596_v11 }
0x107f   : > { %v6355_v61 = vadd.f32 %v6345_v54, %v6096_v23  ;;  %v6588_v23 = vld [vmem:[%s10042_s0 + $0xa8] sm:$0xff]  ;;  %v6590_v54 = vld [vmem:[%s10042_s0 + $0xb8] sm:$0xff] }
0x1080   : > { %v6378_v7 = vpop.xlane.xlu2 %6377 }
0x1081   : > { %v6393_v20 = vmul.f32 0.01, %v6378_v7  ;;  %v6366_v51 = vadd.f32 %v12922_v28, %v6355_v61  ;;  %v6592_v7 = vld [vmem:[%s10042_s0 + $0xc8] sm:$0xff]  ;;  %v6585_v61 = vld [vmem:[%s10042_s0 + $0x90] sm:$0xff] }
0x1082   : > { %6671 = vmatpush.msrb.mxu1 %v6592_v7 }
0x1083   : > { %v6401_v55 = vsub.f32 %v6367_v33, %v6393_v20  ;;  %v12983_v16 = vadd.f32 %v6366_v51, %v13690_v9  ;;  %v6593_v20 = vld [vmem:[%s10042_s0 + $0xd0] sm:$0xff]  ;;  %v6583_v51 = vld [vmem:[%s10042_s0 + $0x80] sm:$0xff] }
0x1084   : > { %6712 = vmatpush.msra.mxu2 %v6593_v20  ;;  %v6579_v9 = vld [vmem:[%s10042_s0 + $0x60] sm:$0xff] }
0x1085   : > { %v12973_v17 = vsel %vm1643_vm10, %v6401_v55, 0.0  ;;  %v6589_v55 = vld [vmem:[%s10042_s0 + $0xb0] sm:$0xff] }
0x1086   : > { %v6417_v15 = vmul.f32 %v12973_v17, %v12973_v17  ;;  %6672 = vmatpush.msrb.mxu1 %v6589_v55  ;;  %6713 = vmatpush.msra.mxu2 %v6590_v54 }
0x1088   : > { %6425 = vadd.xlane.f32.xlu2 %v6417_v15  ;;  %v6380_v42 = vpop.xlane.xlu0 %6379  ;;  %v6586_v15 = vld [vmem:[%s10042_s0 + $0x98] sm:$0xff] }
0x1089   : > { %v6394_v1 = vmul.f32 0.01, %v6380_v42  ;;  %v6587_v42 = vld [vmem:[%s10042_s0 + $0xa0] sm:$0xff]  ;;  %6673 = vmatpush.msrb.mxu1 %v6586_v15 }
0x108a   : > { %6714 = vmatpush.msra.mxu2 %v6587_v42 }
0x108b   : > { %v6402_v25 = vsub.f32 %v6368_v6, %v6394_v1  ;;  %v6582_v1 = vld [vmem:[%s10042_s0 + $0x78] sm:$0xff]  ;;  %6674 = vmatpush.msrb.mxu1 %v6583_v51 }
0x108d   : > { %v12980_v33 = vsel %vm1643_vm10, %v6402_v25, 0.0  ;;  %v6584_v25 = vld [vmem:[%s10042_s0 + $0x88] sm:$0xff] }
0x108e   : > { %v6418_v56 = vmul.f32 %v12980_v33, %v12980_v33  ;;  %6715 = vmatpush.msra.mxu2 %v6584_v25 }
0x1090   : > { %v6382_v31 = vpop.xlane.xlu1 %6381  ;;  %6391 = vadd.xlane.f32.xlu2 %v12983_v16  ;;  %6427 = vadd.xlane.f32.xlu1 %v6418_v56  ;;  %v6580_v56 = vld [vmem:[%s10042_s0 + $0x68] sm:$0xff] }
0x1091   : > { %v6395_v28 = vmul.f32 0.01, %v6382_v31  ;;  %v6581_v31 = vld [vmem:[%s10042_s0 + $0x70] sm:$0xff]  ;;  %6675 = vmatpush.msrb.mxu1 %v6580_v56 }
0x1092   : > { %6716 = vmatpush.msra.mxu2 %v6581_v31 }
0x1093   : > { %v6403_v44 = vsub.f32 %v6369_v29, %v6395_v28  ;;  %v6576_v28 = vld [vmem:[%s10042_s0 + $0x48] sm:$0xff] }
0x1095   : > { %v12990_v6 = vsel %vm1643_vm10, %v6403_v44, 0.0  ;;  %v6577_v44 = vld [vmem:[%s10042_s0 + $0x50] sm:$0xff] }
0x1096   : > { %v6419_v57 = vmul.f32 %v12990_v6, %v12990_v6  ;;  %6676 = vmatpush.msrb.mxu1 %v6577_v44 }
0x1098   : > { %v6384_v34 = vpop.xlane.xlu2 %6383  ;;  %6429 = vadd.xlane.f32.xlu0 %v6419_v57  ;;  %v6578_v57 = vld [vmem:[%s10042_s0 + $0x58] sm:$0xff]  ;;  %6677 = vmatpush.msrb.mxu1 %v6574_v8 }
0x1099   : > { %v6396_v41 = vmul.f32 0.01, %v6384_v34  ;;  %6717 = vmatpush.msra.mxu2 %v6578_v57  ;;  %v6573_v34 = vld [vmem:[%s10042_s0 + $0x30] sm:$0xff] }
0x109b   : > { %v6404_v29 = vsub.f32 %v12944_v38, %v6396_v41  ;;  %6718 = vmatpush.msra.mxu2 %v6575_v0  ;;  %v6571_v41 = vld [vmem:[%s10042_s0 + $0x20] sm:$0xff] }
0x109c   : > { %6678 = vmatpush.msrb.mxu1 %v6571_v41 }
0x109d   : > { %v13003_v35 = vsel %vm1643_vm10, %v6404_v29, 0.0  ;;  %6719 = vmatpush.msra.mxu2 %v6572_v13  ;;  %v6569_v29 = vld [vmem:[%s10042_s0 + $0x10] sm:$0xff] }
0x109e   : > { %v6420_v37 = vmul.f32 %v13003_v35, %v13003_v35  ;;  %6679 = vmatpush.msrb.mxu1 %v6568_v26 }
0x109f   : > { %6720 = vmatpush.msra.mxu2 %v6569_v29 }
0x10a0   : > { %6431 = vadd.xlane.f32.xlu1 %v6420_v37  ;;  %v6386_v5 = vpop.xlane.xlu0 %6385 }
0x10a1   : > { %v6397_v49 = vmul.f32 0.01, %v6386_v5 }
0x10a3   : > { %v6405_v24 = vsub.f32 %v12952_v32, %v6397_v49 }
0x10a5   : > { %v13010_v59 = vsel %vm1643_vm10, %v6405_v24, 0.0 }
0x10a6   : > { %v6421_v38 = vmul.f32 %v13010_v59, %v13010_v59 }
0x10a8   : > { %v6388_v19 = vpop.xlane.xlu1 %6387  ;;  %6433 = vadd.xlane.f32.xlu2 %v6421_v38 }
0x10a9   : > { %v6398_v18 = vmul.f32 0.01, %v6388_v19 }
0x10ab   : > { %v6406_v30 = vsub.f32 %v12960_v39, %v6398_v18  ;;  %v6600_v39 = vld [vmem:[%s10042_s0 + $0x108] sm:$0xff] }
0x10ac   : > { %6627 = vmatpush.msrb.mxu0 %v6600_v39 }
0x10ad   : > { %v13017_v45 = vsel %vm1643_vm10, %v6406_v30, 0.0 }
0x10ae   : > { %v6422_v58 = vmul.f32 %v13017_v45, %v13017_v45  ;;  %6628 = vmatpush.msrb.mxu0 %v6597_v60 }
0x10b0   : > { %6435 = vadd.xlane.f32.xlu0 %v6422_v58  ;;  %v6390_v2 = vpop.xlane.xlu0 %6389 }
0x10b1   : > { %v6399_v52 = vmul.f32 0.01, %v6390_v2 }
0x10b3   : > { %v6407_v32 = vsub.f32 %v12965_v12, %v6399_v52  ;;  %v6594_v12 = vld [vmem:[%s10042_s0 + $0xd8] sm:$0xff] }
0x10b4   : > { %6629 = vmatpush.msrb.mxu0 %v6594_v12  ;;  %v13084_v12 = vld [vmem:[%s1388_s4] ss:$0 sm:$0xff] }
0x10b5   : > { %v13024_v47 = vsel %vm1643_vm10, %v6407_v32, 0.0 }
0x10b6   : > { %v6423_v14 = vmul.f32 %v13024_v47, %v13024_v47  ;;  %6630 = vmatpush.msrb.mxu0 %v6591_v53 }
0x10b8   : > { %6437 = vadd.xlane.f32.xlu1 %v6423_v14  ;;  %6631 = vmatpush.msrb.mxu0 %v6588_v23 }
0x10ba   : > { %6632 = vmatpush.msrb.mxu0 %v6585_v61 }
0x10bc   : > { %6633 = vmatpush.msrb.mxu0 %v6582_v1 }
0x10be   : > { %6634 = vmatpush.msrb.mxu0 %v6579_v9 }
0x10c0   : > { %6635 = vmatpush.msrb.mxu0 %v6576_v28 }
0x10c2   : > { %6636 = vmatpush.msrb.mxu0 %v6573_v34 }
0x10c4   : > { %6637 = vmatpush.msrb.mxu0 %v6570_v40 }
0x10c6   : > { %6638 = vmatpush.msrb.mxu0 %v6567_v36 }
0x10fb   : > { %v6426_v37 = vpop.xlane.xlu2 %6425 }
0x10fc   : > { %v6441_v5 = vmul.f32 0.01, %v6426_v37 }
0x10fe   : > { %v6449_v49 = vadd.f32 1e-05, %v6441_v5 }
0x1100   : > { %8507 = vrsqrt.f32 %v6449_v49  ;;  %vm6463_vm6 = vweird.f32 %v6449_v49 }
0x1103   : > { %v6392_v24 = vpop.xlane.xlu2 %6391  ;;  %v6428_v38 = vpop.xlane.xlu1 %6427 }
0x1104   : > { %v6400_v19 = vmul.f32 0.01, %v6392_v24  ;;  %v6442_v18 = vmul.f32 0.01, %v6428_v38 }
0x1106   : > { %v8508_v30 = vpop.eup %8507  ;;  %v6408_v58 = vsub.f32 %v12983_v16, %v6400_v19  ;;  %v6450_v2 = vadd.f32 1e-05, %v6442_v18  ;;  %v6785_v18 = vld [vmem:[%s10051_s26 + $0x78] sm:$0xff] }
0x1107   : > { %v6458_v52 = vmul.f32 %v8508_v30, %v6449_v49  ;;  %vm6464_vm2 = vweird.f32 %v8508_v30  ;;  %6822 = vmatpush.msra.mxu3 %v6785_v18  ;;  %v6811_v18 = vld [vmem:[%s10051_s26 + $0x148] sm:$0xff] }
0x1108   : > { %v13073_v32 = vsel %vm1643_vm10, %v6408_v58, 0.0  ;;  %8509 = vrsqrt.f32 %v6450_v2  ;;  %vm6465_vm7 = vmor %vm6463_vm6, %vm6464_vm2  ;;  %vm6473_vm9 = vweird.f32 %v6450_v2 }
0x1109   : > { %v6459_v14 = vmul.f32 %v8508_v30, %v6458_v52  ;;  %v6424_v62 = vmul.f32 %v13073_v32, %v13073_v32 }
0x110b   : > { %v6460_v63 = vmul.f32 0.5, %v6459_v14  ;;  %6439 = vadd.xlane.f32.xlu2 %v6424_v62  ;;  %v6430_v46 = vpop.xlane.xlu0 %6429 }
0x110c   : > { %v6443_v48 = vmul.f32 0.01, %v6430_v46 }
0x110d   : > { %v6461_v27 = vsub.f32 1.5, %v6460_v63 }
0x110e   : > { %v8510_v16 = vpop.eup %8509  ;;  %v6451_v50 = vadd.f32 1e-05, %v6443_v48 }
0x110f   : > { %v6462_v39 = vmul.f32 %v8508_v30, %v6461_v27  ;;  %v6468_v3 = vmul.f32 %v8510_v16, %v6450_v2  ;;  %vm6474_vm8 = vweird.f32 %v8510_v16 }
0x1110   : > { %8511 = vrsqrt.f32 %v6451_v50  ;;  %vm6475_vm11 = vmor %vm6473_vm9, %vm6474_vm8  ;;  %vm6483_vm13 = vweird.f32 %v6451_v50 }
0x1111   : > { %v6466_v60 = vsel %vm6465_vm7, %v8508_v30, %v6462_v39  ;;  %v6469_v10 = vmul.f32 %v8510_v16, %v6468_v3  ;;  %v6784_v30 = vld [vmem:[%s10051_s26 + $0x70] sm:$0xff] }
0x1112   : > { %v6537_v43 = vmul.f32 %v6466_v60, %v12973_v17  ;;  %6823 = vmatpush.msra.mxu3 %v6784_v30  ;;  %v6774_v30 = vld [vmem:[%s10051_s26 + $0x20] sm:$0xff] }
0x1113   : > { %v6470_v4 = vmul.f32 0.5, %v6469_v10  ;;  %v6432_v11 = vpop.xlane.xlu1 %6431 }
0x1114   : > { %v6548_v53 = vmul.f32 %v13079_v21, %v6537_v43  ;;  %v6444_v7 = vmul.f32 0.01, %v6432_v11 }
0x1115   : > { %v6471_v20 = vsub.f32 1.5, %v6470_v4 }
0x1116   : > { %v8512_v23 = vpop.eup %8511  ;;  %v6452_v55 = vadd.f32 1e-05, %v6444_v7  ;;  %v13088_v54 = vadd.f32 %v13084_v12, %v6548_v53 }
0x1117   : > { %v6472_v61 = vmul.f32 %v8510_v16, %v6471_v20  ;;  %v6478_v15 = vmul.f32 %v8512_v23, %v6451_v50  ;;  %vm6484_vm12 = vweird.f32 %v8512_v23 }
0x1118   : > { %8513 = vrsqrt.f32 %v6452_v55  ;;  %6639 = vmatmul.f32.vlgmr.msrb.gmra.mxu0 %v13088_v54  ;;  %6680 = vmatmul.f32.vlgmr.msrb.gmra.mxu1 %v13088_v54  ;;  %vm6485_vm14 = vmor %vm6483_vm13, %vm6484_vm12  ;;  %vm6493_vm0 = vweird.f32 %v6452_v55 }
0x1119   : > { %v6476_v17 = vsel %vm6475_vm11, %v8510_v16, %v6472_v61  ;;  %v6479_v42 = vmul.f32 %v8512_v23, %v6478_v15  ;;  %6721 = vmatmul.f32.vlgmr.msra.gmra.mxu2 %v13088_v54 }
0x111a   : > { %v6538_v1 = vmul.f32 %v6476_v17, %v12980_v33 }
0x111b   : > { %v6480_v51 = vmul.f32 0.5, %v6479_v42  ;;  %v6434_v25 = vpop.xlane.xlu2 %6433 }
0x111c   : > { %v6445_v9 = vmul.f32 0.01, %v6434_v25  ;;  %v6549_v56 = vmul.f32 %v13079_v21, %v6538_v1 }
0x111d   : > { %v6481_v31 = vsub.f32 1.5, %v6480_v51 }
0x111e   : > { %v8514_v28 = vpop.eup %8513  ;;  %v6453_v44 = vadd.f32 1e-05, %v6445_v9  ;;  %v13096_v57 = vadd.f32 %v13084_v12, %v6549_v56  ;;  %v6783_v9 = vld [vmem:[%s10051_s26 + $0x68] sm:$0xff]  ;;  %v6782_v56 = vld [vmem:[%s10051_s26 + $0x60] sm:$0xff] }
0x111f   : > { %v6482_v34 = vmul.f32 %v8512_v23, %v6481_v31  ;;  %v6488_v8 = vmul.f32 %v8514_v28, %v6452_v55  ;;  %vm6494_vm15 = vweird.f32 %v8514_v28  ;;  %6824 = vmatpush.msra.mxu3 %v6783_v9  ;;  %v6801_v31 = vld [vmem:[%s10051_s26 + $0xf8] sm:$0xff] }
0x1120   : > { %8515 = vrsqrt.f32 %v6453_v44  ;;  %6642 = vmatmul.f32.gmra.mxu0 %v13096_v57  ;;  %6683 = vmatmul.f32.gmra.mxu1 %v13096_v57  ;;  %vm6495_vm1 = vmor %vm6493_vm0, %vm6494_vm15  ;;  %vm6503_vm4 = vweird.f32 %v6453_v44  ;;  %v6615_v9 = vld [vmem:[%s10045_s10] sm:$0x7]  ;;  %s13691_s10 = scalar_lea.vmem [#allocation27], %s9985_s11 }
0x1121   : > { %v6486_v33 = vsel %vm6485_vm14, %v8512_v23, %v6482_v34  ;;  %v6489_v0 = vmul.f32 %v8514_v28, %v6488_v8  ;;  %6724 = vmatmul.f32.gmra.mxu2 %v13096_v57  ;;  %6825 = vmatpush.msra.mxu3 %v6782_v56  ;;  %v6800_v34 = vld [vmem:[%s10051_s26 + $0xf0] sm:$0xff] }
0x1122   : > { %v6539_v40 = vmul.f32 %v6486_v33, %v12990_v6  ;;  %6863 = vmatpush.msra.mxu0 %v6801_v31  ;;  %v6816_v8 = vld [vmem:[%s10051_s26 + $0x170] sm:$0xff]  ;;  %v6779_v33 = vld [vmem:[%s10051_s26 + $0x48] sm:$0xff]  ;;  %v13190_v31 = vperm.slane %v6615_v9, 0 }
0x1123   : > { %v6490_v41 = vmul.f32 0.5, %v6489_v0  ;;  %v6436_v13 = vpop.xlane.xlu0 %6435  ;;  %v6799_v0 = vld [vmem:[%s10051_s26 + $0xe8] sm:$0xff] }
0x1124   : > { %v6446_v36 = vmul.f32 0.01, %v6436_v13  ;;  %v6550_v26 = vmul.f32 %v13079_v21, %v6539_v40  ;;  %6864 = vmatpush.msra.mxu0 %v6800_v34  ;;  %v6815_v40 = vld [vmem:[%s10051_s26 + $0x168] sm:$0xff]  ;;  %v6798_v13 = vld [vmem:[%s10051_s26 + $0xe0] sm:$0xff] }
0x1125   : > { %v6491_v29 = vsub.f32 1.5, %v6490_v41  ;;  %v6778_v41 = vld [vmem:[%s10051_s26 + $0x40] sm:$0xff] }
0x1126   : > { %v8516_v37 = vpop.eup %8515  ;;  %v6454_v5 = vadd.f32 1e-05, %v6446_v36  ;;  %v13104_v49 = vadd.f32 %v13084_v12, %v6550_v26  ;;  %6865 = vmatpush.msra.mxu0 %v6799_v0  ;;  %v6814_v36 = vld [vmem:[%s10051_s26 + $0x160] sm:$0xff]  ;;  %v6777_v26 = vld [vmem:[%s10051_s26 + $0x38] sm:$0xff] }
0x1127   : > { %v6492_v24 = vmul.f32 %v8514_v28, %v6491_v29  ;;  %v6498_v38 = vmul.f32 %v8516_v37, %v6453_v44  ;;  %vm6504_vm3 = vweird.f32 %v8516_v37  ;;  %v6780_v44 = vld [vmem:[%s10051_s26 + $0x50] sm:$0xff]  ;;  %v6797_v29 = vld [vmem:[%s10051_s26 + $0xd8] sm:$0xff] }
0x1128   : > { %8517 = vrsqrt.f32 %v6454_v5  ;;  %6645 = vmatmul.f32.gmra.mxu0 %v13104_v49  ;;  %6686 = vmatmul.f32.gmra.mxu1 %v13104_v49  ;;  %vm6505_vm5 = vmor %vm6503_vm4, %vm6504_vm3  ;;  %vm6513_vm6 = vweird.f32 %v6454_v5 }
0x1129   : > { %v6496_v6 = vsel %vm6495_vm1, %v8514_v28, %v6492_v24  ;;  %v6499_v19 = vmul.f32 %v8516_v37, %v6498_v38  ;;  %6727 = vmatmul.f32.gmra.mxu2 %v13104_v49  ;;  %v6817_v28 = vld [vmem:[%s10051_s26 + $0x178] sm:$0xff]  ;;  %6866 = vmatpush.msra.mxu0 %v6798_v13  ;;  %v6796_v24 = vld [vmem:[%s10051_s26 + $0xd0] sm:$0xff] }
0x112a   : > { %v6540_v58 = vmul.f32 %v6496_v6, %v13003_v35  ;;  %6904 = vmatpush.msra.mxu1 %v6817_v28  ;;  %v6812_v38 = vld [vmem:[%s10051_s26 + $0x150] sm:$0xff]  ;;  %v6775_v6 = vld [vmem:[%s10051_s26 + $0x28] sm:$0xff] }
0x112b   : > { %v6500_v2 = vmul.f32 0.5, %v6499_v19  ;;  %v6438_v52 = vpop.xlane.xlu1 %6437  ;;  %6867 = vmatpush.msra.mxu0 %v6797_v29  ;;  %v6795_v19 = vld [vmem:[%s10051_s26 + $0xc8] sm:$0xff] }
0x112c   : > { %v6447_v14 = vmul.f32 0.01, %v6438_v52  ;;  %v6551_v62 = vmul.f32 %v13079_v21, %v6540_v58  ;;  %6905 = vmatpush.msra.mxu1 %v6816_v8  ;;  %v6794_v58 = vld [vmem:[%s10051_s26 + $0xc0] sm:$0xff]  ;;  %v6773_v52 = vld [vmem:[%s10051_s26 + $0x18] sm:$0xff] }
0x112d   : > { %v6501_v63 = vsub.f32 1.5, %v6500_v2  ;;  %6868 = vmatpush.msra.mxu0 %v6796_v24  ;;  %v6810_v2 = vld [vmem:[%s10051_s26 + $0x140] sm:$0xff] }
0x112e   : > { %v8518_v46 = vpop.eup %8517  ;;  %v6455_v48 = vadd.f32 1e-05, %v6447_v14  ;;  %v13114_v27 = vadd.f32 %v13084_v12, %v6551_v62  ;;  %6906 = vmatpush.msra.mxu1 %v6815_v40  ;;  %v6793_v14 = vld [vmem:[%s10051_s26 + $0xb8] sm:$0xff] }
0x112f   : > { %v6502_v16 = vmul.f32 %v8516_v37, %v6501_v63  ;;  %v6508_v50 = vmul.f32 %v8518_v46, %v6454_v5  ;;  %vm6514_vm2 = vweird.f32 %v8518_v46  ;;  %v6776_v5 = vld [vmem:[%s10051_s26 + $0x30] sm:$0xff]  ;;  %6869 = vmatpush.msra.mxu0 %v6795_v19  ;;  %v6809_v62 = vld [vmem:[%s10051_s26 + $0x138] sm:$0xff] }
0x1130   : > { %8519 = vrsqrt.f32 %v6455_v48  ;;  %6648 = vmatmul.f32.gmra.mxu0 %v13114_v27  ;;  %6689 = vmatmul.f32.gmra.mxu1 %v13114_v27  ;;  %vm6515_vm7 = vmor %vm6513_vm6, %vm6514_vm2  ;;  %vm6523_vm9 = vweird.f32 %v6455_v48  ;;  %v6772_v63 = vld [vmem:[%s10051_s26 + $0x10] sm:$0xff] }
0x1131   : > { %v6506_v35 = vsel %vm6505_vm5, %v8516_v37, %v6502_v16  ;;  %v6509_v39 = vmul.f32 %v8518_v46, %v6508_v50  ;;  %6730 = vmatmul.f32.gmra.mxu2 %v13114_v27  ;;  %6907 = vmatpush.msra.mxu1 %v6814_v36  ;;  %v6813_v37 = vld [vmem:[%s10051_s26 + $0x158] sm:$0xff]  ;;  %v6771_v16 = vld [vmem:[%s10051_s26 + $0x8] sm:$0xff]  ;;  %v13200_v36 = vperm.slane %v6615_v9, 2 }
0x1132   : > { %v6541_v3 = vmul.f32 %v6506_v35, %v13010_v59  ;;  %6870 = vmatpush.msra.mxu0 %v6794_v58  ;;  %v6791_v50 = vld [vmem:[%s10051_s26 + $0xa8] sm:$0xff] }
0x1133   : > { %v6510_v60 = vmul.f32 0.5, %v6509_v39  ;;  %6908 = vmatpush.msra.mxu1 %v6813_v37  ;;  %v6807_v35 = vld [vmem:[%s10051_s26 + $0x128] sm:$0xff]  ;;  %v6770_v39 = vld [vmem:[%s10051_s26] sm:$0xff] }
0x1134   : > { %v6552_v10 = vmul.f32 %v13079_v21, %v6541_v3  ;;  %6871 = vmatpush.msra.mxu0 %v6793_v14  ;;  %v6790_v3 = vld [vmem:[%s10051_s26 + $0xa0] sm:$0xff] }
0x1135   : > { %v6511_v43 = vsub.f32 1.5, %v6510_v60  ;;  %6909 = vmatpush.msra.mxu1 %v6812_v38  ;;  %v6806_v60 = vld [vmem:[%s10051_s26 + $0x120] sm:$0xff] }
0x1136   : > { %v8520_v4 = vpop.eup %8519  ;;  %v13122_v11 = vadd.f32 %v13084_v12, %v6552_v10  ;;  %v6789_v10 = vld [vmem:[%s10051_s26 + $0x98] sm:$0xff] }
0x1137   : > { %v6512_v53 = vmul.f32 %v8518_v46, %v6511_v43  ;;  %v6518_v7 = vmul.f32 %v8520_v4, %v6455_v48  ;;  %vm6524_vm8 = vweird.f32 %v8520_v4  ;;  %6910 = vmatpush.msra.mxu1 %v6811_v18  ;;  %v6808_v48 = vld [vmem:[%s10051_s26 + $0x130] sm:$0xff]  ;;  %v6805_v43 = vld [vmem:[%s10051_s26 + $0x118] sm:$0xff] }
0x1138   : > { %6651 = vmatmul.f32.gmra.mxu0 %v13122_v11  ;;  %6692 = vmatmul.f32.gmra.mxu1 %v13122_v11  ;;  %vm6525_vm11 = vmor %vm6523_vm9, %vm6524_vm8 }
0x1139   : > { %v6516_v20 = vsel %vm6515_vm7, %v8518_v46, %v6512_v53  ;;  %v6519_v23 = vmul.f32 %v8520_v4, %v6518_v7  ;;  %6733 = vmatmul.f32.gmra.mxu2 %v13122_v11  ;;  %6911 = vmatpush.msra.mxu1 %v6810_v2  ;;  %v6792_v46 = vld [vmem:[%s10051_s26 + $0xb0] sm:$0xff] }
0x113a   : > { %v6542_v59 = vmul.f32 %v6516_v20, %v13017_v45  ;;  %6872 = vmatpush.msra.mxu0 %v6792_v46  ;;  %v6788_v53 = vld [vmem:[%s10051_s26 + $0x90] sm:$0xff] }
0x113b   : > { %v6520_v55 = vmul.f32 0.5, %v6519_v23  ;;  %6912 = vmatpush.msra.mxu1 %v6809_v62  ;;  %v6804_v7 = vld [vmem:[%s10051_s26 + $0x110] sm:$0xff]  ;;  %v6787_v23 = vld [vmem:[%s10051_s26 + $0x88] sm:$0xff] }
0x113c   : > { %v6553_v61 = vmul.f32 %v13079_v21, %v6542_v59  ;;  %6873 = vmatpush.msra.mxu0 %v6791_v50  ;;  %v6803_v59 = vld [vmem:[%s10051_s26 + $0x108] sm:$0xff] }
0x113d   : > { %v6521_v15 = vsub.f32 1.5, %v6520_v55  ;;  %6913 = vmatpush.msra.mxu1 %v6808_v48 }
0x113e   : > { %v13130_v17 = vadd.f32 %v13084_v12, %v6553_v61  ;;  %6874 = vmatpush.msra.mxu0 %v6790_v3  ;;  %v6786_v61 = vld [vmem:[%s10051_s26 + $0x80] sm:$0xff] }
0x113f   : > { %v6522_v42 = vmul.f32 %v8520_v4, %v6521_v15  ;;  %6914 = vmatpush.msra.mxu1 %v6807_v35  ;;  %v6802_v15 = vld [vmem:[%s10051_s26 + $0x100] sm:$0xff] }
0x1140   : > { %6654 = vmatmul.f32.gmra.mxu0 %v13130_v17  ;;  %6695 = vmatmul.f32.gmra.mxu1 %v13130_v17 }
0x1141   : > { %v6526_v45 = vsel %vm6525_vm11, %v8520_v4, %v6522_v42  ;;  %6736 = vmatmul.f32.gmra.mxu2 %v13130_v17  ;;  %6915 = vmatpush.msra.mxu1 %v6806_v60 }
0x1142   : > { %v6543_v1 = vmul.f32 %v6526_v45, %v13024_v47  ;;  %v6781_v47 = vld [vmem:[%s10051_s26 + $0x58] sm:$0xff]  ;;  %6875 = vmatpush.msra.mxu0 %v6789_v10 }
0x1143   : > { %6826 = vmatpush.msra.mxu3 %v6781_v47  ;;  %6916 = vmatpush.msra.mxu1 %v6805_v43 }
0x1144   : > { %v6554_v51 = vmul.f32 %v13079_v21, %v6543_v1  ;;  %6876 = vmatpush.msra.mxu0 %v6788_v53 }
0x1145   : > { %6827 = vmatpush.msra.mxu3 %v6780_v44  ;;  %6917 = vmatpush.msra.mxu1 %v6804_v7 }
0x1146   : > { %v13138_v25 = vadd.f32 %v13084_v12, %v6554_v51  ;;  %6877 = vmatpush.msra.mxu0 %v6787_v23 }
0x1147   : > { %6828 = vmatpush.msra.mxu3 %v6779_v33  ;;  %6918 = vmatpush.msra.mxu1 %v6803_v59 }
0x1148   : > { %6657 = vmatmul.f32.gmra.mxu0 %v13138_v25  ;;  %6698 = vmatmul.f32.gmra.mxu1 %v13138_v25 }
0x1149   : > { %6739 = vmatmul.f32.gmra.mxu2 %v13138_v25  ;;  %6829 = vmatpush.msra.mxu3 %v6778_v41  ;;  %v13195_v41 = vperm.slane %v6615_v9, 1 }
0x114a   : > { %6878 = vmatpush.msra.mxu0 %v6786_v61  ;;  %6919 = vmatpush.msra.mxu1 %v6802_v15 }
0x114b   : > { %6830 = vmatpush.msra.mxu3 %v6777_v26 }
0x114d   : > { %6831 = vmatpush.msra.mxu3 %v6776_v5 }
0x114f   : > { %6832 = vmatpush.msra.mxu3 %v6775_v6 }
0x1151   : > { %6833 = vmatpush.msra.mxu3 %v6774_v30 }
0x1153   : > { %6834 = vmatpush.msra.mxu3 %v6773_v52 }
0x1155   : > { %6835 = vmatpush.msra.mxu3 %v6772_v63 }
0x1157   : > { %6836 = vmatpush.msra.mxu3 %v6771_v16 }
0x1159   : > { %6837 = vmatpush.msra.mxu3 %v6770_v39 }
0x117e   : > { %v6440_v4 = vpop.xlane.xlu2 %6439 }
0x117f   : > { %v6448_v20 = vmul.f32 0.01, %v6440_v4 }
0x1181   : > { %v6456_v55 = vadd.f32 1e-05, %v6448_v20 }
0x1183   : > { %8521 = vrsqrt.f32 %v6456_v55  ;;  %vm6533_vm13 = vweird.f32 %v6456_v55 }
0x1189   : > { %v8522_v42 = vpop.eup %8521 }
0x118a   : > { %v6528_v45 = vmul.f32 %v8522_v42, %v6456_v55  ;;  %vm6534_vm12 = vweird.f32 %v8522_v42 }
0x118b   : > { %vm6535_vm14 = vmor %vm6533_vm13, %vm6534_vm12 }
0x118c   : > { %v6529_v1 = vmul.f32 %v8522_v42, %v6528_v45 }
0x118e   : > { %v6530_v51 = vmul.f32 0.5, %v6529_v1 }
0x1190   : > { %v6531_v56 = vsub.f32 1.5, %v6530_v51 }
0x1192   : > { %v6532_v47 = vmul.f32 %v8522_v42, %v6531_v56 }
0x1194   : > { %v6536_v28 = vsel %vm6535_vm14, %v8522_v42, %v6532_v47 }
0x1195   : > { %v6544_v44 = vmul.f32 %v6536_v28, %v13073_v32  ;;  %v6640_v34 = vpop.f32.mrf.mxu0  ;;  %v6681_v8 = vpop.f32.mrf.mxu1 }
0x1196   : > { %v6641_v33 = vadd.f32 %v6640_v34, %v13190_v31  ;;  %v6682_v26 = vadd.f32 %v6681_v8, %v13195_v41 }
0x1197   : > { %v6555_v0 = vmul.f32 %v13079_v21, %v6544_v44 }
0x1198   : > { %v6746_v40 = vmax.f32 %v6641_v33, 0.0  ;;  %v6747_v24 = vmax.f32 %v6682_v26, 0.0 }
0x1199   : > { %v13198_v13 = vadd.f32 %v13084_v12, %v6555_v0 }
0x119a   : > { %6838 = vmatmul.f32.vlgmr.msra.gmra.mxu3 %v6746_v40 }
0x119b   : > { %6660 = vmatmul.f32.gmra.mxu0 %v13198_v13  ;;  %6701 = vmatmul.f32.gmra.mxu1 %v13198_v13 }
0x119c   : > { %v6722_v32 = vpop.f32.mrf.mxu2  ;;  %6742 = vmatmul.f32.gmra.mxu2 %v13198_v13 }
0x119d   : > { %v6723_v21 = vadd.f32 %v6722_v32, %v13200_v36  ;;  %v6643_v29 = vpop.f32.mrf.mxu0  ;;  %v6684_v37 = vpop.f32.mrf.mxu1 }
0x119e   : > { %v6644_v5 = vadd.f32 %v6643_v29, %v13190_v31  ;;  %v6685_v19 = vadd.f32 %v6684_v37, %v13195_v41 }
0x119f   : > { %v6748_v38 = vmax.f32 %v6723_v21, 0.0 }
0x11a0   : > { %v6749_v12 = vmax.f32 %v6644_v5, 0.0  ;;  %v6750_v14 = vmax.f32 %v6685_v19, 0.0 }
0x11a2   : > { %6841 = vmatmul.f32.gmra.mxu3 %v6749_v12 }
0x11a3   : > { %6879 = vmatmul.f32.vlgmr.msra.gmra.mxu0 %v6747_v24  ;;  %6920 = vmatmul.f32.vlgmr.msra.gmra.mxu1 %v6748_v38 }
0x11a4   : > { %v6725_v6 = vpop.f32.mrf.mxu2 }
0x11a5   : > { %v6726_v18 = vadd.f32 %v6725_v6, %v13200_v36  ;;  %v6646_v30 = vpop.f32.mrf.mxu0  ;;  %v6687_v58 = vpop.f32.mrf.mxu1 }
0x11a6   : > { %v6647_v2 = vadd.f32 %v6646_v30, %v13190_v31  ;;  %v6688_v46 = vadd.f32 %v6687_v58, %v13195_v41 }
0x11a7   : > { %v6751_v62 = vmax.f32 %v6726_v18, 0.0  ;;  %v13229_v18 = vld [vmem:[%s13691_s10] ss:$0 sm:$0xff] }
0x11a8   : > { %v6752_v52 = vmax.f32 %v6647_v2, 0.0  ;;  %v6753_v3 = vmax.f32 %v6688_v46, 0.0 }
0x11aa   : > { %6844 = vmatmul.f32.gmra.mxu3 %v6752_v52 }
0x11ab   : > { %6882 = vmatmul.f32.gmra.mxu0 %v6750_v14  ;;  %6923 = vmatmul.f32.gmra.mxu1 %v6751_v62 }
0x11ac   : > { %v6728_v63 = vpop.f32.mrf.mxu2 }
0x11ad   : > { %v6729_v48 = vadd.f32 %v6728_v63, %v13200_v36  ;;  %v6649_v16 = vpop.f32.mrf.mxu0  ;;  %v6690_v50 = vpop.f32.mrf.mxu1 }
0x11ae   : > { %v6650_v35 = vadd.f32 %v6649_v16, %v13190_v31  ;;  %v6691_v43 = vadd.f32 %v6690_v50, %v13195_v41 }
0x11af   : > { %v6754_v60 = vmax.f32 %v6729_v48, 0.0 }
0x11b0   : > { %v6755_v39 = vmax.f32 %v6650_v35, 0.0  ;;  %v6756_v59 = vmax.f32 %v6691_v43, 0.0 }
0x11b2   : > { %6847 = vmatmul.f32.gmra.mxu3 %v6755_v39 }
0x11b3   : > { %6885 = vmatmul.f32.gmra.mxu0 %v6753_v3  ;;  %6926 = vmatmul.f32.gmra.mxu1 %v6754_v60 }
0x11b4   : > { %v6731_v10 = vpop.f32.mrf.mxu2 }
0x11b5   : > { %v6732_v4 = vadd.f32 %v6731_v10, %v13200_v36  ;;  %v6652_v53 = vpop.f32.mrf.mxu0  ;;  %v6693_v20 = vpop.f32.mrf.mxu1 }
0x11b6   : > { %v6653_v7 = vadd.f32 %v6652_v53, %v13190_v31  ;;  %v6694_v15 = vadd.f32 %v6693_v20, %v13195_v41 }
0x11b7   : > { %v6757_v55 = vmax.f32 %v6732_v4, 0.0 }
0x11b8   : > { %v6758_v23 = vmax.f32 %v6653_v7, 0.0  ;;  %v6759_v56 = vmax.f32 %v6694_v15, 0.0 }
0x11ba   : > { %6850 = vmatmul.f32.gmra.mxu3 %v6758_v23 }
0x11bb   : > { %6888 = vmatmul.f32.gmra.mxu0 %v6756_v59  ;;  %6929 = vmatmul.f32.gmra.mxu1 %v6757_v55 }
0x11bc   : > { %v6734_v61 = vpop.f32.mrf.mxu2 }
0x11bd   : > { %v6735_v42 = vadd.f32 %v6734_v61, %v13200_v36  ;;  %v6655_v45 = vpop.f32.mrf.mxu0  ;;  %v6696_v9 = vpop.f32.mrf.mxu1 }
0x11be   : > { %v6656_v1 = vadd.f32 %v6655_v45, %v13190_v31  ;;  %v6697_v44 = vadd.f32 %v6696_v9, %v13195_v41 }
0x11bf   : > { %v6760_v47 = vmax.f32 %v6735_v42, 0.0 }
0x11c0   : > { %v6761_v51 = vmax.f32 %v6656_v1, 0.0  ;;  %v6762_v40 = vmax.f32 %v6697_v44, 0.0 }
0x11c2   : > { %6853 = vmatmul.f32.gmra.mxu3 %v6761_v51 }
0x11c3   : > { %6891 = vmatmul.f32.gmra.mxu0 %v6759_v56  ;;  %6932 = vmatmul.f32.gmra.mxu1 %v6760_v47 }
0x11c4   : > { %v6737_v28 = vpop.f32.mrf.mxu2 }
0x11c5   : > { %v6738_v34 = vadd.f32 %v6737_v28, %v13200_v36  ;;  %v6658_v8 = vpop.f32.mrf.mxu0  ;;  %v6699_v26 = vpop.f32.mrf.mxu1 }
0x11c6   : > { %v6659_v33 = vadd.f32 %v6658_v8, %v13190_v31  ;;  %v6700_v29 = vadd.f32 %v6699_v26, %v13195_v41 }
0x11c7   : > { %v6763_v32 = vmax.f32 %v6738_v34, 0.0 }
0x11c8   : > { %v6764_v0 = vmax.f32 %v6659_v33, 0.0  ;;  %v6765_v5 = vmax.f32 %v6700_v29, 0.0 }
0x11ca   : > { %6856 = vmatmul.f32.gmra.mxu3 %v6764_v0 }
0x11cb   : > { %6894 = vmatmul.f32.gmra.mxu0 %v6762_v40  ;;  %6935 = vmatmul.f32.gmra.mxu1 %v6763_v32 }
0x11cc   : > { %v6740_v21 = vpop.f32.mrf.mxu2 }
0x11cd   : > { %v6741_v37 = vadd.f32 %v6740_v21, %v13200_v36 }
0x11cf   : > { %v6766_v12 = vmax.f32 %v6741_v37, 0.0 }
0x11d3   : > { %6897 = vmatmul.f32.gmra.mxu0 %v6765_v5  ;;  %6938 = vmatmul.f32.gmra.mxu1 %v6766_v12 }
0x1218   : > { %v6661_v24 = vpop.f32.mrf.mxu0  ;;  %v6702_v38 = vpop.f32.mrf.mxu1 }
0x1219   : > { %v6662_v6 = vadd.f32 %v6661_v24, %v13190_v31  ;;  %v6703_v19 = vadd.f32 %v6702_v38, %v13195_v41 }
0x121b   : > { %v6767_v30 = vmax.f32 %v6662_v6, 0.0  ;;  %v6768_v58 = vmax.f32 %v6703_v19, 0.0 }
0x121d   : > { %v6839_v2 = vpop.f32.mrf.mxu3  ;;  %6859 = vmatmul.f32.gmra.mxu3 %v6767_v30  ;;  %6900 = vmatmul.f32.gmra.mxu0 %v6768_v58 }
0x121e   : > { %v6840_v52 = vadd.f32 %v13229_v18, %v6839_v2 }
0x121f   : > { %v6743_v14 = vpop.f32.mrf.mxu2 }
0x1220   : > { %v6744_v62 = vadd.f32 %v6743_v14, %v13200_v36  ;;  %v6880_v63 = vpop.f32.mrf.mxu0  ;;  %v6921_v46 = vpop.f32.mrf.mxu1 }
0x1221   : > { %v6881_v48 = vadd.f32 %v6880_v63, %v6840_v52 }
0x1222   : > { %v6769_v16 = vmax.f32 %v6744_v62, 0.0 }
0x1223   : > { %v6922_v31 = vadd.f32 %v6921_v46, %v6881_v48 }
0x1224   : > { %6941 = vmatmul.f32.gmra.mxu1 %v6769_v16 }
0x1225   : > { %v6945_v41 = vadd.f32 %v6922_v31, %v13088_v54  ;;  %v6842_v50 = vpop.f32.mrf.mxu3 }
0x1226   : > { %v6843_v35 = vadd.f32 %v13229_v18, %v6842_v50 }
0x1227   : > { %6955 = vadd.xlane.f32.xlu0 %v6945_v41 }
0x1228   : > { %v6883_v39 = vpop.f32.mrf.mxu0  ;;  %v6924_v3 = vpop.f32.mrf.mxu1 }
0x1229   : > { %v6884_v60 = vadd.f32 %v6883_v39, %v6843_v35 }
0x122b   : > { %v6925_v10 = vadd.f32 %v6924_v3, %v6884_v60 }
0x122d   : > { %v6946_v43 = vadd.f32 %v6925_v10, %v13096_v57  ;;  %v6845_v4 = vpop.f32.mrf.mxu3 }
0x122e   : > { %v6846_v36 = vadd.f32 %v13229_v18, %v6845_v4 }
0x122f   : > { %6957 = vadd.xlane.f32.xlu1 %v6946_v43 }
0x1230   : > { %v6886_v53 = vpop.f32.mrf.mxu0  ;;  %v6927_v7 = vpop.f32.mrf.mxu1 }
0x1231   : > { %v6887_v20 = vadd.f32 %v6886_v53, %v6846_v36 }
0x1233   : > { %v6928_v23 = vadd.f32 %v6927_v7, %v6887_v20 }
0x1235   : > { %v6947_v54 = vadd.f32 %v6928_v23, %v13104_v49  ;;  %v6848_v59 = vpop.f32.mrf.mxu3 }
0x1236   : > { %v6849_v55 = vadd.f32 %v13229_v18, %v6848_v59 }
0x1237   : > { %6959 = vadd.xlane.f32.xlu2 %v6947_v54 }
0x1238   : > { %v6889_v61 = vpop.f32.mrf.mxu0  ;;  %v6930_v15 = vpop.f32.mrf.mxu1 }
0x1239   : > { %v6890_v42 = vadd.f32 %v6889_v61, %v6849_v55 }
0x123b   : > { %v6931_v45 = vadd.f32 %v6930_v15, %v6890_v42 }
0x123d   : > { %v6948_v57 = vadd.f32 %v6931_v45, %v13114_v27  ;;  %v6851_v1 = vpop.f32.mrf.mxu3 }
0x123e   : > { %v6852_v51 = vadd.f32 %v13229_v18, %v6851_v1 }
0x123f   : > { %6961 = vadd.xlane.f32.xlu0 %v6948_v57 }
0x1240   : > { %v6892_v9 = vpop.f32.mrf.mxu0  ;;  %v6933_v56 = vpop.f32.mrf.mxu1 }
0x1241   : > { %v6893_v47 = vadd.f32 %v6892_v9, %v6852_v51 }
0x1243   : > { %v6934_v28 = vadd.f32 %v6933_v56, %v6893_v47 }
0x1245   : > { %v6949_v49 = vadd.f32 %v6934_v28, %v13122_v11  ;;  %v6854_v44 = vpop.f32.mrf.mxu3 }
0x1246   : > { %v6855_v34 = vadd.f32 %v13229_v18, %v6854_v44 }
0x1247   : > { %6963 = vadd.xlane.f32.xlu1 %v6949_v49 }
0x1248   : > { %v6895_v8 = vpop.f32.mrf.mxu0  ;;  %v6936_v33 = vpop.f32.mrf.mxu1 }
0x1249   : > { %v6896_v0 = vadd.f32 %v6895_v8, %v6855_v34 }
0x124b   : > { %v6937_v40 = vadd.f32 %v6936_v33, %v6896_v0 }
0x124d   : > { %v6950_v27 = vadd.f32 %v6937_v40, %v13130_v17  ;;  %v6857_v32 = vpop.f32.mrf.mxu3 }
0x124e   : > { %v6858_v26 = vadd.f32 %v13229_v18, %v6857_v32 }
0x124f   : > { %6965 = vadd.xlane.f32.xlu2 %v6950_v27 }
0x1250   : > { %v6898_v21 = vpop.f32.mrf.mxu0  ;;  %v6939_v37 = vpop.f32.mrf.mxu1 }
0x1251   : > { %v6899_v29 = vadd.f32 %v6898_v21, %v6858_v26 }
0x1253   : > { %v6940_v5 = vadd.f32 %v6939_v37, %v6899_v29 }
0x1255   : > { %v6951_v11 = vadd.f32 %v6940_v5, %v13138_v25 }
0x1257   : > { %6967 = vadd.xlane.f32.xlu0 %v6951_v11 }
0x129a   : > { %v6956_v12 = vpop.xlane.xlu0 %6955  ;;  %v6901_v58 = vpop.f32.mrf.mxu0 }
0x129b   : > { %v6971_v24 = vmul.f32 0.01, %v6956_v12  ;;  %v13298_v12 = vld [vmem:[%s1397_s9] ss:$0 sm:$0xff] }
0x129d   : > { %v6979_v38 = vsub.f32 %v6945_v41, %v6971_v24 }
0x129f   : > { %v13248_v6 = vsel %vm1643_vm10, %v6979_v38, 0.0 }
0x12a0   : > { %v6860_v19 = vpop.f32.mrf.mxu3  ;;  %v6995_v17 = vmul.f32 %v13248_v6, %v13248_v6 }
0x12a1   : > { %v6861_v30 = vadd.f32 %v13229_v18, %v6860_v19  ;;  %v6942_v25 = vpop.f32.mrf.mxu1  ;;  %v13302_v19 = vld [vmem:[%s1406_s8] ss:$0 sm:$0xff] }
0x12a2   : > { %v6958_v2 = vpop.xlane.xlu1 %6957  ;;  %7003 = vadd.xlane.f32.xlu2 %v6995_v17 }
0x12a3   : > { %v6902_v52 = vadd.f32 %v6901_v58, %v6861_v30  ;;  %v6972_v14 = vmul.f32 0.01, %v6958_v2 }
0x12a5   : > { %v6943_v62 = vadd.f32 %v6942_v25, %v6902_v52  ;;  %v6980_v63 = vsub.f32 %v6946_v43, %v6972_v14 }
0x12a7   : > { %v6952_v46 = vadd.f32 %v6943_v62, %v13198_v13  ;;  %v13256_v48 = vsel %vm1643_vm10, %v6980_v63, 0.0 }
0x12a8   : > { %v6996_v16 = vmul.f32 %v13256_v48, %v13256_v48 }
0x12a9   : > { %6969 = vadd.xlane.f32.xlu1 %v6952_v46 }
0x12aa   : > { %v6960_v31 = vpop.xlane.xlu2 %6959  ;;  %7005 = vadd.xlane.f32.xlu0 %v6996_v16 }
0x12ab   : > { %v6973_v18 = vmul.f32 0.01, %v6960_v31 }
0x12ad   : > { %v6981_v41 = vsub.f32 %v6947_v54, %v6973_v18 }
0x12af   : > { %v13262_v50 = vsel %vm1643_vm10, %v6981_v41, 0.0 }
0x12b0   : > { %v6997_v35 = vmul.f32 %v13262_v50, %v13262_v50 }
0x12b2   : > { %v6962_v13 = vpop.xlane.xlu0 %6961  ;;  %7007 = vadd.xlane.f32.xlu1 %v6997_v35 }
0x12b3   : > { %v6974_v39 = vmul.f32 0.01, %v6962_v13 }
0x12b5   : > { %v6982_v3 = vsub.f32 %v6948_v57, %v6974_v39 }
0x12b7   : > { %v13268_v60 = vsel %vm1643_vm10, %v6982_v3, 0.0 }
0x12b8   : > { %v6998_v10 = vmul.f32 %v13268_v60, %v13268_v60 }
0x12ba   : > { %v6964_v43 = vpop.xlane.xlu1 %6963  ;;  %7009 = vadd.xlane.f32.xlu2 %v6998_v10 }
0x12bb   : > { %v6975_v4 = vmul.f32 0.01, %v6964_v43 }
0x12bd   : > { %v6983_v36 = vsub.f32 %v6949_v49, %v6975_v4 }
0x12bf   : > { %v13274_v53 = vsel %vm1643_vm10, %v6983_v36, 0.0 }
0x12c0   : > { %v6999_v7 = vmul.f32 %v13274_v53, %v13274_v53 }
0x12c2   : > { %7011 = vadd.xlane.f32.xlu0 %v6999_v7  ;;  %v6966_v20 = vpop.xlane.xlu2 %6965 }
0x12c3   : > { %v6976_v23 = vmul.f32 0.01, %v6966_v20 }
0x12c5   : > { %v6984_v54 = vsub.f32 %v6950_v27, %v6976_v23 }
0x12c7   : > { %v13280_v59 = vsel %vm1643_vm10, %v6984_v54, 0.0 }
0x12c8   : > { %v7000_v55 = vmul.f32 %v13280_v59, %v13280_v59 }
0x12ca   : > { %v6968_v61 = vpop.xlane.xlu0 %6967  ;;  %7013 = vadd.xlane.f32.xlu1 %v7000_v55 }
0x12cb   : > { %v6977_v15 = vmul.f32 0.01, %v6968_v61 }
0x12cd   : > { %v6985_v42 = vsub.f32 %v6951_v11, %v6977_v15 }
0x12cf   : > { %v13286_v45 = vsel %vm1643_vm10, %v6985_v42, 0.0 }
0x12d0   : > { %v7001_v57 = vmul.f32 %v13286_v45, %v13286_v45 }
0x12d2   : > { %7015 = vadd.xlane.f32.xlu2 %v7001_v57 }
0x1315   : > { %v7004_v1 = vpop.xlane.xlu2 %7003 }
0x1316   : > { %v7019_v51 = vmul.f32 0.01, %v7004_v1 }
0x1318   : > { %v7027_v9 = vadd.f32 1e-05, %v7019_v51 }
0x131a   : > { %8523 = vrsqrt.f32 %v7027_v9  ;;  %vm7041_vm0 = vweird.f32 %v7027_v9 }
0x131c   : > { %v6970_v56 = vpop.xlane.xlu1 %6969 }
0x131d   : > { %v6978_v47 = vmul.f32 0.01, %v6970_v56  ;;  %v7006_v28 = vpop.xlane.xlu0 %7005 }
0x131e   : > { %v7020_v49 = vmul.f32 0.01, %v7006_v28 }
0x131f   : > { %v6986_v44 = vsub.f32 %v6952_v46, %v6978_v47 }
0x1320   : > { %v8524_v34 = vpop.eup %8523  ;;  %v7028_v8 = vadd.f32 1e-05, %v7020_v49 }
0x1321   : > { %v7036_v33 = vmul.f32 %v8524_v34, %v7027_v9  ;;  %v13292_v0 = vsel %vm1643_vm10, %v6986_v44, 0.0  ;;  %vm7042_vm15 = vweird.f32 %v8524_v34 }
0x1322   : > { %8525 = vrsqrt.f32 %v7028_v8  ;;  %v7002_v40 = vmul.f32 %v13292_v0, %v13292_v0  ;;  %vm7043_vm10 = vmor %vm7041_vm0, %vm7042_vm15  ;;  %vm7051_vm3 = vweird.f32 %v7028_v8 }
0x1323   : > { %v7037_v27 = vmul.f32 %v8524_v34, %v7036_v33 }
0x1324   : > { %7017 = vadd.xlane.f32.xlu0 %v7002_v40 }
0x1325   : > { %v7038_v32 = vmul.f32 0.5, %v7037_v27  ;;  %v7008_v26 = vpop.xlane.xlu1 %7007 }
0x1326   : > { %v7021_v21 = vmul.f32 0.01, %v7008_v26 }
0x1327   : > { %v7039_v29 = vsub.f32 1.5, %v7038_v32 }
0x1328   : > { %v8526_v37 = vpop.eup %8525  ;;  %v7029_v5 = vadd.f32 1e-05, %v7021_v21 }
0x1329   : > { %v7040_v11 = vmul.f32 %v8524_v34, %v7039_v29  ;;  %v7046_v22 = vmul.f32 %v8526_v37, %v7028_v8  ;;  %vm7052_vm1 = vweird.f32 %v8526_v37 }
0x132a   : > { %8527 = vrsqrt.f32 %v7029_v5  ;;  %vm7053_vm4 = vmor %vm7051_vm3, %vm7052_vm1  ;;  %vm7061_vm2 = vweird.f32 %v7029_v5 }
0x132b   : > { %v7044_v24 = vsel %vm7043_vm10, %v8524_v34, %v7040_v11  ;;  %v7047_v38 = vmul.f32 %v8526_v37, %v7046_v22 }
0x132c   : > { %v7115_v17 = vmul.f32 %v7044_v24, %v13248_v6 }
0x132d   : > { %v7048_v30 = vmul.f32 0.5, %v7047_v38  ;;  %v7010_v58 = vpop.xlane.xlu2 %7009 }
0x132e   : > { %v7126_v2 = vmul.f32 %v13298_v12, %v7115_v17  ;;  %v7022_v52 = vmul.f32 0.01, %v7010_v58 }
0x132f   : > { %v7049_v14 = vsub.f32 1.5, %v7048_v30 }
0x1330   : > { %v8528_v25 = vpop.eup %8527  ;;  %v13307_v62 = vadd.f32 %v13302_v19, %v7126_v2  ;;  %v7030_v63 = vadd.f32 1e-05, %v7022_v52 }
0x1331   : > { %v7050_v46 = vmul.f32 %v8526_v37, %v7049_v14  ;;  %v7056_v16 = vmul.f32 %v8528_v25, %v7029_v5  ;;  %vm7062_vm5 = vweird.f32 %v8528_v25 }
0x1332   : > { %7145 = vst [vmem:[#allocation2 + $0x30] sm:$0xff] %v13307_v62  ;;  %8529 = vrsqrt.f32 %v7030_v63  ;;  %vm7063_vm6 = vmor %vm7061_vm2, %vm7062_vm5  ;;  %vm7071_vm8 = vweird.f32 %v7030_v63 }
0x1333   : > { %v7054_v6 = vsel %vm7053_vm4, %v8526_v37, %v7050_v46  ;;  %v7057_v31 = vmul.f32 %v8528_v25, %v7056_v16 }
0x1334   : > { %v7116_v18 = vmul.f32 %v7054_v6, %v13256_v48 }
0x1335   : > { %v7058_v41 = vmul.f32 0.5, %v7057_v31  ;;  %v7012_v35 = vpop.xlane.xlu0 %7011 }
0x1336   : > { %v7127_v13 = vmul.f32 %v13298_v12, %v7116_v18  ;;  %v7023_v39 = vmul.f32 0.01, %v7012_v35 }
0x1337   : > { %v7059_v3 = vsub.f32 1.5, %v7058_v41 }
0x1338   : > { %v8530_v10 = vpop.eup %8529  ;;  %v13313_v43 = vadd.f32 %v13302_v19, %v7127_v13  ;;  %v7031_v4 = vadd.f32 1e-05, %v7023_v39 }
0x1339   : > { %v7060_v36 = vmul.f32 %v8528_v25, %v7059_v3  ;;  %v7066_v7 = vmul.f32 %v8530_v10, %v7030_v63  ;;  %vm7072_vm7 = vweird.f32 %v8530_v10 }
0x133a   : > { %7146 = vst [vmem:[#allocation2] sm:$0xff] %v13313_v43  ;;  %8531 = vrsqrt.f32 %v7031_v4  ;;  %vm7073_vm9 = vmor %vm7071_vm8, %vm7072_vm7  ;;  %vm7081_vm12 = vweird.f32 %v7031_v4 }
0x133b   : > { %v7064_v48 = vsel %vm7063_vm6, %v8528_v25, %v7060_v36  ;;  %v7067_v20 = vmul.f32 %v8530_v10, %v7066_v7 }
0x133c   : > { %v7117_v23 = vmul.f32 %v7064_v48, %v13262_v50 }
0x133d   : > { %v7068_v54 = vmul.f32 0.5, %v7067_v20  ;;  %v7014_v55 = vpop.xlane.xlu1 %7013 }
0x133e   : > { %v7128_v61 = vmul.f32 %v13298_v12, %v7117_v23  ;;  %v7024_v15 = vmul.f32 0.01, %v7014_v55 }
0x133f   : > { %v7069_v42 = vsub.f32 1.5, %v7068_v54 }
0x1340   : > { %v8532_v57 = vpop.eup %8531  ;;  %v13319_v1 = vadd.f32 %v13302_v19, %v7128_v61  ;;  %v7032_v51 = vadd.f32 1e-05, %v7024_v15 }
0x1341   : > { %v7070_v9 = vmul.f32 %v8530_v10, %v7069_v42  ;;  %v7076_v56 = vmul.f32 %v8532_v57, %v7031_v4  ;;  %vm7082_vm11 = vweird.f32 %v8532_v57 }
0x1342   : > { %7147 = vst [vmem:[#allocation2 + $0x18] sm:$0xff] %v13319_v1  ;;  %8533 = vrsqrt.f32 %v7032_v51  ;;  %vm7083_vm13 = vmor %vm7081_vm12, %vm7082_vm11  ;;  %vm7091_vm15 = vweird.f32 %v7032_v51 }
0x1343   : > { %v7074_v50 = vsel %vm7073_vm9, %v8530_v10, %v7070_v9  ;;  %v7077_v47 = vmul.f32 %v8532_v57, %v7076_v56 }
0x1344   : > { %v7118_v28 = vmul.f32 %v7074_v50, %v13268_v60 }
0x1345   : > { %v7078_v49 = vmul.f32 0.5, %v7077_v47  ;;  %v7016_v44 = vpop.xlane.xlu2 %7015 }
0x1346   : > { %v7129_v34 = vmul.f32 %v13298_v12, %v7118_v28  ;;  %v7025_v8 = vmul.f32 0.01, %v7016_v44 }
0x1347   : > { %v7079_v33 = vsub.f32 1.5, %v7078_v49 }
0x1348   : > { %v8534_v40 = vpop.eup %8533  ;;  %v13325_v27 = vadd.f32 %v13302_v19, %v7129_v34  ;;  %v7033_v32 = vadd.f32 1e-05, %v7025_v8 }
0x1349   : > { %v7080_v26 = vmul.f32 %v8532_v57, %v7079_v33  ;;  %v7086_v21 = vmul.f32 %v8534_v40, %v7032_v51  ;;  %vm7092_vm14 = vweird.f32 %v8534_v40 }
0x134a   : > { %7148 = vst [vmem:[#allocation2 + $0x10] sm:$0xff] %v13325_v27  ;;  %8535 = vrsqrt.f32 %v7033_v32  ;;  %vm7093_vm0 = vmor %vm7091_vm15, %vm7092_vm14  ;;  %vm7101_vm1 = vweird.f32 %v7033_v32 }
0x134b   : > { %v7084_v60 = vsel %vm7083_vm13, %v8532_v57, %v7080_v26  ;;  %v7087_v29 = vmul.f32 %v8534_v40, %v7086_v21 }
0x134c   : > { %v7119_v37 = vmul.f32 %v7084_v60, %v13274_v53 }
0x134d   : > { %v7088_v5 = vmul.f32 0.5, %v7087_v29 }
0x134e   : > { %v7130_v11 = vmul.f32 %v13298_v12, %v7119_v37 }
0x134f   : > { %v7089_v22 = vsub.f32 1.5, %v7088_v5 }
0x1350   : > { %v8536_v24 = vpop.eup %8535  ;;  %v13331_v38 = vadd.f32 %v13302_v19, %v7130_v11 }
0x1351   : > { %v7090_v17 = vmul.f32 %v8534_v40, %v7089_v22  ;;  %v7096_v30 = vmul.f32 %v8536_v24, %v7033_v32  ;;  %vm7102_vm10 = vweird.f32 %v8536_v24 }
0x1352   : > { %7149 = vst [vmem:[#allocation2 + $0x8] sm:$0xff] %v13331_v38  ;;  %vm7103_vm3 = vmor %vm7101_vm1, %vm7102_vm10 }
0x1353   : > { %v7094_v58 = vsel %vm7093_vm0, %v8534_v40, %v7090_v17  ;;  %v7097_v2 = vmul.f32 %v8536_v24, %v7096_v30 }
0x1354   : > { %v7120_v52 = vmul.f32 %v7094_v58, %v13280_v59 }
0x1355   : > { %v7098_v53 = vmul.f32 0.5, %v7097_v2 }
0x1356   : > { %v7131_v14 = vmul.f32 %v13298_v12, %v7120_v52 }
0x1357   : > { %v7099_v25 = vsub.f32 1.5, %v7098_v53 }
0x1358   : > { %v13337_v63 = vadd.f32 %v13302_v19, %v7131_v14 }
0x1359   : > { %v7100_v46 = vmul.f32 %v8536_v24, %v7099_v25 }
0x135a   : > { %7150 = vst [vmem:[#allocation2 + $0x20] sm:$0xff] %v13337_v63 }
0x135b   : > { %v7104_v16 = vsel %vm7103_vm3, %v8536_v24, %v7100_v46 }
0x135c   : > { %v7121_v6 = vmul.f32 %v7104_v16, %v13286_v45 }
0x135e   : > { %v7132_v31 = vmul.f32 %v13298_v12, %v7121_v6 }
0x1360   : > { %v13343_v59 = vadd.f32 %v13302_v19, %v7132_v31 }
0x1362   : > { %7151 = vst [vmem:[#allocation2 + $0x28] sm:$0xff] %v13343_v59 }
0x1397   : > { %v7018_v18 = vpop.xlane.xlu0 %7017 }
0x1398   : > { %v7026_v41 = vmul.f32 0.01, %v7018_v18 }
0x139a   : > { %v7034_v35 = vadd.f32 1e-05, %v7026_v41 }
0x139c   : > { %8537 = vrsqrt.f32 %v7034_v35  ;;  %vm7111_vm5 = vweird.f32 %v7034_v35 }
0x13a2   : > { %v8538_v13 = vpop.eup %8537 }
0x13a3   : > { %v7106_v39 = vmul.f32 %v8538_v13, %v7034_v35  ;;  %vm7112_vm4 = vweird.f32 %v8538_v13 }
0x13a4   : > { %vm7113_vm2 = vmor %vm7111_vm5, %vm7112_vm4 }
0x13a5   : > { %v7107_v3 = vmul.f32 %v8538_v13, %v7106_v39 }
0x13a7   : > { %v7108_v10 = vmul.f32 0.5, %v7107_v3 }
0x13a9   : > { %v7109_v4 = vsub.f32 1.5, %v7108_v10 }
0x13ab   : > { %v7110_v36 = vmul.f32 %v8538_v13, %v7109_v4 }
0x13ad   : > { %v7114_v45 = vsel %vm7113_vm2, %v8538_v13, %v7110_v36 }
0x13ae   : > { %v7122_v7 = vmul.f32 %v7114_v45, %v13292_v0 }
0x13b0   : > { %v7133_v48 = vmul.f32 %v13298_v12, %v7122_v7  ;;  %7156 = sbr.rel (%p7868_p6) target bundleno = 5221 (0x1465), region = 220 }
0x13b2   : > { %v13349_v20 = vadd.f32 %v13302_v19, %v7133_v48 }
0x13b4   : > { %7152 = vst [vmem:[#allocation2 + $0x38] sm:$0xff] %v13349_v20 }
0x13b5   : > { %v7172_v23 = vld [vmem:[#allocation38 + $0x78] sm:$0xff]  ;;  %v7171_v54 = vld [vmem:[#allocation38 + $0x70] sm:$0xff]  ;;  %v7170_v55 = vld [vmem:[#allocation38 + $0x68] sm:$0xff] }
0x13b6   : > { %7910 = vmatpush.msra.mxu2 %v7172_v23  ;;  %7911 = vmatpush.msra.mxu3 %v7172_v23  ;;  %v7169_v0 = vld [vmem:[#allocation38 + $0x60] sm:$0xff]  ;;  %v7168_v12 = vld [vmem:[#allocation38 + $0x58] sm:$0xff]  ;;  %v7167_v19 = vld [vmem:[#allocation38 + $0x50] sm:$0xff] }
0x13b7   : > { %7177 = vmatpush.msra.mxu0 %v7172_v23  ;;  %7909 = vmatpush.msra.mxu1 %v7172_v23  ;;  %v7166_v61 = vld [vmem:[#allocation38 + $0x48] sm:$0xff]  ;;  %v7165_v15 = vld [vmem:[#allocation38 + $0x40] sm:$0xff]  ;;  %v7164_v42 = vld [vmem:[#allocation38 + $0x38] sm:$0xff] }
0x13b8   : > { %7913 = vmatpush.msra.mxu2 %v7171_v54  ;;  %7914 = vmatpush.msra.mxu3 %v7171_v54  ;;  %v7163_v57 = vld [vmem:[#allocation38 + $0x30] sm:$0xff]  ;;  %v7162_v51 = vld [vmem:[#allocation38 + $0x28] sm:$0xff]  ;;  %v7161_v9 = vld [vmem:[#allocation38 + $0x20] sm:$0xff] }
0x13b9   : > { %7178 = vmatpush.msra.mxu0 %v7171_v54  ;;  %7912 = vmatpush.msra.mxu1 %v7171_v54  ;;  %v7160_v56 = vld [vmem:[#allocation38 + $0x18] sm:$0xff]  ;;  %v7159_v50 = vld [vmem:[#allocation38 + $0x10] sm:$0xff]  ;;  %v7158_v47 = vld [vmem:[#allocation38 + $0x8] sm:$0xff] }
0x13ba   : > { %7916 = vmatpush.msra.mxu2 %v7170_v55  ;;  %7917 = vmatpush.msra.mxu3 %v7170_v55  ;;  %v7157_v28 = vld [vmem:[#allocation38] sm:$0xff] }
0x13bb   : > { %7179 = vmatpush.msra.mxu0 %v7170_v55  ;;  %7915 = vmatpush.msra.mxu1 %v7170_v55  ;;  %v8568_v49 = vld [vmem:[#allocation39] ss:$0 sm:$0xff] }
0x13bc   : > { %7919 = vmatpush.msra.mxu2 %v7169_v0  ;;  %7920 = vmatpush.msra.mxu3 %v7169_v0 }
0x13bd   : > { %7180 = vmatpush.msra.mxu0 %v7169_v0  ;;  %7918 = vmatpush.msra.mxu1 %v7169_v0 }
0x13be   : > { %7922 = vmatpush.msra.mxu2 %v7168_v12  ;;  %7923 = vmatpush.msra.mxu3 %v7168_v12 }
0x13bf   : > { %7181 = vmatpush.msra.mxu0 %v7168_v12  ;;  %7921 = vmatpush.msra.mxu1 %v7168_v12 }
0x13c0   : > { %7925 = vmatpush.msra.mxu2 %v7167_v19  ;;  %7926 = vmatpush.msra.mxu3 %v7167_v19 }
0x13c1   : > { %7182 = vmatpush.msra.mxu0 %v7167_v19  ;;  %7924 = vmatpush.msra.mxu1 %v7167_v19 }
0x13c2   : > { %7928 = vmatpush.msra.mxu2 %v7166_v61  ;;  %7929 = vmatpush.msra.mxu3 %v7166_v61 }
0x13c3   : > { %7183 = vmatpush.msra.mxu0 %v7166_v61  ;;  %7927 = vmatpush.msra.mxu1 %v7166_v61 }
0x13c4   : > { %7931 = vmatpush.msra.mxu2 %v7165_v15  ;;  %7932 = vmatpush.msra.mxu3 %v7165_v15 }
0x13c5   : > { %7184 = vmatpush.msra.mxu0 %v7165_v15  ;;  %7930 = vmatpush.msra.mxu1 %v7165_v15 }
0x13c6   : > { %7934 = vmatpush.msra.mxu2 %v7164_v42  ;;  %7935 = vmatpush.msra.mxu3 %v7164_v42 }
0x13c7   : > { %7185 = vmatpush.msra.mxu0 %v7164_v42  ;;  %7933 = vmatpush.msra.mxu1 %v7164_v42 }
0x13c8   : > { %7937 = vmatpush.msra.mxu2 %v7163_v57  ;;  %7938 = vmatpush.msra.mxu3 %v7163_v57 }
0x13c9   : > { %7186 = vmatpush.msra.mxu0 %v7163_v57  ;;  %7936 = vmatpush.msra.mxu1 %v7163_v57 }
0x13ca   : > { %7940 = vmatpush.msra.mxu2 %v7162_v51  ;;  %7941 = vmatpush.msra.mxu3 %v7162_v51 }
0x13cb   : > { %7187 = vmatpush.msra.mxu0 %v7162_v51  ;;  %7939 = vmatpush.msra.mxu1 %v7162_v51 }
0x13cc   : > { %7943 = vmatpush.msra.mxu2 %v7161_v9  ;;  %7944 = vmatpush.msra.mxu3 %v7161_v9 }
0x13cd   : > { %7188 = vmatpush.msra.mxu0 %v7161_v9  ;;  %7942 = vmatpush.msra.mxu1 %v7161_v9 }
0x13ce   : > { %7946 = vmatpush.msra.mxu2 %v7160_v56  ;;  %7947 = vmatpush.msra.mxu3 %v7160_v56 }
0x13cf   : > { %7189 = vmatpush.msra.mxu0 %v7160_v56  ;;  %7945 = vmatpush.msra.mxu1 %v7160_v56 }
0x13d0   : > { %7949 = vmatpush.msra.mxu2 %v7159_v50  ;;  %7950 = vmatpush.msra.mxu3 %v7159_v50 }
0x13d1   : > { %7190 = vmatpush.msra.mxu0 %v7159_v50  ;;  %7948 = vmatpush.msra.mxu1 %v7159_v50 }
0x13d2   : > { %7952 = vmatpush.msra.mxu2 %v7158_v47  ;;  %7953 = vmatpush.msra.mxu3 %v7158_v47 }
0x13d3   : > { %7191 = vmatpush.msra.mxu0 %v7158_v47  ;;  %7951 = vmatpush.msra.mxu1 %v7158_v47 }
0x13d4   : > { %7955 = vmatpush.msra.mxu2 %v7157_v28  ;;  %7956 = vmatpush.msra.mxu3 %v7157_v28 }
0x13d5   : > { %7205 = vmatmul.f32.vlgmr.msra.gmra.mxu2 %v13331_v38  ;;  %7211 = vmatmul.f32.vlgmr.msra.gmra.mxu3 %v13343_v59 }
0x13d6   : > { %7192 = vmatpush.msra.mxu0 %v7157_v28  ;;  %7954 = vmatpush.msra.mxu1 %v7157_v28 }
0x13d7   : > { %7193 = vmatmul.f32.vlgmr.msra.gmra.mxu0 %v13307_v62  ;;  %7199 = vmatmul.f32.vlgmr.msra.gmra.mxu1 %v13319_v1 }
0x13dd   : > { %7208 = vmatmul.f32.gmra.mxu2 %v13337_v63  ;;  %7214 = vmatmul.f32.gmra.mxu3 %v13349_v20 }
0x13df   : > { %7196 = vmatmul.f32.gmra.mxu0 %v13313_v43  ;;  %7202 = vmatmul.f32.gmra.mxu1 %v13325_v27 }
0x1454   : > { %v7194_v44 = vpop.f32.mrf.mxu0  ;;  %v7200_v34 = vpop.f32.mrf.mxu1 }
0x1455   : > { %v7195_v8 = vadd.f32 %v8568_v49, %v7194_v44  ;;  %v7201_v33 = vadd.f32 %v8568_v49, %v7200_v34 }
0x1457   : > { %7218 = vst [vmem:[%s10089_s13] sm:$0xff] %v7195_v8 }
0x1458   : > { %7220 = vst [vmem:[%s10089_s13 + $0x10] sm:$0xff] %v7201_v33  ;;  %v7206_v62 = vpop.f32.mrf.mxu2  ;;  %v7212_v1 = vpop.f32.mrf.mxu3 }
0x1459   : > { %v7207_v40 = vadd.f32 %v8568_v49, %v7206_v62  ;;  %v7213_v32 = vadd.f32 %v8568_v49, %v7212_v1 }
0x145b   : > { %7222 = vst [vmem:[%s10089_s13 + $0x20] sm:$0xff] %v7207_v40 }
0x145c   : > { %7224 = vst [vmem:[%s10089_s13 + $0x30] sm:$0xff] %v7213_v32  ;;  %v7197_v43 = vpop.f32.mrf.mxu0  ;;  %v7203_v26 = vpop.f32.mrf.mxu1 }
0x145d   : > { %v7198_v27 = vadd.f32 %v8568_v49, %v7197_v43  ;;  %v7204_v21 = vadd.f32 %v8568_v49, %v7203_v26 }
0x145f   : > { %7219 = vst [vmem:[%s10089_s13 + $0x8] sm:$0xff] %v7198_v27 }
0x1460   : > { %7221 = vst [vmem:[%s10089_s13 + $0x18] sm:$0xff] %v7204_v21  ;;  %v7209_v60 = vpop.f32.mrf.mxu2  ;;  %v7215_v29 = vpop.f32.mrf.mxu3 }
0x1461   : > { %v7210_v37 = vadd.f32 %v8568_v49, %v7209_v60  ;;  %v7216_v5 = vadd.f32 %v8568_v49, %v7215_v29 }
0x1463   : > { %7223 = vst [vmem:[%s10089_s13 + $0x28] sm:$0xff] %v7210_v37 }
0x1464   : > { %7225 = vst [vmem:[%s10089_s13 + $0x38] sm:$0xff] %v7216_v5 }
0x1465 PF: > { %s13693_s25 = sld [smem:[#allocation63_spill]]  ;;  %s7239_s6 = sshll.u32 %s10089_s13, 4  ;;  %s7240_s6 = int_to_ptr.vmem [resolvable:$true] %s7239_s6 }
0x1466   : > { %s13695_s0 = sld [smem:[#allocation121_spill]]  ;;  %s7227_s29 = scalar_lea.sflag [#allocation5], %s9960_s18 }
0x146b   : > { %s7876_s1 = sshll.u32 %s13693_s25, 6 }
0x146c   : > { %s13696_s20 = smov %s13695_s0  ;;  %s7238_s28 = scalar_lea.hbm %s13695_s0, %s7876_s1 }
0x146d   : > { %s7241_s3 = sshll.u32 %s7238_s28, 4  ;;  %s9265_s22 = scalar_lea.hbm %s13696_s20, 128  ;;  %s7242_s3 = int_to_ptr.hbm [resolvable:$true] %s7241_s3 }
0x146e   : > { %s9259_s4 = sshra.s32 %s7242_s3, 4  ;;  %s9260_s4 = int_to_ptr.hbm [resolvable:$true] %s9259_s4 }
0x146f   : > { %s9261_s26 = scalar_lea.hbm %s9260_s4, 64  ;;  %p9266_p10 = scmp.lt.s32.totalorder %s9260_s4, %s13696_s20 }
0x1470   : > { %p9262_p13 = scmp.ne.s32.totalorder %s9260_s4, %s9261_s26  ;;  %p9267_p2 = scmp.lt.s32.totalorder %s9265_s22, %s9261_s26 }
0x1472   : > { %p9263_p0 = pnand %p9262_p13, %p9691_p8  ;;  %p9268_p9 = por %p9267_p2, %p9266_p10 }
0x1474   : > { %p9264_p5 = pneg %p9263_p0 }
0x1476   : > { %p9269_p7 = pnand %p9268_p9, %p9264_p5 }
0x1478   : > { %9272 = shalt.err (!%p9269_p7)
}
0x1479   : > { %s9440_s18 = smov 128   ;;  %s9441_s13 = smov 8  }
0x147a   : > { %8039 = dma.vmem_to_hbm [thread:$0]  (%p9691_p8), %s7240_s6, 1024, %s7242_s3, %s7227_s29, %s9440_s18, %s9440_s18, %s9441_s13  }
0x147b PF: > { %s13697_s15 = sld [smem:[#allocation64_spill]] }
0x147c   : > { %s13698_s21 = sld [smem:[#allocation60_spill]] }
0x1481   : > { %p8056_p1 = scmp.ge.s32.totalorder %s13697_s15, 2 }
0x1482   : > { %s7256_s14 = sand.u32 1, %s13698_s21  }
0x1483   : > { %p8049_p4 = pnand %p8056_p1, %p9698_p3  ;;  %s7257_s10 = scalar_lea.sflag [#allocation5], %s7256_s14 }
0x1485   : > { %p8050_p11 = pneg %p8049_p4 }
0x1487   : > { %9378 = dma.done.wait (%p8050_p11), %s7257_s10, 1024  }
0x1488   : > { %9380 = vsyncadd (%p8050_p11), %s7257_s10, 4294966272  ;;  %s74_s3 = sadd.s32 1, %s13697_s15   ;;  %s13700_s5 = sld [smem:[#allocation58_spill]] }
0x1489   : > { %p71_p12 = scmp.ge.s32.totalorder %s74_s3, 12   ;;  %s13701_s26 = sld [smem:[#allocation59_spill]] }
0x148a   : > { %s13702_s27 = sld [smem:[#allocation69_spill]]  ;;  %s13707_s6 = smov %s9403_s2 }
0x148b   : > { %s13703_s28 = sld [smem:[#allocation61_spill]]  ;;  %s13709_s29 = smov %s9415_s7 }
0x148c   : > { %s13704_s24 = sld [smem:[#allocation70_spill]]  ;;  %s13710_s0 = smov %s9419_s30 }
0x148d   : > { %s13705_s25 = sld [smem:[#allocation66_spill]] }
0x148e   : > { %s13706_s11 = sld [smem:[#allocation67_spill]] }
0x1490   :  { %73 = sbr.rel (!%p71_p12) target bundleno = 56 (0x38), region = 430 }
0x1492   : > { %s13708_s2 = smov %s13704_s24 }
0x1493   : > { %s13711_s7 = smov %s13705_s25 }
0x1494   : > { %s13712_s30 = smov %s13706_s11 }
0x1495   :  { %7263 = vsyncpa [#allocation4], 1 }
0x1496   :  { %7265 = vsyncpa [#allocation4 + $0x1], 1 }
0x1497   :  { %7266 = vsyncpa [#allocation7], 1 }
0x1498   :  { %7268 = vsyncpa [#allocation7 + $0x1], 1 }
0x1499   :  { %7269 = vsyncpa [#allocation10], 1 }
0x149a   :  { %7271 = vsyncpa [#allocation10 + $0x1], 1 }
0x149b   :  { %7272 = vsyncpa [#allocation13], 1 }
0x149c   :  { %7274 = vsyncpa [#allocation13 + $0x1], 1 }
0x149d   :  { %7275 = vsyncpa [#allocation16], 1 }
0x149e   :  { %7277 = vsyncpa [#allocation16 + $0x1], 1 }
0x149f   :  { %7278 = vsyncpa [#allocation19], 1 }
0x14a0   :  { %7280 = vsyncpa [#allocation19 + $0x1], 1 }
0x14a1   :  { %7281 = vsyncpa [#allocation22], 1 }
0x14a2   :  { %7283 = vsyncpa [#allocation22 + $0x1], 1 }
0x14a3   :  { %7284 = vsyncpa [#allocation25], 1 }
0x14a4   :  { %7286 = vsyncpa [#allocation25 + $0x1], 1 }
0x14a5   :  { %7287 = vsyncpa [#allocation28], 1 }
0x14a6   :  { %7289 = vsyncpa [#allocation28 + $0x1], 1 }
0x14a7   :  { %7290 = vsyncpa [#allocation31], 1 }
0x14a8   :  { %7292 = vsyncpa [#allocation31 + $0x1], 1 }
0x14a9   :  { %7293 = vsyncpa [#allocation34], 1 }
0x14aa   :  { %7295 = vsyncpa [#allocation34 + $0x1], 1 }
0x14ab   :  { %7296 = vsyncpa [#allocation37], 1 }
0x14ac   :  { %7298 = vsyncpa [#allocation37 + $0x1], 1 }
0x14ad   :  { %7299 = vsyncpa [#allocation40], 1 }
0x14ae   :  { %7300 = vsyncpa [#allocation5], 1 }
0x14af   :  { %7302 = vsyncpa [#allocation5 + $0x1], 1 }

</bundles_post_ra>
